<compile_context>
chip_gen: v5e
topology: v5e:2x2
jax: 0.10.0
libtpu: 0.0.40
codegen_flags: <defaults>
</compile_context>

<pallas_src>
import jax
import jax.numpy as jnp
from jax.experimental import pallas as pl
from jax.experimental.pallas import tpu as pltpu

NDF = 64                       # ndf from the PyTorch script
EPS = 1e-5                     # nn.BatchNorm2d default eps
NEG_SLOPE = 0.2                # LeakyReLU slope
VMEM_LIMIT = 16 * 1024 * 1024  # sized from actual usage (<3 MiB/call) + headroom


def _leaky_relu(x):
    return jnp.where(x >= 0, x, NEG_SLOPE * x)


# --------------------------- Pallas kernels ---------------------------------
def conv_lrelu_kernel(x_ref, w_ref, o_ref):
    """Layer 1: im2col-matmul conv + LeakyReLU. Tiled over M (grid axis 0)."""
    acc = jnp.dot(x_ref[...], w_ref[...], preferred_element_type=jnp.float32)
    o_ref[...] = _leaky_relu(acc).astype(o_ref.dtype)


def conv_bn_lrelu_kernel(x_ref, w_ref, g_ref, b_ref, o_ref, acc_ref):
    """Layers 2-3: conv + BatchNorm (training-mode batch stats) + LeakyReLU.

    Grid = (Cout tiles "parallel", K tiles "arbitrary").  The f32 accumulator
    holds the full M axis for this Cout tile, so per-channel batch statistics
    in the epilogue are exact.
    """
    k = pl.program_id(1)

    @pl.when(k == 0)
    def _():
        acc_ref[...] = jnp.zeros_like(acc_ref)

    acc_ref[...] += jnp.dot(x_ref[...], w_ref[...],
                            preferred_element_type=jnp.float32)

    @pl.when(k == pl.num_programs(1) - 1)
    def _():
        acc = acc_ref[...]                               # (M, tile_c) f32
        inv_m = 1.0 / acc.shape[0]
        mean = jnp.sum(acc, axis=0, keepdims=True) * inv_m
        xc = acc - mean                                  # two-pass variance
        var = jnp.sum(xc * xc, axis=0, keepdims=True) * inv_m
        y = xc * jax.lax.rsqrt(var + EPS)
        y = y * g_ref[...] + b_ref[...]
        o_ref[...] = _leaky_relu(y).astype(o_ref.dtype)


def conv_bn_lrelu_head_kernel(x_ref, w_ref, g_ref, b_ref, w5_ref, o_ref, acc_ref):
    """Layer 4 + fused layer 5: conv + BN + LeakyReLU + Conv(512->1,4x4) + Sigmoid.

    Grid = (K tiles "arbitrary") so w4's 4 MiB DMA is pipelined.  Epilogue
    reshapes the (M4, 512) activation to (N, 16, 512) (sublane-split only,
    no layout copy) and reduces against the (16, 512) w5 block.
    """
    k = pl.program_id(0)

    @pl.when(k == 0)
    def _():
        acc_ref[...] = jnp.zeros_like(acc_ref)

    acc_ref[...] += jnp.dot(x_ref[...], w_ref[...],
                            preferred_element_type=jnp.float32)

    @pl.when(k == pl.num_programs(0) - 1)
    def _():
        acc = acc_ref[...]                               # (M4, 512) f32
        inv_m = 1.0 / acc.shape[0]
        mean = jnp.sum(acc, axis=0, keepdims=True) * inv_m
        xc = acc - mean
        var = jnp.sum(xc * xc, axis=0, keepdims=True) * inv_m
        y = xc * jax.lax.rsqrt(var + EPS)
        y = _leaky_relu(y * g_ref[...] + b_ref[...])     # (M4, 512) f32

        n = o_ref.shape[0]
        hw = w5_ref.shape[0]                             # 16
        contrib = y.reshape(n, hw, y.shape[-1]) * w5_ref[...][None, :, :]
        per_img = jnp.sum(contrib, axis=1)               # (N, 512)
        logit = jnp.sum(per_img, axis=1, keepdims=True)  # (N, 1)
        o_ref[...] = (1.0 / (1.0 + jnp.exp(-logit))).astype(o_ref.dtype)


# --------------------------- pallas_call wrappers ----------------------------
def conv_lrelu(patches, w_mat):
    M, K = patches.shape
    cout = w_mat.shape[1]
    tile_m = M
    for t in (2048, 1024, 512, 256, 128):
        if M % t == 0:
            tile_m = t
            break
    return pl.pallas_call(
        conv_lrelu_kernel,
        out_shape=jax.ShapeDtypeStruct((M, cout), jnp.bfloat16),
        grid=(M // tile_m,),
        in_specs=[pl.BlockSpec((tile_m, K), lambda i: (i, 0)),
                  pl.BlockSpec((K, cout), lambda i: (0, 0))],
        out_specs=pl.BlockSpec((tile_m, cout), lambda i: (i, 0)),
        compiler_params=pltpu.CompilerParams(
            dimension_semantics=("parallel",),
            vmem_limit_bytes=VMEM_LIMIT),
    )(patches, w_mat)


def conv_bn_lrelu(patches, w_mat, gamma, beta, *, tile_c=128):
    M, K = patches.shape
    cout = w_mat.shape[1]
    tile_k = 512 if K % 512 == 0 else K
    n_c = cout // tile_c
    n_k = K // tile_k
    return pl.pallas_call(
        conv_bn_lrelu_kernel,
        out_shape=jax.ShapeDtypeStruct((M, cout), jnp.bfloat16),
        grid=(n_c, n_k),
        in_specs=[pl.BlockSpec((M, tile_k), lambda j, k: (0, k)),
                  pl.BlockSpec((tile_k, tile_c), lambda j, k: (k, j)),
                  pl.BlockSpec((1, tile_c), lambda j, k: (0, j)),
                  pl.BlockSpec((1, tile_c), lambda j, k: (0, j))],
        out_specs=pl.BlockSpec((M, tile_c), lambda j, k: (0, j)),
        scratch_shapes=[pltpu.VMEM((M, tile_c), jnp.float32)],
        compiler_params=pltpu.CompilerParams(
            dimension_semantics=("parallel", "arbitrary"),
            vmem_limit_bytes=VMEM_LIMIT),
    )(patches, w_mat, gamma, beta)


def conv_bn_lrelu_head(patches, w_mat, gamma, beta, w5_rows, n_img):
    M, K = patches.shape
    cout = w_mat.shape[1]
    hw = w5_rows.shape[0]
    tile_k = 1024 if K % 1024 == 0 else K
    n_k = K // tile_k
    return pl.pallas_call(
        conv_bn_lrelu_head_kernel,
        out_shape=jax.ShapeDtypeStruct((n_img, 1), jnp.float32),
        grid=(n_k,),
        in_specs=[pl.BlockSpec((M, tile_k), lambda k: (0, k)),
                  pl.BlockSpec((tile_k, cout), lambda k: (k, 0)),
                  pl.BlockSpec((1, cout), lambda k: (0, 0)),
                  pl.BlockSpec((1, cout), lambda k: (0, 0)),
                  pl.BlockSpec((hw, cout), lambda k: (0, 0))],
        out_specs=pl.BlockSpec((n_img, 1), lambda k: (0, 0)),
        scratch_shapes=[pltpu.VMEM((M, cout), jnp.float32)],
        compiler_params=pltpu.CompilerParams(
            dimension_semantics=("arbitrary",),
            vmem_limit_bytes=VMEM_LIMIT),
    )(patches, w_mat, gamma, beta, w5_rows)


# ------------------------------ JAX glue -------------------------------------
def im2col(x, k, stride, pad):
    """x: (N, H, W, C) -> patches (N*Ho*Wo, k*k*C) in (kh, kw, cin) order."""
    N, H, W, C = x.shape
    if pad:
        x = jnp.pad(x, ((0, 0), (pad, pad), (pad, pad), (0, 0)))
    Hp, Wp = H + 2 * pad, W + 2 * pad
    Ho = (Hp - k) // stride + 1
    Wo = (Wp - k) // stride + 1
    cols = []
    for kh in range(k):
        for kw in range(k):
            cols.append(x[:, kh:kh + stride * Ho:stride,
                          kw:kw + stride * Wo:stride, :])
    patches = jnp.concatenate(cols, axis=-1)                 # (N, Ho, Wo, k*k*C)
    return patches.reshape(N * Ho * Wo, k * k * C), N, Ho, Wo


def oihw_to_mat(w):
    """(Cout, Cin, KH, KW) -> (KH*KW*Cin, Cout), matching im2col patch order."""
    cout, cin, kh, kw = w.shape
    return jnp.transpose(w, (2, 3, 1, 0)).reshape(kh * kw * cin, cout)


def init_params(key, channels):
    """Deterministic synthetic parameters (DCGAN-style init)."""
    specs = [(NDF, channels), (NDF * 2, NDF), (NDF * 4, NDF * 2),
             (NDF * 8, NDF * 4), (1, NDF * 8)]
    params = []
    for co, ci in specs:
        key, k1, k2, k3 = jax.random.split(key, 4)
        w = 0.02 * jax.random.normal(k1, (co, ci, 4, 4), jnp.float32)
        gamma = 1.0 + 0.02 * jax.random.normal(k2, (co,), jnp.float32)
        beta = 0.02 * jax.random.normal(k3, (co,), jnp.float32)
        params.append((w, gamma, beta))
    return params


def discriminator_forward(x_nchw, params):
    """Matches nn.Sequential of the PyTorch Discriminator (training-mode BN)."""
    (w1, _, _), (w2, g2, b2), (w3, g3, b3), (w4, g4, b4), (w5, _, _) = params

    x = jnp.transpose(x_nchw, (0, 2, 3, 1)).astype(jnp.bfloat16)   # NCHW -> NHWC bf16

    # ---- layer 1: Conv(c->64, 4, 2, 1) + LeakyReLU --------------------------
    cin = x.shape[-1]
    cin_p = ((cin + 7) // 8) * 8            # K = 16*cin_p is a multiple of 128
    cout1_p = ((NDF + 127) // 128) * 128    # lane-dense output (128)
    x_p = jnp.pad(x, ((0, 0), (0, 0), (0, 0), (0, cin_p - cin)))
    patches, N, Ho, Wo = im2col(x_p, 4, 2, 1)
    w1p = jnp.pad(w1, ((0, cout1_p - NDF), (0, cin_p - cin), (0, 0), (0, 0)))
    y = conv_lrelu(patches, oihw_to_mat(w1p).astype(jnp.bfloat16))
    x = y[:, :NDF].reshape(N, Ho, Wo, NDF)                    # drop zero pad

    # ---- layer 2: Conv(64->128) + BN + LeakyReLU ----------------------------
    patches, N, Ho, Wo = im2col(x, 4, 2, 1)
    y = conv_bn_lrelu(patches, oihw_to_mat(w2).astype(jnp.bfloat16),
                      g2.reshape(1, -1), b2.reshape(1, -1))
    x = y.reshape(N, Ho, Wo, NDF * 2)

    # ---- layer 3: Conv(128->256) + BN + LeakyReLU ---------------------------
    patches, N, Ho, Wo = im2col(x, 4, 2, 1)
    y = conv_bn_lrelu(patches, oihw_to_mat(w3).astype(jnp.bfloat16),
                      g3.reshape(1, -1), b3.reshape(1, -1))
    x = y.reshape(N, Ho, Wo, NDF * 4)

    # ---- layer 4 + 5 fused: Conv(256->512)+BN+LReLU, Conv(512->1)+Sigmoid ---
    patches, N, Ho, Wo = im2col(x, 4, 2, 1)                   # Ho = Wo = 4
    w5_rows = jnp.transpose(w5[0], (1, 2, 0)).reshape(Ho * Wo, NDF * 8)
    out = conv_bn_lrelu_head(patches, oihw_to_mat(w4).astype(jnp.bfloat16),
                             g4.reshape(1, -1), b4.reshape(1, -1),
                             w5_rows.astype(jnp.float32), N)  # (N, 1)
    return out.reshape(N, 1, 1, 1)                            # back to NCHW


# ------------------------- float32 pure-JAX reference -------------------------
def reference_forward(x_nchw, params):
    def conv(x, w, stride, pad):
        w_hwio = jnp.transpose(w, (2, 3, 1, 0))
        return jax.lax.conv_general_dilated(
            x, w_hwio, window_strides=(stride, stride),
            padding=[(pad, pad), (pad, pad)],
            dimension_numbers=("NHWC", "HWIO", "NHWC"))

    def bn(x, g, b):
        mean = jnp.mean(x, axis=(0, 1, 2), keepdims=True)
        var = jnp.mean((x - mean) ** 2, axis=(0, 1, 2), keepdims=True)
        return (x - mean) * jax.lax.rsqrt(var + EPS) * g + b

    (w1, _, _), (w2, g2, b2), (w3, g3, b3), (w4, g4, b4), (w5, _, _) = params
    x = jnp.transpose(x_nchw, (0, 2, 3, 1)).astype(jnp.float32)
    x = _leaky_relu(conv(x, w1, 2, 1))
    x = _leaky_relu(bn(conv(x, w2, 2, 1), g2, b2))
    x = _leaky_relu(bn(conv(x, w3, 2, 1), g3, b3))
    x = _leaky_relu(bn(conv(x, w4, 2, 1), g4, b4))
    x = jax.nn.sigmoid(conv(x, w5, 1, 0))
    return jnp.transpose(x, (0, 3, 1, 2))                     # (N, 1, 1, 1)


if __name__ == "__main__":
    key = jax.random.PRNGKey(0)
    kx, kp = jax.random.split(key)

    # 64x64 input is required by the 4 stride-2 convs + final 4x4 valid conv.
    batch, channels, spatial = 2, 3, 64
    x = jax.random.normal(kx, (batch, channels, spatial, spatial), jnp.float32)
    params = init_params(kp, channels)

    out = jax.jit(discriminator_forward)(x, params)
    out = jax.block_until_ready(out)

    assert out.shape == (batch, 1, 1, 1), out.shape
    assert bool(jnp.all(jnp.isfinite(out)))
    assert bool(jnp.all((out >= 0.0) & (out <= 1.0)))   # sigmoid output range

    # Loose-tolerance check vs float32 reference (bf16 matmul operands).
    ref = reference_forward(x, params)
    err = float(jnp.max(jnp.abs(out.astype(jnp.float32) - ref)))
    assert err < 5e-2, f"max abs error vs reference: {err}"

    print("KERNEL_OK")
</pallas_src>

<mosaic_0001>
module attributes {stable_mosaic.version = 11 : i64} {
  func.func @conv_lrelu_kernel(%arg0: i32, %arg1: memref<2048x128xbf16, #tpu.memory_space<vmem>>, %arg2: memref<128x128xbf16, #tpu.memory_space<vmem>>, %arg3: memref<2048x128xbf16, #tpu.memory_space<vmem>>) attributes {dimension_semantics = [#tpu.dimension_semantics<parallel>], iteration_bounds = array<i64: 1>, scalar_prefetch = 0 : i64, scratch_operands = 0 : i64, tpu.core_type = #tpu.core_type<tc>, window_params = [{transform_indices = @transform_0, window_bounds = array<i64: 2048, 128>}, {pipeline_mode = #tpu.pipeline_mode<synchronous>, transform_indices = @transform_1, window_bounds = array<i64: 128, 128>}, {transform_indices = @transform_2, window_bounds = array<i64: 2048, 128>}]} {
    %c0 = arith.constant 0 : index
    %c0_0 = arith.constant 0 : index
    %0 = vector.load %arg1[%c0, %c0_0] : memref<2048x128xbf16, #tpu.memory_space<vmem>>, vector<2048x128xbf16>
    %c0_1 = arith.constant 0 : index
    %c0_2 = arith.constant 0 : index
    %1 = vector.load %arg2[%c0_1, %c0_2] : memref<128x128xbf16, #tpu.memory_space<vmem>>, vector<128x128xbf16>
    %cst = arith.constant dense<0.000000e+00> : vector<2048x128xf32>
    %2 = tpu.matmul %0, %1, %cst {dimension_numbers = #tpu.dot_dimension_numbers<[1], [0], [0], [1], [0, 0, 1, 1], [], []>} : vector<2048x128xbf16>, vector<128x128xbf16>, vector<2048x128xf32> -> vector<2048x128xf32>
    %cst_3 = arith.constant 0.000000e+00 : f32
    %3 = vector.broadcast %cst_3 : f32 to vector<2048x128xf32>
    %4 = arith.cmpf oge, %2, %3 : vector<2048x128xf32>
    %cst_4 = arith.constant 2.000000e-01 : f32
    %5 = vector.broadcast %cst_4 : f32 to vector<2048x128xf32>
    %6 = arith.mulf %5, %2 : vector<2048x128xf32>
    %7 = arith.select %4, %2, %6 : vector<2048x128xi1>, vector<2048x128xf32>
    %8 = arith.truncf %7 : vector<2048x128xf32> to vector<2048x128xbf16>
    %c0_5 = arith.constant 0 : index
    %c0_6 = arith.constant 0 : index
    %9 = vector.load %arg3[%c0_5, %c0_6] : memref<2048x128xbf16, #tpu.memory_space<vmem>>, vector<2048x128xbf16>
    tpu.vector_store %arg3[%c0_5, %c0_6], %8 {strides = array<i32>} : memref<2048x128xbf16, #tpu.memory_space<vmem>>, vector<2048x128xbf16>,
    return
  }
  func.func @transform_0(%arg0: i32) -> (i32, i32) {
    %c0_i32 = arith.constant 0 : i32
    %c0_i32_0 = arith.constant 0 : i32
    return %arg0, %c0_i32 : i32, i32
  }
  func.func @transform_1(%arg0: i32) -> (i32, i32) {
    %c0_i32 = arith.constant 0 : i32
    %c0_i32_0 = arith.constant 0 : i32
    %c0_i32_1 = arith.constant 0 : i32
    return %c0_i32, %c0_i32_0 : i32, i32
  }
  func.func @transform_2(%arg0: i32) -> (i32, i32) {
    %c0_i32 = arith.constant 0 : i32
    %c0_i32_0 = arith.constant 0 : i32
    return %arg0, %c0_i32 : i32, i32
  }
}

module attributes {stable_mosaic.version = 11 : i64} {
  func.func @conv_bn_lrelu_kernel(%arg0: i32, %arg1: i32, %arg2: memref<512x512xbf16, #tpu.memory_space<vmem>>, %arg3: memref<512x128xbf16, #tpu.memory_space<vmem>>, %arg4: memref<1x128xf32, #tpu.memory_space<vmem>>, %arg5: memref<1x128xf32, #tpu.memory_space<vmem>>, %arg6: memref<512x128xbf16, #tpu.memory_space<vmem>>, %arg7: memref<512x128xf32, #tpu.memory_space<vmem>>) attributes {dimension_semantics = [#tpu.dimension_semantics<parallel>, #tpu.dimension_semantics<arbitrary>], iteration_bounds = array<i64: 1, 2>, scalar_prefetch = 0 : i64, scratch_operands = 1 : i64, tpu.core_type = #tpu.core_type<tc>, window_params = [{transform_indices = @transform_0, window_bounds = array<i64: 512, 512>}, {transform_indices = @transform_1, window_bounds = array<i64: 512, 128>}, {transform_indices = @transform_2, window_bounds = array<i64: 1, 128>}, {transform_indices = @transform_3, window_bounds = array<i64: 1, 128>}, {transform_indices = @transform_4, window_bounds = array<i64: 512, 128>}]} {
    %c0_i32 = arith.constant 0 : i32
    %0 = arith.cmpi eq, %arg1, %c0_i32 : i32
    %1 = arith.extui %0 : i1 to i32
    %c0_i32_0 = arith.constant 0 : i32
    %2 = arith.cmpi ne, %1, %c0_i32_0 : i32
    scf.if %2 {
      %cst_9 = arith.constant 0.000000e+00 : f32
      %12 = vector.broadcast %cst_9 : f32 to vector<512x128xf32>
      %c0_10 = arith.constant 0 : index
      %c0_11 = arith.constant 0 : index
      %13 = vector.load %arg7[%c0_10, %c0_11] : memref<512x128xf32, #tpu.memory_space<vmem>>, vector<512x128xf32>
      tpu.vector_store %arg7[%c0_10, %c0_11], %12 {strides = array<i32>} : memref<512x128xf32, #tpu.memory_space<vmem>>, vector<512x128xf32>,
    } else {
    }
    %c0 = arith.constant 0 : index
    %c0_1 = arith.constant 0 : index
    %3 = vector.load %arg7[%c0, %c0_1] : memref<512x128xf32, #tpu.memory_space<vmem>>, vector<512x128xf32>
    %c0_2 = arith.constant 0 : index
    %c0_3 = arith.constant 0 : index
    %4 = vector.load %arg2[%c0_2, %c0_3] : memref<512x512xbf16, #tpu.memory_space<vmem>>, vector<512x512xbf16>
    %c0_4 = arith.constant 0 : index
    %c0_5 = arith.constant 0 : index
    %5 = vector.load %arg3[%c0_4, %c0_5] : memref<512x128xbf16, #tpu.memory_space<vmem>>, vector<512x128xbf16>
    %cst = arith.constant dense<0.000000e+00> : vector<512x128xf32>
    %6 = tpu.matmul %4, %5, %cst {dimension_numbers = #tpu.dot_dimension_numbers<[1], [0], [0], [1], [0, 0, 1, 1], [], []>} : vector<512x512xbf16>, vector<512x128xbf16>, vector<512x128xf32> -> vector<512x128xf32>
    %7 = arith.addf %3, %6 : vector<512x128xf32>
    %c0_6 = arith.constant 0 : index
    %c0_7 = arith.constant 0 : index
    %8 = vector.load %arg7[%c0_6, %c0_7] : memref<512x128xf32, #tpu.memory_space<vmem>>, vector<512x128xf32>
    tpu.vector_store %arg7[%c0_6, %c0_7], %7 {strides = array<i32>} : memref<512x128xf32, #tpu.memory_space<vmem>>, vector<512x128xf32>,
    %c1_i32 = arith.constant 1 : i32
    %9 = arith.cmpi eq, %arg1, %c1_i32 : i32
    %10 = arith.extui %9 : i1 to i32
    %c0_i32_8 = arith.constant 0 : i32
    %11 = arith.cmpi ne, %10, %c0_i32_8 : i32
    scf.if %11 {
      %c0_9 = arith.constant 0 : index
      %c0_10 = arith.constant 0 : index
      %12 = vector.load %arg7[%c0_9, %c0_10] : memref<512x128xf32, #tpu.memory_space<vmem>>, vector<512x128xf32>
      %cst_11 = arith.constant dense<0.000000e+00> : vector<128xf32>
      %13 = vector.multi_reduction <add>, %12, %cst_11 [0] : vector<512x128xf32> to vector<128xf32>
      %14 = vector.shape_cast %13 : vector<128xf32> to vector<1x128xf32>
      %cst_12 = arith.constant 0.001953125 : f32
      %15 = vector.broadcast %cst_12 : f32 to vector<1x128xf32>
      %16 = arith.mulf %14, %15 : vector<1x128xf32>
      %17 = vector.broadcast %16 : vector<1x128xf32> to vector<512x128xf32>
      %18 = arith.subf %12, %17 : vector<512x128xf32>
      %19 = arith.mulf %18, %18 : vector<512x128xf32>
      %cst_13 = arith.constant dense<0.000000e+00> : vector<128xf32>
      %20 = vector.multi_reduction <add>, %19, %cst_13 [0] : vector<512x128xf32> to vector<128xf32>
      %21 = vector.shape_cast %20 : vector<128xf32> to vector<1x128xf32>
      %cst_14 = arith.constant 0.001953125 : f32
      %22 = vector.broadcast %cst_14 : f32 to vector<1x128xf32>
      %23 = arith.mulf %21, %22 : vector<1x128xf32>
      %cst_15 = arith.constant 9.99999974E-6 : f32
      %24 = vector.broadcast %cst_15 : f32 to vector<1x128xf32>
      %25 = arith.addf %23, %24 : vector<1x128xf32>
      %26 = math.rsqrt %25 : vector<1x128xf32>
      %27 = vector.broadcast %26 : vector<1x128xf32> to vector<512x128xf32>
      %28 = arith.mulf %18, %27 : vector<512x128xf32>
      %c0_16 = arith.constant 0 : index
      %c0_17 = arith.constant 0 : index
      %29 = vector.load %arg4[%c0_16, %c0_17] : memref<1x128xf32, #tpu.memory_space<vmem>>, vector<1x128xf32>
      %30 = vector.broadcast %29 : vector<1x128xf32> to vector<512x128xf32>
      %31 = arith.mulf %28, %30 : vector<512x128xf32>
      %c0_18 = arith.constant 0 : index
      %c0_19 = arith.constant 0 : index
      %32 = vector.load %arg5[%c0_18, %c0_19] : memref<1x128xf32, #tpu.memory_space<vmem>>, vector<1x128xf32>
      %33 = vector.broadcast %32 : vector<1x128xf32> to vector<512x128xf32>
      %34 = arith.addf %31, %33 : vector<512x128xf32>
      %cst_20 = arith.constant 0.000000e+00 : f32
      %35 = vector.broadcast %cst_20 : f32 to vector<512x128xf32>
      %36 = arith.cmpf oge, %34, %35 : vector<512x128xf32>
      %cst_21 = arith.constant 2.000000e-01 : f32
      %37 = vector.broadcast %cst_21 : f32 to vector<512x128xf32>
      %38 = arith.mulf %37, %34 : vector<512x128xf32>
      %39 = arith.select %36, %34, %38 : vector<512x128xi1>, vector<512x128xf32>
      %40 = arith.truncf %39 : vector<512x128xf32> to vector<512x128xbf16>
      %c0_22 = arith.constant 0 : index
      %c0_23 = arith.constant 0 : index
      %41 = vector.load %arg6[%c0_22, %c0_23] : memref<512x128xbf16, #tpu.memory_space<vmem>>, vector<512x128xbf16>
      tpu.vector_store %arg6[%c0_22, %c0_23], %40 {strides = array<i32>} : memref<512x128xbf16, #tpu.memory_space<vmem>>, vector<512x128xbf16>,
    } else {
    }
    return
  }
  func.func @transform_0(%arg0: i32, %arg1: i32) -> (i32, i32) {
    %c0_i32 = arith.constant 0 : i32
    %c0_i32_0 = arith.constant 0 : i32
    return %c0_i32, %arg1 : i32, i32
  }
  func.func @transform_1(%arg0: i32, %arg1: i32) -> (i32, i32) {
    %c0_i32 = arith.constant 0 : i32
    return %arg1, %arg0 : i32, i32
  }
  func.func @transform_2(%arg0: i32, %arg1: i32) -> (i32, i32) {
    %c0_i32 = arith.constant 0 : i32
    %c0_i32_0 = arith.constant 0 : i32
    return %c0_i32, %arg0 : i32, i32
  }
  func.func @transform_3(%arg0: i32, %arg1: i32) -> (i32, i32) {
    %c0_i32 = arith.constant 0 : i32
    %c0_i32_0 = arith.constant 0 : i32
    return %c0_i32, %arg0 : i32, i32
  }
  func.func @transform_4(%arg0: i32, %arg1: i32) -> (i32, i32) {
    %c0_i32 = arith.constant 0 : i32
    %c0_i32_0 = arith.constant 0 : i32
    return %c0_i32, %arg0 : i32, i32
  }
}

module attributes {stable_mosaic.version = 11 : i64} {
  func.func @conv_bn_lrelu_kernel(%arg0: i32, %arg1: i32, %arg2: memref<128x512xbf16, #tpu.memory_space<vmem>>, %arg3: memref<512x128xbf16, #tpu.memory_space<vmem>>, %arg4: memref<1x128xf32, #tpu.memory_space<vmem>>, %arg5: memref<1x128xf32, #tpu.memory_space<vmem>>, %arg6: memref<128x128xbf16, #tpu.memory_space<vmem>>, %arg7: memref<128x128xf32, #tpu.memory_space<vmem>>) attributes {dimension_semantics = [#tpu.dimension_semantics<parallel>, #tpu.dimension_semantics<arbitrary>], iteration_bounds = array<i64: 2, 4>, scalar_prefetch = 0 : i64, scratch_operands = 1 : i64, tpu.core_type = #tpu.core_type<tc>, window_params = [{transform_indices = @transform_0, window_bounds = array<i64: 128, 512>}, {transform_indices = @transform_1, window_bounds = array<i64: 512, 128>}, {transform_indices = @transform_2, window_bounds = array<i64: 1, 128>}, {transform_indices = @transform_3, window_bounds = array<i64: 1, 128>}, {transform_indices = @transform_4, window_bounds = array<i64: 128, 128>}]} {
    %c0_i32 = arith.constant 0 : i32
    %0 = arith.cmpi eq, %arg1, %c0_i32 : i32
    %1 = arith.extui %0 : i1 to i32
    %c0_i32_0 = arith.constant 0 : i32
    %2 = arith.cmpi ne, %1, %c0_i32_0 : i32
    scf.if %2 {
      %cst_9 = arith.constant 0.000000e+00 : f32
      %12 = vector.broadcast %cst_9 : f32 to vector<128x128xf32>
      %c0_10 = arith.constant 0 : index
      %c0_11 = arith.constant 0 : index
      %13 = vector.load %arg7[%c0_10, %c0_11] : memref<128x128xf32, #tpu.memory_space<vmem>>, vector<128x128xf32>
      tpu.vector_store %arg7[%c0_10, %c0_11], %12 {strides = array<i32>} : memref<128x128xf32, #tpu.memory_space<vmem>>, vector<128x128xf32>,
    } else {
    }
    %c0 = arith.constant 0 : index
    %c0_1 = arith.constant 0 : index
    %3 = vector.load %arg7[%c0, %c0_1] : memref<128x128xf32, #tpu.memory_space<vmem>>, vector<128x128xf32>
    %c0_2 = arith.constant 0 : index
    %c0_3 = arith.constant 0 : index
    %4 = vector.load %arg2[%c0_2, %c0_3] : memref<128x512xbf16, #tpu.memory_space<vmem>>, vector<128x512xbf16>
    %c0_4 = arith.constant 0 : index
    %c0_5 = arith.constant 0 : index
    %5 = vector.load %arg3[%c0_4, %c0_5] : memref<512x128xbf16, #tpu.memory_space<vmem>>, vector<512x128xbf16>
    %cst = arith.constant dense<0.000000e+00> : vector<128x128xf32>
    %6 = tpu.matmul %4, %5, %cst {dimension_numbers = #tpu.dot_dimension_numbers<[1], [0], [0], [1], [0, 0, 1, 1], [], []>} : vector<128x512xbf16>, vector<512x128xbf16>, vector<128x128xf32> -> vector<128x128xf32>
    %7 = arith.addf %3, %6 : vector<128x128xf32>
    %c0_6 = arith.constant 0 : index
    %c0_7 = arith.constant 0 : index
    %8 = vector.load %arg7[%c0_6, %c0_7] : memref<128x128xf32, #tpu.memory_space<vmem>>, vector<128x128xf32>
    tpu.vector_store %arg7[%c0_6, %c0_7], %7 {strides = array<i32>} : memref<128x128xf32, #tpu.memory_space<vmem>>, vector<128x128xf32>,
    %c3_i32 = arith.constant 3 : i32
    %9 = arith.cmpi eq, %arg1, %c3_i32 : i32
    %10 = arith.extui %9 : i1 to i32
    %c0_i32_8 = arith.constant 0 : i32
    %11 = arith.cmpi ne, %10, %c0_i32_8 : i32
    scf.if %11 {
      %c0_9 = arith.constant 0 : index
      %c0_10 = arith.constant 0 : index
      %12 = vector.load %arg7[%c0_9, %c0_10] : memref<128x128xf32, #tpu.memory_space<vmem>>, vector<128x128xf32>
      %cst_11 = arith.constant dense<0.000000e+00> : vector<128xf32>
      %13 = vector.multi_reduction <add>, %12, %cst_11 [0] : vector<128x128xf32> to vector<128xf32>
      %14 = vector.shape_cast %13 : vector<128xf32> to vector<1x128xf32>
      %cst_12 = arith.constant 7.812500e-03 : f32
      %15 = vector.broadcast %cst_12 : f32 to vector<1x128xf32>
      %16 = arith.mulf %14, %15 : vector<1x128xf32>
      %17 = vector.broadcast %16 : vector<1x128xf32> to vector<128x128xf32>
      %18 = arith.subf %12, %17 : vector<128x128xf32>
      %19 = arith.mulf %18, %18 : vector<128x128xf32>
      %cst_13 = arith.constant dense<0.000000e+00> : vector<128xf32>
      %20 = vector.multi_reduction <add>, %19, %cst_13 [0] : vector<128x128xf32> to vector<128xf32>
      %21 = vector.shape_cast %20 : vector<128xf32> to vector<1x128xf32>
      %cst_14 = arith.constant 7.812500e-03 : f32
      %22 = vector.broadcast %cst_14 : f32 to vector<1x128xf32>
      %23 = arith.mulf %21, %22 : vector<1x128xf32>
      %cst_15 = arith.constant 9.99999974E-6 : f32
      %24 = vector.broadcast %cst_15 : f32 to vector<1x128xf32>
      %25 = arith.addf %23, %24 : vector<1x128xf32>
      %26 = math.rsqrt %25 : vector<1x128xf32>
      %27 = vector.broadcast %26 : vector<1x128xf32> to vector<128x128xf32>
      %28 = arith.mulf %18, %27 : vector<128x128xf32>
      %c0_16 = arith.constant 0 : index
      %c0_17 = arith.constant 0 : index
      %29 = vector.load %arg4[%c0_16, %c0_17] : memref<1x128xf32, #tpu.memory_space<vmem>>, vector<1x128xf32>
      %30 = vector.broadcast %29 : vector<1x128xf32> to vector<128x128xf32>
      %31 = arith.mulf %28, %30 : vector<128x128xf32>
      %c0_18 = arith.constant 0 : index
      %c0_19 = arith.constant 0 : index
      %32 = vector.load %arg5[%c0_18, %c0_19] : memref<1x128xf32, #tpu.memory_space<vmem>>, vector<1x128xf32>
      %33 = vector.broadcast %32 : vector<1x128xf32> to vector<128x128xf32>
      %34 = arith.addf %31, %33 : vector<128x128xf32>
      %cst_20 = arith.constant 0.000000e+00 : f32
      %35 = vector.broadcast %cst_20 : f32 to vector<128x128xf32>
      %36 = arith.cmpf oge, %34, %35 : vector<128x128xf32>
      %cst_21 = arith.constant 2.000000e-01 : f32
      %37 = vector.broadcast %cst_21 : f32 to vector<128x128xf32>
      %38 = arith.mulf %37, %34 : vector<128x128xf32>
      %39 = arith.select %36, %34, %38 : vector<128x128xi1>, vector<128x128xf32>
      %40 = arith.truncf %39 : vector<128x128xf32> to vector<128x128xbf16>
      %c0_22 = arith.constant 0 : index
      %c0_23 = arith.constant 0 : index
      %41 = vector.load %arg6[%c0_22, %c0_23] : memref<128x128xbf16, #tpu.memory_space<vmem>>, vector<128x128xbf16>
      tpu.vector_store %arg6[%c0_22, %c0_23], %40 {strides = array<i32>} : memref<128x128xbf16, #tpu.memory_space<vmem>>, vector<128x128xbf16>,
    } else {
    }
    return
  }
  func.func @transform_0(%arg0: i32, %arg1: i32) -> (i32, i32) {
    %c0_i32 = arith.constant 0 : i32
    %c0_i32_0 = arith.constant 0 : i32
    return %c0_i32, %arg1 : i32, i32
  }
  func.func @transform_1(%arg0: i32, %arg1: i32) -> (i32, i32) {
    %c0_i32 = arith.constant 0 : i32
    return %arg1, %arg0 : i32, i32
  }
  func.func @transform_2(%arg0: i32, %arg1: i32) -> (i32, i32) {
    %c0_i32 = arith.constant 0 : i32
    %c0_i32_0 = arith.constant 0 : i32
    return %c0_i32, %arg0 : i32, i32
  }
  func.func @transform_3(%arg0: i32, %arg1: i32) -> (i32, i32) {
    %c0_i32 = arith.constant 0 : i32
    %c0_i32_0 = arith.constant 0 : i32
    return %c0_i32, %arg0 : i32, i32
  }
  func.func @transform_4(%arg0: i32, %arg1: i32) -> (i32, i32) {
    %c0_i32 = arith.constant 0 : i32
    %c0_i32_0 = arith.constant 0 : i32
    return %c0_i32, %arg0 : i32, i32
  }
}

module attributes {stable_mosaic.version = 11 : i64} {
  func.func @conv_bn_lrelu_head_kernel(%arg0: i32, %arg1: memref<32x1024xbf16, #tpu.memory_space<vmem>>, %arg2: memref<1024x512xbf16, #tpu.memory_space<vmem>>, %arg3: memref<1x512xf32, #tpu.memory_space<vmem>>, %arg4: memref<1x512xf32, #tpu.memory_space<vmem>>, %arg5: memref<16x512xf32, #tpu.memory_space<vmem>>, %arg6: memref<2x1xf32, #tpu.memory_space<vmem>>, %arg7: memref<32x512xf32, #tpu.memory_space<vmem>>) attributes {dimension_semantics = [#tpu.dimension_semantics<arbitrary>], iteration_bounds = array<i64: 4>, scalar_prefetch = 0 : i64, scratch_operands = 1 : i64, tpu.core_type = #tpu.core_type<tc>, window_params = [{transform_indices = @transform_0, window_bounds = array<i64: 32, 1024>}, {transform_indices = @transform_1, window_bounds = array<i64: 1024, 512>}, {pipeline_mode = #tpu.pipeline_mode<synchronous>, transform_indices = @transform_2, window_bounds = array<i64: 1, 512>}, {pipeline_mode = #tpu.pipeline_mode<synchronous>, transform_indices = @transform_3, window_bounds = array<i64: 1, 512>}, {pipeline_mode = #tpu.pipeline_mode<synchronous>, transform_indices = @transform_4, window_bounds = array<i64: 16, 512>}, {pipeline_mode = #tpu.pipeline_mode<synchronous>, transform_indices = @transform_5, window_bounds = array<i64: 2, 1>}]} {
    %c0_i32 = arith.constant 0 : i32
    %0 = arith.cmpi eq, %arg0, %c0_i32 : i32
    %1 = arith.extui %0 : i1 to i32
    %c0_i32_0 = arith.constant 0 : i32
    %2 = arith.cmpi ne, %1, %c0_i32_0 : i32
    scf.if %2 {
      %cst_9 = arith.constant 0.000000e+00 : f32
      %12 = vector.broadcast %cst_9 : f32 to vector<32x512xf32>
      %c0_10 = arith.constant 0 : index
      %c0_11 = arith.constant 0 : index
      %13 = vector.load %arg7[%c0_10, %c0_11] : memref<32x512xf32, #tpu.memory_space<vmem>>, vector<32x512xf32>
      tpu.vector_store %arg7[%c0_10, %c0_11], %12 {strides = array<i32>} : memref<32x512xf32, #tpu.memory_space<vmem>>, vector<32x512xf32>,
    } else {
    }
    %c0 = arith.constant 0 : index
    %c0_1 = arith.constant 0 : index
    %3 = vector.load %arg7[%c0, %c0_1] : memref<32x512xf32, #tpu.memory_space<vmem>>, vector<32x512xf32>
    %c0_2 = arith.constant 0 : index
    %c0_3 = arith.constant 0 : index
    %4 = vector.load %arg1[%c0_2, %c0_3] : memref<32x1024xbf16, #tpu.memory_space<vmem>>, vector<32x1024xbf16>
    %c0_4 = arith.constant 0 : index
    %c0_5 = arith.constant 0 : index
    %5 = vector.load %arg2[%c0_4, %c0_5] : memref<1024x512xbf16, #tpu.memory_space<vmem>>, vector<1024x512xbf16>
    %cst = arith.constant dense<0.000000e+00> : vector<32x512xf32>
    %6 = tpu.matmul %4, %5, %cst {dimension_numbers = #tpu.dot_dimension_numbers<[1], [0], [0], [1], [0, 0, 1, 1], [], []>} : vector<32x1024xbf16>, vector<1024x512xbf16>, vector<32x512xf32> -> vector<32x512xf32>
    %7 = arith.addf %3, %6 : vector<32x512xf32>
    %c0_6 = arith.constant 0 : index
    %c0_7 = arith.constant 0 : index
    %8 = vector.load %arg7[%c0_6, %c0_7] : memref<32x512xf32, #tpu.memory_space<vmem>>, vector<32x512xf32>
    tpu.vector_store %arg7[%c0_6, %c0_7], %7 {strides = array<i32>} : memref<32x512xf32, #tpu.memory_space<vmem>>, vector<32x512xf32>,
    %c3_i32 = arith.constant 3 : i32
    %9 = arith.cmpi eq, %arg0, %c3_i32 : i32
    %10 = arith.extui %9 : i1 to i32
    %c0_i32_8 = arith.constant 0 : i32
    %11 = arith.cmpi ne, %10, %c0_i32_8 : i32
    scf.if %11 {
      %c0_9 = arith.constant 0 : index
      %c0_10 = arith.constant 0 : index
      %12 = vector.load %arg7[%c0_9, %c0_10] : memref<32x512xf32, #tpu.memory_space<vmem>>, vector<32x512xf32>
      %cst_11 = arith.constant dense<0.000000e+00> : vector<512xf32>
      %13 = vector.multi_reduction <add>, %12, %cst_11 [0] : vector<32x512xf32> to vector<512xf32>
      %14 = vector.shape_cast %13 : vector<512xf32> to vector<1x512xf32>
      %cst_12 = arith.constant 3.125000e-02 : f32
      %15 = vector.broadcast %cst_12 : f32 to vector<1x512xf32>
      %16 = arith.mulf %14, %15 : vector<1x512xf32>
      %17 = vector.broadcast %16 : vector<1x512xf32> to vector<32x512xf32>
      %18 = arith.subf %12, %17 : vector<32x512xf32>
      %19 = arith.mulf %18, %18 : vector<32x512xf32>
      %cst_13 = arith.constant dense<0.000000e+00> : vector<512xf32>
      %20 = vector.multi_reduction <add>, %19, %cst_13 [0] : vector<32x512xf32> to vector<512xf32>
      %21 = vector.shape_cast %20 : vector<512xf32> to vector<1x512xf32>
      %cst_14 = arith.constant 3.125000e-02 : f32
      %22 = vector.broadcast %cst_14 : f32 to vector<1x512xf32>
      %23 = arith.mulf %21, %22 : vector<1x512xf32>
      %cst_15 = arith.constant 9.99999974E-6 : f32
      %24 = vector.broadcast %cst_15 : f32 to vector<1x512xf32>
      %25 = arith.addf %23, %24 : vector<1x512xf32>
      %26 = math.rsqrt %25 : vector<1x512xf32>
      %27 = vector.broadcast %26 : vector<1x512xf32> to vector<32x512xf32>
      %28 = arith.mulf %18, %27 : vector<32x512xf32>
      %c0_16 = arith.constant 0 : index
      %c0_17 = arith.constant 0 : index
      %29 = vector.load %arg3[%c0_16, %c0_17] : memref<1x512xf32, #tpu.memory_space<vmem>>, vector<1x512xf32>
      %30 = vector.broadcast %29 : vector<1x512xf32> to vector<32x512xf32>
      %31 = arith.mulf %28, %30 : vector<32x512xf32>
      %c0_18 = arith.constant 0 : index
      %c0_19 = arith.constant 0 : index
      %32 = vector.load %arg4[%c0_18, %c0_19] : memref<1x512xf32, #tpu.memory_space<vmem>>, vector<1x512xf32>
      %33 = vector.broadcast %32 : vector<1x512xf32> to vector<32x512xf32>
      %34 = arith.addf %31, %33 : vector<32x512xf32>
      %cst_20 = arith.constant 0.000000e+00 : f32
      %35 = vector.broadcast %cst_20 : f32 to vector<32x512xf32>
      %36 = arith.cmpf oge, %34, %35 : vector<32x512xf32>
      %cst_21 = arith.constant 2.000000e-01 : f32
      %37 = vector.broadcast %cst_21 : f32 to vector<32x512xf32>
      %38 = arith.mulf %37, %34 : vector<32x512xf32>
      %39 = arith.select %36, %34, %38 : vector<32x512xi1>, vector<32x512xf32>
      %40 = vector.shape_cast %39 : vector<32x512xf32> to vector<2x16x512xf32>
      %c0_22 = arith.constant 0 : index
      %c0_23 = arith.constant 0 : index
      %41 = vector.load %arg5[%c0_22, %c0_23] : memref<16x512xf32, #tpu.memory_space<vmem>>, vector<16x512xf32>
      %42 = vector.shape_cast %41 : vector<16x512xf32> to vector<1x16x512xf32>
      %43 = vector.broadcast %42 : vector<1x16x512xf32> to vector<2x16x512xf32>
      %44 = arith.mulf %40, %43 : vector<2x16x512xf32>
      %cst_24 = arith.constant dense<0.000000e+00> : vector<2x512xf32>
      %45 = vector.multi_reduction <add>, %44, %cst_24 [1] : vector<2x16x512xf32> to vector<2x512xf32>
      %cst_25 = arith.constant dense<0.000000e+00> : vector<2xf32>
      %46 = vector.multi_reduction <add>, %45, %cst_25 [1] : vector<2x512xf32> to vector<2xf32>
      %47 = vector.shape_cast %46 : vector<2xf32> to vector<2x1xf32>
      %cst_26 = arith.constant 0.000000e+00 : f32
      %48 = vector.broadcast %cst_26 : f32 to vector<2x1xf32>
      %49 = arith.subf %48, %47 : vector<2x1xf32>
      %50 = math.exp %49 : vector<2x1xf32>
      %cst_27 = arith.constant 1.000000e+00 : f32
      %51 = vector.broadcast %cst_27 : f32 to vector<2x1xf32>
      %52 = arith.addf %51, %50 : vector<2x1xf32>
      %cst_28 = arith.constant 1.000000e+00 : f32
      %53 = vector.broadcast %cst_28 : f32 to vector<2x1xf32>
      %54 = arith.divf %53, %52 : vector<2x1xf32>
      %c0_29 = arith.constant 0 : index
      %c0_30 = arith.constant 0 : index
      %55 = vector.load %arg6[%c0_29, %c0_30] : memref<2x1xf32, #tpu.memory_space<vmem>>, vector<2x1xf32>
      tpu.vector_store %arg6[%c0_29, %c0_30], %54 {strides = array<i32>} : memref<2x1xf32, #tpu.memory_space<vmem>>, vector<2x1xf32>,
    } else {
    }
    return
  }
  func.func @transform_0(%arg0: i32) -> (i32, i32) {
    %c0_i32 = arith.constant 0 : i32
    %c0_i32_0 = arith.constant 0 : i32
    return %c0_i32, %arg0 : i32, i32
  }
  func.func @transform_1(%arg0: i32) -> (i32, i32) {
    %c0_i32 = arith.constant 0 : i32
    %c0_i32_0 = arith.constant 0 : i32
    return %arg0, %c0_i32 : i32, i32
  }
  func.func @transform_2(%arg0: i32) -> (i32, i32) {
    %c0_i32 = arith.constant 0 : i32
    %c0_i32_0 = arith.constant 0 : i32
    %c0_i32_1 = arith.constant 0 : i32
    return %c0_i32, %c0_i32_0 : i32, i32
  }
  func.func @transform_3(%arg0: i32) -> (i32, i32) {
    %c0_i32 = arith.constant 0 : i32
    %c0_i32_0 = arith.constant 0 : i32
    %c0_i32_1 = arith.constant 0 : i32
    return %c0_i32, %c0_i32_0 : i32, i32
  }
  func.func @transform_4(%arg0: i32) -> (i32, i32) {
    %c0_i32 = arith.constant 0 : i32
    %c0_i32_0 = arith.constant 0 : i32
    %c0_i32_1 = arith.constant 0 : i32
    return %c0_i32, %c0_i32_0 : i32, i32
  }
  func.func @transform_5(%arg0: i32) -> (i32, i32) {
    %c0_i32 = arith.constant 0 : i32
    %c0_i32_0 = arith.constant 0 : i32
    %c0_i32_1 = arith.constant 0 : i32
    return %c0_i32, %c0_i32_0 : i32, i32
  }
}

</mosaic_0001>

<bundles_post_ra>
// kernel: discriminator_forward.4
= control target key start
LH: loop header
LB: loop body
LE: loop exit
PB: predicated region body
PF: predicated region fallthrough
CT: control target
= control target key end

     0   :  { %s5324_s1 = inlined_call_operand.vmem [shape: bf16[128,128], index: 1, kind: input, shape index: {}]   ;;  %s5325_s0 = inlined_call_operand.vmem [shape: bf16[2048,128], index: 0, kind: input, shape index: {}]   ;;  %s5326_s2 = inlined_call_operand.vmem [shape: bf16[2048,128], index: 2, kind: output, shape index: {}]  }
   0x1   :  { %v3711_v0 = vld [vmem:[%s5324_s1 + $0x38] sm:$0xff]  ;;  %v3710_v1 = vld [vmem:[%s5324_s1 + $0x30] sm:$0xff]  ;;  %v3709_v2 = vld [vmem:[%s5324_s1 + $0x28] sm:$0xff] }
   0x2   :  { %1099 = vmatpush.bf16.msra.mxu0 %v3711_v0  ;;  %4479 = vmatpush.bf16.msra.mxu1 %v3711_v0  ;;  %v3708_v3 = vld [vmem:[%s5324_s1 + $0x20] sm:$0xff]  ;;  %v3707_v4 = vld [vmem:[%s5324_s1 + $0x18] sm:$0xff]  ;;  %v3706_v5 = vld [vmem:[%s5324_s1 + $0x10] sm:$0xff] }
   0x3   :  { %4480 = vmatpush.bf16.msra.mxu2 %v3711_v0  ;;  %4481 = vmatpush.bf16.msra.mxu3 %v3711_v0  ;;  %v3705_v6 = vld [vmem:[%s5324_s1 + $0x8] sm:$0xff]  ;;  %v3704_v7 = vld [vmem:[%s5324_s1] sm:$0xff]  ;;  %v3578_v16 = vld [vmem:[%s5325_s0 + $0x10] sm:$0xff] }
   0x4   :  { %v3576_v8 = vld [vmem:[%s5325_s0] sm:$0xff]  ;;  %v3577_v12 = vld [vmem:[%s5325_s0 + $0x8] sm:$0xff]  ;;  %v3610_v17 = vld [vmem:[%s5325_s0 + $0x110] sm:$0xff] }
   0x5   :  { %v3608_v9 = vld [vmem:[%s5325_s0 + $0x100] sm:$0xff]  ;;  %v3609_v13 = vld [vmem:[%s5325_s0 + $0x108] sm:$0xff]  ;;  %v3642_v18 = vld [vmem:[%s5325_s0 + $0x210] sm:$0xff] }
   0x6   :  { %1100 = vmatpush.bf16.msra.mxu0 %v3710_v1  ;;  %4482 = vmatpush.bf16.msra.mxu1 %v3710_v1  ;;  %v3640_v10 = vld [vmem:[%s5325_s0 + $0x200] sm:$0xff]  ;;  %v3641_v14 = vld [vmem:[%s5325_s0 + $0x208] sm:$0xff]  ;;  %v3674_v19 = vld [vmem:[%s5325_s0 + $0x310] sm:$0xff] }
   0x7   :  { %4483 = vmatpush.bf16.msra.mxu2 %v3710_v1  ;;  %4484 = vmatpush.bf16.msra.mxu3 %v3710_v1  ;;  %v3672_v11 = vld [vmem:[%s5325_s0 + $0x300] sm:$0xff]  ;;  %v3673_v15 = vld [vmem:[%s5325_s0 + $0x308] sm:$0xff]  ;;  %v3579_v20 = vld [vmem:[%s5325_s0 + $0x18] sm:$0xff] }
   0x8   :  { %v3611_v21 = vld [vmem:[%s5325_s0 + $0x118] sm:$0xff]  ;;  %v3580_v24 = vld [vmem:[%s5325_s0 + $0x20] sm:$0xff]  ;;  %v3581_v28 = vld [vmem:[%s5325_s0 + $0x28] sm:$0xff] }
   0x9   :  { %v3643_v22 = vld [vmem:[%s5325_s0 + $0x218] sm:$0xff]  ;;  %v3612_v25 = vld [vmem:[%s5325_s0 + $0x120] sm:$0xff]  ;;  %v3613_v29 = vld [vmem:[%s5325_s0 + $0x128] sm:$0xff] }
   0xa   :  { %1101 = vmatpush.bf16.msra.mxu0 %v3709_v2  ;;  %4485 = vmatpush.bf16.msra.mxu1 %v3709_v2  ;;  %v3675_v23 = vld [vmem:[%s5325_s0 + $0x318] sm:$0xff]  ;;  %v3644_v26 = vld [vmem:[%s5325_s0 + $0x220] sm:$0xff]  ;;  %v3645_v30 = vld [vmem:[%s5325_s0 + $0x228] sm:$0xff] }
   0xb   :  { %4486 = vmatpush.bf16.msra.mxu2 %v3709_v2  ;;  %4487 = vmatpush.bf16.msra.mxu3 %v3709_v2  ;;  %v3676_v27 = vld [vmem:[%s5325_s0 + $0x320] sm:$0xff]  ;;  %v3677_v31 = vld [vmem:[%s5325_s0 + $0x328] sm:$0xff]  ;;  %v3582_v32 = vld [vmem:[%s5325_s0 + $0x30] sm:$0xff] }
   0xc   :  { %v3614_v33 = vld [vmem:[%s5325_s0 + $0x130] sm:$0xff]  ;;  %v3583_v36 = vld [vmem:[%s5325_s0 + $0x38] sm:$0xff]  ;;  %v3584_v40 = vld [vmem:[%s5325_s0 + $0x40] sm:$0xff] }
   0xd   :  { %v3646_v34 = vld [vmem:[%s5325_s0 + $0x230] sm:$0xff]  ;;  %v3615_v37 = vld [vmem:[%s5325_s0 + $0x138] sm:$0xff]  ;;  %v3616_v41 = vld [vmem:[%s5325_s0 + $0x140] sm:$0xff] }
   0xe   :  { %1102 = vmatpush.bf16.msra.mxu0 %v3708_v3  ;;  %4488 = vmatpush.bf16.msra.mxu1 %v3708_v3  ;;  %v3678_v35 = vld [vmem:[%s5325_s0 + $0x330] sm:$0xff]  ;;  %v3647_v38 = vld [vmem:[%s5325_s0 + $0x238] sm:$0xff]  ;;  %v3648_v44 = vld [vmem:[%s5325_s0 + $0x240] sm:$0xff] }
   0xf   :  { %4489 = vmatpush.bf16.msra.mxu2 %v3708_v3  ;;  %4490 = vmatpush.bf16.msra.mxu3 %v3708_v3  ;;  %v3679_v39 = vld [vmem:[%s5325_s0 + $0x338] sm:$0xff]  ;;  %v3680_v45 = vld [vmem:[%s5325_s0 + $0x340] sm:$0xff]  ;;  %v3585_v0 = vld [vmem:[%s5325_s0 + $0x48] sm:$0xff] }
  0x10   :  { %v3617_v1 = vld [vmem:[%s5325_s0 + $0x148] sm:$0xff] }
  0x11   :  { %v3649_v2 = vld [vmem:[%s5325_s0 + $0x248] sm:$0xff] }
  0x12   :  { %1103 = vmatpush.bf16.msra.mxu0 %v3707_v4  ;;  %4491 = vmatpush.bf16.msra.mxu1 %v3707_v4 }
  0x13   :  { %4492 = vmatpush.bf16.msra.mxu2 %v3707_v4  ;;  %4493 = vmatpush.bf16.msra.mxu3 %v3707_v4 }
  0x16   :  { %1104 = vmatpush.bf16.msra.mxu0 %v3706_v5  ;;  %4494 = vmatpush.bf16.msra.mxu1 %v3706_v5 }
  0x17   :  { %4495 = vmatpush.bf16.msra.mxu2 %v3706_v5  ;;  %4496 = vmatpush.bf16.msra.mxu3 %v3706_v5 }
  0x1a   :  { %1105 = vmatpush.bf16.msra.mxu0 %v3705_v6  ;;  %4497 = vmatpush.bf16.msra.mxu1 %v3705_v6 }
  0x1b   :  { %4498 = vmatpush.bf16.msra.mxu2 %v3705_v6  ;;  %4499 = vmatpush.bf16.msra.mxu3 %v3705_v6 }
  0x1e   :  { %1106 = vmatpush.bf16.msra.mxu0 %v3704_v7  ;;  %4500 = vmatpush.bf16.msra.mxu1 %v3704_v7 }
  0x1f   :  { %4501 = vmatpush.bf16.msra.mxu2 %v3704_v7  ;;  %4502 = vmatpush.bf16.msra.mxu3 %v3704_v7  ;;  %v3681_v7 = vld [vmem:[%s5325_s0 + $0x348] sm:$0xff] }
  0x21   :  { %1107 = vmatmul.bf16.vlgmr.msra.gmra.mxu0 %v3576_v8  ;;  %1267 = vmatmul.bf16.vlgmr.msra.gmra.mxu1 %v3608_v9 }
  0x22   :  { %1427 = vmatmul.bf16.vlgmr.msra.gmra.mxu2 %v3640_v10  ;;  %1587 = vmatmul.bf16.vlgmr.msra.gmra.mxu3 %v3672_v11 }
  0x31   :  { %1112 = vmatmul.bf16.gmra.mxu0 %v3577_v12  ;;  %1272 = vmatmul.bf16.gmra.mxu1 %v3609_v13 }
  0x32   :  { %1432 = vmatmul.bf16.gmra.mxu2 %v3641_v14  ;;  %1592 = vmatmul.bf16.gmra.mxu3 %v3673_v15 }
  0x41   :  { %1117 = vmatmul.bf16.gmra.mxu0 %v3578_v16  ;;  %1277 = vmatmul.bf16.gmra.mxu1 %v3610_v17 }
  0x42   :  { %1437 = vmatmul.bf16.gmra.mxu2 %v3642_v18  ;;  %1597 = vmatmul.bf16.gmra.mxu3 %v3674_v19 }
  0x51   :  { %1122 = vmatmul.bf16.gmra.mxu0 %v3579_v20  ;;  %1282 = vmatmul.bf16.gmra.mxu1 %v3611_v21 }
  0x52   :  { %1442 = vmatmul.bf16.gmra.mxu2 %v3643_v22  ;;  %1602 = vmatmul.bf16.gmra.mxu3 %v3675_v23 }
  0x61   :  { %1127 = vmatmul.bf16.gmra.mxu0 %v3580_v24  ;;  %1287 = vmatmul.bf16.gmra.mxu1 %v3612_v25 }
  0x62   :  { %1447 = vmatmul.bf16.gmra.mxu2 %v3644_v26  ;;  %1607 = vmatmul.bf16.gmra.mxu3 %v3676_v27 }
  0x71   :  { %1132 = vmatmul.bf16.gmra.mxu0 %v3581_v28  ;;  %1292 = vmatmul.bf16.gmra.mxu1 %v3613_v29 }
  0x72   :  { %1452 = vmatmul.bf16.gmra.mxu2 %v3645_v30  ;;  %1612 = vmatmul.bf16.gmra.mxu3 %v3677_v31 }
  0x81   :  { %1137 = vmatmul.bf16.gmra.mxu0 %v3582_v32  ;;  %1297 = vmatmul.bf16.gmra.mxu1 %v3614_v33  ;;  %v3586_v32 = vld [vmem:[%s5325_s0 + $0x50] sm:$0xff] }
  0x82   :  { %1457 = vmatmul.bf16.gmra.mxu2 %v3646_v34  ;;  %1617 = vmatmul.bf16.gmra.mxu3 %v3678_v35  ;;  %v3618_v33 = vld [vmem:[%s5325_s0 + $0x150] sm:$0xff] }
  0x83   :  { %v3650_v34 = vld [vmem:[%s5325_s0 + $0x250] sm:$0xff] }
  0x91   :  { %1142 = vmatmul.bf16.gmra.mxu0 %v3583_v36  ;;  %1302 = vmatmul.bf16.gmra.mxu1 %v3615_v37 }
  0x92   :  { %1462 = vmatmul.bf16.gmra.mxu2 %v3647_v38  ;;  %1622 = vmatmul.bf16.gmra.mxu3 %v3679_v39  ;;  %v3682_v39 = vld [vmem:[%s5325_s0 + $0x350] sm:$0xff] }
  0x9e   :  { %v1108_v42 = vpop.f32.mrf.mxu0  ;;  %v1268_v43 = vpop.f32.mrf.mxu1 }
  0x9f   :  { %v2004_v46 = vmul.f32 0.2, %v1108_v42  ;;  %v2068_v47 = vmul.f32 0.2, %v1268_v43  ;;  %vm1748_vm0 = vcmp.ge.f32.partialorder %v1108_v42, 0.0  ;;  %vm1812_vm1 = vcmp.ge.f32.partialorder %v1268_v43, 0.0 }
  0xa1   :  { %1147 = vmatmul.bf16.gmra.mxu0 %v3584_v40  ;;  %1307 = vmatmul.bf16.gmra.mxu1 %v3616_v41  ;;  %v2260_v54 = vsel %vm1748_vm0, %v1108_v42, %v2004_v46  ;;  %v2324_v55 = vsel %vm1812_vm1, %v1268_v43, %v2068_v47 }
  0xa2   :  { %1467 = vmatmul.bf16.gmra.mxu2 %v3648_v44  ;;  %1627 = vmatmul.bf16.gmra.mxu3 %v3680_v45 }
  0xa5   :  { %v1428_v48 = vpop.f32.mrf.mxu2  ;;  %v1588_v49 = vpop.f32.mrf.mxu3 }
  0xa6   :  { %v1110_v50 = vpop.f32.mrf.mxu0  ;;  %v1270_v51 = vpop.f32.mrf.mxu1  ;;  %v2132_v60 = vmul.f32 0.2, %v1428_v48  ;;  %v2196_v61 = vmul.f32 0.2, %v1588_v49  ;;  %vm1876_vm4 = vcmp.ge.f32.partialorder %v1428_v48, 0.0  ;;  %vm1940_vm5 = vcmp.ge.f32.partialorder %v1588_v49, 0.0 }
  0xa7   :  { %vm1749_vm2 = vcmp.ge.f32.partialorder %v1110_v50, 0.0  ;;  %v2005_v52 = vmul.f32 0.2, %v1110_v50  ;;  %vm1813_vm3 = vcmp.ge.f32.partialorder %v1270_v51, 0.0  ;;  %v2069_v53 = vmul.f32 0.2, %v1270_v51 }
  0xa8   :  { %v2388_v8 = vsel %vm1876_vm4, %v1428_v48, %v2132_v60  ;;  %v2452_v9 = vsel %vm1940_vm5, %v1588_v49, %v2196_v61 }
  0xa9   :  { %v2261_v56 = vsel %vm1749_vm2, %v1110_v50, %v2005_v52  ;;  %v2325_v57 = vsel %vm1813_vm3, %v1270_v51, %v2069_v53 }
  0xaa   :  { %v3715_v58 = vpack.c.bf16 %v2261_v56, %v2260_v54  ;;  %v3875_v59 = vpack.c.bf16 %v2325_v57, %v2324_v55 }
  0xac   :  { %3716 = vst [vmem:[%s5326_s2] sm:$0xff] %v3715_v58  }
  0xad   :  { %4383 = vst [vmem:[%s5326_s2 + $0x100] sm:$0xff] %v3875_v59   ;;  %v1430_v62 = vpop.f32.mrf.mxu2  ;;  %v1590_v63 = vpop.f32.mrf.mxu3 }
  0xae   :  { %vm1877_vm6 = vcmp.ge.f32.partialorder %v1430_v62, 0.0  ;;  %v2133_v3 = vmul.f32 0.2, %v1430_v62  ;;  %vm1941_vm7 = vcmp.ge.f32.partialorder %v1590_v63, 0.0  ;;  %v2197_v4 = vmul.f32 0.2, %v1590_v63  ;;  %v1113_v5 = vpop.f32.mrf.mxu0  ;;  %v1273_v6 = vpop.f32.mrf.mxu1 }
  0xaf   :  { %v2006_v14 = vmul.f32 0.2, %v1113_v5  ;;  %v2070_v15 = vmul.f32 0.2, %v1273_v6  ;;  %vm1750_vm8 = vcmp.ge.f32.partialorder %v1113_v5, 0.0  ;;  %vm1814_vm9 = vcmp.ge.f32.partialorder %v1273_v6, 0.0 }
  0xb0   :  { %v2389_v10 = vsel %vm1877_vm6, %v1430_v62, %v2133_v3  ;;  %v2453_v11 = vsel %vm1941_vm7, %v1590_v63, %v2197_v4 }
  0xb1   :  { %v4035_v12 = vpack.c.bf16 %v2389_v10, %v2388_v8  ;;  %v4195_v13 = vpack.c.bf16 %v2453_v11, %v2452_v9  ;;  %1152 = vmatmul.bf16.gmra.mxu0 %v3585_v0  ;;  %1312 = vmatmul.bf16.gmra.mxu1 %v3617_v1  ;;  %v2262_v22 = vsel %vm1750_vm8, %v1113_v5, %v2006_v14  ;;  %v3587_v0 = vld [vmem:[%s5325_s0 + $0x58] sm:$0xff] }
  0xb2   :  { %1472 = vmatmul.bf16.gmra.mxu2 %v3649_v2  ;;  %1632 = vmatmul.bf16.gmra.mxu3 %v3681_v7  ;;  %v2326_v23 = vsel %vm1814_vm9, %v1273_v6, %v2070_v15  ;;  %v3619_v1 = vld [vmem:[%s5325_s0 + $0x158] sm:$0xff] }
  0xb3   :  { %4415 = vst [vmem:[%s5326_s2 + $0x200] sm:$0xff] %v4035_v12   ;;  %v3651_v2 = vld [vmem:[%s5325_s0 + $0x258] sm:$0xff] }
  0xb4   :  { %4447 = vst [vmem:[%s5326_s2 + $0x300] sm:$0xff] %v4195_v13   ;;  %v3683_v7 = vld [vmem:[%s5325_s0 + $0x358] sm:$0xff] }
  0xb5   :  { %v1433_v16 = vpop.f32.mrf.mxu2  ;;  %v1593_v17 = vpop.f32.mrf.mxu3 }
  0xb6   :  { %v1115_v18 = vpop.f32.mrf.mxu0  ;;  %v1275_v19 = vpop.f32.mrf.mxu1  ;;  %v2134_v28 = vmul.f32 0.2, %v1433_v16  ;;  %v2198_v29 = vmul.f32 0.2, %v1593_v17  ;;  %vm1878_vm12 = vcmp.ge.f32.partialorder %v1433_v16, 0.0  ;;  %vm1942_vm13 = vcmp.ge.f32.partialorder %v1593_v17, 0.0 }
  0xb7   :  { %vm1751_vm10 = vcmp.ge.f32.partialorder %v1115_v18, 0.0  ;;  %v2007_v20 = vmul.f32 0.2, %v1115_v18  ;;  %vm1815_vm11 = vcmp.ge.f32.partialorder %v1275_v19, 0.0  ;;  %v2071_v21 = vmul.f32 0.2, %v1275_v19 }
  0xb8   :  { %v2390_v40 = vsel %vm1878_vm12, %v1433_v16, %v2134_v28  ;;  %v2454_v41 = vsel %vm1942_vm13, %v1593_v17, %v2198_v29 }
  0xb9   :  { %v2263_v24 = vsel %vm1751_vm10, %v1115_v18, %v2007_v20  ;;  %v2327_v25 = vsel %vm1815_vm11, %v1275_v19, %v2071_v21 }
  0xba   :  { %v3720_v26 = vpack.c.bf16 %v2263_v24, %v2262_v22  ;;  %v3880_v27 = vpack.c.bf16 %v2327_v25, %v2326_v23 }
  0xbc   :  { %4352 = vst [vmem:[%s5326_s2 + $0x8] sm:$0xff] %v3720_v26  }
  0xbd   :  { %4384 = vst [vmem:[%s5326_s2 + $0x108] sm:$0xff] %v3880_v27   ;;  %v1435_v30 = vpop.f32.mrf.mxu2  ;;  %v1595_v31 = vpop.f32.mrf.mxu3 }
  0xbe   :  { %vm1879_vm14 = vcmp.ge.f32.partialorder %v1435_v30, 0.0  ;;  %v2135_v35 = vmul.f32 0.2, %v1435_v30  ;;  %vm1943_vm15 = vcmp.ge.f32.partialorder %v1595_v31, 0.0  ;;  %v2199_v36 = vmul.f32 0.2, %v1595_v31  ;;  %v1118_v37 = vpop.f32.mrf.mxu0  ;;  %v1278_v38 = vpop.f32.mrf.mxu1 }
  0xbf   :  { %v2008_v46 = vmul.f32 0.2, %v1118_v37  ;;  %v2072_v47 = vmul.f32 0.2, %v1278_v38  ;;  %vm1752_vm0 = vcmp.ge.f32.partialorder %v1118_v37, 0.0  ;;  %vm1816_vm1 = vcmp.ge.f32.partialorder %v1278_v38, 0.0 }
  0xc0   :  { %v2391_v42 = vsel %vm1879_vm14, %v1435_v30, %v2135_v35  ;;  %v2455_v43 = vsel %vm1943_vm15, %v1595_v31, %v2199_v36 }
  0xc1   :  { %v4040_v44 = vpack.c.bf16 %v2391_v42, %v2390_v40  ;;  %v4200_v45 = vpack.c.bf16 %v2455_v43, %v2454_v41  ;;  %1157 = vmatmul.bf16.gmra.mxu0 %v3586_v32  ;;  %1317 = vmatmul.bf16.gmra.mxu1 %v3618_v33  ;;  %v2264_v54 = vsel %vm1752_vm0, %v1118_v37, %v2008_v46  ;;  %v3588_v32 = vld [vmem:[%s5325_s0 + $0x60] sm:$0xff] }
  0xc2   :  { %1477 = vmatmul.bf16.gmra.mxu2 %v3650_v34  ;;  %1637 = vmatmul.bf16.gmra.mxu3 %v3682_v39  ;;  %v2328_v55 = vsel %vm1816_vm1, %v1278_v38, %v2072_v47  ;;  %v3620_v33 = vld [vmem:[%s5325_s0 + $0x160] sm:$0xff] }
  0xc3   :  { %4416 = vst [vmem:[%s5326_s2 + $0x208] sm:$0xff] %v4040_v44   ;;  %v3652_v34 = vld [vmem:[%s5325_s0 + $0x260] sm:$0xff] }
  0xc4   :  { %4448 = vst [vmem:[%s5326_s2 + $0x308] sm:$0xff] %v4200_v45   ;;  %v3684_v39 = vld [vmem:[%s5325_s0 + $0x360] sm:$0xff] }
  0xc5   :  { %v1438_v48 = vpop.f32.mrf.mxu2  ;;  %v1598_v49 = vpop.f32.mrf.mxu3 }
  0xc6   :  { %v1120_v50 = vpop.f32.mrf.mxu0  ;;  %v1280_v51 = vpop.f32.mrf.mxu1  ;;  %v2136_v60 = vmul.f32 0.2, %v1438_v48  ;;  %v2200_v61 = vmul.f32 0.2, %v1598_v49  ;;  %vm1880_vm4 = vcmp.ge.f32.partialorder %v1438_v48, 0.0  ;;  %vm1944_vm5 = vcmp.ge.f32.partialorder %v1598_v49, 0.0 }
  0xc7   :  { %vm1753_vm2 = vcmp.ge.f32.partialorder %v1120_v50, 0.0  ;;  %v2009_v52 = vmul.f32 0.2, %v1120_v50  ;;  %vm1817_vm3 = vcmp.ge.f32.partialorder %v1280_v51, 0.0  ;;  %v2073_v53 = vmul.f32 0.2, %v1280_v51 }
  0xc8   :  { %v2392_v8 = vsel %vm1880_vm4, %v1438_v48, %v2136_v60  ;;  %v2456_v9 = vsel %vm1944_vm5, %v1598_v49, %v2200_v61 }
  0xc9   :  { %v2265_v56 = vsel %vm1753_vm2, %v1120_v50, %v2009_v52  ;;  %v2329_v57 = vsel %vm1817_vm3, %v1280_v51, %v2073_v53 }
  0xca   :  { %v3725_v58 = vpack.c.bf16 %v2265_v56, %v2264_v54  ;;  %v3885_v59 = vpack.c.bf16 %v2329_v57, %v2328_v55 }
  0xcc   :  { %4353 = vst [vmem:[%s5326_s2 + $0x10] sm:$0xff] %v3725_v58  }
  0xcd   :  { %4385 = vst [vmem:[%s5326_s2 + $0x110] sm:$0xff] %v3885_v59   ;;  %v1440_v62 = vpop.f32.mrf.mxu2  ;;  %v1600_v63 = vpop.f32.mrf.mxu3 }
  0xce   :  { %vm1881_vm6 = vcmp.ge.f32.partialorder %v1440_v62, 0.0  ;;  %v2137_v3 = vmul.f32 0.2, %v1440_v62  ;;  %vm1945_vm7 = vcmp.ge.f32.partialorder %v1600_v63, 0.0  ;;  %v2201_v4 = vmul.f32 0.2, %v1600_v63  ;;  %v1123_v5 = vpop.f32.mrf.mxu0  ;;  %v1283_v6 = vpop.f32.mrf.mxu1 }
  0xcf   :  { %v2010_v14 = vmul.f32 0.2, %v1123_v5  ;;  %v2074_v15 = vmul.f32 0.2, %v1283_v6  ;;  %vm1754_vm8 = vcmp.ge.f32.partialorder %v1123_v5, 0.0  ;;  %vm1818_vm9 = vcmp.ge.f32.partialorder %v1283_v6, 0.0 }
  0xd0   :  { %v2393_v10 = vsel %vm1881_vm6, %v1440_v62, %v2137_v3  ;;  %v2457_v11 = vsel %vm1945_vm7, %v1600_v63, %v2201_v4 }
  0xd1   :  { %v4045_v12 = vpack.c.bf16 %v2393_v10, %v2392_v8  ;;  %v4205_v13 = vpack.c.bf16 %v2457_v11, %v2456_v9  ;;  %1162 = vmatmul.bf16.gmra.mxu0 %v3587_v0  ;;  %1322 = vmatmul.bf16.gmra.mxu1 %v3619_v1  ;;  %v2266_v22 = vsel %vm1754_vm8, %v1123_v5, %v2010_v14  ;;  %v3589_v0 = vld [vmem:[%s5325_s0 + $0x68] sm:$0xff] }
  0xd2   :  { %1482 = vmatmul.bf16.gmra.mxu2 %v3651_v2  ;;  %1642 = vmatmul.bf16.gmra.mxu3 %v3683_v7  ;;  %v2330_v23 = vsel %vm1818_vm9, %v1283_v6, %v2074_v15  ;;  %v3621_v1 = vld [vmem:[%s5325_s0 + $0x168] sm:$0xff] }
  0xd3   :  { %4417 = vst [vmem:[%s5326_s2 + $0x210] sm:$0xff] %v4045_v12   ;;  %v3653_v2 = vld [vmem:[%s5325_s0 + $0x268] sm:$0xff] }
  0xd4   :  { %4449 = vst [vmem:[%s5326_s2 + $0x310] sm:$0xff] %v4205_v13   ;;  %v3685_v7 = vld [vmem:[%s5325_s0 + $0x368] sm:$0xff] }
  0xd5   :  { %v1443_v16 = vpop.f32.mrf.mxu2  ;;  %v1603_v17 = vpop.f32.mrf.mxu3 }
  0xd6   :  { %v1125_v18 = vpop.f32.mrf.mxu0  ;;  %v1285_v19 = vpop.f32.mrf.mxu1  ;;  %v2138_v28 = vmul.f32 0.2, %v1443_v16  ;;  %v2202_v29 = vmul.f32 0.2, %v1603_v17  ;;  %vm1882_vm12 = vcmp.ge.f32.partialorder %v1443_v16, 0.0  ;;  %vm1946_vm13 = vcmp.ge.f32.partialorder %v1603_v17, 0.0 }
  0xd7   :  { %vm1755_vm10 = vcmp.ge.f32.partialorder %v1125_v18, 0.0  ;;  %v2011_v20 = vmul.f32 0.2, %v1125_v18  ;;  %vm1819_vm11 = vcmp.ge.f32.partialorder %v1285_v19, 0.0  ;;  %v2075_v21 = vmul.f32 0.2, %v1285_v19 }
  0xd8   :  { %v2394_v40 = vsel %vm1882_vm12, %v1443_v16, %v2138_v28  ;;  %v2458_v41 = vsel %vm1946_vm13, %v1603_v17, %v2202_v29 }
  0xd9   :  { %v2267_v24 = vsel %vm1755_vm10, %v1125_v18, %v2011_v20  ;;  %v2331_v25 = vsel %vm1819_vm11, %v1285_v19, %v2075_v21 }
  0xda   :  { %v3730_v26 = vpack.c.bf16 %v2267_v24, %v2266_v22  ;;  %v3890_v27 = vpack.c.bf16 %v2331_v25, %v2330_v23 }
  0xdc   :  { %4354 = vst [vmem:[%s5326_s2 + $0x18] sm:$0xff] %v3730_v26  }
  0xdd   :  { %4386 = vst [vmem:[%s5326_s2 + $0x118] sm:$0xff] %v3890_v27   ;;  %v1445_v30 = vpop.f32.mrf.mxu2  ;;  %v1605_v31 = vpop.f32.mrf.mxu3 }
  0xde   :  { %vm1883_vm14 = vcmp.ge.f32.partialorder %v1445_v30, 0.0  ;;  %v2139_v35 = vmul.f32 0.2, %v1445_v30  ;;  %vm1947_vm15 = vcmp.ge.f32.partialorder %v1605_v31, 0.0  ;;  %v2203_v36 = vmul.f32 0.2, %v1605_v31  ;;  %v1128_v37 = vpop.f32.mrf.mxu0  ;;  %v1288_v38 = vpop.f32.mrf.mxu1 }
  0xdf   :  { %v2012_v46 = vmul.f32 0.2, %v1128_v37  ;;  %v2076_v47 = vmul.f32 0.2, %v1288_v38  ;;  %vm1756_vm0 = vcmp.ge.f32.partialorder %v1128_v37, 0.0  ;;  %vm1820_vm1 = vcmp.ge.f32.partialorder %v1288_v38, 0.0 }
  0xe0   :  { %v2395_v42 = vsel %vm1883_vm14, %v1445_v30, %v2139_v35  ;;  %v2459_v43 = vsel %vm1947_vm15, %v1605_v31, %v2203_v36 }
  0xe1   :  { %v4050_v44 = vpack.c.bf16 %v2395_v42, %v2394_v40  ;;  %v4210_v45 = vpack.c.bf16 %v2459_v43, %v2458_v41  ;;  %1167 = vmatmul.bf16.gmra.mxu0 %v3588_v32  ;;  %1327 = vmatmul.bf16.gmra.mxu1 %v3620_v33  ;;  %v2268_v54 = vsel %vm1756_vm0, %v1128_v37, %v2012_v46  ;;  %v3590_v32 = vld [vmem:[%s5325_s0 + $0x70] sm:$0xff] }
  0xe2   :  { %1487 = vmatmul.bf16.gmra.mxu2 %v3652_v34  ;;  %1647 = vmatmul.bf16.gmra.mxu3 %v3684_v39  ;;  %v2332_v55 = vsel %vm1820_vm1, %v1288_v38, %v2076_v47  ;;  %v3622_v33 = vld [vmem:[%s5325_s0 + $0x170] sm:$0xff] }
  0xe3   :  { %4418 = vst [vmem:[%s5326_s2 + $0x218] sm:$0xff] %v4050_v44   ;;  %v3654_v34 = vld [vmem:[%s5325_s0 + $0x270] sm:$0xff] }
  0xe4   :  { %4450 = vst [vmem:[%s5326_s2 + $0x318] sm:$0xff] %v4210_v45   ;;  %v3686_v39 = vld [vmem:[%s5325_s0 + $0x370] sm:$0xff] }
  0xe5   :  { %v1448_v48 = vpop.f32.mrf.mxu2  ;;  %v1608_v49 = vpop.f32.mrf.mxu3 }
  0xe6   :  { %v1130_v50 = vpop.f32.mrf.mxu0  ;;  %v1290_v51 = vpop.f32.mrf.mxu1  ;;  %v2140_v60 = vmul.f32 0.2, %v1448_v48  ;;  %v2204_v61 = vmul.f32 0.2, %v1608_v49  ;;  %vm1884_vm4 = vcmp.ge.f32.partialorder %v1448_v48, 0.0  ;;  %vm1948_vm5 = vcmp.ge.f32.partialorder %v1608_v49, 0.0 }
  0xe7   :  { %vm1757_vm2 = vcmp.ge.f32.partialorder %v1130_v50, 0.0  ;;  %v2013_v52 = vmul.f32 0.2, %v1130_v50  ;;  %vm1821_vm3 = vcmp.ge.f32.partialorder %v1290_v51, 0.0  ;;  %v2077_v53 = vmul.f32 0.2, %v1290_v51 }
  0xe8   :  { %v2396_v8 = vsel %vm1884_vm4, %v1448_v48, %v2140_v60  ;;  %v2460_v9 = vsel %vm1948_vm5, %v1608_v49, %v2204_v61 }
  0xe9   :  { %v2269_v56 = vsel %vm1757_vm2, %v1130_v50, %v2013_v52  ;;  %v2333_v57 = vsel %vm1821_vm3, %v1290_v51, %v2077_v53 }
  0xea   :  { %v3735_v58 = vpack.c.bf16 %v2269_v56, %v2268_v54  ;;  %v3895_v59 = vpack.c.bf16 %v2333_v57, %v2332_v55 }
  0xec   :  { %4355 = vst [vmem:[%s5326_s2 + $0x20] sm:$0xff] %v3735_v58  }
  0xed   :  { %4387 = vst [vmem:[%s5326_s2 + $0x120] sm:$0xff] %v3895_v59   ;;  %v1450_v62 = vpop.f32.mrf.mxu2  ;;  %v1610_v63 = vpop.f32.mrf.mxu3 }
  0xee   :  { %vm1885_vm6 = vcmp.ge.f32.partialorder %v1450_v62, 0.0  ;;  %v2141_v3 = vmul.f32 0.2, %v1450_v62  ;;  %vm1949_vm7 = vcmp.ge.f32.partialorder %v1610_v63, 0.0  ;;  %v2205_v4 = vmul.f32 0.2, %v1610_v63  ;;  %v1133_v5 = vpop.f32.mrf.mxu0  ;;  %v1293_v6 = vpop.f32.mrf.mxu1 }
  0xef   :  { %v2014_v14 = vmul.f32 0.2, %v1133_v5  ;;  %v2078_v15 = vmul.f32 0.2, %v1293_v6  ;;  %vm1758_vm8 = vcmp.ge.f32.partialorder %v1133_v5, 0.0  ;;  %vm1822_vm9 = vcmp.ge.f32.partialorder %v1293_v6, 0.0 }
  0xf0   :  { %v2397_v10 = vsel %vm1885_vm6, %v1450_v62, %v2141_v3  ;;  %v2461_v11 = vsel %vm1949_vm7, %v1610_v63, %v2205_v4 }
  0xf1   :  { %v4055_v12 = vpack.c.bf16 %v2397_v10, %v2396_v8  ;;  %v4215_v13 = vpack.c.bf16 %v2461_v11, %v2460_v9  ;;  %1172 = vmatmul.bf16.gmra.mxu0 %v3589_v0  ;;  %1332 = vmatmul.bf16.gmra.mxu1 %v3621_v1  ;;  %v2270_v22 = vsel %vm1758_vm8, %v1133_v5, %v2014_v14  ;;  %v3591_v0 = vld [vmem:[%s5325_s0 + $0x78] sm:$0xff] }
  0xf2   :  { %1492 = vmatmul.bf16.gmra.mxu2 %v3653_v2  ;;  %1652 = vmatmul.bf16.gmra.mxu3 %v3685_v7  ;;  %v2334_v23 = vsel %vm1822_vm9, %v1293_v6, %v2078_v15  ;;  %v3623_v1 = vld [vmem:[%s5325_s0 + $0x178] sm:$0xff] }
  0xf3   :  { %4419 = vst [vmem:[%s5326_s2 + $0x220] sm:$0xff] %v4055_v12   ;;  %v3655_v2 = vld [vmem:[%s5325_s0 + $0x278] sm:$0xff] }
  0xf4   :  { %4451 = vst [vmem:[%s5326_s2 + $0x320] sm:$0xff] %v4215_v13   ;;  %v3687_v7 = vld [vmem:[%s5325_s0 + $0x378] sm:$0xff] }
  0xf5   :  { %v1453_v16 = vpop.f32.mrf.mxu2  ;;  %v1613_v17 = vpop.f32.mrf.mxu3 }
  0xf6   :  { %v1135_v18 = vpop.f32.mrf.mxu0  ;;  %v1295_v19 = vpop.f32.mrf.mxu1  ;;  %v2142_v28 = vmul.f32 0.2, %v1453_v16  ;;  %v2206_v29 = vmul.f32 0.2, %v1613_v17  ;;  %vm1886_vm12 = vcmp.ge.f32.partialorder %v1453_v16, 0.0  ;;  %vm1950_vm13 = vcmp.ge.f32.partialorder %v1613_v17, 0.0 }
  0xf7   :  { %vm1759_vm10 = vcmp.ge.f32.partialorder %v1135_v18, 0.0  ;;  %v2015_v20 = vmul.f32 0.2, %v1135_v18  ;;  %vm1823_vm11 = vcmp.ge.f32.partialorder %v1295_v19, 0.0  ;;  %v2079_v21 = vmul.f32 0.2, %v1295_v19 }
  0xf8   :  { %v2398_v40 = vsel %vm1886_vm12, %v1453_v16, %v2142_v28  ;;  %v2462_v41 = vsel %vm1950_vm13, %v1613_v17, %v2206_v29 }
  0xf9   :  { %v2271_v24 = vsel %vm1759_vm10, %v1135_v18, %v2015_v20  ;;  %v2335_v25 = vsel %vm1823_vm11, %v1295_v19, %v2079_v21 }
  0xfa   :  { %v3740_v26 = vpack.c.bf16 %v2271_v24, %v2270_v22  ;;  %v3900_v27 = vpack.c.bf16 %v2335_v25, %v2334_v23 }
  0xfc   :  { %4356 = vst [vmem:[%s5326_s2 + $0x28] sm:$0xff] %v3740_v26  }
  0xfd   :  { %4388 = vst [vmem:[%s5326_s2 + $0x128] sm:$0xff] %v3900_v27   ;;  %v1455_v30 = vpop.f32.mrf.mxu2  ;;  %v1615_v31 = vpop.f32.mrf.mxu3 }
  0xfe   :  { %vm1887_vm14 = vcmp.ge.f32.partialorder %v1455_v30, 0.0  ;;  %v2143_v35 = vmul.f32 0.2, %v1455_v30  ;;  %vm1951_vm15 = vcmp.ge.f32.partialorder %v1615_v31, 0.0  ;;  %v2207_v36 = vmul.f32 0.2, %v1615_v31  ;;  %v1138_v37 = vpop.f32.mrf.mxu0  ;;  %v1298_v38 = vpop.f32.mrf.mxu1 }
  0xff   :  { %v2016_v46 = vmul.f32 0.2, %v1138_v37  ;;  %v2080_v47 = vmul.f32 0.2, %v1298_v38  ;;  %vm1760_vm0 = vcmp.ge.f32.partialorder %v1138_v37, 0.0  ;;  %vm1824_vm1 = vcmp.ge.f32.partialorder %v1298_v38, 0.0 }
 0x100   :  { %v2399_v42 = vsel %vm1887_vm14, %v1455_v30, %v2143_v35  ;;  %v2463_v43 = vsel %vm1951_vm15, %v1615_v31, %v2207_v36 }
 0x101   :  { %v4060_v44 = vpack.c.bf16 %v2399_v42, %v2398_v40  ;;  %v4220_v45 = vpack.c.bf16 %v2463_v43, %v2462_v41  ;;  %1177 = vmatmul.bf16.gmra.mxu0 %v3590_v32  ;;  %1337 = vmatmul.bf16.gmra.mxu1 %v3622_v33  ;;  %v2272_v54 = vsel %vm1760_vm0, %v1138_v37, %v2016_v46  ;;  %v3592_v32 = vld [vmem:[%s5325_s0 + $0x80] sm:$0xff] }
 0x102   :  { %1497 = vmatmul.bf16.gmra.mxu2 %v3654_v34  ;;  %1657 = vmatmul.bf16.gmra.mxu3 %v3686_v39  ;;  %v2336_v55 = vsel %vm1824_vm1, %v1298_v38, %v2080_v47  ;;  %v3624_v33 = vld [vmem:[%s5325_s0 + $0x180] sm:$0xff] }
 0x103   :  { %4420 = vst [vmem:[%s5326_s2 + $0x228] sm:$0xff] %v4060_v44   ;;  %v3656_v34 = vld [vmem:[%s5325_s0 + $0x280] sm:$0xff] }
 0x104   :  { %4452 = vst [vmem:[%s5326_s2 + $0x328] sm:$0xff] %v4220_v45   ;;  %v3688_v39 = vld [vmem:[%s5325_s0 + $0x380] sm:$0xff] }
 0x105   :  { %v1458_v48 = vpop.f32.mrf.mxu2  ;;  %v1618_v49 = vpop.f32.mrf.mxu3 }
 0x106   :  { %v1140_v50 = vpop.f32.mrf.mxu0  ;;  %v1300_v51 = vpop.f32.mrf.mxu1  ;;  %v2144_v60 = vmul.f32 0.2, %v1458_v48  ;;  %v2208_v61 = vmul.f32 0.2, %v1618_v49  ;;  %vm1888_vm4 = vcmp.ge.f32.partialorder %v1458_v48, 0.0  ;;  %vm1952_vm5 = vcmp.ge.f32.partialorder %v1618_v49, 0.0 }
 0x107   :  { %vm1761_vm2 = vcmp.ge.f32.partialorder %v1140_v50, 0.0  ;;  %v2017_v52 = vmul.f32 0.2, %v1140_v50  ;;  %vm1825_vm3 = vcmp.ge.f32.partialorder %v1300_v51, 0.0  ;;  %v2081_v53 = vmul.f32 0.2, %v1300_v51 }
 0x108   :  { %v2400_v8 = vsel %vm1888_vm4, %v1458_v48, %v2144_v60  ;;  %v2464_v9 = vsel %vm1952_vm5, %v1618_v49, %v2208_v61 }
 0x109   :  { %v2273_v56 = vsel %vm1761_vm2, %v1140_v50, %v2017_v52  ;;  %v2337_v57 = vsel %vm1825_vm3, %v1300_v51, %v2081_v53 }
 0x10a   :  { %v3745_v58 = vpack.c.bf16 %v2273_v56, %v2272_v54  ;;  %v3905_v59 = vpack.c.bf16 %v2337_v57, %v2336_v55 }
 0x10c   :  { %4357 = vst [vmem:[%s5326_s2 + $0x30] sm:$0xff] %v3745_v58  }
 0x10d   :  { %4389 = vst [vmem:[%s5326_s2 + $0x130] sm:$0xff] %v3905_v59   ;;  %v1460_v62 = vpop.f32.mrf.mxu2  ;;  %v1620_v63 = vpop.f32.mrf.mxu3 }
 0x10e   :  { %vm1889_vm6 = vcmp.ge.f32.partialorder %v1460_v62, 0.0  ;;  %v2145_v3 = vmul.f32 0.2, %v1460_v62  ;;  %vm1953_vm7 = vcmp.ge.f32.partialorder %v1620_v63, 0.0  ;;  %v2209_v4 = vmul.f32 0.2, %v1620_v63  ;;  %v1143_v5 = vpop.f32.mrf.mxu0  ;;  %v1303_v6 = vpop.f32.mrf.mxu1 }
 0x10f   :  { %v2018_v14 = vmul.f32 0.2, %v1143_v5  ;;  %v2082_v15 = vmul.f32 0.2, %v1303_v6  ;;  %vm1762_vm8 = vcmp.ge.f32.partialorder %v1143_v5, 0.0  ;;  %vm1826_vm9 = vcmp.ge.f32.partialorder %v1303_v6, 0.0 }
 0x110   :  { %v2401_v10 = vsel %vm1889_vm6, %v1460_v62, %v2145_v3  ;;  %v2465_v11 = vsel %vm1953_vm7, %v1620_v63, %v2209_v4 }
 0x111   :  { %v4065_v12 = vpack.c.bf16 %v2401_v10, %v2400_v8  ;;  %v4225_v13 = vpack.c.bf16 %v2465_v11, %v2464_v9  ;;  %1182 = vmatmul.bf16.gmra.mxu0 %v3591_v0  ;;  %1342 = vmatmul.bf16.gmra.mxu1 %v3623_v1  ;;  %v2274_v22 = vsel %vm1762_vm8, %v1143_v5, %v2018_v14  ;;  %v3593_v0 = vld [vmem:[%s5325_s0 + $0x88] sm:$0xff] }
 0x112   :  { %1502 = vmatmul.bf16.gmra.mxu2 %v3655_v2  ;;  %1662 = vmatmul.bf16.gmra.mxu3 %v3687_v7  ;;  %v2338_v23 = vsel %vm1826_vm9, %v1303_v6, %v2082_v15  ;;  %v3625_v1 = vld [vmem:[%s5325_s0 + $0x188] sm:$0xff] }
 0x113   :  { %4421 = vst [vmem:[%s5326_s2 + $0x230] sm:$0xff] %v4065_v12   ;;  %v3657_v2 = vld [vmem:[%s5325_s0 + $0x288] sm:$0xff] }
 0x114   :  { %4453 = vst [vmem:[%s5326_s2 + $0x330] sm:$0xff] %v4225_v13   ;;  %v3689_v7 = vld [vmem:[%s5325_s0 + $0x388] sm:$0xff] }
 0x115   :  { %v1463_v16 = vpop.f32.mrf.mxu2  ;;  %v1623_v17 = vpop.f32.mrf.mxu3 }
 0x116   :  { %v1145_v18 = vpop.f32.mrf.mxu0  ;;  %v1305_v19 = vpop.f32.mrf.mxu1  ;;  %v2146_v28 = vmul.f32 0.2, %v1463_v16  ;;  %v2210_v29 = vmul.f32 0.2, %v1623_v17  ;;  %vm1890_vm12 = vcmp.ge.f32.partialorder %v1463_v16, 0.0  ;;  %vm1954_vm13 = vcmp.ge.f32.partialorder %v1623_v17, 0.0 }
 0x117   :  { %vm1763_vm10 = vcmp.ge.f32.partialorder %v1145_v18, 0.0  ;;  %v2019_v20 = vmul.f32 0.2, %v1145_v18  ;;  %vm1827_vm11 = vcmp.ge.f32.partialorder %v1305_v19, 0.0  ;;  %v2083_v21 = vmul.f32 0.2, %v1305_v19 }
 0x118   :  { %v2402_v40 = vsel %vm1890_vm12, %v1463_v16, %v2146_v28  ;;  %v2466_v41 = vsel %vm1954_vm13, %v1623_v17, %v2210_v29 }
 0x119   :  { %v2275_v24 = vsel %vm1763_vm10, %v1145_v18, %v2019_v20  ;;  %v2339_v25 = vsel %vm1827_vm11, %v1305_v19, %v2083_v21 }
 0x11a   :  { %v3750_v26 = vpack.c.bf16 %v2275_v24, %v2274_v22  ;;  %v3910_v27 = vpack.c.bf16 %v2339_v25, %v2338_v23 }
 0x11c   :  { %4358 = vst [vmem:[%s5326_s2 + $0x38] sm:$0xff] %v3750_v26  }
 0x11d   :  { %4390 = vst [vmem:[%s5326_s2 + $0x138] sm:$0xff] %v3910_v27   ;;  %v1465_v30 = vpop.f32.mrf.mxu2  ;;  %v1625_v31 = vpop.f32.mrf.mxu3 }
 0x11e   :  { %vm1891_vm14 = vcmp.ge.f32.partialorder %v1465_v30, 0.0  ;;  %v2147_v35 = vmul.f32 0.2, %v1465_v30  ;;  %vm1955_vm15 = vcmp.ge.f32.partialorder %v1625_v31, 0.0  ;;  %v2211_v36 = vmul.f32 0.2, %v1625_v31  ;;  %v1148_v37 = vpop.f32.mrf.mxu0  ;;  %v1308_v38 = vpop.f32.mrf.mxu1 }
 0x11f   :  { %v2020_v46 = vmul.f32 0.2, %v1148_v37  ;;  %v2084_v47 = vmul.f32 0.2, %v1308_v38  ;;  %vm1764_vm0 = vcmp.ge.f32.partialorder %v1148_v37, 0.0  ;;  %vm1828_vm1 = vcmp.ge.f32.partialorder %v1308_v38, 0.0 }
 0x120   :  { %v2403_v42 = vsel %vm1891_vm14, %v1465_v30, %v2147_v35  ;;  %v2467_v43 = vsel %vm1955_vm15, %v1625_v31, %v2211_v36  ;;  %v3594_v31 = vld [vmem:[%s5325_s0 + $0x90] sm:$0xff] }
 0x121   :  { %v4070_v44 = vpack.c.bf16 %v2403_v42, %v2402_v40  ;;  %v4230_v45 = vpack.c.bf16 %v2467_v43, %v2466_v41  ;;  %1187 = vmatmul.bf16.gmra.mxu0 %v3592_v32  ;;  %1347 = vmatmul.bf16.gmra.mxu1 %v3624_v33  ;;  %v2276_v54 = vsel %vm1764_vm0, %v1148_v37, %v2020_v46  ;;  %v3626_v35 = vld [vmem:[%s5325_s0 + $0x190] sm:$0xff] }
 0x122   :  { %1507 = vmatmul.bf16.gmra.mxu2 %v3656_v34  ;;  %1667 = vmatmul.bf16.gmra.mxu3 %v3688_v39  ;;  %v2340_v55 = vsel %vm1828_vm1, %v1308_v38, %v2084_v47  ;;  %v3658_v36 = vld [vmem:[%s5325_s0 + $0x290] sm:$0xff] }
 0x123   :  { %4422 = vst [vmem:[%s5326_s2 + $0x238] sm:$0xff] %v4070_v44   ;;  %v3690_v39 = vld [vmem:[%s5325_s0 + $0x390] sm:$0xff] }
 0x124   :  { %4454 = vst [vmem:[%s5326_s2 + $0x338] sm:$0xff] %v4230_v45  }
 0x125   :  { %v1468_v48 = vpop.f32.mrf.mxu2  ;;  %v1628_v49 = vpop.f32.mrf.mxu3 }
 0x126   :  { %v1150_v50 = vpop.f32.mrf.mxu0  ;;  %v1310_v51 = vpop.f32.mrf.mxu1  ;;  %v2148_v60 = vmul.f32 0.2, %v1468_v48  ;;  %v2212_v61 = vmul.f32 0.2, %v1628_v49  ;;  %vm1892_vm4 = vcmp.ge.f32.partialorder %v1468_v48, 0.0  ;;  %vm1956_vm5 = vcmp.ge.f32.partialorder %v1628_v49, 0.0 }
 0x127   :  { %vm1765_vm2 = vcmp.ge.f32.partialorder %v1150_v50, 0.0  ;;  %v2021_v52 = vmul.f32 0.2, %v1150_v50  ;;  %vm1829_vm3 = vcmp.ge.f32.partialorder %v1310_v51, 0.0  ;;  %v2085_v53 = vmul.f32 0.2, %v1310_v51 }
 0x128   :  { %v2404_v8 = vsel %vm1892_vm4, %v1468_v48, %v2148_v60  ;;  %v2468_v9 = vsel %vm1956_vm5, %v1628_v49, %v2212_v61 }
 0x129   :  { %v2277_v56 = vsel %vm1765_vm2, %v1150_v50, %v2021_v52  ;;  %v2341_v57 = vsel %vm1829_vm3, %v1310_v51, %v2085_v53 }
 0x12a   :  { %v3755_v58 = vpack.c.bf16 %v2277_v56, %v2276_v54  ;;  %v3915_v59 = vpack.c.bf16 %v2341_v57, %v2340_v55 }
 0x12c   :  { %4359 = vst [vmem:[%s5326_s2 + $0x40] sm:$0xff] %v3755_v58  }
 0x12d   :  { %4391 = vst [vmem:[%s5326_s2 + $0x140] sm:$0xff] %v3915_v59   ;;  %v1470_v62 = vpop.f32.mrf.mxu2  ;;  %v1630_v63 = vpop.f32.mrf.mxu3 }
 0x12e   :  { %vm1893_vm6 = vcmp.ge.f32.partialorder %v1470_v62, 0.0  ;;  %v2149_v3 = vmul.f32 0.2, %v1470_v62  ;;  %vm1957_vm7 = vcmp.ge.f32.partialorder %v1630_v63, 0.0  ;;  %v2213_v4 = vmul.f32 0.2, %v1630_v63  ;;  %v1153_v5 = vpop.f32.mrf.mxu0  ;;  %v1313_v6 = vpop.f32.mrf.mxu1 }
 0x12f   :  { %v2022_v14 = vmul.f32 0.2, %v1153_v5  ;;  %vm1766_vm8 = vcmp.ge.f32.partialorder %v1153_v5, 0.0  ;;  %v2086_v16 = vmul.f32 0.2, %v1313_v6  ;;  %vm1830_vm9 = vcmp.ge.f32.partialorder %v1313_v6, 0.0 }
 0x130   :  { %v2405_v10 = vsel %vm1893_vm6, %v1470_v62, %v2149_v3  ;;  %v2469_v11 = vsel %vm1957_vm7, %v1630_v63, %v2213_v4  ;;  %v3595_v63 = vld [vmem:[%s5325_s0 + $0x98] sm:$0xff] }
 0x131   :  { %v4075_v12 = vpack.c.bf16 %v2405_v10, %v2404_v8  ;;  %v4235_v13 = vpack.c.bf16 %v2469_v11, %v2468_v9  ;;  %1192 = vmatmul.bf16.gmra.mxu0 %v3593_v0  ;;  %1352 = vmatmul.bf16.gmra.mxu1 %v3625_v1  ;;  %v2278_v22 = vsel %vm1766_vm8, %v1153_v5, %v2022_v14  ;;  %v3627_v3 = vld [vmem:[%s5325_s0 + $0x198] sm:$0xff] }
 0x132   :  { %1512 = vmatmul.bf16.gmra.mxu2 %v3657_v2  ;;  %1672 = vmatmul.bf16.gmra.mxu3 %v3689_v7  ;;  %v2342_v24 = vsel %vm1830_vm9, %v1313_v6, %v2086_v16  ;;  %v3659_v4 = vld [vmem:[%s5325_s0 + $0x298] sm:$0xff] }
 0x133   :  { %4423 = vst [vmem:[%s5326_s2 + $0x240] sm:$0xff] %v4075_v12   ;;  %v3691_v7 = vld [vmem:[%s5325_s0 + $0x398] sm:$0xff] }
 0x134   :  { %4455 = vst [vmem:[%s5326_s2 + $0x340] sm:$0xff] %v4235_v13  }
 0x135   :  { %v1473_v15 = vpop.f32.mrf.mxu2  ;;  %v1633_v17 = vpop.f32.mrf.mxu3 }
 0x136   :  { %v1155_v18 = vpop.f32.mrf.mxu0  ;;  %v1315_v20 = vpop.f32.mrf.mxu1  ;;  %v2150_v28 = vmul.f32 0.2, %v1473_v15  ;;  %vm1894_vm12 = vcmp.ge.f32.partialorder %v1473_v15, 0.0  ;;  %v2214_v29 = vmul.f32 0.2, %v1633_v17  ;;  %vm1958_vm13 = vcmp.ge.f32.partialorder %v1633_v17, 0.0 }
 0x137   :  { %vm1767_vm10 = vcmp.ge.f32.partialorder %v1155_v18, 0.0  ;;  %v2023_v19 = vmul.f32 0.2, %v1155_v18  ;;  %vm1831_vm11 = vcmp.ge.f32.partialorder %v1315_v20, 0.0  ;;  %v2087_v21 = vmul.f32 0.2, %v1315_v20 }
 0x138   :  { %v2406_v40 = vsel %vm1894_vm12, %v1473_v15, %v2150_v28  ;;  %v2470_v42 = vsel %vm1958_vm13, %v1633_v17, %v2214_v29 }
 0x139   :  { %v2279_v23 = vsel %vm1767_vm10, %v1155_v18, %v2023_v19  ;;  %v2343_v26 = vsel %vm1831_vm11, %v1315_v20, %v2087_v21 }
 0x13a   :  { %v3760_v25 = vpack.c.bf16 %v2279_v23, %v2278_v22  ;;  %v3920_v27 = vpack.c.bf16 %v2343_v26, %v2342_v24 }
 0x13c   :  { %4360 = vst [vmem:[%s5326_s2 + $0x48] sm:$0xff] %v3760_v25  }
 0x13d   :  { %4392 = vst [vmem:[%s5326_s2 + $0x148] sm:$0xff] %v3920_v27   ;;  %v1475_v30 = vpop.f32.mrf.mxu2  ;;  %v1635_v33 = vpop.f32.mrf.mxu3 }
 0x13e   :  { %vm1895_vm14 = vcmp.ge.f32.partialorder %v1475_v30, 0.0  ;;  %v2151_v32 = vmul.f32 0.2, %v1475_v30  ;;  %v1158_v34 = vpop.f32.mrf.mxu0  ;;  %vm1959_vm15 = vcmp.ge.f32.partialorder %v1635_v33, 0.0  ;;  %v2215_v37 = vmul.f32 0.2, %v1635_v33  ;;  %v1318_v38 = vpop.f32.mrf.mxu1 }
 0x13f   :  { %v2024_v46 = vmul.f32 0.2, %v1158_v34  ;;  %vm1768_vm0 = vcmp.ge.f32.partialorder %v1158_v34, 0.0  ;;  %v2088_v48 = vmul.f32 0.2, %v1318_v38  ;;  %vm1832_vm1 = vcmp.ge.f32.partialorder %v1318_v38, 0.0 }
 0x140   :  { %v2407_v41 = vsel %vm1895_vm14, %v1475_v30, %v2151_v32  ;;  %v2471_v44 = vsel %vm1959_vm15, %v1635_v33, %v2215_v37 }
 0x141   :  { %v4080_v43 = vpack.c.bf16 %v2407_v41, %v2406_v40  ;;  %1197 = vmatmul.bf16.gmra.mxu0 %v3594_v31  ;;  %v4240_v45 = vpack.c.bf16 %v2471_v44, %v2470_v42  ;;  %1357 = vmatmul.bf16.gmra.mxu1 %v3626_v35  ;;  %v2280_v54 = vsel %vm1768_vm0, %v1158_v34, %v2024_v46  ;;  %v3596_v31 = vld [vmem:[%s5325_s0 + $0xa0] sm:$0xff] }
 0x142   :  { %1517 = vmatmul.bf16.gmra.mxu2 %v3658_v36  ;;  %1677 = vmatmul.bf16.gmra.mxu3 %v3690_v39  ;;  %v2344_v56 = vsel %vm1832_vm1, %v1318_v38, %v2088_v48  ;;  %v3628_v35 = vld [vmem:[%s5325_s0 + $0x1a0] sm:$0xff] }
 0x143   :  { %4424 = vst [vmem:[%s5326_s2 + $0x248] sm:$0xff] %v4080_v43   ;;  %v3660_v36 = vld [vmem:[%s5325_s0 + $0x2a0] sm:$0xff] }
 0x144   :  { %4456 = vst [vmem:[%s5326_s2 + $0x348] sm:$0xff] %v4240_v45   ;;  %v3692_v39 = vld [vmem:[%s5325_s0 + $0x3a0] sm:$0xff] }
 0x145   :  { %v1478_v47 = vpop.f32.mrf.mxu2  ;;  %v1638_v49 = vpop.f32.mrf.mxu3 }
 0x146   :  { %v1160_v50 = vpop.f32.mrf.mxu0  ;;  %v1320_v52 = vpop.f32.mrf.mxu1  ;;  %v2152_v60 = vmul.f32 0.2, %v1478_v47  ;;  %vm1896_vm4 = vcmp.ge.f32.partialorder %v1478_v47, 0.0  ;;  %v2216_v61 = vmul.f32 0.2, %v1638_v49  ;;  %vm1960_vm5 = vcmp.ge.f32.partialorder %v1638_v49, 0.0 }
 0x147   :  { %vm1769_vm2 = vcmp.ge.f32.partialorder %v1160_v50, 0.0  ;;  %v2025_v51 = vmul.f32 0.2, %v1160_v50  ;;  %vm1833_vm3 = vcmp.ge.f32.partialorder %v1320_v52, 0.0  ;;  %v2089_v53 = vmul.f32 0.2, %v1320_v52 }
 0x148   :  { %v2408_v8 = vsel %vm1896_vm4, %v1478_v47, %v2152_v60  ;;  %v2472_v10 = vsel %vm1960_vm5, %v1638_v49, %v2216_v61 }
 0x149   :  { %v2281_v55 = vsel %vm1769_vm2, %v1160_v50, %v2025_v51  ;;  %v2345_v58 = vsel %vm1833_vm3, %v1320_v52, %v2089_v53 }
 0x14a   :  { %v3765_v57 = vpack.c.bf16 %v2281_v55, %v2280_v54  ;;  %v3925_v59 = vpack.c.bf16 %v2345_v58, %v2344_v56 }
 0x14c   :  { %4361 = vst [vmem:[%s5326_s2 + $0x50] sm:$0xff] %v3765_v57  }
 0x14d   :  { %4393 = vst [vmem:[%s5326_s2 + $0x150] sm:$0xff] %v3925_v59   ;;  %v1480_v62 = vpop.f32.mrf.mxu2  ;;  %v1640_v1 = vpop.f32.mrf.mxu3 }
 0x14e   :  { %vm1897_vm6 = vcmp.ge.f32.partialorder %v1480_v62, 0.0  ;;  %v2153_v0 = vmul.f32 0.2, %v1480_v62  ;;  %v1163_v2 = vpop.f32.mrf.mxu0  ;;  %vm1961_vm7 = vcmp.ge.f32.partialorder %v1640_v1, 0.0  ;;  %v2217_v5 = vmul.f32 0.2, %v1640_v1  ;;  %v1323_v6 = vpop.f32.mrf.mxu1 }
 0x14f   :  { %v2026_v14 = vmul.f32 0.2, %v1163_v2  ;;  %vm1770_vm8 = vcmp.ge.f32.partialorder %v1163_v2, 0.0  ;;  %v2090_v16 = vmul.f32 0.2, %v1323_v6  ;;  %vm1834_vm9 = vcmp.ge.f32.partialorder %v1323_v6, 0.0 }
 0x150   :  { %v2409_v9 = vsel %vm1897_vm6, %v1480_v62, %v2153_v0  ;;  %v2473_v12 = vsel %vm1961_vm7, %v1640_v1, %v2217_v5 }
 0x151   :  { %v4085_v11 = vpack.c.bf16 %v2409_v9, %v2408_v8  ;;  %1202 = vmatmul.bf16.gmra.mxu0 %v3595_v63  ;;  %v4245_v13 = vpack.c.bf16 %v2473_v12, %v2472_v10  ;;  %1362 = vmatmul.bf16.gmra.mxu1 %v3627_v3  ;;  %v2282_v22 = vsel %vm1770_vm8, %v1163_v2, %v2026_v14  ;;  %v3597_v63 = vld [vmem:[%s5325_s0 + $0xa8] sm:$0xff] }
 0x152   :  { %1522 = vmatmul.bf16.gmra.mxu2 %v3659_v4  ;;  %1682 = vmatmul.bf16.gmra.mxu3 %v3691_v7  ;;  %v2346_v24 = vsel %vm1834_vm9, %v1323_v6, %v2090_v16  ;;  %v3629_v3 = vld [vmem:[%s5325_s0 + $0x1a8] sm:$0xff] }
 0x153   :  { %4425 = vst [vmem:[%s5326_s2 + $0x250] sm:$0xff] %v4085_v11   ;;  %v3661_v4 = vld [vmem:[%s5325_s0 + $0x2a8] sm:$0xff] }
 0x154   :  { %4457 = vst [vmem:[%s5326_s2 + $0x350] sm:$0xff] %v4245_v13   ;;  %v3693_v7 = vld [vmem:[%s5325_s0 + $0x3a8] sm:$0xff] }
 0x155   :  { %v1483_v15 = vpop.f32.mrf.mxu2  ;;  %v1643_v17 = vpop.f32.mrf.mxu3 }
 0x156   :  { %v1165_v18 = vpop.f32.mrf.mxu0  ;;  %v1325_v20 = vpop.f32.mrf.mxu1  ;;  %v2154_v28 = vmul.f32 0.2, %v1483_v15  ;;  %vm1898_vm12 = vcmp.ge.f32.partialorder %v1483_v15, 0.0  ;;  %v2218_v29 = vmul.f32 0.2, %v1643_v17  ;;  %vm1962_vm13 = vcmp.ge.f32.partialorder %v1643_v17, 0.0 }
 0x157   :  { %vm1771_vm10 = vcmp.ge.f32.partialorder %v1165_v18, 0.0  ;;  %v2027_v19 = vmul.f32 0.2, %v1165_v18  ;;  %vm1835_vm11 = vcmp.ge.f32.partialorder %v1325_v20, 0.0  ;;  %v2091_v21 = vmul.f32 0.2, %v1325_v20 }
 0x158   :  { %v2410_v40 = vsel %vm1898_vm12, %v1483_v15, %v2154_v28  ;;  %v2474_v42 = vsel %vm1962_vm13, %v1643_v17, %v2218_v29 }
 0x159   :  { %v2283_v23 = vsel %vm1771_vm10, %v1165_v18, %v2027_v19  ;;  %v2347_v26 = vsel %vm1835_vm11, %v1325_v20, %v2091_v21 }
 0x15a   :  { %v3770_v25 = vpack.c.bf16 %v2283_v23, %v2282_v22  ;;  %v3930_v27 = vpack.c.bf16 %v2347_v26, %v2346_v24 }
 0x15c   :  { %4362 = vst [vmem:[%s5326_s2 + $0x58] sm:$0xff] %v3770_v25  }
 0x15d   :  { %4394 = vst [vmem:[%s5326_s2 + $0x158] sm:$0xff] %v3930_v27   ;;  %v1485_v30 = vpop.f32.mrf.mxu2  ;;  %v1645_v33 = vpop.f32.mrf.mxu3 }
 0x15e   :  { %vm1899_vm14 = vcmp.ge.f32.partialorder %v1485_v30, 0.0  ;;  %v2155_v32 = vmul.f32 0.2, %v1485_v30  ;;  %v1168_v34 = vpop.f32.mrf.mxu0  ;;  %vm1963_vm15 = vcmp.ge.f32.partialorder %v1645_v33, 0.0  ;;  %v2219_v37 = vmul.f32 0.2, %v1645_v33  ;;  %v1328_v38 = vpop.f32.mrf.mxu1 }
 0x15f   :  { %v2028_v46 = vmul.f32 0.2, %v1168_v34  ;;  %vm1772_vm0 = vcmp.ge.f32.partialorder %v1168_v34, 0.0  ;;  %v2092_v48 = vmul.f32 0.2, %v1328_v38  ;;  %vm1836_vm1 = vcmp.ge.f32.partialorder %v1328_v38, 0.0 }
 0x160   :  { %v2411_v41 = vsel %vm1899_vm14, %v1485_v30, %v2155_v32  ;;  %v2475_v44 = vsel %vm1963_vm15, %v1645_v33, %v2219_v37 }
 0x161   :  { %v4090_v43 = vpack.c.bf16 %v2411_v41, %v2410_v40  ;;  %1207 = vmatmul.bf16.gmra.mxu0 %v3596_v31  ;;  %v4250_v45 = vpack.c.bf16 %v2475_v44, %v2474_v42  ;;  %1367 = vmatmul.bf16.gmra.mxu1 %v3628_v35  ;;  %v2284_v54 = vsel %vm1772_vm0, %v1168_v34, %v2028_v46  ;;  %v3598_v31 = vld [vmem:[%s5325_s0 + $0xb0] sm:$0xff] }
 0x162   :  { %1527 = vmatmul.bf16.gmra.mxu2 %v3660_v36  ;;  %1687 = vmatmul.bf16.gmra.mxu3 %v3692_v39  ;;  %v2348_v56 = vsel %vm1836_vm1, %v1328_v38, %v2092_v48  ;;  %v3630_v35 = vld [vmem:[%s5325_s0 + $0x1b0] sm:$0xff] }
 0x163   :  { %4426 = vst [vmem:[%s5326_s2 + $0x258] sm:$0xff] %v4090_v43   ;;  %v3662_v36 = vld [vmem:[%s5325_s0 + $0x2b0] sm:$0xff] }
 0x164   :  { %4458 = vst [vmem:[%s5326_s2 + $0x358] sm:$0xff] %v4250_v45   ;;  %v3694_v39 = vld [vmem:[%s5325_s0 + $0x3b0] sm:$0xff] }
 0x165   :  { %v1488_v47 = vpop.f32.mrf.mxu2  ;;  %v1648_v49 = vpop.f32.mrf.mxu3 }
 0x166   :  { %v1170_v50 = vpop.f32.mrf.mxu0  ;;  %v1330_v52 = vpop.f32.mrf.mxu1  ;;  %v2156_v60 = vmul.f32 0.2, %v1488_v47  ;;  %vm1900_vm4 = vcmp.ge.f32.partialorder %v1488_v47, 0.0  ;;  %v2220_v61 = vmul.f32 0.2, %v1648_v49  ;;  %vm1964_vm5 = vcmp.ge.f32.partialorder %v1648_v49, 0.0 }
 0x167   :  { %vm1773_vm2 = vcmp.ge.f32.partialorder %v1170_v50, 0.0  ;;  %v2029_v51 = vmul.f32 0.2, %v1170_v50  ;;  %vm1837_vm3 = vcmp.ge.f32.partialorder %v1330_v52, 0.0  ;;  %v2093_v53 = vmul.f32 0.2, %v1330_v52 }
 0x168   :  { %v2412_v8 = vsel %vm1900_vm4, %v1488_v47, %v2156_v60  ;;  %v2476_v10 = vsel %vm1964_vm5, %v1648_v49, %v2220_v61 }
 0x169   :  { %v2285_v55 = vsel %vm1773_vm2, %v1170_v50, %v2029_v51  ;;  %v2349_v58 = vsel %vm1837_vm3, %v1330_v52, %v2093_v53 }
 0x16a   :  { %v3775_v57 = vpack.c.bf16 %v2285_v55, %v2284_v54  ;;  %v3935_v59 = vpack.c.bf16 %v2349_v58, %v2348_v56 }
 0x16c   :  { %4363 = vst [vmem:[%s5326_s2 + $0x60] sm:$0xff] %v3775_v57  }
 0x16d   :  { %4395 = vst [vmem:[%s5326_s2 + $0x160] sm:$0xff] %v3935_v59   ;;  %v1490_v62 = vpop.f32.mrf.mxu2  ;;  %v1650_v1 = vpop.f32.mrf.mxu3 }
 0x16e   :  { %vm1901_vm6 = vcmp.ge.f32.partialorder %v1490_v62, 0.0  ;;  %v2157_v0 = vmul.f32 0.2, %v1490_v62  ;;  %v1173_v2 = vpop.f32.mrf.mxu0  ;;  %vm1965_vm7 = vcmp.ge.f32.partialorder %v1650_v1, 0.0  ;;  %v2221_v5 = vmul.f32 0.2, %v1650_v1  ;;  %v1333_v6 = vpop.f32.mrf.mxu1 }
 0x16f   :  { %v2030_v14 = vmul.f32 0.2, %v1173_v2  ;;  %vm1774_vm8 = vcmp.ge.f32.partialorder %v1173_v2, 0.0  ;;  %v2094_v16 = vmul.f32 0.2, %v1333_v6  ;;  %vm1838_vm9 = vcmp.ge.f32.partialorder %v1333_v6, 0.0 }
 0x170   :  { %v2413_v9 = vsel %vm1901_vm6, %v1490_v62, %v2157_v0  ;;  %v2477_v12 = vsel %vm1965_vm7, %v1650_v1, %v2221_v5 }
 0x171   :  { %v4095_v11 = vpack.c.bf16 %v2413_v9, %v2412_v8  ;;  %1212 = vmatmul.bf16.gmra.mxu0 %v3597_v63  ;;  %v4255_v13 = vpack.c.bf16 %v2477_v12, %v2476_v10  ;;  %1372 = vmatmul.bf16.gmra.mxu1 %v3629_v3  ;;  %v2286_v22 = vsel %vm1774_vm8, %v1173_v2, %v2030_v14  ;;  %v3599_v63 = vld [vmem:[%s5325_s0 + $0xb8] sm:$0xff] }
 0x172   :  { %1532 = vmatmul.bf16.gmra.mxu2 %v3661_v4  ;;  %1692 = vmatmul.bf16.gmra.mxu3 %v3693_v7  ;;  %v2350_v24 = vsel %vm1838_vm9, %v1333_v6, %v2094_v16  ;;  %v3631_v3 = vld [vmem:[%s5325_s0 + $0x1b8] sm:$0xff] }
 0x173   :  { %4427 = vst [vmem:[%s5326_s2 + $0x260] sm:$0xff] %v4095_v11   ;;  %v3663_v4 = vld [vmem:[%s5325_s0 + $0x2b8] sm:$0xff] }
 0x174   :  { %4459 = vst [vmem:[%s5326_s2 + $0x360] sm:$0xff] %v4255_v13   ;;  %v3695_v7 = vld [vmem:[%s5325_s0 + $0x3b8] sm:$0xff] }
 0x175   :  { %v1493_v15 = vpop.f32.mrf.mxu2  ;;  %v1653_v17 = vpop.f32.mrf.mxu3 }
 0x176   :  { %v1175_v18 = vpop.f32.mrf.mxu0  ;;  %v1335_v20 = vpop.f32.mrf.mxu1  ;;  %v2158_v28 = vmul.f32 0.2, %v1493_v15  ;;  %vm1902_vm12 = vcmp.ge.f32.partialorder %v1493_v15, 0.0  ;;  %v2222_v29 = vmul.f32 0.2, %v1653_v17  ;;  %vm1966_vm13 = vcmp.ge.f32.partialorder %v1653_v17, 0.0 }
 0x177   :  { %vm1775_vm10 = vcmp.ge.f32.partialorder %v1175_v18, 0.0  ;;  %v2031_v19 = vmul.f32 0.2, %v1175_v18  ;;  %vm1839_vm11 = vcmp.ge.f32.partialorder %v1335_v20, 0.0  ;;  %v2095_v21 = vmul.f32 0.2, %v1335_v20 }
 0x178   :  { %v2414_v40 = vsel %vm1902_vm12, %v1493_v15, %v2158_v28  ;;  %v2478_v42 = vsel %vm1966_vm13, %v1653_v17, %v2222_v29 }
 0x179   :  { %v2287_v23 = vsel %vm1775_vm10, %v1175_v18, %v2031_v19  ;;  %v2351_v26 = vsel %vm1839_vm11, %v1335_v20, %v2095_v21 }
 0x17a   :  { %v3780_v25 = vpack.c.bf16 %v2287_v23, %v2286_v22  ;;  %v3940_v27 = vpack.c.bf16 %v2351_v26, %v2350_v24 }
 0x17c   :  { %4364 = vst [vmem:[%s5326_s2 + $0x68] sm:$0xff] %v3780_v25  }
 0x17d   :  { %4396 = vst [vmem:[%s5326_s2 + $0x168] sm:$0xff] %v3940_v27   ;;  %v1495_v30 = vpop.f32.mrf.mxu2  ;;  %v1655_v33 = vpop.f32.mrf.mxu3 }
 0x17e   :  { %vm1903_vm14 = vcmp.ge.f32.partialorder %v1495_v30, 0.0  ;;  %v2159_v32 = vmul.f32 0.2, %v1495_v30  ;;  %v1178_v34 = vpop.f32.mrf.mxu0  ;;  %vm1967_vm15 = vcmp.ge.f32.partialorder %v1655_v33, 0.0  ;;  %v2223_v37 = vmul.f32 0.2, %v1655_v33  ;;  %v1338_v38 = vpop.f32.mrf.mxu1 }
 0x17f   :  { %v2032_v46 = vmul.f32 0.2, %v1178_v34  ;;  %vm1776_vm0 = vcmp.ge.f32.partialorder %v1178_v34, 0.0  ;;  %v2096_v48 = vmul.f32 0.2, %v1338_v38  ;;  %vm1840_vm1 = vcmp.ge.f32.partialorder %v1338_v38, 0.0 }
 0x180   :  { %v2415_v41 = vsel %vm1903_vm14, %v1495_v30, %v2159_v32  ;;  %v2479_v44 = vsel %vm1967_vm15, %v1655_v33, %v2223_v37 }
 0x181   :  { %v4100_v43 = vpack.c.bf16 %v2415_v41, %v2414_v40  ;;  %1217 = vmatmul.bf16.gmra.mxu0 %v3598_v31  ;;  %v4260_v45 = vpack.c.bf16 %v2479_v44, %v2478_v42  ;;  %1377 = vmatmul.bf16.gmra.mxu1 %v3630_v35  ;;  %v2288_v54 = vsel %vm1776_vm0, %v1178_v34, %v2032_v46  ;;  %v3600_v31 = vld [vmem:[%s5325_s0 + $0xc0] sm:$0xff] }
 0x182   :  { %1537 = vmatmul.bf16.gmra.mxu2 %v3662_v36  ;;  %1697 = vmatmul.bf16.gmra.mxu3 %v3694_v39  ;;  %v2352_v56 = vsel %vm1840_vm1, %v1338_v38, %v2096_v48  ;;  %v3632_v35 = vld [vmem:[%s5325_s0 + $0x1c0] sm:$0xff] }
 0x183   :  { %4428 = vst [vmem:[%s5326_s2 + $0x268] sm:$0xff] %v4100_v43   ;;  %v3664_v36 = vld [vmem:[%s5325_s0 + $0x2c0] sm:$0xff] }
 0x184   :  { %4460 = vst [vmem:[%s5326_s2 + $0x368] sm:$0xff] %v4260_v45   ;;  %v3696_v39 = vld [vmem:[%s5325_s0 + $0x3c0] sm:$0xff] }
 0x185   :  { %v1498_v47 = vpop.f32.mrf.mxu2  ;;  %v1658_v49 = vpop.f32.mrf.mxu3 }
 0x186   :  { %v1180_v50 = vpop.f32.mrf.mxu0  ;;  %v1340_v52 = vpop.f32.mrf.mxu1  ;;  %v2160_v60 = vmul.f32 0.2, %v1498_v47  ;;  %vm1904_vm4 = vcmp.ge.f32.partialorder %v1498_v47, 0.0  ;;  %v2224_v61 = vmul.f32 0.2, %v1658_v49  ;;  %vm1968_vm5 = vcmp.ge.f32.partialorder %v1658_v49, 0.0 }
 0x187   :  { %vm1777_vm2 = vcmp.ge.f32.partialorder %v1180_v50, 0.0  ;;  %v2033_v51 = vmul.f32 0.2, %v1180_v50  ;;  %vm1841_vm3 = vcmp.ge.f32.partialorder %v1340_v52, 0.0  ;;  %v2097_v53 = vmul.f32 0.2, %v1340_v52 }
 0x188   :  { %v2416_v8 = vsel %vm1904_vm4, %v1498_v47, %v2160_v60  ;;  %v2480_v10 = vsel %vm1968_vm5, %v1658_v49, %v2224_v61 }
 0x189   :  { %v2289_v55 = vsel %vm1777_vm2, %v1180_v50, %v2033_v51  ;;  %v2353_v58 = vsel %vm1841_vm3, %v1340_v52, %v2097_v53 }
 0x18a   :  { %v3785_v57 = vpack.c.bf16 %v2289_v55, %v2288_v54  ;;  %v3945_v59 = vpack.c.bf16 %v2353_v58, %v2352_v56 }
 0x18c   :  { %4365 = vst [vmem:[%s5326_s2 + $0x70] sm:$0xff] %v3785_v57  }
 0x18d   :  { %4397 = vst [vmem:[%s5326_s2 + $0x170] sm:$0xff] %v3945_v59   ;;  %v1500_v62 = vpop.f32.mrf.mxu2  ;;  %v1660_v1 = vpop.f32.mrf.mxu3 }
 0x18e   :  { %vm1905_vm6 = vcmp.ge.f32.partialorder %v1500_v62, 0.0  ;;  %v2161_v0 = vmul.f32 0.2, %v1500_v62  ;;  %v1183_v2 = vpop.f32.mrf.mxu0  ;;  %vm1969_vm7 = vcmp.ge.f32.partialorder %v1660_v1, 0.0  ;;  %v2225_v5 = vmul.f32 0.2, %v1660_v1  ;;  %v1343_v6 = vpop.f32.mrf.mxu1 }
 0x18f   :  { %v2034_v14 = vmul.f32 0.2, %v1183_v2  ;;  %vm1778_vm8 = vcmp.ge.f32.partialorder %v1183_v2, 0.0  ;;  %v2098_v16 = vmul.f32 0.2, %v1343_v6  ;;  %vm1842_vm9 = vcmp.ge.f32.partialorder %v1343_v6, 0.0 }
 0x190   :  { %v2417_v9 = vsel %vm1905_vm6, %v1500_v62, %v2161_v0  ;;  %v2481_v12 = vsel %vm1969_vm7, %v1660_v1, %v2225_v5 }
 0x191   :  { %v4105_v11 = vpack.c.bf16 %v2417_v9, %v2416_v8  ;;  %1222 = vmatmul.bf16.gmra.mxu0 %v3599_v63  ;;  %v4265_v13 = vpack.c.bf16 %v2481_v12, %v2480_v10  ;;  %1382 = vmatmul.bf16.gmra.mxu1 %v3631_v3  ;;  %v2290_v22 = vsel %vm1778_vm8, %v1183_v2, %v2034_v14  ;;  %v3601_v63 = vld [vmem:[%s5325_s0 + $0xc8] sm:$0xff] }
 0x192   :  { %1542 = vmatmul.bf16.gmra.mxu2 %v3663_v4  ;;  %1702 = vmatmul.bf16.gmra.mxu3 %v3695_v7  ;;  %v2354_v24 = vsel %vm1842_vm9, %v1343_v6, %v2098_v16  ;;  %v3633_v3 = vld [vmem:[%s5325_s0 + $0x1c8] sm:$0xff] }
 0x193   :  { %4429 = vst [vmem:[%s5326_s2 + $0x270] sm:$0xff] %v4105_v11   ;;  %v3665_v4 = vld [vmem:[%s5325_s0 + $0x2c8] sm:$0xff] }
 0x194   :  { %4461 = vst [vmem:[%s5326_s2 + $0x370] sm:$0xff] %v4265_v13   ;;  %v3697_v7 = vld [vmem:[%s5325_s0 + $0x3c8] sm:$0xff] }
 0x195   :  { %v1503_v15 = vpop.f32.mrf.mxu2  ;;  %v1663_v17 = vpop.f32.mrf.mxu3 }
 0x196   :  { %v1185_v18 = vpop.f32.mrf.mxu0  ;;  %v1345_v20 = vpop.f32.mrf.mxu1  ;;  %v2162_v28 = vmul.f32 0.2, %v1503_v15  ;;  %vm1906_vm12 = vcmp.ge.f32.partialorder %v1503_v15, 0.0  ;;  %v2226_v29 = vmul.f32 0.2, %v1663_v17  ;;  %vm1970_vm13 = vcmp.ge.f32.partialorder %v1663_v17, 0.0 }
 0x197   :  { %vm1779_vm10 = vcmp.ge.f32.partialorder %v1185_v18, 0.0  ;;  %v2035_v19 = vmul.f32 0.2, %v1185_v18  ;;  %vm1843_vm11 = vcmp.ge.f32.partialorder %v1345_v20, 0.0  ;;  %v2099_v21 = vmul.f32 0.2, %v1345_v20 }
 0x198   :  { %v2418_v40 = vsel %vm1906_vm12, %v1503_v15, %v2162_v28  ;;  %v2482_v42 = vsel %vm1970_vm13, %v1663_v17, %v2226_v29 }
 0x199   :  { %v2291_v23 = vsel %vm1779_vm10, %v1185_v18, %v2035_v19  ;;  %v2355_v26 = vsel %vm1843_vm11, %v1345_v20, %v2099_v21 }
 0x19a   :  { %v3790_v25 = vpack.c.bf16 %v2291_v23, %v2290_v22  ;;  %v3950_v27 = vpack.c.bf16 %v2355_v26, %v2354_v24 }
 0x19c   :  { %4366 = vst [vmem:[%s5326_s2 + $0x78] sm:$0xff] %v3790_v25  }
 0x19d   :  { %4398 = vst [vmem:[%s5326_s2 + $0x178] sm:$0xff] %v3950_v27   ;;  %v1505_v30 = vpop.f32.mrf.mxu2  ;;  %v1665_v33 = vpop.f32.mrf.mxu3 }
 0x19e   :  { %vm1907_vm14 = vcmp.ge.f32.partialorder %v1505_v30, 0.0  ;;  %v2163_v32 = vmul.f32 0.2, %v1505_v30  ;;  %v1188_v34 = vpop.f32.mrf.mxu0  ;;  %vm1971_vm15 = vcmp.ge.f32.partialorder %v1665_v33, 0.0  ;;  %v2227_v37 = vmul.f32 0.2, %v1665_v33  ;;  %v1348_v38 = vpop.f32.mrf.mxu1 }
 0x19f   :  { %v2036_v46 = vmul.f32 0.2, %v1188_v34  ;;  %vm1780_vm0 = vcmp.ge.f32.partialorder %v1188_v34, 0.0  ;;  %v2100_v48 = vmul.f32 0.2, %v1348_v38  ;;  %vm1844_vm1 = vcmp.ge.f32.partialorder %v1348_v38, 0.0 }
 0x1a0   :  { %v2419_v41 = vsel %vm1907_vm14, %v1505_v30, %v2163_v32  ;;  %v2483_v44 = vsel %vm1971_vm15, %v1665_v33, %v2227_v37 }
 0x1a1   :  { %v4110_v43 = vpack.c.bf16 %v2419_v41, %v2418_v40  ;;  %1227 = vmatmul.bf16.gmra.mxu0 %v3600_v31  ;;  %v4270_v45 = vpack.c.bf16 %v2483_v44, %v2482_v42  ;;  %1387 = vmatmul.bf16.gmra.mxu1 %v3632_v35  ;;  %v2292_v54 = vsel %vm1780_vm0, %v1188_v34, %v2036_v46  ;;  %v3602_v31 = vld [vmem:[%s5325_s0 + $0xd0] sm:$0xff] }
 0x1a2   :  { %1547 = vmatmul.bf16.gmra.mxu2 %v3664_v36  ;;  %1707 = vmatmul.bf16.gmra.mxu3 %v3696_v39  ;;  %v2356_v56 = vsel %vm1844_vm1, %v1348_v38, %v2100_v48  ;;  %v3634_v35 = vld [vmem:[%s5325_s0 + $0x1d0] sm:$0xff] }
 0x1a3   :  { %4430 = vst [vmem:[%s5326_s2 + $0x278] sm:$0xff] %v4110_v43   ;;  %v3666_v36 = vld [vmem:[%s5325_s0 + $0x2d0] sm:$0xff] }
 0x1a4   :  { %4462 = vst [vmem:[%s5326_s2 + $0x378] sm:$0xff] %v4270_v45   ;;  %v3698_v39 = vld [vmem:[%s5325_s0 + $0x3d0] sm:$0xff] }
 0x1a5   :  { %v1508_v47 = vpop.f32.mrf.mxu2  ;;  %v1668_v49 = vpop.f32.mrf.mxu3 }
 0x1a6   :  { %v1190_v50 = vpop.f32.mrf.mxu0  ;;  %v1350_v52 = vpop.f32.mrf.mxu1  ;;  %v2164_v60 = vmul.f32 0.2, %v1508_v47  ;;  %vm1908_vm4 = vcmp.ge.f32.partialorder %v1508_v47, 0.0  ;;  %v2228_v61 = vmul.f32 0.2, %v1668_v49  ;;  %vm1972_vm5 = vcmp.ge.f32.partialorder %v1668_v49, 0.0 }
 0x1a7   :  { %vm1781_vm2 = vcmp.ge.f32.partialorder %v1190_v50, 0.0  ;;  %v2037_v51 = vmul.f32 0.2, %v1190_v50  ;;  %vm1845_vm3 = vcmp.ge.f32.partialorder %v1350_v52, 0.0  ;;  %v2101_v53 = vmul.f32 0.2, %v1350_v52 }
 0x1a8   :  { %v2420_v8 = vsel %vm1908_vm4, %v1508_v47, %v2164_v60  ;;  %v2484_v10 = vsel %vm1972_vm5, %v1668_v49, %v2228_v61 }
 0x1a9   :  { %v2293_v55 = vsel %vm1781_vm2, %v1190_v50, %v2037_v51  ;;  %v2357_v58 = vsel %vm1845_vm3, %v1350_v52, %v2101_v53 }
 0x1aa   :  { %v3795_v57 = vpack.c.bf16 %v2293_v55, %v2292_v54  ;;  %v3955_v59 = vpack.c.bf16 %v2357_v58, %v2356_v56 }
 0x1ac   :  { %4367 = vst [vmem:[%s5326_s2 + $0x80] sm:$0xff] %v3795_v57  }
 0x1ad   :  { %4399 = vst [vmem:[%s5326_s2 + $0x180] sm:$0xff] %v3955_v59   ;;  %v1510_v62 = vpop.f32.mrf.mxu2  ;;  %v1670_v1 = vpop.f32.mrf.mxu3 }
 0x1ae   :  { %vm1909_vm6 = vcmp.ge.f32.partialorder %v1510_v62, 0.0  ;;  %v2165_v0 = vmul.f32 0.2, %v1510_v62  ;;  %v1193_v2 = vpop.f32.mrf.mxu0  ;;  %vm1973_vm7 = vcmp.ge.f32.partialorder %v1670_v1, 0.0  ;;  %v2229_v5 = vmul.f32 0.2, %v1670_v1  ;;  %v1353_v6 = vpop.f32.mrf.mxu1 }
 0x1af   :  { %v2038_v14 = vmul.f32 0.2, %v1193_v2  ;;  %vm1782_vm8 = vcmp.ge.f32.partialorder %v1193_v2, 0.0  ;;  %v2102_v16 = vmul.f32 0.2, %v1353_v6  ;;  %vm1846_vm9 = vcmp.ge.f32.partialorder %v1353_v6, 0.0 }
 0x1b0   :  { %v2421_v9 = vsel %vm1909_vm6, %v1510_v62, %v2165_v0  ;;  %v2485_v12 = vsel %vm1973_vm7, %v1670_v1, %v2229_v5 }
 0x1b1   :  { %v4115_v11 = vpack.c.bf16 %v2421_v9, %v2420_v8  ;;  %1232 = vmatmul.bf16.gmra.mxu0 %v3601_v63  ;;  %v4275_v13 = vpack.c.bf16 %v2485_v12, %v2484_v10  ;;  %1392 = vmatmul.bf16.gmra.mxu1 %v3633_v3  ;;  %v2294_v22 = vsel %vm1782_vm8, %v1193_v2, %v2038_v14  ;;  %v3603_v63 = vld [vmem:[%s5325_s0 + $0xd8] sm:$0xff] }
 0x1b2   :  { %1552 = vmatmul.bf16.gmra.mxu2 %v3665_v4  ;;  %1712 = vmatmul.bf16.gmra.mxu3 %v3697_v7  ;;  %v2358_v24 = vsel %vm1846_vm9, %v1353_v6, %v2102_v16  ;;  %v3635_v3 = vld [vmem:[%s5325_s0 + $0x1d8] sm:$0xff] }
 0x1b3   :  { %4431 = vst [vmem:[%s5326_s2 + $0x280] sm:$0xff] %v4115_v11   ;;  %v3667_v4 = vld [vmem:[%s5325_s0 + $0x2d8] sm:$0xff] }
 0x1b4   :  { %4463 = vst [vmem:[%s5326_s2 + $0x380] sm:$0xff] %v4275_v13   ;;  %v3699_v7 = vld [vmem:[%s5325_s0 + $0x3d8] sm:$0xff] }
 0x1b5   :  { %v1513_v15 = vpop.f32.mrf.mxu2  ;;  %v1673_v17 = vpop.f32.mrf.mxu3 }
 0x1b6   :  { %v1195_v18 = vpop.f32.mrf.mxu0  ;;  %v1355_v20 = vpop.f32.mrf.mxu1  ;;  %v2166_v28 = vmul.f32 0.2, %v1513_v15  ;;  %vm1910_vm12 = vcmp.ge.f32.partialorder %v1513_v15, 0.0  ;;  %v2230_v29 = vmul.f32 0.2, %v1673_v17  ;;  %vm1974_vm13 = vcmp.ge.f32.partialorder %v1673_v17, 0.0 }
 0x1b7   :  { %vm1783_vm10 = vcmp.ge.f32.partialorder %v1195_v18, 0.0  ;;  %v2039_v19 = vmul.f32 0.2, %v1195_v18  ;;  %vm1847_vm11 = vcmp.ge.f32.partialorder %v1355_v20, 0.0  ;;  %v2103_v21 = vmul.f32 0.2, %v1355_v20 }
 0x1b8   :  { %v2422_v40 = vsel %vm1910_vm12, %v1513_v15, %v2166_v28  ;;  %v2486_v42 = vsel %vm1974_vm13, %v1673_v17, %v2230_v29 }
 0x1b9   :  { %v2295_v23 = vsel %vm1783_vm10, %v1195_v18, %v2039_v19  ;;  %v2359_v26 = vsel %vm1847_vm11, %v1355_v20, %v2103_v21 }
 0x1ba   :  { %v3800_v25 = vpack.c.bf16 %v2295_v23, %v2294_v22  ;;  %v3960_v27 = vpack.c.bf16 %v2359_v26, %v2358_v24 }
 0x1bc   :  { %4368 = vst [vmem:[%s5326_s2 + $0x88] sm:$0xff] %v3800_v25  }
 0x1bd   :  { %4400 = vst [vmem:[%s5326_s2 + $0x188] sm:$0xff] %v3960_v27   ;;  %v1515_v30 = vpop.f32.mrf.mxu2  ;;  %v1675_v33 = vpop.f32.mrf.mxu3 }
 0x1be   :  { %vm1911_vm14 = vcmp.ge.f32.partialorder %v1515_v30, 0.0  ;;  %v2167_v32 = vmul.f32 0.2, %v1515_v30  ;;  %v1198_v34 = vpop.f32.mrf.mxu0  ;;  %vm1975_vm15 = vcmp.ge.f32.partialorder %v1675_v33, 0.0  ;;  %v2231_v37 = vmul.f32 0.2, %v1675_v33  ;;  %v1358_v38 = vpop.f32.mrf.mxu1 }
 0x1bf   :  { %v2040_v46 = vmul.f32 0.2, %v1198_v34  ;;  %vm1784_vm0 = vcmp.ge.f32.partialorder %v1198_v34, 0.0  ;;  %v2104_v48 = vmul.f32 0.2, %v1358_v38  ;;  %vm1848_vm1 = vcmp.ge.f32.partialorder %v1358_v38, 0.0 }
 0x1c0   :  { %v2423_v41 = vsel %vm1911_vm14, %v1515_v30, %v2167_v32  ;;  %v2487_v44 = vsel %vm1975_vm15, %v1675_v33, %v2231_v37 }
 0x1c1   :  { %v4120_v43 = vpack.c.bf16 %v2423_v41, %v2422_v40  ;;  %1237 = vmatmul.bf16.gmra.mxu0 %v3602_v31  ;;  %v4280_v45 = vpack.c.bf16 %v2487_v44, %v2486_v42  ;;  %1397 = vmatmul.bf16.gmra.mxu1 %v3634_v35  ;;  %v2296_v54 = vsel %vm1784_vm0, %v1198_v34, %v2040_v46  ;;  %v3604_v31 = vld [vmem:[%s5325_s0 + $0xe0] sm:$0xff] }
 0x1c2   :  { %1557 = vmatmul.bf16.gmra.mxu2 %v3666_v36  ;;  %1717 = vmatmul.bf16.gmra.mxu3 %v3698_v39  ;;  %v2360_v56 = vsel %vm1848_vm1, %v1358_v38, %v2104_v48  ;;  %v3636_v35 = vld [vmem:[%s5325_s0 + $0x1e0] sm:$0xff] }
 0x1c3   :  { %4432 = vst [vmem:[%s5326_s2 + $0x288] sm:$0xff] %v4120_v43   ;;  %v3668_v36 = vld [vmem:[%s5325_s0 + $0x2e0] sm:$0xff] }
 0x1c4   :  { %4464 = vst [vmem:[%s5326_s2 + $0x388] sm:$0xff] %v4280_v45   ;;  %v3700_v39 = vld [vmem:[%s5325_s0 + $0x3e0] sm:$0xff] }
 0x1c5   :  { %v1518_v47 = vpop.f32.mrf.mxu2  ;;  %v1678_v49 = vpop.f32.mrf.mxu3 }
 0x1c6   :  { %v1200_v50 = vpop.f32.mrf.mxu0  ;;  %v1360_v52 = vpop.f32.mrf.mxu1  ;;  %v2168_v60 = vmul.f32 0.2, %v1518_v47  ;;  %vm1912_vm4 = vcmp.ge.f32.partialorder %v1518_v47, 0.0  ;;  %v2232_v61 = vmul.f32 0.2, %v1678_v49  ;;  %vm1976_vm5 = vcmp.ge.f32.partialorder %v1678_v49, 0.0 }
 0x1c7   :  { %vm1785_vm2 = vcmp.ge.f32.partialorder %v1200_v50, 0.0  ;;  %v2041_v51 = vmul.f32 0.2, %v1200_v50  ;;  %vm1849_vm3 = vcmp.ge.f32.partialorder %v1360_v52, 0.0  ;;  %v2105_v53 = vmul.f32 0.2, %v1360_v52 }
 0x1c8   :  { %v2424_v8 = vsel %vm1912_vm4, %v1518_v47, %v2168_v60  ;;  %v2488_v10 = vsel %vm1976_vm5, %v1678_v49, %v2232_v61 }
 0x1c9   :  { %v2297_v55 = vsel %vm1785_vm2, %v1200_v50, %v2041_v51  ;;  %v2361_v58 = vsel %vm1849_vm3, %v1360_v52, %v2105_v53 }
 0x1ca   :  { %v3805_v57 = vpack.c.bf16 %v2297_v55, %v2296_v54  ;;  %v3965_v59 = vpack.c.bf16 %v2361_v58, %v2360_v56 }
 0x1cc   :  { %4369 = vst [vmem:[%s5326_s2 + $0x90] sm:$0xff] %v3805_v57  }
 0x1cd   :  { %4401 = vst [vmem:[%s5326_s2 + $0x190] sm:$0xff] %v3965_v59   ;;  %v1520_v62 = vpop.f32.mrf.mxu2  ;;  %v1680_v1 = vpop.f32.mrf.mxu3 }
 0x1ce   :  { %vm1913_vm6 = vcmp.ge.f32.partialorder %v1520_v62, 0.0  ;;  %v2169_v0 = vmul.f32 0.2, %v1520_v62  ;;  %v1203_v2 = vpop.f32.mrf.mxu0  ;;  %vm1977_vm7 = vcmp.ge.f32.partialorder %v1680_v1, 0.0  ;;  %v2233_v5 = vmul.f32 0.2, %v1680_v1  ;;  %v1363_v6 = vpop.f32.mrf.mxu1 }
 0x1cf   :  { %v2042_v14 = vmul.f32 0.2, %v1203_v2  ;;  %vm1786_vm8 = vcmp.ge.f32.partialorder %v1203_v2, 0.0  ;;  %v2106_v16 = vmul.f32 0.2, %v1363_v6  ;;  %vm1850_vm9 = vcmp.ge.f32.partialorder %v1363_v6, 0.0 }
 0x1d0   :  { %v2425_v9 = vsel %vm1913_vm6, %v1520_v62, %v2169_v0  ;;  %v2489_v12 = vsel %vm1977_vm7, %v1680_v1, %v2233_v5 }
 0x1d1   :  { %v4125_v11 = vpack.c.bf16 %v2425_v9, %v2424_v8  ;;  %1242 = vmatmul.bf16.gmra.mxu0 %v3603_v63  ;;  %v4285_v13 = vpack.c.bf16 %v2489_v12, %v2488_v10  ;;  %1402 = vmatmul.bf16.gmra.mxu1 %v3635_v3  ;;  %v2298_v22 = vsel %vm1786_vm8, %v1203_v2, %v2042_v14  ;;  %v3605_v63 = vld [vmem:[%s5325_s0 + $0xe8] sm:$0xff] }
 0x1d2   :  { %1562 = vmatmul.bf16.gmra.mxu2 %v3667_v4  ;;  %1722 = vmatmul.bf16.gmra.mxu3 %v3699_v7  ;;  %v2362_v24 = vsel %vm1850_vm9, %v1363_v6, %v2106_v16  ;;  %v3637_v3 = vld [vmem:[%s5325_s0 + $0x1e8] sm:$0xff] }
 0x1d3   :  { %4433 = vst [vmem:[%s5326_s2 + $0x290] sm:$0xff] %v4125_v11   ;;  %v3669_v4 = vld [vmem:[%s5325_s0 + $0x2e8] sm:$0xff] }
 0x1d4   :  { %4465 = vst [vmem:[%s5326_s2 + $0x390] sm:$0xff] %v4285_v13   ;;  %v3701_v7 = vld [vmem:[%s5325_s0 + $0x3e8] sm:$0xff] }
 0x1d5   :  { %v1523_v15 = vpop.f32.mrf.mxu2  ;;  %v1683_v17 = vpop.f32.mrf.mxu3 }
 0x1d6   :  { %v1205_v18 = vpop.f32.mrf.mxu0  ;;  %v1365_v20 = vpop.f32.mrf.mxu1  ;;  %v2170_v28 = vmul.f32 0.2, %v1523_v15  ;;  %vm1914_vm12 = vcmp.ge.f32.partialorder %v1523_v15, 0.0  ;;  %v2234_v29 = vmul.f32 0.2, %v1683_v17  ;;  %vm1978_vm13 = vcmp.ge.f32.partialorder %v1683_v17, 0.0 }
 0x1d7   :  { %vm1787_vm10 = vcmp.ge.f32.partialorder %v1205_v18, 0.0  ;;  %v2043_v19 = vmul.f32 0.2, %v1205_v18  ;;  %vm1851_vm11 = vcmp.ge.f32.partialorder %v1365_v20, 0.0  ;;  %v2107_v21 = vmul.f32 0.2, %v1365_v20 }
 0x1d8   :  { %v2426_v40 = vsel %vm1914_vm12, %v1523_v15, %v2170_v28  ;;  %v2490_v42 = vsel %vm1978_vm13, %v1683_v17, %v2234_v29 }
 0x1d9   :  { %v2299_v23 = vsel %vm1787_vm10, %v1205_v18, %v2043_v19  ;;  %v2363_v26 = vsel %vm1851_vm11, %v1365_v20, %v2107_v21 }
 0x1da   :  { %v3810_v25 = vpack.c.bf16 %v2299_v23, %v2298_v22  ;;  %v3970_v27 = vpack.c.bf16 %v2363_v26, %v2362_v24 }
 0x1dc   :  { %4370 = vst [vmem:[%s5326_s2 + $0x98] sm:$0xff] %v3810_v25  }
 0x1dd   :  { %4402 = vst [vmem:[%s5326_s2 + $0x198] sm:$0xff] %v3970_v27   ;;  %v1525_v30 = vpop.f32.mrf.mxu2  ;;  %v1685_v33 = vpop.f32.mrf.mxu3 }
 0x1de   :  { %vm1915_vm14 = vcmp.ge.f32.partialorder %v1525_v30, 0.0  ;;  %v2171_v32 = vmul.f32 0.2, %v1525_v30  ;;  %v1208_v34 = vpop.f32.mrf.mxu0  ;;  %vm1979_vm15 = vcmp.ge.f32.partialorder %v1685_v33, 0.0  ;;  %v2235_v37 = vmul.f32 0.2, %v1685_v33  ;;  %v1368_v38 = vpop.f32.mrf.mxu1 }
 0x1df   :  { %v2044_v46 = vmul.f32 0.2, %v1208_v34  ;;  %vm1788_vm0 = vcmp.ge.f32.partialorder %v1208_v34, 0.0  ;;  %v2108_v48 = vmul.f32 0.2, %v1368_v38  ;;  %vm1852_vm1 = vcmp.ge.f32.partialorder %v1368_v38, 0.0 }
 0x1e0   :  { %v2427_v41 = vsel %vm1915_vm14, %v1525_v30, %v2171_v32  ;;  %v2491_v44 = vsel %vm1979_vm15, %v1685_v33, %v2235_v37 }
 0x1e1   :  { %v4130_v43 = vpack.c.bf16 %v2427_v41, %v2426_v40  ;;  %1247 = vmatmul.bf16.gmra.mxu0 %v3604_v31  ;;  %v4290_v45 = vpack.c.bf16 %v2491_v44, %v2490_v42  ;;  %1407 = vmatmul.bf16.gmra.mxu1 %v3636_v35  ;;  %v2300_v54 = vsel %vm1788_vm0, %v1208_v34, %v2044_v46  ;;  %v3606_v31 = vld [vmem:[%s5325_s0 + $0xf0] sm:$0xff] }
 0x1e2   :  { %1567 = vmatmul.bf16.gmra.mxu2 %v3668_v36  ;;  %1727 = vmatmul.bf16.gmra.mxu3 %v3700_v39  ;;  %v2364_v56 = vsel %vm1852_vm1, %v1368_v38, %v2108_v48  ;;  %v3638_v35 = vld [vmem:[%s5325_s0 + $0x1f0] sm:$0xff] }
 0x1e3   :  { %4434 = vst [vmem:[%s5326_s2 + $0x298] sm:$0xff] %v4130_v43   ;;  %v3670_v36 = vld [vmem:[%s5325_s0 + $0x2f0] sm:$0xff] }
 0x1e4   :  { %4466 = vst [vmem:[%s5326_s2 + $0x398] sm:$0xff] %v4290_v45   ;;  %v3702_v39 = vld [vmem:[%s5325_s0 + $0x3f0] sm:$0xff] }
 0x1e5   :  { %v1528_v47 = vpop.f32.mrf.mxu2  ;;  %v1688_v49 = vpop.f32.mrf.mxu3 }
 0x1e6   :  { %v1210_v50 = vpop.f32.mrf.mxu0  ;;  %v1370_v52 = vpop.f32.mrf.mxu1  ;;  %v2172_v60 = vmul.f32 0.2, %v1528_v47  ;;  %vm1916_vm4 = vcmp.ge.f32.partialorder %v1528_v47, 0.0  ;;  %v2236_v61 = vmul.f32 0.2, %v1688_v49  ;;  %vm1980_vm5 = vcmp.ge.f32.partialorder %v1688_v49, 0.0 }
 0x1e7   :  { %vm1789_vm2 = vcmp.ge.f32.partialorder %v1210_v50, 0.0  ;;  %v2045_v51 = vmul.f32 0.2, %v1210_v50  ;;  %vm1853_vm3 = vcmp.ge.f32.partialorder %v1370_v52, 0.0  ;;  %v2109_v53 = vmul.f32 0.2, %v1370_v52 }
 0x1e8   :  { %v2428_v8 = vsel %vm1916_vm4, %v1528_v47, %v2172_v60  ;;  %v2492_v10 = vsel %vm1980_vm5, %v1688_v49, %v2236_v61 }
 0x1e9   :  { %v2301_v55 = vsel %vm1789_vm2, %v1210_v50, %v2045_v51  ;;  %v2365_v58 = vsel %vm1853_vm3, %v1370_v52, %v2109_v53 }
 0x1ea   :  { %v3815_v57 = vpack.c.bf16 %v2301_v55, %v2300_v54  ;;  %v3975_v59 = vpack.c.bf16 %v2365_v58, %v2364_v56 }
 0x1ec   :  { %4371 = vst [vmem:[%s5326_s2 + $0xa0] sm:$0xff] %v3815_v57  }
 0x1ed   :  { %4403 = vst [vmem:[%s5326_s2 + $0x1a0] sm:$0xff] %v3975_v59   ;;  %v1530_v62 = vpop.f32.mrf.mxu2  ;;  %v1690_v1 = vpop.f32.mrf.mxu3 }
 0x1ee   :  { %vm1917_vm6 = vcmp.ge.f32.partialorder %v1530_v62, 0.0  ;;  %v2173_v0 = vmul.f32 0.2, %v1530_v62  ;;  %v1213_v2 = vpop.f32.mrf.mxu0  ;;  %vm1981_vm7 = vcmp.ge.f32.partialorder %v1690_v1, 0.0  ;;  %v2237_v5 = vmul.f32 0.2, %v1690_v1  ;;  %v1373_v6 = vpop.f32.mrf.mxu1 }
 0x1ef   :  { %v2046_v14 = vmul.f32 0.2, %v1213_v2  ;;  %vm1790_vm8 = vcmp.ge.f32.partialorder %v1213_v2, 0.0  ;;  %v2110_v16 = vmul.f32 0.2, %v1373_v6  ;;  %vm1854_vm9 = vcmp.ge.f32.partialorder %v1373_v6, 0.0 }
 0x1f0   :  { %v2429_v9 = vsel %vm1917_vm6, %v1530_v62, %v2173_v0  ;;  %v2493_v12 = vsel %vm1981_vm7, %v1690_v1, %v2237_v5 }
 0x1f1   :  { %v4135_v11 = vpack.c.bf16 %v2429_v9, %v2428_v8  ;;  %1252 = vmatmul.bf16.gmra.mxu0 %v3605_v63  ;;  %v4295_v13 = vpack.c.bf16 %v2493_v12, %v2492_v10  ;;  %1412 = vmatmul.bf16.gmra.mxu1 %v3637_v3  ;;  %v2302_v22 = vsel %vm1790_vm8, %v1213_v2, %v2046_v14  ;;  %v3607_v63 = vld [vmem:[%s5325_s0 + $0xf8] sm:$0xff] }
 0x1f2   :  { %1572 = vmatmul.bf16.gmra.mxu2 %v3669_v4  ;;  %1732 = vmatmul.bf16.gmra.mxu3 %v3701_v7  ;;  %v2366_v24 = vsel %vm1854_vm9, %v1373_v6, %v2110_v16  ;;  %v3639_v3 = vld [vmem:[%s5325_s0 + $0x1f8] sm:$0xff] }
 0x1f3   :  { %4435 = vst [vmem:[%s5326_s2 + $0x2a0] sm:$0xff] %v4135_v11   ;;  %v3671_v4 = vld [vmem:[%s5325_s0 + $0x2f8] sm:$0xff] }
 0x1f4   :  { %4467 = vst [vmem:[%s5326_s2 + $0x3a0] sm:$0xff] %v4295_v13   ;;  %v3703_v7 = vld [vmem:[%s5325_s0 + $0x3f8] sm:$0xff] }
 0x1f5   :  { %v1533_v15 = vpop.f32.mrf.mxu2  ;;  %v1693_v17 = vpop.f32.mrf.mxu3 }
 0x1f6   :  { %v1215_v18 = vpop.f32.mrf.mxu0  ;;  %v1375_v20 = vpop.f32.mrf.mxu1  ;;  %v2174_v28 = vmul.f32 0.2, %v1533_v15  ;;  %vm1918_vm12 = vcmp.ge.f32.partialorder %v1533_v15, 0.0  ;;  %v2238_v29 = vmul.f32 0.2, %v1693_v17  ;;  %vm1982_vm13 = vcmp.ge.f32.partialorder %v1693_v17, 0.0 }
 0x1f7   :  { %vm1791_vm10 = vcmp.ge.f32.partialorder %v1215_v18, 0.0  ;;  %v2047_v19 = vmul.f32 0.2, %v1215_v18  ;;  %vm1855_vm11 = vcmp.ge.f32.partialorder %v1375_v20, 0.0  ;;  %v2111_v21 = vmul.f32 0.2, %v1375_v20 }
 0x1f8   :  { %v2430_v40 = vsel %vm1918_vm12, %v1533_v15, %v2174_v28  ;;  %v2494_v42 = vsel %vm1982_vm13, %v1693_v17, %v2238_v29 }
 0x1f9   :  { %v2303_v23 = vsel %vm1791_vm10, %v1215_v18, %v2047_v19  ;;  %v2367_v26 = vsel %vm1855_vm11, %v1375_v20, %v2111_v21 }
 0x1fa   :  { %v3820_v25 = vpack.c.bf16 %v2303_v23, %v2302_v22  ;;  %v3980_v27 = vpack.c.bf16 %v2367_v26, %v2366_v24 }
 0x1fc   :  { %4372 = vst [vmem:[%s5326_s2 + $0xa8] sm:$0xff] %v3820_v25  }
 0x1fd   :  { %4404 = vst [vmem:[%s5326_s2 + $0x1a8] sm:$0xff] %v3980_v27   ;;  %v1535_v30 = vpop.f32.mrf.mxu2  ;;  %v1695_v33 = vpop.f32.mrf.mxu3 }
 0x1fe   :  { %vm1919_vm14 = vcmp.ge.f32.partialorder %v1535_v30, 0.0  ;;  %v2175_v32 = vmul.f32 0.2, %v1535_v30  ;;  %v1218_v34 = vpop.f32.mrf.mxu0  ;;  %vm1983_vm15 = vcmp.ge.f32.partialorder %v1695_v33, 0.0  ;;  %v2239_v37 = vmul.f32 0.2, %v1695_v33  ;;  %v1378_v38 = vpop.f32.mrf.mxu1 }
 0x1ff   :  { %v2048_v46 = vmul.f32 0.2, %v1218_v34  ;;  %vm1792_vm0 = vcmp.ge.f32.partialorder %v1218_v34, 0.0  ;;  %v2112_v48 = vmul.f32 0.2, %v1378_v38  ;;  %vm1856_vm1 = vcmp.ge.f32.partialorder %v1378_v38, 0.0 }
 0x200   :  { %v2431_v41 = vsel %vm1919_vm14, %v1535_v30, %v2175_v32  ;;  %v2495_v44 = vsel %vm1983_vm15, %v1695_v33, %v2239_v37 }
 0x201   :  { %v4140_v43 = vpack.c.bf16 %v2431_v41, %v2430_v40  ;;  %1257 = vmatmul.bf16.gmra.mxu0 %v3606_v31  ;;  %v4300_v45 = vpack.c.bf16 %v2495_v44, %v2494_v42  ;;  %1417 = vmatmul.bf16.gmra.mxu1 %v3638_v35  ;;  %v2304_v54 = vsel %vm1792_vm0, %v1218_v34, %v2048_v46 }
 0x202   :  { %1577 = vmatmul.bf16.gmra.mxu2 %v3670_v36  ;;  %1737 = vmatmul.bf16.gmra.mxu3 %v3702_v39  ;;  %v2368_v56 = vsel %vm1856_vm1, %v1378_v38, %v2112_v48 }
 0x203   :  { %4436 = vst [vmem:[%s5326_s2 + $0x2a8] sm:$0xff] %v4140_v43  }
 0x204   :  { %4468 = vst [vmem:[%s5326_s2 + $0x3a8] sm:$0xff] %v4300_v45  }
 0x205   :  { %v1538_v47 = vpop.f32.mrf.mxu2  ;;  %v1698_v49 = vpop.f32.mrf.mxu3 }
 0x206   :  { %v1220_v50 = vpop.f32.mrf.mxu0  ;;  %v1380_v52 = vpop.f32.mrf.mxu1  ;;  %v2176_v60 = vmul.f32 0.2, %v1538_v47  ;;  %vm1920_vm4 = vcmp.ge.f32.partialorder %v1538_v47, 0.0  ;;  %v2240_v61 = vmul.f32 0.2, %v1698_v49  ;;  %vm1984_vm5 = vcmp.ge.f32.partialorder %v1698_v49, 0.0 }
 0x207   :  { %vm1793_vm2 = vcmp.ge.f32.partialorder %v1220_v50, 0.0  ;;  %v2049_v51 = vmul.f32 0.2, %v1220_v50  ;;  %vm1857_vm3 = vcmp.ge.f32.partialorder %v1380_v52, 0.0  ;;  %v2113_v53 = vmul.f32 0.2, %v1380_v52 }
 0x208   :  { %v2432_v8 = vsel %vm1920_vm4, %v1538_v47, %v2176_v60  ;;  %v2496_v10 = vsel %vm1984_vm5, %v1698_v49, %v2240_v61 }
 0x209   :  { %v2305_v55 = vsel %vm1793_vm2, %v1220_v50, %v2049_v51  ;;  %v2369_v58 = vsel %vm1857_vm3, %v1380_v52, %v2113_v53 }
 0x20a   :  { %v3825_v57 = vpack.c.bf16 %v2305_v55, %v2304_v54  ;;  %v3985_v59 = vpack.c.bf16 %v2369_v58, %v2368_v56 }
 0x20c   :  { %4373 = vst [vmem:[%s5326_s2 + $0xb0] sm:$0xff] %v3825_v57  }
 0x20d   :  { %4405 = vst [vmem:[%s5326_s2 + $0x1b0] sm:$0xff] %v3985_v59   ;;  %v1540_v62 = vpop.f32.mrf.mxu2  ;;  %v1700_v1 = vpop.f32.mrf.mxu3 }
 0x20e   :  { %vm1921_vm6 = vcmp.ge.f32.partialorder %v1540_v62, 0.0  ;;  %v2177_v0 = vmul.f32 0.2, %v1540_v62  ;;  %v1223_v2 = vpop.f32.mrf.mxu0  ;;  %vm1985_vm7 = vcmp.ge.f32.partialorder %v1700_v1, 0.0  ;;  %v2241_v5 = vmul.f32 0.2, %v1700_v1  ;;  %v1383_v6 = vpop.f32.mrf.mxu1 }
 0x20f   :  { %v2050_v14 = vmul.f32 0.2, %v1223_v2  ;;  %vm1794_vm8 = vcmp.ge.f32.partialorder %v1223_v2, 0.0  ;;  %v2114_v16 = vmul.f32 0.2, %v1383_v6  ;;  %vm1858_vm9 = vcmp.ge.f32.partialorder %v1383_v6, 0.0 }
 0x210   :  { %v2433_v9 = vsel %vm1921_vm6, %v1540_v62, %v2177_v0  ;;  %v2497_v12 = vsel %vm1985_vm7, %v1700_v1, %v2241_v5 }
 0x211   :  { %v4145_v11 = vpack.c.bf16 %v2433_v9, %v2432_v8  ;;  %1262 = vmatmul.bf16.gmra.mxu0 %v3607_v63  ;;  %v4305_v13 = vpack.c.bf16 %v2497_v12, %v2496_v10  ;;  %1422 = vmatmul.bf16.gmra.mxu1 %v3639_v3  ;;  %v2306_v22 = vsel %vm1794_vm8, %v1223_v2, %v2050_v14 }
 0x212   :  { %1582 = vmatmul.bf16.gmra.mxu2 %v3671_v4  ;;  %1742 = vmatmul.bf16.gmra.mxu3 %v3703_v7  ;;  %v2370_v24 = vsel %vm1858_vm9, %v1383_v6, %v2114_v16 }
 0x213   :  { %4437 = vst [vmem:[%s5326_s2 + $0x2b0] sm:$0xff] %v4145_v11  }
 0x214   :  { %4469 = vst [vmem:[%s5326_s2 + $0x3b0] sm:$0xff] %v4305_v13  }
 0x215   :  { %v1543_v15 = vpop.f32.mrf.mxu2  ;;  %v1703_v17 = vpop.f32.mrf.mxu3 }
 0x216   :  { %v1225_v18 = vpop.f32.mrf.mxu0  ;;  %v1385_v20 = vpop.f32.mrf.mxu1  ;;  %v2178_v28 = vmul.f32 0.2, %v1543_v15  ;;  %vm1922_vm12 = vcmp.ge.f32.partialorder %v1543_v15, 0.0  ;;  %v2242_v29 = vmul.f32 0.2, %v1703_v17  ;;  %vm1986_vm13 = vcmp.ge.f32.partialorder %v1703_v17, 0.0 }
 0x217   :  { %vm1795_vm10 = vcmp.ge.f32.partialorder %v1225_v18, 0.0  ;;  %v2051_v19 = vmul.f32 0.2, %v1225_v18  ;;  %vm1859_vm11 = vcmp.ge.f32.partialorder %v1385_v20, 0.0  ;;  %v2115_v21 = vmul.f32 0.2, %v1385_v20 }
 0x218   :  { %v2434_v36 = vsel %vm1922_vm12, %v1543_v15, %v2178_v28  ;;  %v2498_v38 = vsel %vm1986_vm13, %v1703_v17, %v2242_v29 }
 0x219   :  { %v2307_v23 = vsel %vm1795_vm10, %v1225_v18, %v2051_v19  ;;  %v2371_v26 = vsel %vm1859_vm11, %v1385_v20, %v2115_v21 }
 0x21a   :  { %v3830_v25 = vpack.c.bf16 %v2307_v23, %v2306_v22  ;;  %v3990_v27 = vpack.c.bf16 %v2371_v26, %v2370_v24 }
 0x21c   :  { %4374 = vst [vmem:[%s5326_s2 + $0xb8] sm:$0xff] %v3830_v25  }
 0x21d   :  { %4406 = vst [vmem:[%s5326_s2 + $0x1b8] sm:$0xff] %v3990_v27   ;;  %v1545_v30 = vpop.f32.mrf.mxu2  ;;  %v1705_v32 = vpop.f32.mrf.mxu3 }
 0x21e   :  { %vm1923_vm14 = vcmp.ge.f32.partialorder %v1545_v30, 0.0  ;;  %v2179_v31 = vmul.f32 0.2, %v1545_v30  ;;  %v1228_v33 = vpop.f32.mrf.mxu0  ;;  %vm1987_vm15 = vcmp.ge.f32.partialorder %v1705_v32, 0.0  ;;  %v2243_v34 = vmul.f32 0.2, %v1705_v32  ;;  %v1388_v35 = vpop.f32.mrf.mxu1 }
 0x21f   :  { %v2052_v42 = vmul.f32 0.2, %v1228_v33  ;;  %vm1796_vm0 = vcmp.ge.f32.partialorder %v1228_v33, 0.0  ;;  %v2116_v44 = vmul.f32 0.2, %v1388_v35  ;;  %vm1860_vm1 = vcmp.ge.f32.partialorder %v1388_v35, 0.0 }
 0x220   :  { %v2435_v37 = vsel %vm1923_vm14, %v1545_v30, %v2179_v31  ;;  %v2499_v40 = vsel %vm1987_vm15, %v1705_v32, %v2243_v34 }
 0x221   :  { %v4150_v39 = vpack.c.bf16 %v2435_v37, %v2434_v36  ;;  %v4310_v41 = vpack.c.bf16 %v2499_v40, %v2498_v38  ;;  %v2308_v50 = vsel %vm1796_vm0, %v1228_v33, %v2052_v42  ;;  %v2372_v52 = vsel %vm1860_vm1, %v1388_v35, %v2116_v44 }
 0x223   :  { %4438 = vst [vmem:[%s5326_s2 + $0x2b8] sm:$0xff] %v4150_v39  }
 0x224   :  { %4470 = vst [vmem:[%s5326_s2 + $0x3b8] sm:$0xff] %v4310_v41  }
 0x225   :  { %v1548_v43 = vpop.f32.mrf.mxu2  ;;  %v1708_v45 = vpop.f32.mrf.mxu3 }
 0x226   :  { %v1230_v46 = vpop.f32.mrf.mxu0  ;;  %v1390_v48 = vpop.f32.mrf.mxu1  ;;  %v2180_v56 = vmul.f32 0.2, %v1548_v43  ;;  %vm1924_vm4 = vcmp.ge.f32.partialorder %v1548_v43, 0.0  ;;  %v2244_v57 = vmul.f32 0.2, %v1708_v45  ;;  %vm1988_vm5 = vcmp.ge.f32.partialorder %v1708_v45, 0.0 }
 0x227   :  { %vm1797_vm2 = vcmp.ge.f32.partialorder %v1230_v46, 0.0  ;;  %v2053_v47 = vmul.f32 0.2, %v1230_v46  ;;  %vm1861_vm3 = vcmp.ge.f32.partialorder %v1390_v48, 0.0  ;;  %v2117_v49 = vmul.f32 0.2, %v1390_v48 }
 0x228   :  { %v2436_v0 = vsel %vm1924_vm4, %v1548_v43, %v2180_v56  ;;  %v2500_v2 = vsel %vm1988_vm5, %v1708_v45, %v2244_v57 }
 0x229   :  { %v2309_v51 = vsel %vm1797_vm2, %v1230_v46, %v2053_v47  ;;  %v2373_v54 = vsel %vm1861_vm3, %v1390_v48, %v2117_v49 }
 0x22a   :  { %v3835_v53 = vpack.c.bf16 %v2309_v51, %v2308_v50  ;;  %v3995_v55 = vpack.c.bf16 %v2373_v54, %v2372_v52 }
 0x22c   :  { %4375 = vst [vmem:[%s5326_s2 + $0xc0] sm:$0xff] %v3835_v53  }
 0x22d   :  { %4407 = vst [vmem:[%s5326_s2 + $0x1c0] sm:$0xff] %v3995_v55   ;;  %v1550_v58 = vpop.f32.mrf.mxu2  ;;  %v1710_v60 = vpop.f32.mrf.mxu3 }
 0x22e   :  { %vm1925_vm6 = vcmp.ge.f32.partialorder %v1550_v58, 0.0  ;;  %v2181_v59 = vmul.f32 0.2, %v1550_v58  ;;  %v1233_v61 = vpop.f32.mrf.mxu0  ;;  %vm1989_vm7 = vcmp.ge.f32.partialorder %v1710_v60, 0.0  ;;  %v2245_v62 = vmul.f32 0.2, %v1710_v60  ;;  %v1393_v63 = vpop.f32.mrf.mxu1 }
 0x22f   :  { %v2054_v6 = vmul.f32 0.2, %v1233_v61  ;;  %vm1798_vm8 = vcmp.ge.f32.partialorder %v1233_v61, 0.0  ;;  %v2118_v8 = vmul.f32 0.2, %v1393_v63  ;;  %vm1862_vm9 = vcmp.ge.f32.partialorder %v1393_v63, 0.0 }
 0x230   :  { %v2437_v1 = vsel %vm1925_vm6, %v1550_v58, %v2181_v59  ;;  %v2501_v4 = vsel %vm1989_vm7, %v1710_v60, %v2245_v62 }
 0x231   :  { %v4155_v3 = vpack.c.bf16 %v2437_v1, %v2436_v0  ;;  %v4315_v5 = vpack.c.bf16 %v2501_v4, %v2500_v2  ;;  %v2310_v14 = vsel %vm1798_vm8, %v1233_v61, %v2054_v6  ;;  %v2374_v16 = vsel %vm1862_vm9, %v1393_v63, %v2118_v8 }
 0x233   :  { %4439 = vst [vmem:[%s5326_s2 + $0x2c0] sm:$0xff] %v4155_v3  }
 0x234   :  { %4471 = vst [vmem:[%s5326_s2 + $0x3c0] sm:$0xff] %v4315_v5  }
 0x235   :  { %v1553_v7 = vpop.f32.mrf.mxu2  ;;  %v1713_v9 = vpop.f32.mrf.mxu3 }
 0x236   :  { %v1235_v10 = vpop.f32.mrf.mxu0  ;;  %v1395_v12 = vpop.f32.mrf.mxu1  ;;  %v2182_v20 = vmul.f32 0.2, %v1553_v7  ;;  %vm1926_vm12 = vcmp.ge.f32.partialorder %v1553_v7, 0.0  ;;  %v2246_v21 = vmul.f32 0.2, %v1713_v9  ;;  %vm1990_vm13 = vcmp.ge.f32.partialorder %v1713_v9, 0.0 }
 0x237   :  { %vm1799_vm10 = vcmp.ge.f32.partialorder %v1235_v10, 0.0  ;;  %v2055_v11 = vmul.f32 0.2, %v1235_v10  ;;  %vm1863_vm11 = vcmp.ge.f32.partialorder %v1395_v12, 0.0  ;;  %v2119_v13 = vmul.f32 0.2, %v1395_v12 }
 0x238   :  { %v2438_v28 = vsel %vm1926_vm12, %v1553_v7, %v2182_v20  ;;  %v2502_v30 = vsel %vm1990_vm13, %v1713_v9, %v2246_v21 }
 0x239   :  { %v2311_v15 = vsel %vm1799_vm10, %v1235_v10, %v2055_v11  ;;  %v2375_v18 = vsel %vm1863_vm11, %v1395_v12, %v2119_v13 }
 0x23a   :  { %v3840_v17 = vpack.c.bf16 %v2311_v15, %v2310_v14  ;;  %v4000_v19 = vpack.c.bf16 %v2375_v18, %v2374_v16 }
 0x23c   :  { %4376 = vst [vmem:[%s5326_s2 + $0xc8] sm:$0xff] %v3840_v17  }
 0x23d   :  { %4408 = vst [vmem:[%s5326_s2 + $0x1c8] sm:$0xff] %v4000_v19   ;;  %v1555_v22 = vpop.f32.mrf.mxu2  ;;  %v1715_v24 = vpop.f32.mrf.mxu3 }
 0x23e   :  { %vm1927_vm14 = vcmp.ge.f32.partialorder %v1555_v22, 0.0  ;;  %v2183_v23 = vmul.f32 0.2, %v1555_v22  ;;  %v1238_v25 = vpop.f32.mrf.mxu0  ;;  %vm1991_vm15 = vcmp.ge.f32.partialorder %v1715_v24, 0.0  ;;  %v2247_v26 = vmul.f32 0.2, %v1715_v24  ;;  %v1398_v27 = vpop.f32.mrf.mxu1 }
 0x23f   :  { %v2056_v34 = vmul.f32 0.2, %v1238_v25  ;;  %vm1800_vm0 = vcmp.ge.f32.partialorder %v1238_v25, 0.0  ;;  %v2120_v36 = vmul.f32 0.2, %v1398_v27  ;;  %vm1864_vm1 = vcmp.ge.f32.partialorder %v1398_v27, 0.0 }
 0x240   :  { %v2439_v29 = vsel %vm1927_vm14, %v1555_v22, %v2183_v23  ;;  %v2503_v32 = vsel %vm1991_vm15, %v1715_v24, %v2247_v26 }
 0x241   :  { %v4160_v31 = vpack.c.bf16 %v2439_v29, %v2438_v28  ;;  %v4320_v33 = vpack.c.bf16 %v2503_v32, %v2502_v30  ;;  %v2312_v42 = vsel %vm1800_vm0, %v1238_v25, %v2056_v34  ;;  %v2376_v44 = vsel %vm1864_vm1, %v1398_v27, %v2120_v36 }
 0x243   :  { %4440 = vst [vmem:[%s5326_s2 + $0x2c8] sm:$0xff] %v4160_v31  }
 0x244   :  { %4472 = vst [vmem:[%s5326_s2 + $0x3c8] sm:$0xff] %v4320_v33  }
 0x245   :  { %v1558_v35 = vpop.f32.mrf.mxu2  ;;  %v1718_v37 = vpop.f32.mrf.mxu3 }
 0x246   :  { %v1240_v38 = vpop.f32.mrf.mxu0  ;;  %v1400_v40 = vpop.f32.mrf.mxu1  ;;  %v2184_v48 = vmul.f32 0.2, %v1558_v35  ;;  %vm1928_vm4 = vcmp.ge.f32.partialorder %v1558_v35, 0.0  ;;  %v2248_v49 = vmul.f32 0.2, %v1718_v37  ;;  %vm1992_vm5 = vcmp.ge.f32.partialorder %v1718_v37, 0.0 }
 0x247   :  { %vm1801_vm2 = vcmp.ge.f32.partialorder %v1240_v38, 0.0  ;;  %v2057_v39 = vmul.f32 0.2, %v1240_v38  ;;  %vm1865_vm3 = vcmp.ge.f32.partialorder %v1400_v40, 0.0  ;;  %v2121_v41 = vmul.f32 0.2, %v1400_v40 }
 0x248   :  { %v2440_v56 = vsel %vm1928_vm4, %v1558_v35, %v2184_v48  ;;  %v2504_v58 = vsel %vm1992_vm5, %v1718_v37, %v2248_v49 }
 0x249   :  { %v2313_v43 = vsel %vm1801_vm2, %v1240_v38, %v2057_v39  ;;  %v2377_v46 = vsel %vm1865_vm3, %v1400_v40, %v2121_v41 }
 0x24a   :  { %v3845_v45 = vpack.c.bf16 %v2313_v43, %v2312_v42  ;;  %v4005_v47 = vpack.c.bf16 %v2377_v46, %v2376_v44 }
 0x24c   :  { %4377 = vst [vmem:[%s5326_s2 + $0xd0] sm:$0xff] %v3845_v45  }
 0x24d   :  { %4409 = vst [vmem:[%s5326_s2 + $0x1d0] sm:$0xff] %v4005_v47   ;;  %v1560_v50 = vpop.f32.mrf.mxu2  ;;  %v1720_v52 = vpop.f32.mrf.mxu3 }
 0x24e   :  { %vm1929_vm6 = vcmp.ge.f32.partialorder %v1560_v50, 0.0  ;;  %v2185_v51 = vmul.f32 0.2, %v1560_v50  ;;  %v1243_v53 = vpop.f32.mrf.mxu0  ;;  %vm1993_vm7 = vcmp.ge.f32.partialorder %v1720_v52, 0.0  ;;  %v2249_v54 = vmul.f32 0.2, %v1720_v52  ;;  %v1403_v55 = vpop.f32.mrf.mxu1 }
 0x24f   :  { %v2058_v62 = vmul.f32 0.2, %v1243_v53  ;;  %vm1802_vm8 = vcmp.ge.f32.partialorder %v1243_v53, 0.0  ;;  %v2122_v0 = vmul.f32 0.2, %v1403_v55  ;;  %vm1866_vm9 = vcmp.ge.f32.partialorder %v1403_v55, 0.0 }
 0x250   :  { %v2441_v57 = vsel %vm1929_vm6, %v1560_v50, %v2185_v51  ;;  %v2505_v60 = vsel %vm1993_vm7, %v1720_v52, %v2249_v54 }
 0x251   :  { %v4165_v59 = vpack.c.bf16 %v2441_v57, %v2440_v56  ;;  %v4325_v61 = vpack.c.bf16 %v2505_v60, %v2504_v58  ;;  %v2314_v6 = vsel %vm1802_vm8, %v1243_v53, %v2058_v62  ;;  %v2378_v8 = vsel %vm1866_vm9, %v1403_v55, %v2122_v0 }
 0x253   :  { %4441 = vst [vmem:[%s5326_s2 + $0x2d0] sm:$0xff] %v4165_v59  }
 0x254   :  { %4473 = vst [vmem:[%s5326_s2 + $0x3d0] sm:$0xff] %v4325_v61  }
 0x255   :  { %v1563_v63 = vpop.f32.mrf.mxu2  ;;  %v1723_v1 = vpop.f32.mrf.mxu3 }
 0x256   :  { %v1245_v2 = vpop.f32.mrf.mxu0  ;;  %v1405_v4 = vpop.f32.mrf.mxu1  ;;  %v2186_v12 = vmul.f32 0.2, %v1563_v63  ;;  %vm1930_vm12 = vcmp.ge.f32.partialorder %v1563_v63, 0.0  ;;  %v2250_v13 = vmul.f32 0.2, %v1723_v1  ;;  %vm1994_vm13 = vcmp.ge.f32.partialorder %v1723_v1, 0.0 }
 0x257   :  { %vm1803_vm10 = vcmp.ge.f32.partialorder %v1245_v2, 0.0  ;;  %v2059_v3 = vmul.f32 0.2, %v1245_v2  ;;  %vm1867_vm11 = vcmp.ge.f32.partialorder %v1405_v4, 0.0  ;;  %v2123_v5 = vmul.f32 0.2, %v1405_v4 }
 0x258   :  { %v2442_v20 = vsel %vm1930_vm12, %v1563_v63, %v2186_v12  ;;  %v2506_v22 = vsel %vm1994_vm13, %v1723_v1, %v2250_v13 }
 0x259   :  { %v2315_v7 = vsel %vm1803_vm10, %v1245_v2, %v2059_v3  ;;  %v2379_v10 = vsel %vm1867_vm11, %v1405_v4, %v2123_v5 }
 0x25a   :  { %v3850_v9 = vpack.c.bf16 %v2315_v7, %v2314_v6  ;;  %v4010_v11 = vpack.c.bf16 %v2379_v10, %v2378_v8 }
 0x25c   :  { %4378 = vst [vmem:[%s5326_s2 + $0xd8] sm:$0xff] %v3850_v9  }
 0x25d   :  { %4410 = vst [vmem:[%s5326_s2 + $0x1d8] sm:$0xff] %v4010_v11   ;;  %v1565_v14 = vpop.f32.mrf.mxu2  ;;  %v1725_v16 = vpop.f32.mrf.mxu3 }
 0x25e   :  { %vm1931_vm14 = vcmp.ge.f32.partialorder %v1565_v14, 0.0  ;;  %v2187_v15 = vmul.f32 0.2, %v1565_v14  ;;  %v1248_v17 = vpop.f32.mrf.mxu0  ;;  %vm1995_vm15 = vcmp.ge.f32.partialorder %v1725_v16, 0.0  ;;  %v2251_v18 = vmul.f32 0.2, %v1725_v16  ;;  %v1408_v19 = vpop.f32.mrf.mxu1 }
 0x25f   :  { %v2060_v26 = vmul.f32 0.2, %v1248_v17  ;;  %vm1804_vm0 = vcmp.ge.f32.partialorder %v1248_v17, 0.0  ;;  %v2124_v28 = vmul.f32 0.2, %v1408_v19  ;;  %vm1868_vm1 = vcmp.ge.f32.partialorder %v1408_v19, 0.0 }
 0x260   :  { %v2443_v21 = vsel %vm1931_vm14, %v1565_v14, %v2187_v15  ;;  %v2507_v24 = vsel %vm1995_vm15, %v1725_v16, %v2251_v18 }
 0x261   :  { %v4170_v23 = vpack.c.bf16 %v2443_v21, %v2442_v20  ;;  %v4330_v25 = vpack.c.bf16 %v2507_v24, %v2506_v22  ;;  %v2316_v34 = vsel %vm1804_vm0, %v1248_v17, %v2060_v26  ;;  %v2380_v36 = vsel %vm1868_vm1, %v1408_v19, %v2124_v28 }
 0x263   :  { %4442 = vst [vmem:[%s5326_s2 + $0x2d8] sm:$0xff] %v4170_v23  }
 0x264   :  { %4474 = vst [vmem:[%s5326_s2 + $0x3d8] sm:$0xff] %v4330_v25  }
 0x265   :  { %v1568_v27 = vpop.f32.mrf.mxu2  ;;  %v1728_v29 = vpop.f32.mrf.mxu3 }
 0x266   :  { %v1250_v30 = vpop.f32.mrf.mxu0  ;;  %v1410_v32 = vpop.f32.mrf.mxu1  ;;  %v2188_v40 = vmul.f32 0.2, %v1568_v27  ;;  %vm1932_vm4 = vcmp.ge.f32.partialorder %v1568_v27, 0.0  ;;  %v2252_v41 = vmul.f32 0.2, %v1728_v29  ;;  %vm1996_vm5 = vcmp.ge.f32.partialorder %v1728_v29, 0.0 }
 0x267   :  { %vm1805_vm2 = vcmp.ge.f32.partialorder %v1250_v30, 0.0  ;;  %v2061_v31 = vmul.f32 0.2, %v1250_v30  ;;  %vm1869_vm3 = vcmp.ge.f32.partialorder %v1410_v32, 0.0  ;;  %v2125_v33 = vmul.f32 0.2, %v1410_v32 }
 0x268   :  { %v2444_v48 = vsel %vm1932_vm4, %v1568_v27, %v2188_v40  ;;  %v2508_v50 = vsel %vm1996_vm5, %v1728_v29, %v2252_v41 }
 0x269   :  { %v2317_v35 = vsel %vm1805_vm2, %v1250_v30, %v2061_v31  ;;  %v2381_v38 = vsel %vm1869_vm3, %v1410_v32, %v2125_v33 }
 0x26a   :  { %v3855_v37 = vpack.c.bf16 %v2317_v35, %v2316_v34  ;;  %v4015_v39 = vpack.c.bf16 %v2381_v38, %v2380_v36 }
 0x26c   :  { %4379 = vst [vmem:[%s5326_s2 + $0xe0] sm:$0xff] %v3855_v37  }
 0x26d   :  { %4411 = vst [vmem:[%s5326_s2 + $0x1e0] sm:$0xff] %v4015_v39   ;;  %v1570_v42 = vpop.f32.mrf.mxu2  ;;  %v1730_v44 = vpop.f32.mrf.mxu3 }
 0x26e   :  { %vm1933_vm6 = vcmp.ge.f32.partialorder %v1570_v42, 0.0  ;;  %v2189_v43 = vmul.f32 0.2, %v1570_v42  ;;  %v1253_v45 = vpop.f32.mrf.mxu0  ;;  %vm1997_vm7 = vcmp.ge.f32.partialorder %v1730_v44, 0.0  ;;  %v2253_v46 = vmul.f32 0.2, %v1730_v44  ;;  %v1413_v47 = vpop.f32.mrf.mxu1 }
 0x26f   :  { %v2062_v54 = vmul.f32 0.2, %v1253_v45  ;;  %vm1806_vm8 = vcmp.ge.f32.partialorder %v1253_v45, 0.0  ;;  %v2126_v56 = vmul.f32 0.2, %v1413_v47  ;;  %vm1870_vm9 = vcmp.ge.f32.partialorder %v1413_v47, 0.0 }
 0x270   :  { %v2445_v49 = vsel %vm1933_vm6, %v1570_v42, %v2189_v43  ;;  %v2509_v52 = vsel %vm1997_vm7, %v1730_v44, %v2253_v46 }
 0x271   :  { %v4175_v51 = vpack.c.bf16 %v2445_v49, %v2444_v48  ;;  %v4335_v53 = vpack.c.bf16 %v2509_v52, %v2508_v50  ;;  %v2318_v62 = vsel %vm1806_vm8, %v1253_v45, %v2062_v54  ;;  %v2382_v0 = vsel %vm1870_vm9, %v1413_v47, %v2126_v56 }
 0x273   :  { %4443 = vst [vmem:[%s5326_s2 + $0x2e0] sm:$0xff] %v4175_v51  }
 0x274   :  { %4475 = vst [vmem:[%s5326_s2 + $0x3e0] sm:$0xff] %v4335_v53  }
 0x275   :  { %v1573_v55 = vpop.f32.mrf.mxu2  ;;  %v1733_v57 = vpop.f32.mrf.mxu3 }
 0x276   :  { %v1255_v58 = vpop.f32.mrf.mxu0  ;;  %v1415_v60 = vpop.f32.mrf.mxu1  ;;  %v2190_v4 = vmul.f32 0.2, %v1573_v55  ;;  %vm1934_vm12 = vcmp.ge.f32.partialorder %v1573_v55, 0.0  ;;  %v2254_v5 = vmul.f32 0.2, %v1733_v57  ;;  %vm1998_vm13 = vcmp.ge.f32.partialorder %v1733_v57, 0.0 }
 0x277   :  { %vm1807_vm10 = vcmp.ge.f32.partialorder %v1255_v58, 0.0  ;;  %v2063_v59 = vmul.f32 0.2, %v1255_v58  ;;  %vm1871_vm11 = vcmp.ge.f32.partialorder %v1415_v60, 0.0  ;;  %v2127_v61 = vmul.f32 0.2, %v1415_v60 }
 0x278   :  { %v2446_v12 = vsel %vm1934_vm12, %v1573_v55, %v2190_v4  ;;  %v2510_v14 = vsel %vm1998_vm13, %v1733_v57, %v2254_v5 }
 0x279   :  { %v2319_v63 = vsel %vm1807_vm10, %v1255_v58, %v2063_v59  ;;  %v2383_v2 = vsel %vm1871_vm11, %v1415_v60, %v2127_v61 }
 0x27a   :  { %v3860_v1 = vpack.c.bf16 %v2319_v63, %v2318_v62  ;;  %v4020_v3 = vpack.c.bf16 %v2383_v2, %v2382_v0 }
 0x27c   :  { %4380 = vst [vmem:[%s5326_s2 + $0xe8] sm:$0xff] %v3860_v1  }
 0x27d   :  { %4412 = vst [vmem:[%s5326_s2 + $0x1e8] sm:$0xff] %v4020_v3   ;;  %v1575_v6 = vpop.f32.mrf.mxu2  ;;  %v1735_v8 = vpop.f32.mrf.mxu3 }
 0x27e   :  { %vm1935_vm14 = vcmp.ge.f32.partialorder %v1575_v6, 0.0  ;;  %v2191_v7 = vmul.f32 0.2, %v1575_v6  ;;  %v1258_v9 = vpop.f32.mrf.mxu0  ;;  %vm1999_vm15 = vcmp.ge.f32.partialorder %v1735_v8, 0.0  ;;  %v2255_v10 = vmul.f32 0.2, %v1735_v8  ;;  %v1418_v11 = vpop.f32.mrf.mxu1 }
 0x27f   :  { %v2064_v18 = vmul.f32 0.2, %v1258_v9  ;;  %vm1808_vm0 = vcmp.ge.f32.partialorder %v1258_v9, 0.0  ;;  %v2128_v20 = vmul.f32 0.2, %v1418_v11  ;;  %vm1872_vm1 = vcmp.ge.f32.partialorder %v1418_v11, 0.0 }
 0x280   :  { %v2447_v13 = vsel %vm1935_vm14, %v1575_v6, %v2191_v7  ;;  %v2511_v16 = vsel %vm1999_vm15, %v1735_v8, %v2255_v10 }
 0x281   :  { %v4180_v15 = vpack.c.bf16 %v2447_v13, %v2446_v12  ;;  %v4340_v17 = vpack.c.bf16 %v2511_v16, %v2510_v14  ;;  %v2320_v26 = vsel %vm1808_vm0, %v1258_v9, %v2064_v18  ;;  %v2384_v28 = vsel %vm1872_vm1, %v1418_v11, %v2128_v20 }
 0x283   :  { %4444 = vst [vmem:[%s5326_s2 + $0x2e8] sm:$0xff] %v4180_v15  }
 0x284   :  { %4476 = vst [vmem:[%s5326_s2 + $0x3e8] sm:$0xff] %v4340_v17  }
 0x285   :  { %v1578_v19 = vpop.f32.mrf.mxu2  ;;  %v1738_v21 = vpop.f32.mrf.mxu3 }
 0x286   :  { %v1260_v22 = vpop.f32.mrf.mxu0  ;;  %v1420_v24 = vpop.f32.mrf.mxu1  ;;  %v2192_v32 = vmul.f32 0.2, %v1578_v19  ;;  %vm1936_vm4 = vcmp.ge.f32.partialorder %v1578_v19, 0.0  ;;  %v2256_v33 = vmul.f32 0.2, %v1738_v21  ;;  %vm2000_vm5 = vcmp.ge.f32.partialorder %v1738_v21, 0.0 }
 0x287   :  { %vm1809_vm2 = vcmp.ge.f32.partialorder %v1260_v22, 0.0  ;;  %v2065_v23 = vmul.f32 0.2, %v1260_v22  ;;  %vm1873_vm3 = vcmp.ge.f32.partialorder %v1420_v24, 0.0  ;;  %v2129_v25 = vmul.f32 0.2, %v1420_v24 }
 0x288   :  { %v2448_v40 = vsel %vm1936_vm4, %v1578_v19, %v2192_v32  ;;  %v2512_v42 = vsel %vm2000_vm5, %v1738_v21, %v2256_v33 }
 0x289   :  { %v2321_v27 = vsel %vm1809_vm2, %v1260_v22, %v2065_v23  ;;  %v2385_v30 = vsel %vm1873_vm3, %v1420_v24, %v2129_v25 }
 0x28a   :  { %v3865_v29 = vpack.c.bf16 %v2321_v27, %v2320_v26  ;;  %v4025_v31 = vpack.c.bf16 %v2385_v30, %v2384_v28 }
 0x28c   :  { %4381 = vst [vmem:[%s5326_s2 + $0xf0] sm:$0xff] %v3865_v29  }
 0x28d   :  { %4413 = vst [vmem:[%s5326_s2 + $0x1f0] sm:$0xff] %v4025_v31   ;;  %v1580_v34 = vpop.f32.mrf.mxu2  ;;  %v1740_v36 = vpop.f32.mrf.mxu3 }
 0x28e   :  { %vm1937_vm6 = vcmp.ge.f32.partialorder %v1580_v34, 0.0  ;;  %v2193_v35 = vmul.f32 0.2, %v1580_v34  ;;  %v1263_v37 = vpop.f32.mrf.mxu0  ;;  %vm2001_vm7 = vcmp.ge.f32.partialorder %v1740_v36, 0.0  ;;  %v2257_v38 = vmul.f32 0.2, %v1740_v36  ;;  %v1423_v39 = vpop.f32.mrf.mxu1 }
 0x28f   :  { %v2066_v46 = vmul.f32 0.2, %v1263_v37  ;;  %vm1810_vm8 = vcmp.ge.f32.partialorder %v1263_v37, 0.0  ;;  %v2130_v48 = vmul.f32 0.2, %v1423_v39  ;;  %vm1874_vm9 = vcmp.ge.f32.partialorder %v1423_v39, 0.0 }
 0x290   :  { %v2449_v41 = vsel %vm1937_vm6, %v1580_v34, %v2193_v35  ;;  %v2513_v44 = vsel %vm2001_vm7, %v1740_v36, %v2257_v38 }
 0x291   :  { %v4185_v43 = vpack.c.bf16 %v2449_v41, %v2448_v40  ;;  %v4345_v45 = vpack.c.bf16 %v2513_v44, %v2512_v42  ;;  %v2322_v54 = vsel %vm1810_vm8, %v1263_v37, %v2066_v46  ;;  %v2386_v56 = vsel %vm1874_vm9, %v1423_v39, %v2130_v48 }
 0x293   :  { %4445 = vst [vmem:[%s5326_s2 + $0x2f0] sm:$0xff] %v4185_v43  }
 0x294   :  { %4477 = vst [vmem:[%s5326_s2 + $0x3f0] sm:$0xff] %v4345_v45  }
 0x295   :  { %v1583_v47 = vpop.f32.mrf.mxu2  ;;  %v1743_v49 = vpop.f32.mrf.mxu3 }
 0x296   :  { %v1265_v50 = vpop.f32.mrf.mxu0  ;;  %v1425_v52 = vpop.f32.mrf.mxu1  ;;  %v2194_v60 = vmul.f32 0.2, %v1583_v47  ;;  %vm1938_vm12 = vcmp.ge.f32.partialorder %v1583_v47, 0.0  ;;  %v2258_v61 = vmul.f32 0.2, %v1743_v49  ;;  %vm2002_vm13 = vcmp.ge.f32.partialorder %v1743_v49, 0.0 }
 0x297   :  { %vm1811_vm10 = vcmp.ge.f32.partialorder %v1265_v50, 0.0  ;;  %v2067_v51 = vmul.f32 0.2, %v1265_v50  ;;  %vm1875_vm11 = vcmp.ge.f32.partialorder %v1425_v52, 0.0  ;;  %v2131_v53 = vmul.f32 0.2, %v1425_v52 }
 0x298   :  { %v2450_v2 = vsel %vm1938_vm12, %v1583_v47, %v2194_v60  ;;  %v2514_v4 = vsel %vm2002_vm13, %v1743_v49, %v2258_v61 }
 0x299   :  { %v2323_v55 = vsel %vm1811_vm10, %v1265_v50, %v2067_v51  ;;  %v2387_v58 = vsel %vm1875_vm11, %v1425_v52, %v2131_v53 }
 0x29a   :  { %v3870_v57 = vpack.c.bf16 %v2323_v55, %v2322_v54  ;;  %v4030_v59 = vpack.c.bf16 %v2387_v58, %v2386_v56 }
 0x29c   :  { %4382 = vst [vmem:[%s5326_s2 + $0xf8] sm:$0xff] %v3870_v57  }
 0x29d   :  { %4414 = vst [vmem:[%s5326_s2 + $0x1f8] sm:$0xff] %v4030_v59   ;;  %v1585_v62 = vpop.f32.mrf.mxu2  ;;  %v1745_v0 = vpop.f32.mrf.mxu3 }
 0x29e   :  { %vm1939_vm14 = vcmp.ge.f32.partialorder %v1585_v62, 0.0  ;;  %v2195_v63 = vmul.f32 0.2, %v1585_v62  ;;  %vm2003_vm15 = vcmp.ge.f32.partialorder %v1745_v0, 0.0  ;;  %v2259_v1 = vmul.f32 0.2, %v1745_v0 }
 0x2a0   :  { %v2451_v3 = vsel %vm1939_vm14, %v1585_v62, %v2195_v63  ;;  %v2515_v6 = vsel %vm2003_vm15, %v1745_v0, %v2259_v1 }
 0x2a1   :  { %v4190_v5 = vpack.c.bf16 %v2451_v3, %v2450_v2  ;;  %v4350_v7 = vpack.c.bf16 %v2515_v6, %v2514_v4 }
 0x2a3   :  { %4446 = vst [vmem:[%s5326_s2 + $0x2f8] sm:$0xff] %v4190_v5  }
 0x2a4   :  { %4478 = vst [vmem:[%s5326_s2 + $0x3f8] sm:$0xff] %v4350_v7  }

// kernel: discriminator_forward.5
= control target key start
LH: loop header
LB: loop body
LE: loop exit
PB: predicated region body
PF: predicated region fallthrough
CT: control target
= control target key end

     0   :  { %s4595_s15 = smov 0   ;;  %s4597_s16 = smov 0   ;;  %s6144_s0 = inlined_call_operand.vmem [shape: bf16[512,1024], index: 0, kind: input, shape index: {}]   ;;  %s6145_s1 = inlined_call_operand.vmem [shape: bf16[1024,128], index: 1, kind: input, shape index: {}]   ;;  %s6146_s2 = inlined_call_operand.vmem [shape: f32[1,128], index: 2, kind: input, shape index: {}]   ;;  %s6147_s3 = inlined_call_operand.vmem [shape: f32[1,128], index: 3, kind: input, shape index: {}]   ;;  %s6148_s4 = inlined_call_operand.vmem [shape: bf16[512,128], index: 4, kind: output, shape index: {}]  }
   0x1   :  { %s4599_s17 = smov 0   ;;  %s4601_s18 = smov 0  }
   0x2   :  { %s4603_s19 = smov 0  }
   0x3 LB: > { %s23_s20 = sadd.s32 1, %s4563_s18  ;;  %p40_p1 = scmp.ne.s32.totalorder %s4555_s16, %s4551_s15  ;;  %s4567_s19 = sphi %s4603_s19, %s14_s19   ;;  %s4563_s18 = sphi %s4601_s18, %s6260_s18   ;;  %s4559_s17 = sphi %s4599_s17, %s6259_s17   ;;  %s4555_s16 = sphi %s4597_s16, %s6258_s16   ;;  %s4551_s15 = sphi %s4595_s15, %s6257_s15  }
   0x4   : > { %p24_p0 = scmp.ge.s32.totalorder %s23_s20, 2  ;;  %p41_p2 = scmp.eq.s32.totalorder %s4567_s19, 0 }
   0x5   : > { %s33_s22 = sadd.s32 1, %s4555_s16  ;;  %p3479_p5 = scmp.ge.s32.totalorder %s4567_s19, 2 }
   0x6   : > { %s6262_s20 = smov (%p24_p0, %s23_s20), 0  ;;  %p42_p3 = por %p41_p2, %p40_p1 }
   0x7   : > { %s30_s21 = ssub.s32 %s4563_s18, %s6262_s20  ;;  %184 = sbr.rel (%p3479_p5) target bundleno = 144 (0x90), region = 24 }
   0x8   : > { %p31_p4 = scmp.eq.s32.totalorder %s30_s21, 0 }
   0xa   : > { %s4630_s23 = scalar_select %p31_p4, %s4555_s16, %s33_s22  }
   0xc   : > { %187 = sbr.rel (!%p42_p3) target bundleno = 144 (0x90), region = 28  ;;  %s189_s24 = sand.u32 (%p42_p3), 1, %s4555_s16  }
   0xd   : > { %s4132_s25 = sshll.u32 (%p42_p3), %s4563_s18, 4  ;;  %s3480_s26 = sshll.u32 (%p42_p3), %s189_s24, 10 }
   0xe   : > { %s4638_s29 = scalar_lea.vmem (%p42_p3), %s6144_s0, %s4132_s25  ;;  %s4643_s30 = scalar_lea.vmem (%p42_p3), [#allocation3], %s3480_s26 }
   0xf   : > { %v207_v0 = vld [vmem:[%s4638_s29] sm:$0xff] (%p42_p3)  ;;  %v209_v1 = vld [vmem:[%s4638_s29 + $0x8] sm:$0xff] (%p42_p3) }
  0x10   : > { %v211_v2 = vld [vmem:[%s4638_s29 + $0x20] sm:$0xff] (%p42_p3)  ;;  %208 = vst [vmem:[%s4643_s30] sm:$0xff] (%p42_p3), %v207_v0  ;;  %v213_v3 = vld [vmem:[%s4638_s29 + $0x28] sm:$0xff] (%p42_p3) }
  0x11   : > { %210 = vst [vmem:[%s4643_s30 + $0x8] sm:$0xff] %v209_v1  ;;  %v215_v4 = vld [vmem:[%s4638_s29 + $0x40] sm:$0xff]  ;;  %v217_v5 = vld [vmem:[%s4638_s29 + $0x48] sm:$0xff] }
  0x12   : > { %212 = vst [vmem:[%s4643_s30 + $0x10] sm:$0xff] %v211_v2  ;;  %v219_v6 = vld [vmem:[%s4638_s29 + $0x60] sm:$0xff]  ;;  %v221_v7 = vld [vmem:[%s4638_s29 + $0x68] sm:$0xff] }
  0x13   : > { %214 = vst [vmem:[%s4643_s30 + $0x18] sm:$0xff] %v213_v3  ;;  %v223_v8 = vld [vmem:[%s4638_s29 + $0x80] sm:$0xff]  ;;  %v225_v9 = vld [vmem:[%s4638_s29 + $0x88] sm:$0xff] }
  0x14   : > { %216 = vst [vmem:[%s4643_s30 + $0x20] sm:$0xff] %v215_v4  ;;  %v227_v10 = vld [vmem:[%s4638_s29 + $0xa0] sm:$0xff]  ;;  %v229_v11 = vld [vmem:[%s4638_s29 + $0xa8] sm:$0xff] }
  0x15   : > { %218 = vst [vmem:[%s4643_s30 + $0x28] sm:$0xff] %v217_v5  ;;  %v231_v12 = vld [vmem:[%s4638_s29 + $0xc0] sm:$0xff]  ;;  %v233_v13 = vld [vmem:[%s4638_s29 + $0xc8] sm:$0xff] }
  0x16   : > { %220 = vst [vmem:[%s4643_s30 + $0x30] sm:$0xff] %v219_v6  ;;  %v235_v14 = vld [vmem:[%s4638_s29 + $0xe0] sm:$0xff]  ;;  %v237_v15 = vld [vmem:[%s4638_s29 + $0xe8] sm:$0xff] }
  0x17   : > { %222 = vst [vmem:[%s4643_s30 + $0x38] sm:$0xff] %v221_v7  ;;  %v239_v16 = vld [vmem:[%s4638_s29 + $0x100] sm:$0xff]  ;;  %v241_v17 = vld [vmem:[%s4638_s29 + $0x108] sm:$0xff] }
  0x18   : > { %224 = vst [vmem:[%s4643_s30 + $0x40] sm:$0xff] %v223_v8  ;;  %v243_v18 = vld [vmem:[%s4638_s29 + $0x120] sm:$0xff]  ;;  %v245_v19 = vld [vmem:[%s4638_s29 + $0x128] sm:$0xff] }
  0x19   : > { %226 = vst [vmem:[%s4643_s30 + $0x48] sm:$0xff] %v225_v9  ;;  %v247_v20 = vld [vmem:[%s4638_s29 + $0x140] sm:$0xff]  ;;  %v249_v21 = vld [vmem:[%s4638_s29 + $0x148] sm:$0xff] }
  0x1a   : > { %228 = vst [vmem:[%s4643_s30 + $0x50] sm:$0xff] %v227_v10  ;;  %v251_v22 = vld [vmem:[%s4638_s29 + $0x160] sm:$0xff]  ;;  %v253_v23 = vld [vmem:[%s4638_s29 + $0x168] sm:$0xff] }
  0x1b   : > { %230 = vst [vmem:[%s4643_s30 + $0x58] sm:$0xff] %v229_v11  ;;  %v255_v24 = vld [vmem:[%s4638_s29 + $0x180] sm:$0xff]  ;;  %v257_v25 = vld [vmem:[%s4638_s29 + $0x188] sm:$0xff] }
  0x1c   : > { %232 = vst [vmem:[%s4643_s30 + $0x60] sm:$0xff] %v231_v12  ;;  %v259_v26 = vld [vmem:[%s4638_s29 + $0x1a0] sm:$0xff]  ;;  %v261_v27 = vld [vmem:[%s4638_s29 + $0x1a8] sm:$0xff] }
  0x1d   : > { %234 = vst [vmem:[%s4643_s30 + $0x68] sm:$0xff] %v233_v13  ;;  %v263_v28 = vld [vmem:[%s4638_s29 + $0x1c0] sm:$0xff]  ;;  %v265_v29 = vld [vmem:[%s4638_s29 + $0x1c8] sm:$0xff] }
  0x1e   : > { %236 = vst [vmem:[%s4643_s30 + $0x70] sm:$0xff] %v235_v14  ;;  %v267_v30 = vld [vmem:[%s4638_s29 + $0x1e0] sm:$0xff]  ;;  %v269_v31 = vld [vmem:[%s4638_s29 + $0x1e8] sm:$0xff] }
  0x1f   : > { %238 = vst [vmem:[%s4643_s30 + $0x78] sm:$0xff] %v237_v15  ;;  %v271_v32 = vld [vmem:[%s4638_s29 + $0x200] sm:$0xff]  ;;  %v273_v33 = vld [vmem:[%s4638_s29 + $0x208] sm:$0xff] }
  0x20   : > { %240 = vst [vmem:[%s4643_s30 + $0x80] sm:$0xff] %v239_v16  ;;  %v275_v34 = vld [vmem:[%s4638_s29 + $0x220] sm:$0xff]  ;;  %v277_v35 = vld [vmem:[%s4638_s29 + $0x228] sm:$0xff] }
  0x21   : > { %242 = vst [vmem:[%s4643_s30 + $0x88] sm:$0xff] %v241_v17  ;;  %v279_v36 = vld [vmem:[%s4638_s29 + $0x240] sm:$0xff]  ;;  %v281_v37 = vld [vmem:[%s4638_s29 + $0x248] sm:$0xff] }
  0x22   : > { %244 = vst [vmem:[%s4643_s30 + $0x90] sm:$0xff] %v243_v18  ;;  %v283_v38 = vld [vmem:[%s4638_s29 + $0x260] sm:$0xff]  ;;  %v285_v39 = vld [vmem:[%s4638_s29 + $0x268] sm:$0xff] }
  0x23   : > { %246 = vst [vmem:[%s4643_s30 + $0x98] sm:$0xff] %v245_v19  ;;  %v287_v40 = vld [vmem:[%s4638_s29 + $0x280] sm:$0xff]  ;;  %v289_v41 = vld [vmem:[%s4638_s29 + $0x288] sm:$0xff] }
  0x24   : > { %248 = vst [vmem:[%s4643_s30 + $0xa0] sm:$0xff] %v247_v20  ;;  %v291_v42 = vld [vmem:[%s4638_s29 + $0x2a0] sm:$0xff]  ;;  %v293_v43 = vld [vmem:[%s4638_s29 + $0x2a8] sm:$0xff] }
  0x25   : > { %250 = vst [vmem:[%s4643_s30 + $0xa8] sm:$0xff] %v249_v21  ;;  %v295_v44 = vld [vmem:[%s4638_s29 + $0x2c0] sm:$0xff]  ;;  %v297_v45 = vld [vmem:[%s4638_s29 + $0x2c8] sm:$0xff] }
  0x26   : > { %252 = vst [vmem:[%s4643_s30 + $0xb0] sm:$0xff] %v251_v22  ;;  %v299_v46 = vld [vmem:[%s4638_s29 + $0x2e0] sm:$0xff]  ;;  %v301_v47 = vld [vmem:[%s4638_s29 + $0x2e8] sm:$0xff] }
  0x27   : > { %254 = vst [vmem:[%s4643_s30 + $0xb8] sm:$0xff] %v253_v23  ;;  %v303_v48 = vld [vmem:[%s4638_s29 + $0x300] sm:$0xff]  ;;  %v305_v49 = vld [vmem:[%s4638_s29 + $0x308] sm:$0xff] }
  0x28   : > { %256 = vst [vmem:[%s4643_s30 + $0xc0] sm:$0xff] %v255_v24  ;;  %v307_v50 = vld [vmem:[%s4638_s29 + $0x320] sm:$0xff]  ;;  %v309_v51 = vld [vmem:[%s4638_s29 + $0x328] sm:$0xff] }
  0x29   : > { %258 = vst [vmem:[%s4643_s30 + $0xc8] sm:$0xff] %v257_v25  ;;  %v311_v52 = vld [vmem:[%s4638_s29 + $0x340] sm:$0xff]  ;;  %v313_v53 = vld [vmem:[%s4638_s29 + $0x348] sm:$0xff] }
  0x2a   : > { %260 = vst [vmem:[%s4643_s30 + $0xd0] sm:$0xff] %v259_v26  ;;  %v315_v54 = vld [vmem:[%s4638_s29 + $0x360] sm:$0xff]  ;;  %v317_v55 = vld [vmem:[%s4638_s29 + $0x368] sm:$0xff] }
  0x2b   : > { %262 = vst [vmem:[%s4643_s30 + $0xd8] sm:$0xff] %v261_v27  ;;  %v319_v56 = vld [vmem:[%s4638_s29 + $0x380] sm:$0xff]  ;;  %v321_v57 = vld [vmem:[%s4638_s29 + $0x388] sm:$0xff] }
  0x2c   : > { %264 = vst [vmem:[%s4643_s30 + $0xe0] sm:$0xff] %v263_v28  ;;  %v323_v58 = vld [vmem:[%s4638_s29 + $0x3a0] sm:$0xff]  ;;  %v325_v59 = vld [vmem:[%s4638_s29 + $0x3a8] sm:$0xff] }
  0x2d   : > { %266 = vst [vmem:[%s4643_s30 + $0xe8] sm:$0xff] %v265_v29  ;;  %v327_v60 = vld [vmem:[%s4638_s29 + $0x3c0] sm:$0xff]  ;;  %v329_v61 = vld [vmem:[%s4638_s29 + $0x3c8] sm:$0xff] }
  0x2e   : > { %268 = vst [vmem:[%s4643_s30 + $0xf0] sm:$0xff] %v267_v30  ;;  %v331_v62 = vld [vmem:[%s4638_s29 + $0x3e0] sm:$0xff]  ;;  %v333_v63 = vld [vmem:[%s4638_s29 + $0x3e8] sm:$0xff] }
  0x2f   : > { %270 = vst [vmem:[%s4643_s30 + $0xf8] sm:$0xff] %v269_v31  ;;  %v335_v0 = vld [vmem:[%s4638_s29 + $0x400] sm:$0xff]  ;;  %v337_v1 = vld [vmem:[%s4638_s29 + $0x408] sm:$0xff] }
  0x30   : > { %272 = vst [vmem:[%s4643_s30 + $0x100] sm:$0xff] %v271_v32  ;;  %v339_v2 = vld [vmem:[%s4638_s29 + $0x420] sm:$0xff]  ;;  %v341_v3 = vld [vmem:[%s4638_s29 + $0x428] sm:$0xff] }
  0x31   : > { %274 = vst [vmem:[%s4643_s30 + $0x108] sm:$0xff] %v273_v33  ;;  %v343_v4 = vld [vmem:[%s4638_s29 + $0x440] sm:$0xff]  ;;  %v345_v5 = vld [vmem:[%s4638_s29 + $0x448] sm:$0xff] }
  0x32   : > { %276 = vst [vmem:[%s4643_s30 + $0x110] sm:$0xff] %v275_v34  ;;  %v347_v6 = vld [vmem:[%s4638_s29 + $0x460] sm:$0xff]  ;;  %v349_v7 = vld [vmem:[%s4638_s29 + $0x468] sm:$0xff] }
  0x33   : > { %278 = vst [vmem:[%s4643_s30 + $0x118] sm:$0xff] %v277_v35  ;;  %v351_v8 = vld [vmem:[%s4638_s29 + $0x480] sm:$0xff]  ;;  %v353_v9 = vld [vmem:[%s4638_s29 + $0x488] sm:$0xff] }
  0x34   : > { %280 = vst [vmem:[%s4643_s30 + $0x120] sm:$0xff] %v279_v36  ;;  %v355_v10 = vld [vmem:[%s4638_s29 + $0x4a0] sm:$0xff]  ;;  %v357_v11 = vld [vmem:[%s4638_s29 + $0x4a8] sm:$0xff] }
  0x35   : > { %282 = vst [vmem:[%s4643_s30 + $0x128] sm:$0xff] %v281_v37  ;;  %v359_v12 = vld [vmem:[%s4638_s29 + $0x4c0] sm:$0xff]  ;;  %v361_v13 = vld [vmem:[%s4638_s29 + $0x4c8] sm:$0xff] }
  0x36   : > { %284 = vst [vmem:[%s4643_s30 + $0x130] sm:$0xff] %v283_v38  ;;  %v363_v14 = vld [vmem:[%s4638_s29 + $0x4e0] sm:$0xff]  ;;  %v365_v15 = vld [vmem:[%s4638_s29 + $0x4e8] sm:$0xff] }
  0x37   : > { %286 = vst [vmem:[%s4643_s30 + $0x138] sm:$0xff] %v285_v39  ;;  %v367_v16 = vld [vmem:[%s4638_s29 + $0x500] sm:$0xff]  ;;  %v369_v17 = vld [vmem:[%s4638_s29 + $0x508] sm:$0xff] }
  0x38   : > { %288 = vst [vmem:[%s4643_s30 + $0x140] sm:$0xff] %v287_v40  ;;  %v371_v18 = vld [vmem:[%s4638_s29 + $0x520] sm:$0xff]  ;;  %v373_v19 = vld [vmem:[%s4638_s29 + $0x528] sm:$0xff] }
  0x39   : > { %290 = vst [vmem:[%s4643_s30 + $0x148] sm:$0xff] %v289_v41  ;;  %v375_v20 = vld [vmem:[%s4638_s29 + $0x540] sm:$0xff]  ;;  %v377_v21 = vld [vmem:[%s4638_s29 + $0x548] sm:$0xff] }
  0x3a   : > { %292 = vst [vmem:[%s4643_s30 + $0x150] sm:$0xff] %v291_v42  ;;  %v379_v22 = vld [vmem:[%s4638_s29 + $0x560] sm:$0xff]  ;;  %v381_v23 = vld [vmem:[%s4638_s29 + $0x568] sm:$0xff] }
  0x3b   : > { %294 = vst [vmem:[%s4643_s30 + $0x158] sm:$0xff] %v293_v43  ;;  %v383_v24 = vld [vmem:[%s4638_s29 + $0x580] sm:$0xff]  ;;  %v385_v25 = vld [vmem:[%s4638_s29 + $0x588] sm:$0xff] }
  0x3c   : > { %296 = vst [vmem:[%s4643_s30 + $0x160] sm:$0xff] %v295_v44  ;;  %v387_v26 = vld [vmem:[%s4638_s29 + $0x5a0] sm:$0xff]  ;;  %v389_v27 = vld [vmem:[%s4638_s29 + $0x5a8] sm:$0xff] }
  0x3d   : > { %298 = vst [vmem:[%s4643_s30 + $0x168] sm:$0xff] %v297_v45  ;;  %v391_v28 = vld [vmem:[%s4638_s29 + $0x5c0] sm:$0xff]  ;;  %v393_v29 = vld [vmem:[%s4638_s29 + $0x5c8] sm:$0xff] }
  0x3e   : > { %300 = vst [vmem:[%s4643_s30 + $0x170] sm:$0xff] %v299_v46  ;;  %v395_v30 = vld [vmem:[%s4638_s29 + $0x5e0] sm:$0xff]  ;;  %v397_v31 = vld [vmem:[%s4638_s29 + $0x5e8] sm:$0xff] }
  0x3f   : > { %302 = vst [vmem:[%s4643_s30 + $0x178] sm:$0xff] %v301_v47  ;;  %v399_v32 = vld [vmem:[%s4638_s29 + $0x600] sm:$0xff]  ;;  %v401_v33 = vld [vmem:[%s4638_s29 + $0x608] sm:$0xff] }
  0x40   : > { %304 = vst [vmem:[%s4643_s30 + $0x180] sm:$0xff] %v303_v48  ;;  %v403_v34 = vld [vmem:[%s4638_s29 + $0x620] sm:$0xff]  ;;  %v405_v35 = vld [vmem:[%s4638_s29 + $0x628] sm:$0xff] }
  0x41   : > { %306 = vst [vmem:[%s4643_s30 + $0x188] sm:$0xff] %v305_v49  ;;  %v407_v36 = vld [vmem:[%s4638_s29 + $0x640] sm:$0xff]  ;;  %v409_v37 = vld [vmem:[%s4638_s29 + $0x648] sm:$0xff] }
  0x42   : > { %308 = vst [vmem:[%s4643_s30 + $0x190] sm:$0xff] %v307_v50  ;;  %v411_v38 = vld [vmem:[%s4638_s29 + $0x660] sm:$0xff]  ;;  %v413_v39 = vld [vmem:[%s4638_s29 + $0x668] sm:$0xff] }
  0x43   : > { %310 = vst [vmem:[%s4643_s30 + $0x198] sm:$0xff] %v309_v51  ;;  %v415_v40 = vld [vmem:[%s4638_s29 + $0x680] sm:$0xff]  ;;  %v417_v41 = vld [vmem:[%s4638_s29 + $0x688] sm:$0xff] }
  0x44   : > { %312 = vst [vmem:[%s4643_s30 + $0x1a0] sm:$0xff] %v311_v52  ;;  %v419_v42 = vld [vmem:[%s4638_s29 + $0x6a0] sm:$0xff]  ;;  %v421_v43 = vld [vmem:[%s4638_s29 + $0x6a8] sm:$0xff] }
  0x45   : > { %314 = vst [vmem:[%s4643_s30 + $0x1a8] sm:$0xff] %v313_v53  ;;  %v423_v44 = vld [vmem:[%s4638_s29 + $0x6c0] sm:$0xff]  ;;  %v425_v45 = vld [vmem:[%s4638_s29 + $0x6c8] sm:$0xff] }
  0x46   : > { %316 = vst [vmem:[%s4643_s30 + $0x1b0] sm:$0xff] %v315_v54  ;;  %v427_v46 = vld [vmem:[%s4638_s29 + $0x6e0] sm:$0xff]  ;;  %v429_v47 = vld [vmem:[%s4638_s29 + $0x6e8] sm:$0xff] }
  0x47   : > { %318 = vst [vmem:[%s4643_s30 + $0x1b8] sm:$0xff] %v317_v55  ;;  %v431_v48 = vld [vmem:[%s4638_s29 + $0x700] sm:$0xff]  ;;  %v433_v49 = vld [vmem:[%s4638_s29 + $0x708] sm:$0xff] }
  0x48   : > { %320 = vst [vmem:[%s4643_s30 + $0x1c0] sm:$0xff] %v319_v56  ;;  %v435_v50 = vld [vmem:[%s4638_s29 + $0x720] sm:$0xff]  ;;  %v437_v51 = vld [vmem:[%s4638_s29 + $0x728] sm:$0xff] }
  0x49   : > { %322 = vst [vmem:[%s4643_s30 + $0x1c8] sm:$0xff] %v321_v57  ;;  %v439_v52 = vld [vmem:[%s4638_s29 + $0x740] sm:$0xff]  ;;  %v441_v53 = vld [vmem:[%s4638_s29 + $0x748] sm:$0xff] }
  0x4a   : > { %324 = vst [vmem:[%s4643_s30 + $0x1d0] sm:$0xff] %v323_v58  ;;  %v443_v54 = vld [vmem:[%s4638_s29 + $0x760] sm:$0xff]  ;;  %v445_v55 = vld [vmem:[%s4638_s29 + $0x768] sm:$0xff] }
  0x4b   : > { %326 = vst [vmem:[%s4643_s30 + $0x1d8] sm:$0xff] %v325_v59  ;;  %v447_v56 = vld [vmem:[%s4638_s29 + $0x780] sm:$0xff]  ;;  %v449_v57 = vld [vmem:[%s4638_s29 + $0x788] sm:$0xff] }
  0x4c   : > { %328 = vst [vmem:[%s4643_s30 + $0x1e0] sm:$0xff] %v327_v60  ;;  %v451_v58 = vld [vmem:[%s4638_s29 + $0x7a0] sm:$0xff]  ;;  %v453_v59 = vld [vmem:[%s4638_s29 + $0x7a8] sm:$0xff] }
  0x4d   : > { %330 = vst [vmem:[%s4643_s30 + $0x1e8] sm:$0xff] %v329_v61  ;;  %v455_v60 = vld [vmem:[%s4638_s29 + $0x7c0] sm:$0xff]  ;;  %v457_v61 = vld [vmem:[%s4638_s29 + $0x7c8] sm:$0xff] }
  0x4e   : > { %332 = vst [vmem:[%s4643_s30 + $0x1f0] sm:$0xff] %v331_v62  ;;  %v459_v62 = vld [vmem:[%s4638_s29 + $0x7e0] sm:$0xff] }
  0x4f   : > { %334 = vst [vmem:[%s4643_s30 + $0x1f8] sm:$0xff] %v333_v63  ;;  %v461_v63 = vld [vmem:[%s4638_s29 + $0x7e8] sm:$0xff] }
  0x50   : > { %336 = vst [vmem:[%s4643_s30 + $0x200] sm:$0xff] %v335_v0 }
  0x51   : > { %338 = vst [vmem:[%s4643_s30 + $0x208] sm:$0xff] %v337_v1 }
  0x52   : > { %340 = vst [vmem:[%s4643_s30 + $0x210] sm:$0xff] %v339_v2 }
  0x53   : > { %342 = vst [vmem:[%s4643_s30 + $0x218] sm:$0xff] %v341_v3 }
  0x54   : > { %344 = vst [vmem:[%s4643_s30 + $0x220] sm:$0xff] %v343_v4 }
  0x55   : > { %346 = vst [vmem:[%s4643_s30 + $0x228] sm:$0xff] %v345_v5 }
  0x56   : > { %348 = vst [vmem:[%s4643_s30 + $0x230] sm:$0xff] %v347_v6 }
  0x57   : > { %350 = vst [vmem:[%s4643_s30 + $0x238] sm:$0xff] %v349_v7 }
  0x58   : > { %352 = vst [vmem:[%s4643_s30 + $0x240] sm:$0xff] %v351_v8 }
  0x59   : > { %354 = vst [vmem:[%s4643_s30 + $0x248] sm:$0xff] %v353_v9 }
  0x5a   : > { %356 = vst [vmem:[%s4643_s30 + $0x250] sm:$0xff] %v355_v10 }
  0x5b   : > { %358 = vst [vmem:[%s4643_s30 + $0x258] sm:$0xff] %v357_v11 }
  0x5c   : > { %360 = vst [vmem:[%s4643_s30 + $0x260] sm:$0xff] %v359_v12 }
  0x5d   : > { %362 = vst [vmem:[%s4643_s30 + $0x268] sm:$0xff] %v361_v13 }
  0x5e   : > { %364 = vst [vmem:[%s4643_s30 + $0x270] sm:$0xff] %v363_v14 }
  0x5f   : > { %366 = vst [vmem:[%s4643_s30 + $0x278] sm:$0xff] %v365_v15 }
  0x60   : > { %368 = vst [vmem:[%s4643_s30 + $0x280] sm:$0xff] %v367_v16 }
  0x61   : > { %370 = vst [vmem:[%s4643_s30 + $0x288] sm:$0xff] %v369_v17 }
  0x62   : > { %372 = vst [vmem:[%s4643_s30 + $0x290] sm:$0xff] %v371_v18 }
  0x63   : > { %374 = vst [vmem:[%s4643_s30 + $0x298] sm:$0xff] %v373_v19 }
  0x64   : > { %376 = vst [vmem:[%s4643_s30 + $0x2a0] sm:$0xff] %v375_v20 }
  0x65   : > { %378 = vst [vmem:[%s4643_s30 + $0x2a8] sm:$0xff] %v377_v21 }
  0x66   : > { %380 = vst [vmem:[%s4643_s30 + $0x2b0] sm:$0xff] %v379_v22 }
  0x67   : > { %382 = vst [vmem:[%s4643_s30 + $0x2b8] sm:$0xff] %v381_v23 }
  0x68   : > { %384 = vst [vmem:[%s4643_s30 + $0x2c0] sm:$0xff] %v383_v24 }
  0x69   : > { %386 = vst [vmem:[%s4643_s30 + $0x2c8] sm:$0xff] %v385_v25 }
  0x6a   : > { %388 = vst [vmem:[%s4643_s30 + $0x2d0] sm:$0xff] %v387_v26 }
  0x6b   : > { %390 = vst [vmem:[%s4643_s30 + $0x2d8] sm:$0xff] %v389_v27 }
  0x6c   : > { %392 = vst [vmem:[%s4643_s30 + $0x2e0] sm:$0xff] %v391_v28 }
  0x6d   : > { %394 = vst [vmem:[%s4643_s30 + $0x2e8] sm:$0xff] %v393_v29 }
  0x6e   : > { %396 = vst [vmem:[%s4643_s30 + $0x2f0] sm:$0xff] %v395_v30 }
  0x6f   : > { %398 = vst [vmem:[%s4643_s30 + $0x2f8] sm:$0xff] %v397_v31 }
  0x70   : > { %400 = vst [vmem:[%s4643_s30 + $0x300] sm:$0xff] %v399_v32 }
  0x71   : > { %402 = vst [vmem:[%s4643_s30 + $0x308] sm:$0xff] %v401_v33 }
  0x72   : > { %404 = vst [vmem:[%s4643_s30 + $0x310] sm:$0xff] %v403_v34 }
  0x73   : > { %406 = vst [vmem:[%s4643_s30 + $0x318] sm:$0xff] %v405_v35 }
  0x74   : > { %408 = vst [vmem:[%s4643_s30 + $0x320] sm:$0xff] %v407_v36 }
  0x75   : > { %410 = vst [vmem:[%s4643_s30 + $0x328] sm:$0xff] %v409_v37 }
  0x76   : > { %412 = vst [vmem:[%s4643_s30 + $0x330] sm:$0xff] %v411_v38 }
  0x77   : > { %414 = vst [vmem:[%s4643_s30 + $0x338] sm:$0xff] %v413_v39 }
  0x78   : > { %416 = vst [vmem:[%s4643_s30 + $0x340] sm:$0xff] %v415_v40 }
  0x79   : > { %418 = vst [vmem:[%s4643_s30 + $0x348] sm:$0xff] %v417_v41 }
  0x7a   : > { %420 = vst [vmem:[%s4643_s30 + $0x350] sm:$0xff] %v419_v42 }
  0x7b   : > { %422 = vst [vmem:[%s4643_s30 + $0x358] sm:$0xff] %v421_v43 }
  0x7c   : > { %424 = vst [vmem:[%s4643_s30 + $0x360] sm:$0xff] %v423_v44 }
  0x7d   : > { %426 = vst [vmem:[%s4643_s30 + $0x368] sm:$0xff] %v425_v45 }
  0x7e   : > { %428 = vst [vmem:[%s4643_s30 + $0x370] sm:$0xff] %v427_v46 }
  0x7f   : > { %430 = vst [vmem:[%s4643_s30 + $0x378] sm:$0xff] %v429_v47 }
  0x80   : > { %432 = vst [vmem:[%s4643_s30 + $0x380] sm:$0xff] %v431_v48 }
  0x81   : > { %434 = vst [vmem:[%s4643_s30 + $0x388] sm:$0xff] %v433_v49 }
  0x82   : > { %436 = vst [vmem:[%s4643_s30 + $0x390] sm:$0xff] %v435_v50 }
  0x83   : > { %438 = vst [vmem:[%s4643_s30 + $0x398] sm:$0xff] %v437_v51 }
  0x84   : > { %440 = vst [vmem:[%s4643_s30 + $0x3a0] sm:$0xff] %v439_v52 }
  0x85   : > { %442 = vst [vmem:[%s4643_s30 + $0x3a8] sm:$0xff] %v441_v53 }
  0x86   : > { %444 = vst [vmem:[%s4643_s30 + $0x3b0] sm:$0xff] %v443_v54 }
  0x87   : > { %446 = vst [vmem:[%s4643_s30 + $0x3b8] sm:$0xff] %v445_v55 }
  0x88   : > { %448 = vst [vmem:[%s4643_s30 + $0x3c0] sm:$0xff] %v447_v56 }
  0x89   : > { %450 = vst [vmem:[%s4643_s30 + $0x3c8] sm:$0xff] %v449_v57 }
  0x8a   : > { %452 = vst [vmem:[%s4643_s30 + $0x3d0] sm:$0xff] %v451_v58 }
  0x8b   : > { %454 = vst [vmem:[%s4643_s30 + $0x3d8] sm:$0xff] %v453_v59 }
  0x8c   : > { %456 = vst [vmem:[%s4643_s30 + $0x3e0] sm:$0xff] %v455_v60 }
  0x8d   : > { %458 = vst [vmem:[%s4643_s30 + $0x3e8] sm:$0xff] %v457_v61 }
  0x8e   : > { %460 = vst [vmem:[%s4643_s30 + $0x3f0] sm:$0xff] %v459_v62 }
  0x8f   : > { %462 = vst [vmem:[%s4643_s30 + $0x3f8] sm:$0xff] %v461_v63 }
  0x90 PF: > { %p3483_p6 = scmp.ge.s32.totalorder %s4567_s19, 1  ;;  %p479_p7 = scmp.lt.s32.totalorder %s4567_s19, 3 }
  0x92   : > { %p480_p8 = pnand %p3483_p6, %p479_p7 }
  0x93   : > { %s486_s5 = sand.u32 (!%p480_p8), 1, %s4551_s15   ;;  %s3485_s6 = sshll.u32 (!%p480_p8), %s4559_s17, 6 }
  0x94   : > { %483 = sbr.rel (%p480_p8) target bundleno = 1323 (0x52b), region = 55  ;;  %s3484_s7 = sshll.u32 (!%p480_p8), %s486_s5, 10 }
  0x95   : > { %p526_p9 = scmp.lt.s32.totalorder (!%p480_p8), %s3485_s6, 127  ;;  %s4907_s12 = scalar_lea.vmem (!%p480_p8), [#allocation3], %s3484_s7 }
  0x96   : > { %p3487_p10 = scmp.ne.s32.totalorder (!%p480_p8), %s4559_s17, 0 }
  0x99   : > { %s6264_s6 = smov (!%p526_p9, %s3485_s6), 127  ;;  %547 = sbr.rel (%p3487_p10) target bundleno = 223 (0xdf), region = 63 }
  0x9a   : > { %s3486_s8 = sshll.u32 %s6264_s6, 2 }
  0x9b   : > { %s4905_s11 = scalar_lea.vmem %s6145_s1, %s3486_s8 }
  0x9e   : > { %v4569_v0 = vmov 0.0  }
  0x9f   : > { %548 = vst [vmem:[#allocation2 + $0xb0] sm:$0xff] %v4569_v0 }
  0xa0   : > { %549 = vst [vmem:[#allocation2 + $0x1b0] sm:$0xff] %v4569_v0 }
  0xa1   : > { %550 = vst [vmem:[#allocation2 + $0xd8] sm:$0xff] %v4569_v0 }
  0xa2   : > { %551 = vst [vmem:[#allocation2 + $0x18] sm:$0xff] %v4569_v0 }
  0xa3   : > { %552 = vst [vmem:[#allocation2 + $0x50] sm:$0xff] %v4569_v0 }
  0xa4   : > { %553 = vst [vmem:[#allocation2 + $0x168] sm:$0xff] %v4569_v0 }
  0xa5   : > { %554 = vst [vmem:[#allocation2 + $0x130] sm:$0xff] %v4569_v0 }
  0xa6   : > { %555 = vst [vmem:[#allocation2 + $0x48] sm:$0xff] %v4569_v0 }
  0xa7   : > { %556 = vst [vmem:[#allocation2 + $0x180] sm:$0xff] %v4569_v0 }
  0xa8   : > { %557 = vst [vmem:[#allocation2 + $0x110] sm:$0xff] %v4569_v0 }
  0xa9   : > { %558 = vst [vmem:[#allocation2 + $0x118] sm:$0xff] %v4569_v0 }
  0xaa   : > { %559 = vst [vmem:[#allocation2 + $0x98] sm:$0xff] %v4569_v0 }
  0xab   : > { %560 = vst [vmem:[#allocation2 + $0x120] sm:$0xff] %v4569_v0 }
  0xac   : > { %561 = vst [vmem:[#allocation2 + $0x150] sm:$0xff] %v4569_v0 }
  0xad   : > { %562 = vst [vmem:[#allocation2 + $0x108] sm:$0xff] %v4569_v0 }
  0xae   : > { %563 = vst [vmem:[#allocation2 + $0x60] sm:$0xff] %v4569_v0 }
  0xaf   : > { %564 = vst [vmem:[#allocation2 + $0xe0] sm:$0xff] %v4569_v0 }
  0xb0   : > { %565 = vst [vmem:[#allocation2 + $0x188] sm:$0xff] %v4569_v0 }
  0xb1   : > { %566 = vst [vmem:[#allocation2 + $0x138] sm:$0xff] %v4569_v0 }
  0xb2   : > { %567 = vst [vmem:[#allocation2 + $0x140] sm:$0xff] %v4569_v0 }
  0xb3   : > { %568 = vst [vmem:[#allocation2 + $0x80] sm:$0xff] %v4569_v0 }
  0xb4   : > { %569 = vst [vmem:[#allocation2 + $0x1a8] sm:$0xff] %v4569_v0 }
  0xb5   : > { %570 = vst [vmem:[#allocation2 + $0x1b8] sm:$0xff] %v4569_v0 }
  0xb6   : > { %571 = vst [vmem:[#allocation2 + $0x28] sm:$0xff] %v4569_v0 }
  0xb7   : > { %572 = vst [vmem:[#allocation2 + $0x1e8] sm:$0xff] %v4569_v0 }
  0xb8   : > { %573 = vst [vmem:[#allocation2 + $0xf8] sm:$0xff] %v4569_v0 }
  0xb9   : > { %574 = vst [vmem:[#allocation2 + $0x160] sm:$0xff] %v4569_v0 }
  0xba   : > { %575 = vst [vmem:[#allocation2 + $0x30] sm:$0xff] %v4569_v0 }
  0xbb   : > { %576 = vst [vmem:[#allocation2 + $0x1e0] sm:$0xff] %v4569_v0 }
  0xbc   : > { %577 = vst [vmem:[#allocation2] sm:$0xff] %v4569_v0 }
  0xbd   : > { %578 = vst [vmem:[#allocation2 + $0xf0] sm:$0xff] %v4569_v0 }
  0xbe   : > { %579 = vst [vmem:[#allocation2 + $0x8] sm:$0xff] %v4569_v0 }
  0xbf   : > { %580 = vst [vmem:[#allocation2 + $0x148] sm:$0xff] %v4569_v0 }
  0xc0   : > { %581 = vst [vmem:[#allocation2 + $0x1d0] sm:$0xff] %v4569_v0 }
  0xc1   : > { %582 = vst [vmem:[#allocation2 + $0x100] sm:$0xff] %v4569_v0 }
  0xc2   : > { %583 = vst [vmem:[#allocation2 + $0xc8] sm:$0xff] %v4569_v0 }
  0xc3   : > { %584 = vst [vmem:[#allocation2 + $0x40] sm:$0xff] %v4569_v0 }
  0xc4   : > { %585 = vst [vmem:[#allocation2 + $0x1f8] sm:$0xff] %v4569_v0 }
  0xc5   : > { %586 = vst [vmem:[#allocation2 + $0x20] sm:$0xff] %v4569_v0 }
  0xc6   : > { %587 = vst [vmem:[#allocation2 + $0x128] sm:$0xff] %v4569_v0 }
  0xc7   : > { %588 = vst [vmem:[#allocation2 + $0x1a0] sm:$0xff] %v4569_v0 }
  0xc8   : > { %589 = vst [vmem:[#allocation2 + $0x1f0] sm:$0xff] %v4569_v0 }
  0xc9   : > { %590 = vst [vmem:[#allocation2 + $0xe8] sm:$0xff] %v4569_v0 }
  0xca   : > { %591 = vst [vmem:[#allocation2 + $0x78] sm:$0xff] %v4569_v0 }
  0xcb   : > { %592 = vst [vmem:[#allocation2 + $0x70] sm:$0xff] %v4569_v0 }
  0xcc   : > { %593 = vst [vmem:[#allocation2 + $0x90] sm:$0xff] %v4569_v0 }
  0xcd   : > { %594 = vst [vmem:[#allocation2 + $0x1d8] sm:$0xff] %v4569_v0 }
  0xce   : > { %595 = vst [vmem:[#allocation2 + $0xd0] sm:$0xff] %v4569_v0 }
  0xcf   : > { %596 = vst [vmem:[#allocation2 + $0xb8] sm:$0xff] %v4569_v0 }
  0xd0   : > { %597 = vst [vmem:[#allocation2 + $0x88] sm:$0xff] %v4569_v0 }
  0xd1   : > { %598 = vst [vmem:[#allocation2 + $0xa8] sm:$0xff] %v4569_v0 }
  0xd2   : > { %599 = vst [vmem:[#allocation2 + $0x1c8] sm:$0xff] %v4569_v0 }
  0xd3   : > { %600 = vst [vmem:[#allocation2 + $0x170] sm:$0xff] %v4569_v0 }
  0xd4   : > { %601 = vst [vmem:[#allocation2 + $0x178] sm:$0xff] %v4569_v0 }
  0xd5   : > { %602 = vst [vmem:[#allocation2 + $0x68] sm:$0xff] %v4569_v0 }
  0xd6   : > { %603 = vst [vmem:[#allocation2 + $0x190] sm:$0xff] %v4569_v0 }
  0xd7   : > { %604 = vst [vmem:[#allocation2 + $0x198] sm:$0xff] %v4569_v0 }
  0xd8   : > { %605 = vst [vmem:[#allocation2 + $0x38] sm:$0xff] %v4569_v0 }
  0xd9   : > { %606 = vst [vmem:[#allocation2 + $0xc0] sm:$0xff] %v4569_v0 }
  0xda   : > { %607 = vst [vmem:[#allocation2 + $0x1c0] sm:$0xff] %v4569_v0 }
  0xdb   : > { %608 = vst [vmem:[#allocation2 + $0x158] sm:$0xff] %v4569_v0 }
  0xdc   : > { %609 = vst [vmem:[#allocation2 + $0x10] sm:$0xff] %v4569_v0 }
  0xdd   : > { %610 = vst [vmem:[#allocation2 + $0x58] sm:$0xff] %v4569_v0 }
  0xde   : > { %611 = vst [vmem:[#allocation2 + $0xa0] sm:$0xff] %v4569_v0 }
  0xdf PF: > { %v4268_v1 = vld [vmem:[%s4905_s11 + $0x38] sm:$0xff]  ;;  %v4267_v5 = vld [vmem:[%s4905_s11 + $0x30] sm:$0xff]  ;;  %v4266_v9 = vld [vmem:[%s4905_s11 + $0x28] sm:$0xff]  ;;  %p4128_p11 = scmp.ne.s32.totalorder %s4559_s17, 1 }
  0xe0   : > { %v4276_v2 = vld [vmem:[%s4905_s11 + $0x78] sm:$0xff]  ;;  %1700 = vmatpush.bf16.msra.mxu0 %v4268_v1  ;;  %v4275_v6 = vld [vmem:[%s4905_s11 + $0x70] sm:$0xff]  ;;  %v4274_v10 = vld [vmem:[%s4905_s11 + $0x68] sm:$0xff] }
  0xe1   : > { %v4284_v3 = vld [vmem:[%s4905_s11 + $0xb8] sm:$0xff]  ;;  %1869 = vmatpush.bf16.msra.mxu1 %v4276_v2  ;;  %v4283_v7 = vld [vmem:[%s4905_s11 + $0xb0] sm:$0xff]  ;;  %v4282_v11 = vld [vmem:[%s4905_s11 + $0xa8] sm:$0xff] }
  0xe2   : > { %v4292_v4 = vld [vmem:[%s4905_s11 + $0xf8] sm:$0xff]  ;;  %2038 = vmatpush.bf16.msra.mxu2 %v4284_v3  ;;  %v4291_v8 = vld [vmem:[%s4905_s11 + $0xf0] sm:$0xff]  ;;  %v4290_v12 = vld [vmem:[%s4905_s11 + $0xe8] sm:$0xff] }
  0xe3   : > { %2207 = vmatpush.bf16.msra.mxu3 %v4292_v4  ;;  %v4265_v13 = vld [vmem:[%s4905_s11 + $0x20] sm:$0xff]  ;;  %v4264_v17 = vld [vmem:[%s4905_s11 + $0x18] sm:$0xff]  ;;  %v4263_v21 = vld [vmem:[%s4905_s11 + $0x10] sm:$0xff] }
  0xe4   : > { %1701 = vmatpush.bf16.msra.mxu0 %v4267_v5  ;;  %v4273_v14 = vld [vmem:[%s4905_s11 + $0x60] sm:$0xff]  ;;  %v4272_v18 = vld [vmem:[%s4905_s11 + $0x58] sm:$0xff]  ;;  %v4271_v22 = vld [vmem:[%s4905_s11 + $0x50] sm:$0xff] }
  0xe5   : > { %1870 = vmatpush.bf16.msra.mxu1 %v4275_v6  ;;  %v4281_v15 = vld [vmem:[%s4905_s11 + $0xa0] sm:$0xff]  ;;  %v4280_v19 = vld [vmem:[%s4905_s11 + $0x98] sm:$0xff]  ;;  %v4279_v23 = vld [vmem:[%s4905_s11 + $0x90] sm:$0xff] }
  0xe6   : > { %2039 = vmatpush.bf16.msra.mxu2 %v4283_v7  ;;  %v4289_v16 = vld [vmem:[%s4905_s11 + $0xe0] sm:$0xff]  ;;  %v4288_v20 = vld [vmem:[%s4905_s11 + $0xd8] sm:$0xff]  ;;  %v4287_v24 = vld [vmem:[%s4905_s11 + $0xd0] sm:$0xff] }
  0xe7   : > { %2208 = vmatpush.bf16.msra.mxu3 %v4291_v8  ;;  %v4262_v25 = vld [vmem:[%s4905_s11 + $0x8] sm:$0xff]  ;;  %v4261_v29 = vld [vmem:[%s4905_s11] sm:$0xff]  ;;  %v4135_v34 = vld [vmem:[%s4907_s12 + $0xc] sm:$0xf0] }
  0xe8   : > { %1702 = vmatpush.bf16.msra.mxu0 %v4266_v9  ;;  %v4270_v26 = vld [vmem:[%s4905_s11 + $0x48] sm:$0xff]  ;;  %v4269_v30 = vld [vmem:[%s4905_s11 + $0x40] sm:$0xff]  ;;  %v3492_v36 = vld [vmem:[%s4907_s12 + $0x10] sm:$0xf0] }
  0xe9   : > { %1871 = vmatpush.bf16.msra.mxu1 %v4274_v10  ;;  %v4278_v27 = vld [vmem:[%s4905_s11 + $0x88] sm:$0xff]  ;;  %v4277_v31 = vld [vmem:[%s4905_s11 + $0x80] sm:$0xff]  ;;  %v4136_v38 = vld [vmem:[%s4907_s12 + $0x14] sm:$0xf0] }
  0xea   : > { %2040 = vmatpush.bf16.msra.mxu2 %v4282_v11  ;;  %v4286_v28 = vld [vmem:[%s4905_s11 + $0xc8] sm:$0xff]  ;;  %v4285_v32 = vld [vmem:[%s4905_s11 + $0xc0] sm:$0xff]  ;;  %v3500_v40 = vld [vmem:[%s4907_s12 + $0x18] sm:$0xf0] }
  0xeb   : > { %2209 = vmatpush.bf16.msra.mxu3 %v4290_v12  ;;  %v3490_v33 = vld [vmem:[%s4907_s12] sm:$0xf]  ;;  %v4133_v35 = vld [vmem:[%s4907_s12 + $0x4] sm:$0xf]  ;;  %v3498_v37 = vld [vmem:[%s4907_s12 + $0x8] sm:$0xf] }
  0xec   : > { %1703 = vmatpush.bf16.msra.mxu0 %v4265_v13  ;;  %v4134_v39 = vld [vmem:[%s4907_s12 + $0xc] sm:$0xf]  ;;  %v3491_v41 = vor.u32 %v4135_v34, %v3490_v33  ;;  %v3495_v42 = vor.u32 %v4133_v35, %v3492_v36  ;;  %v3499_v43 = vor.u32 %v4136_v38, %v3498_v37  ;;  %v3506_v45 = vld [vmem:[%s4907_s12 + $0x20] sm:$0xf]  ;;  %v4139_v46 = vld [vmem:[%s4907_s12 + $0x2c] sm:$0xf0] }
  0xed   : > { %1872 = vmatpush.bf16.msra.mxu1 %v4273_v14  ;;  %v3503_v44 = vor.u32 %v4134_v39, %v3500_v40  ;;  %v4137_v47 = vld [vmem:[%s4907_s12 + $0x24] sm:$0xf]  ;;  %v3508_v48 = vld [vmem:[%s4907_s12 + $0x30] sm:$0xf0]  ;;  %v3514_v49 = vld [vmem:[%s4907_s12 + $0x28] sm:$0xf]  ;;  %v3507_v53 = vor.u32 %v4139_v46, %v3506_v45 }
  0xee   : > { %2041 = vmatpush.bf16.msra.mxu2 %v4281_v15  ;;  %v4140_v50 = vld [vmem:[%s4907_s12 + $0x34] sm:$0xf0]  ;;  %v4138_v51 = vld [vmem:[%s4907_s12 + $0x2c] sm:$0xf]  ;;  %v3516_v52 = vld [vmem:[%s4907_s12 + $0x38] sm:$0xf0]  ;;  %v3511_v54 = vor.u32 %v4137_v47, %v3508_v48 }
  0xef   : > { %2210 = vmatpush.bf16.msra.mxu3 %v4289_v16  ;;  %v3515_v55 = vor.u32 %v4140_v50, %v3514_v49  ;;  %v3519_v56 = vor.u32 %v4138_v51, %v3516_v52  ;;  %v3522_v57 = vld [vmem:[%s4907_s12 + $0x40] sm:$0xf]  ;;  %v4143_v58 = vld [vmem:[%s4907_s12 + $0x4c] sm:$0xf0]  ;;  %v4141_v59 = vld [vmem:[%s4907_s12 + $0x44] sm:$0xf] }
  0xf0   : > { %1704 = vmatpush.bf16.msra.mxu0 %v4264_v17  ;;  %v3524_v60 = vld [vmem:[%s4907_s12 + $0x50] sm:$0xf0]  ;;  %v3530_v61 = vld [vmem:[%s4907_s12 + $0x48] sm:$0xf]  ;;  %v4144_v62 = vld [vmem:[%s4907_s12 + $0x54] sm:$0xf0]  ;;  %v3523_v1 = vor.u32 %v4143_v58, %v3522_v57 }
  0xf1   : > { %1873 = vmatpush.bf16.msra.mxu1 %v4272_v18  ;;  %v4142_v63 = vld [vmem:[%s4907_s12 + $0x4c] sm:$0xf]  ;;  %v3532_v0 = vld [vmem:[%s4907_s12 + $0x58] sm:$0xf0]  ;;  %v3527_v2 = vor.u32 %v4141_v59, %v3524_v60  ;;  %v3531_v3 = vor.u32 %v4144_v62, %v3530_v61  ;;  %v3538_v5 = vld [vmem:[%s4907_s12 + $0x60] sm:$0xf] }
  0xf2   : > { %2042 = vmatpush.bf16.msra.mxu2 %v4280_v19  ;;  %v3535_v4 = vor.u32 %v4142_v63, %v3532_v0  ;;  %v4147_v6 = vld [vmem:[%s4907_s12 + $0x6c] sm:$0xf0]  ;;  %v4145_v7 = vld [vmem:[%s4907_s12 + $0x64] sm:$0xf]  ;;  %v3540_v8 = vld [vmem:[%s4907_s12 + $0x70] sm:$0xf0] }
  0xf3   : > { %2211 = vmatpush.bf16.msra.mxu3 %v4288_v20  ;;  %v3546_v9 = vld [vmem:[%s4907_s12 + $0x68] sm:$0xf]  ;;  %v4148_v10 = vld [vmem:[%s4907_s12 + $0x74] sm:$0xf0]  ;;  %v4146_v11 = vld [vmem:[%s4907_s12 + $0x6c] sm:$0xf]  ;;  %v3539_v13 = vor.u32 %v4147_v6, %v3538_v5  ;;  %v3543_v14 = vor.u32 %v4145_v7, %v3540_v8 }
  0xf4   : > { %1705 = vmatpush.bf16.msra.mxu0 %v4263_v21  ;;  %v3548_v12 = vld [vmem:[%s4907_s12 + $0x78] sm:$0xf0]  ;;  %v3547_v15 = vor.u32 %v4148_v10, %v3546_v9  ;;  %v3554_v17 = vld [vmem:[%s4907_s12 + $0x80] sm:$0xf]  ;;  %v4151_v18 = vld [vmem:[%s4907_s12 + $0x8c] sm:$0xf0] }
  0xf5   : > { %1874 = vmatpush.bf16.msra.mxu1 %v4271_v22  ;;  %v3551_v16 = vor.u32 %v4146_v11, %v3548_v12  ;;  %v4149_v19 = vld [vmem:[%s4907_s12 + $0x84] sm:$0xf]  ;;  %v3556_v20 = vld [vmem:[%s4907_s12 + $0x90] sm:$0xf0]  ;;  %v3562_v21 = vld [vmem:[%s4907_s12 + $0x88] sm:$0xf] }
  0xf6   : > { %2043 = vmatpush.bf16.msra.mxu2 %v4279_v23  ;;  %v4152_v22 = vld [vmem:[%s4907_s12 + $0x94] sm:$0xf0]  ;;  %v4150_v23 = vld [vmem:[%s4907_s12 + $0x8c] sm:$0xf]  ;;  %v3578_v33 = vld [vmem:[%s4907_s12 + $0xa8] sm:$0xf] }
  0xf7   : > { %2212 = vmatpush.bf16.msra.mxu3 %v4287_v24  ;;  %v3564_v24 = vld [vmem:[%s4907_s12 + $0x98] sm:$0xf0]  ;;  %v4156_v34 = vld [vmem:[%s4907_s12 + $0xb4] sm:$0xf0]  ;;  %v4154_v35 = vld [vmem:[%s4907_s12 + $0xac] sm:$0xf] }
  0xf8   : > { %1706 = vmatpush.bf16.msra.mxu0 %v4262_v25  ;;  %v3555_v25 = vor.u32 %v4151_v18, %v3554_v17  ;;  %v3580_v36 = vld [vmem:[%s4907_s12 + $0xb8] sm:$0xf0]  ;;  %v3579_v39 = vor.u32 %v4156_v34, %v3578_v33  ;;  %v3594_v45 = vld [vmem:[%s4907_s12 + $0xc8] sm:$0xf]  ;;  %v4160_v46 = vld [vmem:[%s4907_s12 + $0xd4] sm:$0xf0] }
  0xf9   : > { %1875 = vmatpush.bf16.msra.mxu1 %v4270_v26  ;;  %v3559_v26 = vor.u32 %v4149_v19, %v3556_v20  ;;  %v3583_v40 = vor.u32 %v4154_v35, %v3580_v36  ;;  %v4158_v47 = vld [vmem:[%s4907_s12 + $0xcc] sm:$0xf]  ;;  %v3596_v48 = vld [vmem:[%s4907_s12 + $0xd8] sm:$0xf0]  ;;  %v3595_v51 = vor.u32 %v4160_v46, %v3594_v45  ;;  %v3610_v57 = vld [vmem:[%s4907_s12 + $0xe8] sm:$0xf] }
  0xfa   : > { %2044 = vmatpush.bf16.msra.mxu2 %v4278_v27  ;;  %v3563_v27 = vor.u32 %v4152_v22, %v3562_v21  ;;  %v3599_v52 = vor.u32 %v4158_v47, %v3596_v48  ;;  %v4164_v58 = vld [vmem:[%s4907_s12 + $0xf4] sm:$0xf0]  ;;  %v4162_v59 = vld [vmem:[%s4907_s12 + $0xec] sm:$0xf]  ;;  %v3612_v60 = vld [vmem:[%s4907_s12 + $0xf8] sm:$0xf0] }
  0xfb   : > { %2213 = vmatpush.bf16.msra.mxu3 %v4286_v28  ;;  %v3567_v28 = vor.u32 %v4150_v23, %v3564_v24  ;;  %v3611_v63 = vor.u32 %v4164_v58, %v3610_v57  ;;  %v3615_v0 = vor.u32 %v4162_v59, %v3612_v60  ;;  %v3626_v5 = vld [vmem:[%s4907_s12 + $0x108] sm:$0xf]  ;;  %v4168_v6 = vld [vmem:[%s4907_s12 + $0x114] sm:$0xf0]  ;;  %v4166_v7 = vld [vmem:[%s4907_s12 + $0x10c] sm:$0xf] }
  0xfc   : > { %1707 = vmatpush.bf16.msra.mxu0 %v4261_v29  ;;  %v3570_v29 = vld [vmem:[%s4907_s12 + $0xa0] sm:$0xf]  ;;  %v3628_v8 = vld [vmem:[%s4907_s12 + $0x118] sm:$0xf0]  ;;  %v612_v21 = vld [vmem:[#allocation2 + $0xb0] sm:$0xff] }
  0xfd   : > { %1876 = vmatpush.bf16.msra.mxu1 %v4269_v30  ;;  %v4155_v30 = vld [vmem:[%s4907_s12 + $0xac] sm:$0xf0]  ;;  %v3634_v23 = vld [vmem:[%s4907_s12 + $0x120] sm:$0xf]  ;;  %v3652_v57 = vld [vmem:[%s4907_s12 + $0x150] sm:$0xf0] }
  0xfe   : > { %2045 = vmatpush.bf16.msra.mxu2 %v4277_v31  ;;  %v4153_v31 = vld [vmem:[%s4907_s12 + $0xa4] sm:$0xf]  ;;  %v3571_v37 = vor.u32 %v4155_v30, %v3570_v29  ;;  %v4171_v24 = vld [vmem:[%s4907_s12 + $0x12c] sm:$0xf0]  ;;  %v4172_v29 = vld [vmem:[%s4907_s12 + $0x134] sm:$0xf0] }
  0xff   : > { %2214 = vmatpush.bf16.msra.mxu3 %v4285_v32  ;;  %1708 = vmatmul.bf16.vlgmr.msra.gmra.mxu0 %v3491_v41  ;;  %v3572_v32 = vld [vmem:[%s4907_s12 + $0xb0] sm:$0xf0]  ;;  %v3586_v41 = vld [vmem:[%s4907_s12 + $0xc0] sm:$0xf]  ;;  %v4170_v30 = vld [vmem:[%s4907_s12 + $0x12c] sm:$0xf]  ;;  %v3635_v35 = vor.u32 %v4171_v24, %v3634_v23 }
 0x100   : > { %1877 = vmatmul.bf16.vlgmr.msra.gmra.mxu1 %v3495_v42  ;;  %v3575_v38 = vor.u32 %v4153_v31, %v3572_v32  ;;  %v4159_v42 = vld [vmem:[%s4907_s12 + $0xcc] sm:$0xf0]  ;;  %v3644_v31 = vld [vmem:[%s4907_s12 + $0x138] sm:$0xf0]  ;;  %v3658_v58 = vld [vmem:[%s4907_s12 + $0x148] sm:$0xf] }
 0x101   : > { %2046 = vmatmul.bf16.vlgmr.msra.gmra.mxu2 %v3499_v43  ;;  %v4157_v43 = vld [vmem:[%s4907_s12 + $0xc4] sm:$0xf]  ;;  %v3587_v49 = vor.u32 %v4159_v42, %v3586_v41  ;;  %v3647_v41 = vor.u32 %v4170_v30, %v3644_v31  ;;  %v613_v42 = vld [vmem:[#allocation2 + $0x1b0] sm:$0xff]  ;;  %v4176_v59 = vld [vmem:[%s4907_s12 + $0x154] sm:$0xf0] }
 0x102   : > { %2215 = vmatmul.bf16.vlgmr.msra.gmra.mxu3 %v3503_v44  ;;  %v3588_v44 = vld [vmem:[%s4907_s12 + $0xd0] sm:$0xf0]  ;;  %v4174_v60 = vld [vmem:[%s4907_s12 + $0x14c] sm:$0xf]  ;;  %v3674_v24 = vld [vmem:[%s4907_s12 + $0x168] sm:$0xf] }
 0x103   : > { %v3591_v50 = vor.u32 %v4157_v43, %v3588_v44  ;;  %v3668_v23 = vld [vmem:[%s4907_s12 + $0x170] sm:$0xf0] }
 0x10f   : > { %1713 = vmatmul.bf16.gmra.mxu0 %v3507_v53  ;;  %v3602_v53 = vld [vmem:[%s4907_s12 + $0xe0] sm:$0xf] }
 0x110   : > { %1882 = vmatmul.bf16.gmra.mxu1 %v3511_v54  ;;  %v4163_v54 = vld [vmem:[%s4907_s12 + $0xec] sm:$0xf0] }
 0x111   : > { %2051 = vmatmul.bf16.gmra.mxu2 %v3515_v55  ;;  %v4161_v55 = vld [vmem:[%s4907_s12 + $0xe4] sm:$0xf]  ;;  %v3603_v61 = vor.u32 %v4163_v54, %v3602_v53  ;;  %v3650_v53 = vld [vmem:[%s4907_s12 + $0x140] sm:$0xf]  ;;  %v4175_v54 = vld [vmem:[%s4907_s12 + $0x14c] sm:$0xf0] }
 0x112   : > { %2220 = vmatmul.bf16.gmra.mxu3 %v3519_v56  ;;  %v3604_v56 = vld [vmem:[%s4907_s12 + $0xf0] sm:$0xf0] }
 0x113   : > { %v3607_v62 = vor.u32 %v4161_v55, %v3604_v56  ;;  %v4173_v56 = vld [vmem:[%s4907_s12 + $0x144] sm:$0xf] }
 0x11f   : > { %1718 = vmatmul.bf16.gmra.mxu0 %v3523_v1  ;;  %v3618_v1 = vld [vmem:[%s4907_s12 + $0x100] sm:$0xf] }
 0x120   : > { %1887 = vmatmul.bf16.gmra.mxu1 %v3527_v2  ;;  %v4167_v2 = vld [vmem:[%s4907_s12 + $0x10c] sm:$0xf0] }
 0x121   : > { %2056 = vmatmul.bf16.gmra.mxu2 %v3531_v3  ;;  %v4165_v3 = vld [vmem:[%s4907_s12 + $0x104] sm:$0xf]  ;;  %v3619_v9 = vor.u32 %v4167_v2, %v3618_v1  ;;  %v3651_v1 = vor.u32 %v4175_v54, %v3650_v53  ;;  %v3655_v2 = vor.u32 %v4173_v56, %v3652_v57  ;;  %v3684_v53 = vld [vmem:[%s4907_s12 + $0x190] sm:$0xf0]  ;;  %v3690_v54 = vld [vmem:[%s4907_s12 + $0x188] sm:$0xf] }
 0x122   : > { %2225 = vmatmul.bf16.gmra.mxu3 %v3535_v4  ;;  %v3620_v4 = vld [vmem:[%s4907_s12 + $0x110] sm:$0xf0]  ;;  %v4182_v56 = vld [vmem:[%s4907_s12 + $0x18c] sm:$0xf]  ;;  %v3692_v57 = vld [vmem:[%s4907_s12 + $0x198] sm:$0xf0] }
 0x123   : > { %v3623_v10 = vor.u32 %v4165_v3, %v3620_v4 }
 0x12f   : > { %1723 = vmatmul.bf16.gmra.mxu0 %v3539_v13  ;;  %v3627_v13 = vor.u32 %v4168_v6, %v3626_v5  ;;  %v3659_v6 = vor.u32 %v4176_v59, %v3658_v58 }
 0x130   : > { %1892 = vmatmul.bf16.gmra.mxu1 %v3543_v14  ;;  %v3631_v14 = vor.u32 %v4166_v7, %v3628_v8  ;;  %v615_v8 = vld [vmem:[#allocation2 + $0x18] sm:$0xff] }
 0x131   : > { %2061 = vmatmul.bf16.gmra.mxu2 %v3547_v15 }
 0x132   : > { %2230 = vmatmul.bf16.gmra.mxu3 %v3551_v16 }
 0x13f   : > { %1728 = vmatmul.bf16.gmra.mxu0 %v3555_v25 }
 0x140   : > { %1897 = vmatmul.bf16.gmra.mxu1 %v3559_v26  ;;  %v4169_v26 = vld [vmem:[%s4907_s12 + $0x124] sm:$0xf] }
 0x141   : > { %2066 = vmatmul.bf16.gmra.mxu2 %v3563_v27  ;;  %v3636_v27 = vld [vmem:[%s4907_s12 + $0x130] sm:$0xf0] }
 0x142   : > { %2235 = vmatmul.bf16.gmra.mxu3 %v3567_v28  ;;  %v3642_v28 = vld [vmem:[%s4907_s12 + $0x128] sm:$0xf]  ;;  %v3639_v36 = vor.u32 %v4169_v26, %v3636_v27  ;;  %v4178_v26 = vld [vmem:[%s4907_s12 + $0x16c] sm:$0xf]  ;;  %v3676_v27 = vld [vmem:[%s4907_s12 + $0x178] sm:$0xf0] }
 0x14f   : > { %1733 = vmatmul.bf16.gmra.mxu0 %v3571_v37 }
 0x150   : > { %1902 = vmatmul.bf16.gmra.mxu1 %v3575_v38 }
 0x151   : > { %2071 = vmatmul.bf16.gmra.mxu2 %v3579_v39 }
 0x152   : > { %2240 = vmatmul.bf16.gmra.mxu3 %v3583_v40  ;;  %v3643_v40 = vor.u32 %v4172_v29, %v3642_v28 }
 0x15f   : > { %1738 = vmatmul.bf16.gmra.mxu0 %v3587_v49 }
 0x160   : > { %1907 = vmatmul.bf16.gmra.mxu1 %v3591_v50 }
 0x161   : > { %2076 = vmatmul.bf16.gmra.mxu2 %v3595_v51  ;;  %v614_v51 = vld [vmem:[#allocation2 + $0xd8] sm:$0xff] }
 0x162   : > { %2245 = vmatmul.bf16.gmra.mxu3 %v3599_v52 }
 0x16f   : > { %1743 = vmatmul.bf16.gmra.mxu0 %v3603_v61  ;;  %v3660_v61 = vld [vmem:[%s4907_s12 + $0x158] sm:$0xf0] }
 0x170   : > { %1912 = vmatmul.bf16.gmra.mxu1 %v3607_v62  ;;  %v3663_v7 = vor.u32 %v4174_v60, %v3660_v61 }
 0x171   : > { %2081 = vmatmul.bf16.gmra.mxu2 %v3611_v63 }
 0x172   : > { %2250 = vmatmul.bf16.gmra.mxu3 %v3615_v0 }
 0x17c   : > { %v1709_v11 = vpop.f32.mrf.mxu0 }
 0x17d   : > { %v1878_v12 = vpop.f32.mrf.mxu1 }
 0x17e   : > { %v1879_v15 = vadd.f32 %v1878_v12, %v1709_v11 }
 0x17f   : > { %1748 = vmatmul.bf16.gmra.mxu0 %v3619_v9 }
 0x180   : > { %1917 = vmatmul.bf16.gmra.mxu1 %v3623_v10 }
 0x181   : > { %2086 = vmatmul.bf16.gmra.mxu2 %v3627_v13 }
 0x182   : > { %2255 = vmatmul.bf16.gmra.mxu3 %v3631_v14 }
 0x184   : > { %v2047_v16 = vpop.f32.mrf.mxu2  ;;  %v1711_v19 = vpop.f32.mrf.mxu0 }
 0x185   : > { %v2216_v17 = vpop.f32.mrf.mxu3  ;;  %v2048_v18 = vadd.f32 %v2047_v16, %v1879_v15  ;;  %v1880_v20 = vpop.f32.mrf.mxu1 }
 0x186   : > { %v1881_v32 = vadd.f32 %v1880_v20, %v1711_v19  ;;  %v3666_v19 = vld [vmem:[%s4907_s12 + $0x160] sm:$0xf]  ;;  %v4179_v20 = vld [vmem:[%s4907_s12 + $0x16c] sm:$0xf0] }
 0x187   : > { %v2217_v22 = vadd.f32 %v2216_v17, %v2048_v18  ;;  %v616_v17 = vld [vmem:[#allocation2 + $0x50] sm:$0xff]  ;;  %v3667_v31 = vor.u32 %v4179_v20, %v3666_v19  ;;  %v3706_v20 = vld [vmem:[%s4907_s12 + $0x1a8] sm:$0xf] }
 0x188   : > { %v3700_v19 = vld [vmem:[%s4907_s12 + $0x1b0] sm:$0xf0] }
 0x189   : > { %v2376_v25 = vadd.f32 %v2217_v22, %v612_v21  ;;  %v4177_v22 = vld [vmem:[%s4907_s12 + $0x164] sm:$0xf] }
 0x18b   : > { %2440 = vst [vmem:[#allocation2 + $0xb0] sm:$0xff] %v2376_v25  ;;  %v4180_v25 = vld [vmem:[%s4907_s12 + $0x174] sm:$0xf0] }
 0x18c   : > { %v2049_v33 = vpop.f32.mrf.mxu2  ;;  %v1714_v38 = vpop.f32.mrf.mxu0 }
 0x18d   : > { %v2218_v34 = vpop.f32.mrf.mxu3  ;;  %v2050_v37 = vadd.f32 %v2049_v33, %v1881_v32  ;;  %v1883_v39 = vpop.f32.mrf.mxu1  ;;  %v3671_v32 = vor.u32 %v4177_v22, %v3668_v23  ;;  %v4186_v22 = vld [vmem:[%s4907_s12 + $0x1ac] sm:$0xf]  ;;  %v3708_v23 = vld [vmem:[%s4907_s12 + $0x1b8] sm:$0xf0] }
 0x18e   : > { %v1884_v45 = vadd.f32 %v1883_v39, %v1714_v38  ;;  %v617_v38 = vld [vmem:[#allocation2 + $0x168] sm:$0xff] }
 0x18f   : > { %v2219_v43 = vadd.f32 %v2218_v34, %v2050_v37  ;;  %1753 = vmatmul.bf16.gmra.mxu0 %v3635_v35  ;;  %v3679_v37 = vor.u32 %v4178_v26, %v3676_v27 }
 0x190   : > { %1922 = vmatmul.bf16.gmra.mxu1 %v3639_v36  ;;  %v3675_v36 = vor.u32 %v4180_v25, %v3674_v24 }
 0x191   : > { %v2377_v44 = vadd.f32 %v2219_v43, %v613_v42  ;;  %2091 = vmatmul.bf16.gmra.mxu2 %v3643_v40 }
 0x192   : > { %2260 = vmatmul.bf16.gmra.mxu3 %v3647_v41 }
 0x193   : > { %2441 = vst [vmem:[#allocation2 + $0x1b0] sm:$0xff] %v2377_v44 }
 0x194   : > { %v2052_v46 = vpop.f32.mrf.mxu2  ;;  %v1716_v49 = vpop.f32.mrf.mxu0 }
 0x195   : > { %v2221_v47 = vpop.f32.mrf.mxu3  ;;  %v2053_v48 = vadd.f32 %v2052_v46, %v1884_v45  ;;  %v1885_v50 = vpop.f32.mrf.mxu1 }
 0x196   : > { %v1886_v62 = vadd.f32 %v1885_v50, %v1716_v49  ;;  %v3682_v49 = vld [vmem:[%s4907_s12 + $0x180] sm:$0xf]  ;;  %v4183_v50 = vld [vmem:[%s4907_s12 + $0x18c] sm:$0xf0] }
 0x197   : > { %v2222_v52 = vadd.f32 %v2221_v47, %v2053_v48  ;;  %v618_v47 = vld [vmem:[#allocation2 + $0x130] sm:$0xff]  ;;  %v3683_v61 = vor.u32 %v4183_v50, %v3682_v49  ;;  %v3722_v50 = vld [vmem:[%s4907_s12 + $0x1c8] sm:$0xf] }
 0x198   : > { %v3716_v49 = vld [vmem:[%s4907_s12 + $0x1d0] sm:$0xf0] }
 0x199   : > { %v2378_v55 = vadd.f32 %v2222_v52, %v614_v51  ;;  %v4181_v52 = vld [vmem:[%s4907_s12 + $0x184] sm:$0xf] }
 0x19b   : > { %2442 = vst [vmem:[#allocation2 + $0xd8] sm:$0xff] %v2378_v55  ;;  %v4184_v55 = vld [vmem:[%s4907_s12 + $0x194] sm:$0xf0] }
 0x19c   : > { %v2054_v63 = vpop.f32.mrf.mxu2  ;;  %v1719_v4 = vpop.f32.mrf.mxu0 }
 0x19d   : > { %v2223_v0 = vpop.f32.mrf.mxu3  ;;  %v2055_v3 = vadd.f32 %v2054_v63, %v1886_v62  ;;  %v1888_v5 = vpop.f32.mrf.mxu1  ;;  %v3687_v62 = vor.u32 %v4181_v52, %v3684_v53  ;;  %v4190_v52 = vld [vmem:[%s4907_s12 + $0x1cc] sm:$0xf]  ;;  %v3724_v53 = vld [vmem:[%s4907_s12 + $0x1d8] sm:$0xf0] }
 0x19e   : > { %v1889_v11 = vadd.f32 %v1888_v5, %v1719_v4  ;;  %v619_v4 = vld [vmem:[#allocation2 + $0x48] sm:$0xff] }
 0x19f   : > { %v2224_v9 = vadd.f32 %v2223_v0, %v2055_v3  ;;  %1758 = vmatmul.bf16.gmra.mxu0 %v3651_v1  ;;  %v3695_v3 = vor.u32 %v4182_v56, %v3692_v57 }
 0x1a0   : > { %1927 = vmatmul.bf16.gmra.mxu1 %v3655_v2  ;;  %v3691_v2 = vor.u32 %v4184_v55, %v3690_v54 }
 0x1a1   : > { %v2379_v10 = vadd.f32 %v2224_v9, %v615_v8  ;;  %2096 = vmatmul.bf16.gmra.mxu2 %v3659_v6 }
 0x1a2   : > { %2265 = vmatmul.bf16.gmra.mxu3 %v3663_v7 }
 0x1a3   : > { %2443 = vst [vmem:[#allocation2 + $0x18] sm:$0xff] %v2379_v10 }
 0x1a4   : > { %v2057_v12 = vpop.f32.mrf.mxu2  ;;  %v1721_v15 = vpop.f32.mrf.mxu0 }
 0x1a5   : > { %v2226_v13 = vpop.f32.mrf.mxu3  ;;  %v2058_v14 = vadd.f32 %v2057_v12, %v1889_v11  ;;  %v1890_v16 = vpop.f32.mrf.mxu1 }
 0x1a6   : > { %v1891_v28 = vadd.f32 %v1890_v16, %v1721_v15  ;;  %v3698_v15 = vld [vmem:[%s4907_s12 + $0x1a0] sm:$0xf]  ;;  %v4187_v16 = vld [vmem:[%s4907_s12 + $0x1ac] sm:$0xf0] }
 0x1a7   : > { %v2227_v18 = vadd.f32 %v2226_v13, %v2058_v14  ;;  %v620_v13 = vld [vmem:[#allocation2 + $0x180] sm:$0xff]  ;;  %v3699_v27 = vor.u32 %v4187_v16, %v3698_v15  ;;  %v3732_v15 = vld [vmem:[%s4907_s12 + $0x1f0] sm:$0xf0]  ;;  %v3738_v16 = vld [vmem:[%s4907_s12 + $0x1e8] sm:$0xf] }
 0x1a9   : > { %v2380_v21 = vadd.f32 %v2227_v18, %v616_v17  ;;  %v4185_v18 = vld [vmem:[%s4907_s12 + $0x1a4] sm:$0xf] }
 0x1ab   : > { %2444 = vst [vmem:[#allocation2 + $0x50] sm:$0xff] %v2380_v21  ;;  %v4188_v21 = vld [vmem:[%s4907_s12 + $0x1b4] sm:$0xf0] }
 0x1ac   : > { %v2059_v29 = vpop.f32.mrf.mxu2  ;;  %v1724_v34 = vpop.f32.mrf.mxu0 }
 0x1ad   : > { %v2228_v30 = vpop.f32.mrf.mxu3  ;;  %v2060_v33 = vadd.f32 %v2059_v29, %v1891_v28  ;;  %v1893_v35 = vpop.f32.mrf.mxu1  ;;  %v3703_v28 = vor.u32 %v4185_v18, %v3700_v19  ;;  %v4194_v18 = vld [vmem:[%s4907_s12 + $0x1ec] sm:$0xf]  ;;  %v3740_v19 = vld [vmem:[%s4907_s12 + $0x1f8] sm:$0xf0] }
 0x1ae   : > { %v1894_v41 = vadd.f32 %v1893_v35, %v1724_v34  ;;  %v621_v34 = vld [vmem:[#allocation2 + $0x110] sm:$0xff] }
 0x1af   : > { %v2229_v39 = vadd.f32 %v2228_v30, %v2060_v33  ;;  %1763 = vmatmul.bf16.gmra.mxu0 %v3667_v31  ;;  %v3711_v33 = vor.u32 %v4186_v22, %v3708_v23 }
 0x1b0   : > { %1932 = vmatmul.bf16.gmra.mxu1 %v3671_v32  ;;  %v3707_v32 = vor.u32 %v4188_v21, %v3706_v20 }
 0x1b1   : > { %v2381_v40 = vadd.f32 %v2229_v39, %v617_v38  ;;  %2101 = vmatmul.bf16.gmra.mxu2 %v3675_v36 }
 0x1b2   : > { %2270 = vmatmul.bf16.gmra.mxu3 %v3679_v37 }
 0x1b3   : > { %2445 = vst [vmem:[#allocation2 + $0x168] sm:$0xff] %v2381_v40 }
 0x1b4   : > { %v2062_v42 = vpop.f32.mrf.mxu2  ;;  %v1726_v45 = vpop.f32.mrf.mxu0 }
 0x1b5   : > { %v2231_v43 = vpop.f32.mrf.mxu3  ;;  %v2063_v44 = vadd.f32 %v2062_v42, %v1894_v41  ;;  %v1895_v46 = vpop.f32.mrf.mxu1 }
 0x1b6   : > { %v1896_v58 = vadd.f32 %v1895_v46, %v1726_v45  ;;  %v3714_v45 = vld [vmem:[%s4907_s12 + $0x1c0] sm:$0xf]  ;;  %v4191_v46 = vld [vmem:[%s4907_s12 + $0x1cc] sm:$0xf0] }
 0x1b7   : > { %v2232_v48 = vadd.f32 %v2231_v43, %v2063_v44  ;;  %v622_v43 = vld [vmem:[#allocation2 + $0x118] sm:$0xff]  ;;  %v3715_v57 = vor.u32 %v4191_v46, %v3714_v45  ;;  %v3748_v45 = vld [vmem:[%s4907_s12 + $0x210] sm:$0xf0]  ;;  %v3754_v46 = vld [vmem:[%s4907_s12 + $0x208] sm:$0xf] }
 0x1b9   : > { %v2382_v51 = vadd.f32 %v2232_v48, %v618_v47  ;;  %v4189_v48 = vld [vmem:[%s4907_s12 + $0x1c4] sm:$0xf] }
 0x1bb   : > { %2446 = vst [vmem:[#allocation2 + $0x130] sm:$0xff] %v2382_v51  ;;  %v4192_v51 = vld [vmem:[%s4907_s12 + $0x1d4] sm:$0xf0] }
 0x1bc   : > { %v2064_v59 = vpop.f32.mrf.mxu2  ;;  %v1729_v0 = vpop.f32.mrf.mxu0 }
 0x1bd   : > { %v2233_v60 = vpop.f32.mrf.mxu3  ;;  %v2065_v63 = vadd.f32 %v2064_v59, %v1896_v58  ;;  %v1898_v1 = vpop.f32.mrf.mxu1  ;;  %v3719_v58 = vor.u32 %v4189_v48, %v3716_v49  ;;  %v4198_v48 = vld [vmem:[%s4907_s12 + $0x20c] sm:$0xf]  ;;  %v3756_v49 = vld [vmem:[%s4907_s12 + $0x218] sm:$0xf0] }
 0x1be   : > { %v1899_v7 = vadd.f32 %v1898_v1, %v1729_v0  ;;  %v623_v0 = vld [vmem:[#allocation2 + $0x98] sm:$0xff] }
 0x1bf   : > { %v2234_v5 = vadd.f32 %v2233_v60, %v2065_v63  ;;  %1768 = vmatmul.bf16.gmra.mxu0 %v3683_v61  ;;  %v3727_v63 = vor.u32 %v4190_v52, %v3724_v53 }
 0x1c0   : > { %1937 = vmatmul.bf16.gmra.mxu1 %v3687_v62  ;;  %v3723_v62 = vor.u32 %v4192_v51, %v3722_v50 }
 0x1c1   : > { %v2383_v6 = vadd.f32 %v2234_v5, %v619_v4  ;;  %2106 = vmatmul.bf16.gmra.mxu2 %v3691_v2 }
 0x1c2   : > { %2275 = vmatmul.bf16.gmra.mxu3 %v3695_v3 }
 0x1c3   : > { %2447 = vst [vmem:[#allocation2 + $0x48] sm:$0xff] %v2383_v6 }
 0x1c4   : > { %v2067_v8 = vpop.f32.mrf.mxu2  ;;  %v1731_v11 = vpop.f32.mrf.mxu0 }
 0x1c5   : > { %v2236_v9 = vpop.f32.mrf.mxu3  ;;  %v2068_v10 = vadd.f32 %v2067_v8, %v1899_v7  ;;  %v1900_v12 = vpop.f32.mrf.mxu1 }
 0x1c6   : > { %v1901_v24 = vadd.f32 %v1900_v12, %v1731_v11  ;;  %v3730_v11 = vld [vmem:[%s4907_s12 + $0x1e0] sm:$0xf]  ;;  %v4195_v12 = vld [vmem:[%s4907_s12 + $0x1ec] sm:$0xf0] }
 0x1c7   : > { %v2237_v14 = vadd.f32 %v2236_v9, %v2068_v10  ;;  %v624_v9 = vld [vmem:[#allocation2 + $0x120] sm:$0xff]  ;;  %v3731_v23 = vor.u32 %v4195_v12, %v3730_v11  ;;  %v3764_v11 = vld [vmem:[%s4907_s12 + $0x230] sm:$0xf0]  ;;  %v3770_v12 = vld [vmem:[%s4907_s12 + $0x228] sm:$0xf] }
 0x1c9   : > { %v2384_v17 = vadd.f32 %v2237_v14, %v620_v13  ;;  %v4193_v14 = vld [vmem:[%s4907_s12 + $0x1e4] sm:$0xf] }
 0x1cb   : > { %2448 = vst [vmem:[#allocation2 + $0x180] sm:$0xff] %v2384_v17  ;;  %v4196_v17 = vld [vmem:[%s4907_s12 + $0x1f4] sm:$0xf0] }
 0x1cc   : > { %v2069_v25 = vpop.f32.mrf.mxu2  ;;  %v1734_v30 = vpop.f32.mrf.mxu0 }
 0x1cd   : > { %v2238_v26 = vpop.f32.mrf.mxu3  ;;  %v2070_v29 = vadd.f32 %v2069_v25, %v1901_v24  ;;  %v1903_v31 = vpop.f32.mrf.mxu1  ;;  %v3735_v24 = vor.u32 %v4193_v14, %v3732_v15  ;;  %v4202_v14 = vld [vmem:[%s4907_s12 + $0x22c] sm:$0xf]  ;;  %v3772_v15 = vld [vmem:[%s4907_s12 + $0x238] sm:$0xf0] }
 0x1ce   : > { %v1904_v37 = vadd.f32 %v1903_v31, %v1734_v30  ;;  %v625_v30 = vld [vmem:[#allocation2 + $0x150] sm:$0xff] }
 0x1cf   : > { %v2239_v35 = vadd.f32 %v2238_v26, %v2070_v29  ;;  %1773 = vmatmul.bf16.gmra.mxu0 %v3699_v27  ;;  %v3743_v29 = vor.u32 %v4194_v18, %v3740_v19 }
 0x1d0   : > { %1942 = vmatmul.bf16.gmra.mxu1 %v3703_v28  ;;  %v3739_v28 = vor.u32 %v4196_v17, %v3738_v16 }
 0x1d1   : > { %v2385_v36 = vadd.f32 %v2239_v35, %v621_v34  ;;  %2111 = vmatmul.bf16.gmra.mxu2 %v3707_v32 }
 0x1d2   : > { %2280 = vmatmul.bf16.gmra.mxu3 %v3711_v33 }
 0x1d3   : > { %2449 = vst [vmem:[#allocation2 + $0x110] sm:$0xff] %v2385_v36 }
 0x1d4   : > { %v2072_v38 = vpop.f32.mrf.mxu2  ;;  %v1736_v41 = vpop.f32.mrf.mxu0 }
 0x1d5   : > { %v2241_v39 = vpop.f32.mrf.mxu3  ;;  %v2073_v40 = vadd.f32 %v2072_v38, %v1904_v37  ;;  %v1905_v42 = vpop.f32.mrf.mxu1 }
 0x1d6   : > { %v1906_v54 = vadd.f32 %v1905_v42, %v1736_v41  ;;  %v3746_v41 = vld [vmem:[%s4907_s12 + $0x200] sm:$0xf]  ;;  %v4199_v42 = vld [vmem:[%s4907_s12 + $0x20c] sm:$0xf0] }
 0x1d7   : > { %v2242_v44 = vadd.f32 %v2241_v39, %v2073_v40  ;;  %v626_v39 = vld [vmem:[#allocation2 + $0x108] sm:$0xff]  ;;  %v3747_v53 = vor.u32 %v4199_v42, %v3746_v41  ;;  %v3780_v41 = vld [vmem:[%s4907_s12 + $0x250] sm:$0xf0] }
 0x1d8   : > { %v3786_v42 = vld [vmem:[%s4907_s12 + $0x248] sm:$0xf] }
 0x1d9   : > { %v2386_v47 = vadd.f32 %v2242_v44, %v622_v43  ;;  %v4197_v44 = vld [vmem:[%s4907_s12 + $0x204] sm:$0xf] }
 0x1db   : > { %2450 = vst [vmem:[#allocation2 + $0x118] sm:$0xff] %v2386_v47  ;;  %v4200_v47 = vld [vmem:[%s4907_s12 + $0x214] sm:$0xf0] }
 0x1dc   : > { %v2074_v55 = vpop.f32.mrf.mxu2  ;;  %v1739_v60 = vpop.f32.mrf.mxu0 }
 0x1dd   : > { %v2243_v56 = vpop.f32.mrf.mxu3  ;;  %v2075_v59 = vadd.f32 %v2074_v55, %v1906_v54  ;;  %v1908_v61 = vpop.f32.mrf.mxu1  ;;  %v3751_v54 = vor.u32 %v4197_v44, %v3748_v45  ;;  %v4206_v44 = vld [vmem:[%s4907_s12 + $0x24c] sm:$0xf]  ;;  %v3788_v45 = vld [vmem:[%s4907_s12 + $0x258] sm:$0xf0] }
 0x1de   : > { %v1909_v3 = vadd.f32 %v1908_v61, %v1739_v60  ;;  %v627_v60 = vld [vmem:[#allocation2 + $0x60] sm:$0xff] }
 0x1df   : > { %v2244_v1 = vadd.f32 %v2243_v56, %v2075_v59  ;;  %1778 = vmatmul.bf16.gmra.mxu0 %v3715_v57  ;;  %v3759_v59 = vor.u32 %v4198_v48, %v3756_v49 }
 0x1e0   : > { %1947 = vmatmul.bf16.gmra.mxu1 %v3719_v58  ;;  %v3755_v58 = vor.u32 %v4200_v47, %v3754_v46 }
 0x1e1   : > { %v2387_v2 = vadd.f32 %v2244_v1, %v623_v0  ;;  %2116 = vmatmul.bf16.gmra.mxu2 %v3723_v62 }
 0x1e2   : > { %2285 = vmatmul.bf16.gmra.mxu3 %v3727_v63 }
 0x1e3   : > { %2451 = vst [vmem:[#allocation2 + $0x98] sm:$0xff] %v2387_v2 }
 0x1e4   : > { %v2077_v4 = vpop.f32.mrf.mxu2  ;;  %v1741_v7 = vpop.f32.mrf.mxu0 }
 0x1e5   : > { %v2246_v5 = vpop.f32.mrf.mxu3  ;;  %v2078_v6 = vadd.f32 %v2077_v4, %v1909_v3  ;;  %v1910_v8 = vpop.f32.mrf.mxu1 }
 0x1e6   : > { %v1911_v20 = vadd.f32 %v1910_v8, %v1741_v7  ;;  %v3762_v7 = vld [vmem:[%s4907_s12 + $0x220] sm:$0xf]  ;;  %v4203_v8 = vld [vmem:[%s4907_s12 + $0x22c] sm:$0xf0] }
 0x1e7   : > { %v2247_v10 = vadd.f32 %v2246_v5, %v2078_v6  ;;  %v628_v5 = vld [vmem:[#allocation2 + $0xe0] sm:$0xff]  ;;  %v3763_v19 = vor.u32 %v4203_v8, %v3762_v7  ;;  %v3796_v7 = vld [vmem:[%s4907_s12 + $0x270] sm:$0xf0]  ;;  %v3802_v8 = vld [vmem:[%s4907_s12 + $0x268] sm:$0xf] }
 0x1e9   : > { %v2388_v13 = vadd.f32 %v2247_v10, %v624_v9  ;;  %v4201_v10 = vld [vmem:[%s4907_s12 + $0x224] sm:$0xf] }
 0x1eb   : > { %2452 = vst [vmem:[#allocation2 + $0x120] sm:$0xff] %v2388_v13  ;;  %v4204_v13 = vld [vmem:[%s4907_s12 + $0x234] sm:$0xf0] }
 0x1ec   : > { %v2079_v21 = vpop.f32.mrf.mxu2  ;;  %v1744_v26 = vpop.f32.mrf.mxu0 }
 0x1ed   : > { %v2248_v22 = vpop.f32.mrf.mxu3  ;;  %v2080_v25 = vadd.f32 %v2079_v21, %v1911_v20  ;;  %v1913_v27 = vpop.f32.mrf.mxu1  ;;  %v3767_v20 = vor.u32 %v4201_v10, %v3764_v11  ;;  %v4210_v10 = vld [vmem:[%s4907_s12 + $0x26c] sm:$0xf]  ;;  %v3804_v11 = vld [vmem:[%s4907_s12 + $0x278] sm:$0xf0] }
 0x1ee   : > { %v1914_v33 = vadd.f32 %v1913_v27, %v1744_v26  ;;  %v629_v26 = vld [vmem:[#allocation2 + $0x188] sm:$0xff] }
 0x1ef   : > { %v2249_v31 = vadd.f32 %v2248_v22, %v2080_v25  ;;  %1783 = vmatmul.bf16.gmra.mxu0 %v3731_v23  ;;  %v3775_v25 = vor.u32 %v4202_v14, %v3772_v15 }
 0x1f0   : > { %1952 = vmatmul.bf16.gmra.mxu1 %v3735_v24  ;;  %v3771_v24 = vor.u32 %v4204_v13, %v3770_v12 }
 0x1f1   : > { %v2389_v32 = vadd.f32 %v2249_v31, %v625_v30  ;;  %2121 = vmatmul.bf16.gmra.mxu2 %v3739_v28 }
 0x1f2   : > { %2290 = vmatmul.bf16.gmra.mxu3 %v3743_v29 }
 0x1f3   : > { %2453 = vst [vmem:[#allocation2 + $0x150] sm:$0xff] %v2389_v32 }
 0x1f4   : > { %v2082_v34 = vpop.f32.mrf.mxu2  ;;  %v1746_v37 = vpop.f32.mrf.mxu0 }
 0x1f5   : > { %v2251_v35 = vpop.f32.mrf.mxu3  ;;  %v2083_v36 = vadd.f32 %v2082_v34, %v1914_v33  ;;  %v1915_v38 = vpop.f32.mrf.mxu1 }
 0x1f6   : > { %v1916_v50 = vadd.f32 %v1915_v38, %v1746_v37  ;;  %v3778_v37 = vld [vmem:[%s4907_s12 + $0x240] sm:$0xf]  ;;  %v4207_v38 = vld [vmem:[%s4907_s12 + $0x24c] sm:$0xf0] }
 0x1f7   : > { %v2252_v40 = vadd.f32 %v2251_v35, %v2083_v36  ;;  %v630_v35 = vld [vmem:[#allocation2 + $0x138] sm:$0xff]  ;;  %v3779_v49 = vor.u32 %v4207_v38, %v3778_v37  ;;  %v3812_v37 = vld [vmem:[%s4907_s12 + $0x290] sm:$0xf0]  ;;  %v3818_v38 = vld [vmem:[%s4907_s12 + $0x288] sm:$0xf] }
 0x1f9   : > { %v2390_v43 = vadd.f32 %v2252_v40, %v626_v39  ;;  %v4205_v40 = vld [vmem:[%s4907_s12 + $0x244] sm:$0xf] }
 0x1fb   : > { %2454 = vst [vmem:[#allocation2 + $0x108] sm:$0xff] %v2390_v43  ;;  %v4208_v43 = vld [vmem:[%s4907_s12 + $0x254] sm:$0xf0] }
 0x1fc   : > { %v2084_v51 = vpop.f32.mrf.mxu2  ;;  %v1749_v56 = vpop.f32.mrf.mxu0 }
 0x1fd   : > { %v2253_v52 = vpop.f32.mrf.mxu3  ;;  %v2085_v55 = vadd.f32 %v2084_v51, %v1916_v50  ;;  %v1918_v57 = vpop.f32.mrf.mxu1  ;;  %v3783_v50 = vor.u32 %v4205_v40, %v3780_v41  ;;  %v4214_v40 = vld [vmem:[%s4907_s12 + $0x28c] sm:$0xf]  ;;  %v3820_v41 = vld [vmem:[%s4907_s12 + $0x298] sm:$0xf0] }
 0x1fe   : > { %v1919_v63 = vadd.f32 %v1918_v57, %v1749_v56  ;;  %v631_v56 = vld [vmem:[#allocation2 + $0x140] sm:$0xff] }
 0x1ff   : > { %v2254_v61 = vadd.f32 %v2253_v52, %v2085_v55  ;;  %1788 = vmatmul.bf16.gmra.mxu0 %v3747_v53  ;;  %v3791_v55 = vor.u32 %v4206_v44, %v3788_v45 }
 0x200   : > { %1957 = vmatmul.bf16.gmra.mxu1 %v3751_v54  ;;  %v3787_v54 = vor.u32 %v4208_v43, %v3786_v42 }
 0x201   : > { %v2391_v62 = vadd.f32 %v2254_v61, %v627_v60  ;;  %2126 = vmatmul.bf16.gmra.mxu2 %v3755_v58 }
 0x202   : > { %2295 = vmatmul.bf16.gmra.mxu3 %v3759_v59 }
 0x203   : > { %2455 = vst [vmem:[#allocation2 + $0x60] sm:$0xff] %v2391_v62 }
 0x204   : > { %v2087_v0 = vpop.f32.mrf.mxu2  ;;  %v1751_v3 = vpop.f32.mrf.mxu0 }
 0x205   : > { %v2256_v1 = vpop.f32.mrf.mxu3  ;;  %v2088_v2 = vadd.f32 %v2087_v0, %v1919_v63  ;;  %v1920_v4 = vpop.f32.mrf.mxu1 }
 0x206   : > { %v1921_v16 = vadd.f32 %v1920_v4, %v1751_v3  ;;  %v3794_v3 = vld [vmem:[%s4907_s12 + $0x260] sm:$0xf]  ;;  %v4211_v4 = vld [vmem:[%s4907_s12 + $0x26c] sm:$0xf0] }
 0x207   : > { %v2257_v6 = vadd.f32 %v2256_v1, %v2088_v2  ;;  %v632_v1 = vld [vmem:[#allocation2 + $0x80] sm:$0xff]  ;;  %v3795_v15 = vor.u32 %v4211_v4, %v3794_v3  ;;  %v3828_v3 = vld [vmem:[%s4907_s12 + $0x2b0] sm:$0xf0]  ;;  %v3834_v4 = vld [vmem:[%s4907_s12 + $0x2a8] sm:$0xf] }
 0x209   : > { %v2392_v9 = vadd.f32 %v2257_v6, %v628_v5  ;;  %v4209_v6 = vld [vmem:[%s4907_s12 + $0x264] sm:$0xf] }
 0x20b   : > { %2456 = vst [vmem:[#allocation2 + $0xe0] sm:$0xff] %v2392_v9  ;;  %v4212_v9 = vld [vmem:[%s4907_s12 + $0x274] sm:$0xf0] }
 0x20c   : > { %v2089_v17 = vpop.f32.mrf.mxu2  ;;  %v1754_v22 = vpop.f32.mrf.mxu0 }
 0x20d   : > { %v2258_v18 = vpop.f32.mrf.mxu3  ;;  %v2090_v21 = vadd.f32 %v2089_v17, %v1921_v16  ;;  %v1923_v23 = vpop.f32.mrf.mxu1  ;;  %v3799_v16 = vor.u32 %v4209_v6, %v3796_v7  ;;  %v4218_v6 = vld [vmem:[%s4907_s12 + $0x2ac] sm:$0xf]  ;;  %v3836_v7 = vld [vmem:[%s4907_s12 + $0x2b8] sm:$0xf0] }
 0x20e   : > { %v1924_v29 = vadd.f32 %v1923_v23, %v1754_v22  ;;  %v633_v22 = vld [vmem:[#allocation2 + $0x1a8] sm:$0xff] }
 0x20f   : > { %v2259_v27 = vadd.f32 %v2258_v18, %v2090_v21  ;;  %1793 = vmatmul.bf16.gmra.mxu0 %v3763_v19  ;;  %v3807_v21 = vor.u32 %v4210_v10, %v3804_v11 }
 0x210   : > { %1962 = vmatmul.bf16.gmra.mxu1 %v3767_v20  ;;  %v3803_v20 = vor.u32 %v4212_v9, %v3802_v8 }
 0x211   : > { %v2393_v28 = vadd.f32 %v2259_v27, %v629_v26  ;;  %2131 = vmatmul.bf16.gmra.mxu2 %v3771_v24 }
 0x212   : > { %2300 = vmatmul.bf16.gmra.mxu3 %v3775_v25 }
 0x213   : > { %2457 = vst [vmem:[#allocation2 + $0x188] sm:$0xff] %v2393_v28 }
 0x214   : > { %v2092_v30 = vpop.f32.mrf.mxu2  ;;  %v1756_v33 = vpop.f32.mrf.mxu0 }
 0x215   : > { %v2261_v31 = vpop.f32.mrf.mxu3  ;;  %v2093_v32 = vadd.f32 %v2092_v30, %v1924_v29  ;;  %v1925_v34 = vpop.f32.mrf.mxu1 }
 0x216   : > { %v1926_v46 = vadd.f32 %v1925_v34, %v1756_v33  ;;  %v3810_v33 = vld [vmem:[%s4907_s12 + $0x280] sm:$0xf]  ;;  %v4215_v34 = vld [vmem:[%s4907_s12 + $0x28c] sm:$0xf0] }
 0x217   : > { %v2262_v36 = vadd.f32 %v2261_v31, %v2093_v32  ;;  %v634_v31 = vld [vmem:[#allocation2 + $0x1b8] sm:$0xff]  ;;  %v3811_v45 = vor.u32 %v4215_v34, %v3810_v33  ;;  %v3844_v33 = vld [vmem:[%s4907_s12 + $0x2d0] sm:$0xf0]  ;;  %v3850_v34 = vld [vmem:[%s4907_s12 + $0x2c8] sm:$0xf] }
 0x219   : > { %v2394_v39 = vadd.f32 %v2262_v36, %v630_v35  ;;  %v4213_v36 = vld [vmem:[%s4907_s12 + $0x284] sm:$0xf] }
 0x21b   : > { %2458 = vst [vmem:[#allocation2 + $0x138] sm:$0xff] %v2394_v39  ;;  %v4216_v39 = vld [vmem:[%s4907_s12 + $0x294] sm:$0xf0] }
 0x21c   : > { %v2094_v47 = vpop.f32.mrf.mxu2  ;;  %v1759_v52 = vpop.f32.mrf.mxu0 }
 0x21d   : > { %v2263_v48 = vpop.f32.mrf.mxu3  ;;  %v2095_v51 = vadd.f32 %v2094_v47, %v1926_v46  ;;  %v1928_v53 = vpop.f32.mrf.mxu1  ;;  %v3815_v46 = vor.u32 %v4213_v36, %v3812_v37  ;;  %v4222_v36 = vld [vmem:[%s4907_s12 + $0x2cc] sm:$0xf]  ;;  %v3852_v37 = vld [vmem:[%s4907_s12 + $0x2d8] sm:$0xf0] }
 0x21e   : > { %v1929_v59 = vadd.f32 %v1928_v53, %v1759_v52  ;;  %v635_v52 = vld [vmem:[#allocation2 + $0x28] sm:$0xff] }
 0x21f   : > { %v2264_v57 = vadd.f32 %v2263_v48, %v2095_v51  ;;  %1798 = vmatmul.bf16.gmra.mxu0 %v3779_v49  ;;  %v3823_v51 = vor.u32 %v4214_v40, %v3820_v41 }
 0x220   : > { %1967 = vmatmul.bf16.gmra.mxu1 %v3783_v50  ;;  %v3819_v50 = vor.u32 %v4216_v39, %v3818_v38 }
 0x221   : > { %v2395_v58 = vadd.f32 %v2264_v57, %v631_v56  ;;  %2136 = vmatmul.bf16.gmra.mxu2 %v3787_v54 }
 0x222   : > { %2305 = vmatmul.bf16.gmra.mxu3 %v3791_v55 }
 0x223   : > { %2459 = vst [vmem:[#allocation2 + $0x140] sm:$0xff] %v2395_v58 }
 0x224   : > { %v2097_v60 = vpop.f32.mrf.mxu2  ;;  %v1761_v63 = vpop.f32.mrf.mxu0 }
 0x225   : > { %v2266_v61 = vpop.f32.mrf.mxu3  ;;  %v2098_v62 = vadd.f32 %v2097_v60, %v1929_v59  ;;  %v1930_v0 = vpop.f32.mrf.mxu1 }
 0x226   : > { %v1931_v12 = vadd.f32 %v1930_v0, %v1761_v63  ;;  %v3826_v63 = vld [vmem:[%s4907_s12 + $0x2a0] sm:$0xf]  ;;  %v4219_v0 = vld [vmem:[%s4907_s12 + $0x2ac] sm:$0xf0] }
 0x227   : > { %v2267_v2 = vadd.f32 %v2266_v61, %v2098_v62  ;;  %v636_v61 = vld [vmem:[#allocation2 + $0x1e8] sm:$0xff]  ;;  %v3827_v11 = vor.u32 %v4219_v0, %v3826_v63  ;;  %v3860_v63 = vld [vmem:[%s4907_s12 + $0x2f0] sm:$0xf0] }
 0x228   : > { %v3866_v0 = vld [vmem:[%s4907_s12 + $0x2e8] sm:$0xf] }
 0x229   : > { %v2396_v5 = vadd.f32 %v2267_v2, %v632_v1  ;;  %v4217_v2 = vld [vmem:[%s4907_s12 + $0x2a4] sm:$0xf] }
 0x22b   : > { %2460 = vst [vmem:[#allocation2 + $0x80] sm:$0xff] %v2396_v5  ;;  %v4220_v5 = vld [vmem:[%s4907_s12 + $0x2b4] sm:$0xf0] }
 0x22c   : > { %v2099_v13 = vpop.f32.mrf.mxu2  ;;  %v1764_v18 = vpop.f32.mrf.mxu0 }
 0x22d   : > { %v2268_v14 = vpop.f32.mrf.mxu3  ;;  %v2100_v17 = vadd.f32 %v2099_v13, %v1931_v12  ;;  %v1933_v19 = vpop.f32.mrf.mxu1  ;;  %v3831_v12 = vor.u32 %v4217_v2, %v3828_v3  ;;  %v4226_v2 = vld [vmem:[%s4907_s12 + $0x2ec] sm:$0xf]  ;;  %v3868_v3 = vld [vmem:[%s4907_s12 + $0x2f8] sm:$0xf0] }
 0x22e   : > { %v1934_v25 = vadd.f32 %v1933_v19, %v1764_v18  ;;  %v637_v18 = vld [vmem:[#allocation2 + $0xf8] sm:$0xff] }
 0x22f   : > { %v2269_v23 = vadd.f32 %v2268_v14, %v2100_v17  ;;  %1803 = vmatmul.bf16.gmra.mxu0 %v3795_v15  ;;  %v3839_v17 = vor.u32 %v4218_v6, %v3836_v7 }
 0x230   : > { %1972 = vmatmul.bf16.gmra.mxu1 %v3799_v16  ;;  %v3835_v16 = vor.u32 %v4220_v5, %v3834_v4 }
 0x231   : > { %v2397_v24 = vadd.f32 %v2269_v23, %v633_v22  ;;  %2141 = vmatmul.bf16.gmra.mxu2 %v3803_v20 }
 0x232   : > { %2310 = vmatmul.bf16.gmra.mxu3 %v3807_v21 }
 0x233   : > { %2461 = vst [vmem:[#allocation2 + $0x1a8] sm:$0xff] %v2397_v24 }
 0x234   : > { %v2102_v26 = vpop.f32.mrf.mxu2  ;;  %v1766_v29 = vpop.f32.mrf.mxu0 }
 0x235   : > { %v2271_v27 = vpop.f32.mrf.mxu3  ;;  %v2103_v28 = vadd.f32 %v2102_v26, %v1934_v25  ;;  %v1935_v30 = vpop.f32.mrf.mxu1 }
 0x236   : > { %v1936_v42 = vadd.f32 %v1935_v30, %v1766_v29  ;;  %v3842_v29 = vld [vmem:[%s4907_s12 + $0x2c0] sm:$0xf]  ;;  %v4223_v30 = vld [vmem:[%s4907_s12 + $0x2cc] sm:$0xf0] }
 0x237   : > { %v2272_v32 = vadd.f32 %v2271_v27, %v2103_v28  ;;  %v638_v27 = vld [vmem:[#allocation2 + $0x160] sm:$0xff]  ;;  %v3843_v41 = vor.u32 %v4223_v30, %v3842_v29  ;;  %v3876_v29 = vld [vmem:[%s4907_s12 + $0x310] sm:$0xf0]  ;;  %v3882_v30 = vld [vmem:[%s4907_s12 + $0x308] sm:$0xf] }
 0x239   : > { %v2398_v35 = vadd.f32 %v2272_v32, %v634_v31  ;;  %v4221_v32 = vld [vmem:[%s4907_s12 + $0x2c4] sm:$0xf] }
 0x23b   : > { %2462 = vst [vmem:[#allocation2 + $0x1b8] sm:$0xff] %v2398_v35  ;;  %v4224_v35 = vld [vmem:[%s4907_s12 + $0x2d4] sm:$0xf0] }
 0x23c   : > { %v2104_v43 = vpop.f32.mrf.mxu2  ;;  %v1769_v48 = vpop.f32.mrf.mxu0 }
 0x23d   : > { %v2273_v44 = vpop.f32.mrf.mxu3  ;;  %v2105_v47 = vadd.f32 %v2104_v43, %v1936_v42  ;;  %v1938_v49 = vpop.f32.mrf.mxu1  ;;  %v3847_v42 = vor.u32 %v4221_v32, %v3844_v33  ;;  %v4230_v32 = vld [vmem:[%s4907_s12 + $0x30c] sm:$0xf]  ;;  %v3884_v33 = vld [vmem:[%s4907_s12 + $0x318] sm:$0xf0] }
 0x23e   : > { %v1939_v55 = vadd.f32 %v1938_v49, %v1769_v48  ;;  %v639_v48 = vld [vmem:[#allocation2 + $0x30] sm:$0xff] }
 0x23f   : > { %v2274_v53 = vadd.f32 %v2273_v44, %v2105_v47  ;;  %1808 = vmatmul.bf16.gmra.mxu0 %v3811_v45  ;;  %v3855_v47 = vor.u32 %v4222_v36, %v3852_v37 }
 0x240   : > { %1977 = vmatmul.bf16.gmra.mxu1 %v3815_v46  ;;  %v3851_v46 = vor.u32 %v4224_v35, %v3850_v34 }
 0x241   : > { %v2399_v54 = vadd.f32 %v2274_v53, %v635_v52  ;;  %2146 = vmatmul.bf16.gmra.mxu2 %v3819_v50 }
 0x242   : > { %2315 = vmatmul.bf16.gmra.mxu3 %v3823_v51 }
 0x243   : > { %2463 = vst [vmem:[#allocation2 + $0x28] sm:$0xff] %v2399_v54 }
 0x244   : > { %v2107_v56 = vpop.f32.mrf.mxu2  ;;  %v1771_v59 = vpop.f32.mrf.mxu0 }
 0x245   : > { %v2276_v57 = vpop.f32.mrf.mxu3  ;;  %v2108_v58 = vadd.f32 %v2107_v56, %v1939_v55  ;;  %v1940_v60 = vpop.f32.mrf.mxu1 }
 0x246   : > { %v1941_v8 = vadd.f32 %v1940_v60, %v1771_v59  ;;  %v3858_v59 = vld [vmem:[%s4907_s12 + $0x2e0] sm:$0xf]  ;;  %v4227_v60 = vld [vmem:[%s4907_s12 + $0x2ec] sm:$0xf0] }
 0x247   : > { %v2277_v62 = vadd.f32 %v2276_v57, %v2108_v58  ;;  %v640_v57 = vld [vmem:[#allocation2 + $0x1e0] sm:$0xff]  ;;  %v3859_v7 = vor.u32 %v4227_v60, %v3858_v59  ;;  %v3892_v59 = vld [vmem:[%s4907_s12 + $0x330] sm:$0xf0]  ;;  %v3898_v60 = vld [vmem:[%s4907_s12 + $0x328] sm:$0xf] }
 0x249   : > { %v2400_v1 = vadd.f32 %v2277_v62, %v636_v61  ;;  %v4225_v62 = vld [vmem:[%s4907_s12 + $0x2e4] sm:$0xf] }
 0x24b   : > { %2464 = vst [vmem:[#allocation2 + $0x1e8] sm:$0xff] %v2400_v1  ;;  %v4228_v1 = vld [vmem:[%s4907_s12 + $0x2f4] sm:$0xf0] }
 0x24c   : > { %v2109_v9 = vpop.f32.mrf.mxu2  ;;  %v1774_v14 = vpop.f32.mrf.mxu0 }
 0x24d   : > { %v2278_v10 = vpop.f32.mrf.mxu3  ;;  %v2110_v13 = vadd.f32 %v2109_v9, %v1941_v8  ;;  %v1943_v15 = vpop.f32.mrf.mxu1  ;;  %v3863_v8 = vor.u32 %v4225_v62, %v3860_v63  ;;  %v4234_v62 = vld [vmem:[%s4907_s12 + $0x32c] sm:$0xf]  ;;  %v3900_v63 = vld [vmem:[%s4907_s12 + $0x338] sm:$0xf0] }
 0x24e   : > { %v1944_v21 = vadd.f32 %v1943_v15, %v1774_v14  ;;  %v641_v14 = vld [vmem:[#allocation2] sm:$0xff] }
 0x24f   : > { %v2279_v19 = vadd.f32 %v2278_v10, %v2110_v13  ;;  %1813 = vmatmul.bf16.gmra.mxu0 %v3827_v11  ;;  %v3871_v13 = vor.u32 %v4226_v2, %v3868_v3 }
 0x250   : > { %1982 = vmatmul.bf16.gmra.mxu1 %v3831_v12  ;;  %v3867_v12 = vor.u32 %v4228_v1, %v3866_v0 }
 0x251   : > { %v2401_v20 = vadd.f32 %v2279_v19, %v637_v18  ;;  %2151 = vmatmul.bf16.gmra.mxu2 %v3835_v16 }
 0x252   : > { %2320 = vmatmul.bf16.gmra.mxu3 %v3839_v17 }
 0x253   : > { %2465 = vst [vmem:[#allocation2 + $0xf8] sm:$0xff] %v2401_v20 }
 0x254   : > { %v2112_v22 = vpop.f32.mrf.mxu2  ;;  %v1776_v25 = vpop.f32.mrf.mxu0 }
 0x255   : > { %v2281_v23 = vpop.f32.mrf.mxu3  ;;  %v2113_v24 = vadd.f32 %v2112_v22, %v1944_v21  ;;  %v1945_v26 = vpop.f32.mrf.mxu1 }
 0x256   : > { %v1946_v38 = vadd.f32 %v1945_v26, %v1776_v25  ;;  %v3874_v25 = vld [vmem:[%s4907_s12 + $0x300] sm:$0xf]  ;;  %v4231_v26 = vld [vmem:[%s4907_s12 + $0x30c] sm:$0xf0] }
 0x257   : > { %v2282_v28 = vadd.f32 %v2281_v23, %v2113_v24  ;;  %v642_v23 = vld [vmem:[#allocation2 + $0xf0] sm:$0xff]  ;;  %v3875_v37 = vor.u32 %v4231_v26, %v3874_v25  ;;  %v3914_v26 = vld [vmem:[%s4907_s12 + $0x348] sm:$0xf] }
 0x258   : > { %v3908_v25 = vld [vmem:[%s4907_s12 + $0x350] sm:$0xf0] }
 0x259   : > { %v2402_v31 = vadd.f32 %v2282_v28, %v638_v27  ;;  %v4229_v28 = vld [vmem:[%s4907_s12 + $0x304] sm:$0xf] }
 0x25b   : > { %2466 = vst [vmem:[#allocation2 + $0x160] sm:$0xff] %v2402_v31  ;;  %v4232_v31 = vld [vmem:[%s4907_s12 + $0x314] sm:$0xf0] }
 0x25c   : > { %v2114_v39 = vpop.f32.mrf.mxu2  ;;  %v1779_v44 = vpop.f32.mrf.mxu0 }
 0x25d   : > { %v2283_v40 = vpop.f32.mrf.mxu3  ;;  %v2115_v43 = vadd.f32 %v2114_v39, %v1946_v38  ;;  %v1948_v45 = vpop.f32.mrf.mxu1  ;;  %v3879_v38 = vor.u32 %v4229_v28, %v3876_v29  ;;  %v4238_v28 = vld [vmem:[%s4907_s12 + $0x34c] sm:$0xf]  ;;  %v3916_v29 = vld [vmem:[%s4907_s12 + $0x358] sm:$0xf0] }
 0x25e   : > { %v1949_v51 = vadd.f32 %v1948_v45, %v1779_v44  ;;  %v643_v44 = vld [vmem:[#allocation2 + $0x8] sm:$0xff] }
 0x25f   : > { %v2284_v49 = vadd.f32 %v2283_v40, %v2115_v43  ;;  %1818 = vmatmul.bf16.gmra.mxu0 %v3843_v41  ;;  %v3887_v43 = vor.u32 %v4230_v32, %v3884_v33 }
 0x260   : > { %1987 = vmatmul.bf16.gmra.mxu1 %v3847_v42  ;;  %v3883_v42 = vor.u32 %v4232_v31, %v3882_v30 }
 0x261   : > { %v2403_v50 = vadd.f32 %v2284_v49, %v639_v48  ;;  %2156 = vmatmul.bf16.gmra.mxu2 %v3851_v46 }
 0x262   : > { %2325 = vmatmul.bf16.gmra.mxu3 %v3855_v47 }
 0x263   : > { %2467 = vst [vmem:[#allocation2 + $0x30] sm:$0xff] %v2403_v50 }
 0x264   : > { %v2117_v52 = vpop.f32.mrf.mxu2  ;;  %v1781_v55 = vpop.f32.mrf.mxu0 }
 0x265   : > { %v2286_v53 = vpop.f32.mrf.mxu3  ;;  %v2118_v54 = vadd.f32 %v2117_v52, %v1949_v51  ;;  %v1950_v56 = vpop.f32.mrf.mxu1 }
 0x266   : > { %v1951_v4 = vadd.f32 %v1950_v56, %v1781_v55  ;;  %v3890_v55 = vld [vmem:[%s4907_s12 + $0x320] sm:$0xf]  ;;  %v4235_v56 = vld [vmem:[%s4907_s12 + $0x32c] sm:$0xf0] }
 0x267   : > { %v2287_v58 = vadd.f32 %v2286_v53, %v2118_v54  ;;  %v644_v53 = vld [vmem:[#allocation2 + $0x148] sm:$0xff]  ;;  %v3891_v3 = vor.u32 %v4235_v56, %v3890_v55  ;;  %v3924_v55 = vld [vmem:[%s4907_s12 + $0x370] sm:$0xf0] }
 0x268   : > { %v3930_v56 = vld [vmem:[%s4907_s12 + $0x368] sm:$0xf] }
 0x269   : > { %v2404_v61 = vadd.f32 %v2287_v58, %v640_v57  ;;  %v4233_v58 = vld [vmem:[%s4907_s12 + $0x324] sm:$0xf] }
 0x26b   : > { %2468 = vst [vmem:[#allocation2 + $0x1e0] sm:$0xff] %v2404_v61  ;;  %v4236_v61 = vld [vmem:[%s4907_s12 + $0x334] sm:$0xf0] }
 0x26c   : > { %v2119_v5 = vpop.f32.mrf.mxu2  ;;  %v1784_v10 = vpop.f32.mrf.mxu0 }
 0x26d   : > { %v2288_v6 = vpop.f32.mrf.mxu3  ;;  %v2120_v9 = vadd.f32 %v2119_v5, %v1951_v4  ;;  %v1953_v11 = vpop.f32.mrf.mxu1  ;;  %v3895_v4 = vor.u32 %v4233_v58, %v3892_v59  ;;  %v4242_v58 = vld [vmem:[%s4907_s12 + $0x36c] sm:$0xf]  ;;  %v3932_v59 = vld [vmem:[%s4907_s12 + $0x378] sm:$0xf0] }
 0x26e   : > { %v1954_v17 = vadd.f32 %v1953_v11, %v1784_v10  ;;  %v645_v10 = vld [vmem:[#allocation2 + $0x1d0] sm:$0xff] }
 0x26f   : > { %v2289_v15 = vadd.f32 %v2288_v6, %v2120_v9  ;;  %1823 = vmatmul.bf16.gmra.mxu0 %v3859_v7  ;;  %v3903_v9 = vor.u32 %v4234_v62, %v3900_v63 }
 0x270   : > { %1992 = vmatmul.bf16.gmra.mxu1 %v3863_v8  ;;  %v3899_v8 = vor.u32 %v4236_v61, %v3898_v60 }
 0x271   : > { %v2405_v16 = vadd.f32 %v2289_v15, %v641_v14  ;;  %2161 = vmatmul.bf16.gmra.mxu2 %v3867_v12 }
 0x272   : > { %2330 = vmatmul.bf16.gmra.mxu3 %v3871_v13 }
 0x273   : > { %2469 = vst [vmem:[#allocation2] sm:$0xff] %v2405_v16 }
 0x274   : > { %v2122_v18 = vpop.f32.mrf.mxu2  ;;  %v1786_v21 = vpop.f32.mrf.mxu0 }
 0x275   : > { %v2291_v19 = vpop.f32.mrf.mxu3  ;;  %v2123_v20 = vadd.f32 %v2122_v18, %v1954_v17  ;;  %v1955_v22 = vpop.f32.mrf.mxu1 }
 0x276   : > { %v1956_v34 = vadd.f32 %v1955_v22, %v1786_v21  ;;  %v3906_v21 = vld [vmem:[%s4907_s12 + $0x340] sm:$0xf]  ;;  %v4239_v22 = vld [vmem:[%s4907_s12 + $0x34c] sm:$0xf0] }
 0x277   : > { %v2292_v24 = vadd.f32 %v2291_v19, %v2123_v20  ;;  %v646_v19 = vld [vmem:[#allocation2 + $0x100] sm:$0xff]  ;;  %v3907_v33 = vor.u32 %v4239_v22, %v3906_v21  ;;  %v3940_v21 = vld [vmem:[%s4907_s12 + $0x390] sm:$0xf0]  ;;  %v3946_v22 = vld [vmem:[%s4907_s12 + $0x388] sm:$0xf] }
 0x279   : > { %v2406_v27 = vadd.f32 %v2292_v24, %v642_v23  ;;  %v4237_v24 = vld [vmem:[%s4907_s12 + $0x344] sm:$0xf] }
 0x27b   : > { %2470 = vst [vmem:[#allocation2 + $0xf0] sm:$0xff] %v2406_v27  ;;  %v4240_v27 = vld [vmem:[%s4907_s12 + $0x354] sm:$0xf0] }
 0x27c   : > { %v2124_v35 = vpop.f32.mrf.mxu2  ;;  %v1789_v40 = vpop.f32.mrf.mxu0 }
 0x27d   : > { %v2293_v36 = vpop.f32.mrf.mxu3  ;;  %v2125_v39 = vadd.f32 %v2124_v35, %v1956_v34  ;;  %v1958_v41 = vpop.f32.mrf.mxu1  ;;  %v3911_v34 = vor.u32 %v4237_v24, %v3908_v25  ;;  %v4246_v24 = vld [vmem:[%s4907_s12 + $0x38c] sm:$0xf]  ;;  %v3948_v25 = vld [vmem:[%s4907_s12 + $0x398] sm:$0xf0] }
 0x27e   : > { %v1959_v47 = vadd.f32 %v1958_v41, %v1789_v40  ;;  %v647_v40 = vld [vmem:[#allocation2 + $0xc8] sm:$0xff] }
 0x27f   : > { %v2294_v45 = vadd.f32 %v2293_v36, %v2125_v39  ;;  %1828 = vmatmul.bf16.gmra.mxu0 %v3875_v37  ;;  %v3919_v39 = vor.u32 %v4238_v28, %v3916_v29 }
 0x280   : > { %1997 = vmatmul.bf16.gmra.mxu1 %v3879_v38  ;;  %v3915_v38 = vor.u32 %v4240_v27, %v3914_v26 }
 0x281   : > { %v2407_v46 = vadd.f32 %v2294_v45, %v643_v44  ;;  %2166 = vmatmul.bf16.gmra.mxu2 %v3883_v42 }
 0x282   : > { %2335 = vmatmul.bf16.gmra.mxu3 %v3887_v43 }
 0x283   : > { %2471 = vst [vmem:[#allocation2 + $0x8] sm:$0xff] %v2407_v46 }
 0x284   : > { %v2127_v48 = vpop.f32.mrf.mxu2  ;;  %v1791_v51 = vpop.f32.mrf.mxu0 }
 0x285   : > { %v2296_v49 = vpop.f32.mrf.mxu3  ;;  %v2128_v50 = vadd.f32 %v2127_v48, %v1959_v47  ;;  %v1960_v52 = vpop.f32.mrf.mxu1 }
 0x286   : > { %v1961_v0 = vadd.f32 %v1960_v52, %v1791_v51  ;;  %v3922_v51 = vld [vmem:[%s4907_s12 + $0x360] sm:$0xf]  ;;  %v4243_v52 = vld [vmem:[%s4907_s12 + $0x36c] sm:$0xf0] }
 0x287   : > { %v2297_v54 = vadd.f32 %v2296_v49, %v2128_v50  ;;  %v648_v49 = vld [vmem:[#allocation2 + $0x40] sm:$0xff]  ;;  %v3923_v63 = vor.u32 %v4243_v52, %v3922_v51  ;;  %v3956_v51 = vld [vmem:[%s4907_s12 + $0x3b0] sm:$0xf0]  ;;  %v3962_v52 = vld [vmem:[%s4907_s12 + $0x3a8] sm:$0xf] }
 0x289   : > { %v2408_v57 = vadd.f32 %v2297_v54, %v644_v53  ;;  %v4241_v54 = vld [vmem:[%s4907_s12 + $0x364] sm:$0xf] }
 0x28b   : > { %2472 = vst [vmem:[#allocation2 + $0x148] sm:$0xff] %v2408_v57  ;;  %v4244_v57 = vld [vmem:[%s4907_s12 + $0x374] sm:$0xf0] }
 0x28c   : > { %v2129_v1 = vpop.f32.mrf.mxu2  ;;  %v1794_v6 = vpop.f32.mrf.mxu0 }
 0x28d   : > { %v2298_v2 = vpop.f32.mrf.mxu3  ;;  %v2130_v5 = vadd.f32 %v2129_v1, %v1961_v0  ;;  %v1963_v7 = vpop.f32.mrf.mxu1  ;;  %v3927_v0 = vor.u32 %v4241_v54, %v3924_v55  ;;  %v4250_v54 = vld [vmem:[%s4907_s12 + $0x3ac] sm:$0xf]  ;;  %v3964_v55 = vld [vmem:[%s4907_s12 + $0x3b8] sm:$0xf0] }
 0x28e   : > { %v1964_v13 = vadd.f32 %v1963_v7, %v1794_v6  ;;  %v649_v6 = vld [vmem:[#allocation2 + $0x1f8] sm:$0xff] }
 0x28f   : > { %v2299_v11 = vadd.f32 %v2298_v2, %v2130_v5  ;;  %1833 = vmatmul.bf16.gmra.mxu0 %v3891_v3  ;;  %v3935_v5 = vor.u32 %v4242_v58, %v3932_v59 }
 0x290   : > { %2002 = vmatmul.bf16.gmra.mxu1 %v3895_v4  ;;  %v3931_v4 = vor.u32 %v4244_v57, %v3930_v56 }
 0x291   : > { %v2409_v12 = vadd.f32 %v2299_v11, %v645_v10  ;;  %2171 = vmatmul.bf16.gmra.mxu2 %v3899_v8 }
 0x292   : > { %2340 = vmatmul.bf16.gmra.mxu3 %v3903_v9 }
 0x293   : > { %2473 = vst [vmem:[#allocation2 + $0x1d0] sm:$0xff] %v2409_v12 }
 0x294   : > { %v2132_v14 = vpop.f32.mrf.mxu2  ;;  %v1796_v17 = vpop.f32.mrf.mxu0 }
 0x295   : > { %v2301_v15 = vpop.f32.mrf.mxu3  ;;  %v2133_v16 = vadd.f32 %v2132_v14, %v1964_v13  ;;  %v1965_v18 = vpop.f32.mrf.mxu1 }
 0x296   : > { %v1966_v30 = vadd.f32 %v1965_v18, %v1796_v17  ;;  %v3938_v17 = vld [vmem:[%s4907_s12 + $0x380] sm:$0xf]  ;;  %v4247_v18 = vld [vmem:[%s4907_s12 + $0x38c] sm:$0xf0] }
 0x297   : > { %v2302_v20 = vadd.f32 %v2301_v15, %v2133_v16  ;;  %v650_v15 = vld [vmem:[#allocation2 + $0x20] sm:$0xff]  ;;  %v3939_v29 = vor.u32 %v4247_v18, %v3938_v17  ;;  %v3972_v17 = vld [vmem:[%s4907_s12 + $0x3d0] sm:$0xf0]  ;;  %v3978_v18 = vld [vmem:[%s4907_s12 + $0x3c8] sm:$0xf] }
 0x299   : > { %v2410_v23 = vadd.f32 %v2302_v20, %v646_v19  ;;  %v4245_v20 = vld [vmem:[%s4907_s12 + $0x384] sm:$0xf] }
 0x29b   : > { %2474 = vst [vmem:[#allocation2 + $0x100] sm:$0xff] %v2410_v23  ;;  %v4248_v23 = vld [vmem:[%s4907_s12 + $0x394] sm:$0xf0] }
 0x29c   : > { %v2134_v31 = vpop.f32.mrf.mxu2  ;;  %v1799_v36 = vpop.f32.mrf.mxu0 }
 0x29d   : > { %v2303_v32 = vpop.f32.mrf.mxu3  ;;  %v2135_v35 = vadd.f32 %v2134_v31, %v1966_v30  ;;  %v1968_v37 = vpop.f32.mrf.mxu1  ;;  %v3943_v30 = vor.u32 %v4245_v20, %v3940_v21  ;;  %v4254_v20 = vld [vmem:[%s4907_s12 + $0x3cc] sm:$0xf]  ;;  %v3980_v21 = vld [vmem:[%s4907_s12 + $0x3d8] sm:$0xf0] }
 0x29e   : > { %v1969_v43 = vadd.f32 %v1968_v37, %v1799_v36  ;;  %v651_v36 = vld [vmem:[#allocation2 + $0x128] sm:$0xff] }
 0x29f   : > { %v2304_v41 = vadd.f32 %v2303_v32, %v2135_v35  ;;  %1838 = vmatmul.bf16.gmra.mxu0 %v3907_v33  ;;  %v3951_v35 = vor.u32 %v4246_v24, %v3948_v25 }
 0x2a0   : > { %2007 = vmatmul.bf16.gmra.mxu1 %v3911_v34  ;;  %v3947_v34 = vor.u32 %v4248_v23, %v3946_v22 }
 0x2a1   : > { %v2411_v42 = vadd.f32 %v2304_v41, %v647_v40  ;;  %2176 = vmatmul.bf16.gmra.mxu2 %v3915_v38 }
 0x2a2   : > { %2345 = vmatmul.bf16.gmra.mxu3 %v3919_v39 }
 0x2a3   : > { %2475 = vst [vmem:[#allocation2 + $0xc8] sm:$0xff] %v2411_v42 }
 0x2a4   : > { %v2137_v44 = vpop.f32.mrf.mxu2  ;;  %v1801_v47 = vpop.f32.mrf.mxu0 }
 0x2a5   : > { %v2306_v45 = vpop.f32.mrf.mxu3  ;;  %v2138_v46 = vadd.f32 %v2137_v44, %v1969_v43  ;;  %v1970_v48 = vpop.f32.mrf.mxu1 }
 0x2a6   : > { %v1971_v60 = vadd.f32 %v1970_v48, %v1801_v47  ;;  %v3954_v47 = vld [vmem:[%s4907_s12 + $0x3a0] sm:$0xf]  ;;  %v4251_v48 = vld [vmem:[%s4907_s12 + $0x3ac] sm:$0xf0] }
 0x2a7   : > { %v2307_v50 = vadd.f32 %v2306_v45, %v2138_v46  ;;  %v652_v45 = vld [vmem:[#allocation2 + $0x1a0] sm:$0xff]  ;;  %v3955_v59 = vor.u32 %v4251_v48, %v3954_v47  ;;  %v3988_v47 = vld [vmem:[%s4907_s12 + $0x3f0] sm:$0xf0]  ;;  %v3994_v48 = vld [vmem:[%s4907_s12 + $0x3e8] sm:$0xf] }
 0x2a9   : > { %v2412_v53 = vadd.f32 %v2307_v50, %v648_v49  ;;  %v4249_v50 = vld [vmem:[%s4907_s12 + $0x3a4] sm:$0xf] }
 0x2ab   : > { %2476 = vst [vmem:[#allocation2 + $0x40] sm:$0xff] %v2412_v53  ;;  %v4252_v53 = vld [vmem:[%s4907_s12 + $0x3b4] sm:$0xf0] }
 0x2ac   : > { %v2139_v61 = vpop.f32.mrf.mxu2  ;;  %v1804_v2 = vpop.f32.mrf.mxu0 }
 0x2ad   : > { %v2308_v62 = vpop.f32.mrf.mxu3  ;;  %v2140_v1 = vadd.f32 %v2139_v61, %v1971_v60  ;;  %v1973_v3 = vpop.f32.mrf.mxu1  ;;  %v3959_v60 = vor.u32 %v4249_v50, %v3956_v51  ;;  %v4258_v50 = vld [vmem:[%s4907_s12 + $0x3ec] sm:$0xf]  ;;  %v3996_v51 = vld [vmem:[%s4907_s12 + $0x3f8] sm:$0xf0] }
 0x2ae   : > { %v1974_v9 = vadd.f32 %v1973_v3, %v1804_v2  ;;  %v653_v2 = vld [vmem:[#allocation2 + $0x1f0] sm:$0xff] }
 0x2af   : > { %v2309_v7 = vadd.f32 %v2308_v62, %v2140_v1  ;;  %1843 = vmatmul.bf16.gmra.mxu0 %v3923_v63  ;;  %v3967_v1 = vor.u32 %v4250_v54, %v3964_v55 }
 0x2b0   : > { %2012 = vmatmul.bf16.gmra.mxu1 %v3927_v0  ;;  %v3963_v0 = vor.u32 %v4252_v53, %v3962_v52 }
 0x2b1   : > { %v2413_v8 = vadd.f32 %v2309_v7, %v649_v6  ;;  %2181 = vmatmul.bf16.gmra.mxu2 %v3931_v4 }
 0x2b2   : > { %2350 = vmatmul.bf16.gmra.mxu3 %v3935_v5 }
 0x2b3   : > { %2477 = vst [vmem:[#allocation2 + $0x1f8] sm:$0xff] %v2413_v8 }
 0x2b4   : > { %v2142_v10 = vpop.f32.mrf.mxu2  ;;  %v1806_v13 = vpop.f32.mrf.mxu0 }
 0x2b5   : > { %v2311_v11 = vpop.f32.mrf.mxu3  ;;  %v2143_v12 = vadd.f32 %v2142_v10, %v1974_v9  ;;  %v1975_v14 = vpop.f32.mrf.mxu1 }
 0x2b6   : > { %v1976_v26 = vadd.f32 %v1975_v14, %v1806_v13  ;;  %v3970_v13 = vld [vmem:[%s4907_s12 + $0x3c0] sm:$0xf]  ;;  %v4255_v14 = vld [vmem:[%s4907_s12 + $0x3cc] sm:$0xf0] }
 0x2b7   : > { %v2312_v16 = vadd.f32 %v2311_v11, %v2143_v12  ;;  %v654_v11 = vld [vmem:[#allocation2 + $0xe8] sm:$0xff]  ;;  %v3971_v25 = vor.u32 %v4255_v14, %v3970_v13 }
 0x2b9   : > { %v2414_v19 = vadd.f32 %v2312_v16, %v650_v15  ;;  %v4253_v16 = vld [vmem:[%s4907_s12 + $0x3c4] sm:$0xf] }
 0x2bb   : > { %2478 = vst [vmem:[#allocation2 + $0x20] sm:$0xff] %v2414_v19  ;;  %v4256_v19 = vld [vmem:[%s4907_s12 + $0x3d4] sm:$0xf0] }
 0x2bc   : > { %v2144_v27 = vpop.f32.mrf.mxu2  ;;  %v1809_v32 = vpop.f32.mrf.mxu0 }
 0x2bd   : > { %v2313_v28 = vpop.f32.mrf.mxu3  ;;  %v2145_v31 = vadd.f32 %v2144_v27, %v1976_v26  ;;  %v1978_v33 = vpop.f32.mrf.mxu1  ;;  %v3975_v26 = vor.u32 %v4253_v16, %v3972_v17  ;;  %v659_v16 = vld [vmem:[#allocation2 + $0xd0] sm:$0xff] }
 0x2be   : > { %v1979_v39 = vadd.f32 %v1978_v33, %v1809_v32  ;;  %v655_v32 = vld [vmem:[#allocation2 + $0x78] sm:$0xff] }
 0x2bf   : > { %v2314_v37 = vadd.f32 %v2313_v28, %v2145_v31  ;;  %1848 = vmatmul.bf16.gmra.mxu0 %v3939_v29  ;;  %v3983_v31 = vor.u32 %v4254_v20, %v3980_v21 }
 0x2c0   : > { %2017 = vmatmul.bf16.gmra.mxu1 %v3943_v30  ;;  %v3979_v30 = vor.u32 %v4256_v19, %v3978_v18 }
 0x2c1   : > { %v2415_v38 = vadd.f32 %v2314_v37, %v651_v36  ;;  %2186 = vmatmul.bf16.gmra.mxu2 %v3947_v34 }
 0x2c2   : > { %2355 = vmatmul.bf16.gmra.mxu3 %v3951_v35 }
 0x2c3   : > { %2479 = vst [vmem:[#allocation2 + $0x128] sm:$0xff] %v2415_v38 }
 0x2c4   : > { %v2147_v40 = vpop.f32.mrf.mxu2  ;;  %v1811_v43 = vpop.f32.mrf.mxu0 }
 0x2c5   : > { %v2316_v41 = vpop.f32.mrf.mxu3  ;;  %v2148_v42 = vadd.f32 %v2147_v40, %v1979_v39  ;;  %v1980_v44 = vpop.f32.mrf.mxu1 }
 0x2c6   : > { %v1981_v56 = vadd.f32 %v1980_v44, %v1811_v43  ;;  %v3986_v43 = vld [vmem:[%s4907_s12 + $0x3e0] sm:$0xf]  ;;  %v4259_v44 = vld [vmem:[%s4907_s12 + $0x3ec] sm:$0xf0] }
 0x2c7   : > { %v2317_v46 = vadd.f32 %v2316_v41, %v2148_v42  ;;  %v656_v41 = vld [vmem:[#allocation2 + $0x70] sm:$0xff]  ;;  %v3987_v55 = vor.u32 %v4259_v44, %v3986_v43  ;;  %v662_v43 = vld [vmem:[#allocation2 + $0xa8] sm:$0xff] }
 0x2c9   : > { %v2416_v49 = vadd.f32 %v2317_v46, %v652_v45  ;;  %v4257_v46 = vld [vmem:[%s4907_s12 + $0x3e4] sm:$0xf] }
 0x2cb   : > { %2480 = vst [vmem:[#allocation2 + $0x1a0] sm:$0xff] %v2416_v49  ;;  %v4260_v49 = vld [vmem:[%s4907_s12 + $0x3f4] sm:$0xf0] }
 0x2cc   : > { %v2149_v57 = vpop.f32.mrf.mxu2  ;;  %v1814_v62 = vpop.f32.mrf.mxu0 }
 0x2cd   : > { %v2318_v58 = vpop.f32.mrf.mxu3  ;;  %v2150_v61 = vadd.f32 %v2149_v57, %v1981_v56  ;;  %v1983_v63 = vpop.f32.mrf.mxu1  ;;  %v3991_v56 = vor.u32 %v4257_v46, %v3988_v47 }
 0x2ce   : > { %v1984_v5 = vadd.f32 %v1983_v63, %v1814_v62  ;;  %v657_v62 = vld [vmem:[#allocation2 + $0x90] sm:$0xff] }
 0x2cf   : > { %v2319_v3 = vadd.f32 %v2318_v58, %v2150_v61  ;;  %1853 = vmatmul.bf16.gmra.mxu0 %v3955_v59  ;;  %v3999_v61 = vor.u32 %v4258_v50, %v3996_v51 }
 0x2d0   : > { %2022 = vmatmul.bf16.gmra.mxu1 %v3959_v60  ;;  %v3995_v60 = vor.u32 %v4260_v49, %v3994_v48 }
 0x2d1   : > { %v2417_v4 = vadd.f32 %v2319_v3, %v653_v2  ;;  %2191 = vmatmul.bf16.gmra.mxu2 %v3963_v0 }
 0x2d2   : > { %2360 = vmatmul.bf16.gmra.mxu3 %v3967_v1 }
 0x2d3   : > { %2481 = vst [vmem:[#allocation2 + $0x1f0] sm:$0xff] %v2417_v4 }
 0x2d4   : > { %v2152_v6 = vpop.f32.mrf.mxu2  ;;  %v1816_v9 = vpop.f32.mrf.mxu0 }
 0x2d5   : > { %v2321_v7 = vpop.f32.mrf.mxu3  ;;  %v2153_v8 = vadd.f32 %v2152_v6, %v1984_v5  ;;  %v1985_v10 = vpop.f32.mrf.mxu1 }
 0x2d6   : > { %v1986_v22 = vadd.f32 %v1985_v10, %v1816_v9 }
 0x2d7   : > { %v2322_v12 = vadd.f32 %v2321_v7, %v2153_v8  ;;  %v658_v7 = vld [vmem:[#allocation2 + $0x1d8] sm:$0xff] }
 0x2d9   : > { %v2418_v15 = vadd.f32 %v2322_v12, %v654_v11 }
 0x2db   : > { %2482 = vst [vmem:[#allocation2 + $0xe8] sm:$0xff] %v2418_v15 }
 0x2dc   : > { %v2154_v23 = vpop.f32.mrf.mxu2  ;;  %v1819_v28 = vpop.f32.mrf.mxu0 }
 0x2dd   : > { %v2323_v24 = vpop.f32.mrf.mxu3  ;;  %v2155_v27 = vadd.f32 %v2154_v23, %v1986_v22  ;;  %v1988_v29 = vpop.f32.mrf.mxu1 }
 0x2de   : > { %v1989_v35 = vadd.f32 %v1988_v29, %v1819_v28 }
 0x2df   : > { %v2324_v33 = vadd.f32 %v2323_v24, %v2155_v27  ;;  %1858 = vmatmul.bf16.gmra.mxu0 %v3971_v25  ;;  %v660_v25 = vld [vmem:[#allocation2 + $0xb8] sm:$0xff] }
 0x2e0   : > { %2027 = vmatmul.bf16.gmra.mxu1 %v3975_v26 }
 0x2e1   : > { %v2419_v34 = vadd.f32 %v2324_v33, %v655_v32  ;;  %2196 = vmatmul.bf16.gmra.mxu2 %v3979_v30 }
 0x2e2   : > { %2365 = vmatmul.bf16.gmra.mxu3 %v3983_v31 }
 0x2e3   : > { %2483 = vst [vmem:[#allocation2 + $0x78] sm:$0xff] %v2419_v34  ;;  %v661_v34 = vld [vmem:[#allocation2 + $0x88] sm:$0xff] }
 0x2e4   : > { %v2157_v36 = vpop.f32.mrf.mxu2  ;;  %v1821_v39 = vpop.f32.mrf.mxu0 }
 0x2e5   : > { %v2326_v37 = vpop.f32.mrf.mxu3  ;;  %v2158_v38 = vadd.f32 %v2157_v36, %v1989_v35  ;;  %v1990_v40 = vpop.f32.mrf.mxu1 }
 0x2e6   : > { %v1991_v52 = vadd.f32 %v1990_v40, %v1821_v39 }
 0x2e7   : > { %v2327_v42 = vadd.f32 %v2326_v37, %v2158_v38 }
 0x2e9   : > { %v2420_v45 = vadd.f32 %v2327_v42, %v656_v41 }
 0x2eb   : > { %2484 = vst [vmem:[#allocation2 + $0x70] sm:$0xff] %v2420_v45 }
 0x2ec   : > { %v2159_v53 = vpop.f32.mrf.mxu2  ;;  %v1824_v58 = vpop.f32.mrf.mxu0 }
 0x2ed   : > { %v2328_v54 = vpop.f32.mrf.mxu3  ;;  %v2160_v57 = vadd.f32 %v2159_v53, %v1991_v52  ;;  %v1993_v59 = vpop.f32.mrf.mxu1  ;;  %v663_v52 = vld [vmem:[#allocation2 + $0x1c8] sm:$0xff] }
 0x2ee   : > { %v1994_v1 = vadd.f32 %v1993_v59, %v1824_v58 }
 0x2ef   : > { %v2329_v63 = vadd.f32 %v2328_v54, %v2160_v57  ;;  %1863 = vmatmul.bf16.gmra.mxu0 %v3987_v55 }
 0x2f0   : > { %2032 = vmatmul.bf16.gmra.mxu1 %v3991_v56 }
 0x2f1   : > { %v2421_v0 = vadd.f32 %v2329_v63, %v657_v62  ;;  %2201 = vmatmul.bf16.gmra.mxu2 %v3995_v60 }
 0x2f2   : > { %2370 = vmatmul.bf16.gmra.mxu3 %v3999_v61  ;;  %v664_v61 = vld [vmem:[#allocation2 + $0x170] sm:$0xff] }
 0x2f3   : > { %2485 = vst [vmem:[#allocation2 + $0x90] sm:$0xff] %v2421_v0 }
 0x2f4   : > { %v2162_v2 = vpop.f32.mrf.mxu2  ;;  %v1826_v5 = vpop.f32.mrf.mxu0 }
 0x2f5   : > { %v2331_v3 = vpop.f32.mrf.mxu3  ;;  %v2163_v4 = vadd.f32 %v2162_v2, %v1994_v1  ;;  %v1995_v6 = vpop.f32.mrf.mxu1 }
 0x2f6   : > { %v1996_v10 = vadd.f32 %v1995_v6, %v1826_v5  ;;  %v665_v6 = vld [vmem:[#allocation2 + $0x178] sm:$0xff] }
 0x2f7   : > { %v2332_v8 = vadd.f32 %v2331_v3, %v2163_v4 }
 0x2f9   : > { %v2422_v9 = vadd.f32 %v2332_v8, %v658_v7 }
 0x2fb   : > { %2486 = vst [vmem:[#allocation2 + $0x1d8] sm:$0xff] %v2422_v9 }
 0x2fc   : > { %v2164_v11 = vpop.f32.mrf.mxu2  ;;  %v1829_v14 = vpop.f32.mrf.mxu0 }
 0x2fd   : > { %v2333_v12 = vpop.f32.mrf.mxu3  ;;  %v2165_v13 = vadd.f32 %v2164_v11, %v1996_v10  ;;  %v1998_v15 = vpop.f32.mrf.mxu1 }
 0x2fe   : > { %v1999_v19 = vadd.f32 %v1998_v15, %v1829_v14  ;;  %v666_v15 = vld [vmem:[#allocation2 + $0x68] sm:$0xff] }
 0x2ff   : > { %v2334_v17 = vadd.f32 %v2333_v12, %v2165_v13 }
 0x301   : > { %v2423_v18 = vadd.f32 %v2334_v17, %v659_v16 }
 0x303   : > { %2487 = vst [vmem:[#allocation2 + $0xd0] sm:$0xff] %v2423_v18 }
 0x304   : > { %v2167_v20 = vpop.f32.mrf.mxu2  ;;  %v1831_v23 = vpop.f32.mrf.mxu0 }
 0x305   : > { %v2336_v21 = vpop.f32.mrf.mxu3  ;;  %v2168_v22 = vadd.f32 %v2167_v20, %v1999_v19  ;;  %v2000_v24 = vpop.f32.mrf.mxu1 }
 0x306   : > { %v2001_v28 = vadd.f32 %v2000_v24, %v1831_v23  ;;  %v667_v24 = vld [vmem:[#allocation2 + $0x190] sm:$0xff] }
 0x307   : > { %v2337_v26 = vadd.f32 %v2336_v21, %v2168_v22 }
 0x309   : > { %v2424_v27 = vadd.f32 %v2337_v26, %v660_v25 }
 0x30b   : > { %2488 = vst [vmem:[#allocation2 + $0xb8] sm:$0xff] %v2424_v27 }
 0x30c   : > { %v2169_v29 = vpop.f32.mrf.mxu2  ;;  %v1834_v32 = vpop.f32.mrf.mxu0 }
 0x30d   : > { %v2338_v30 = vpop.f32.mrf.mxu3  ;;  %v2170_v31 = vadd.f32 %v2169_v29, %v2001_v28  ;;  %v2003_v33 = vpop.f32.mrf.mxu1 }
 0x30e   : > { %v2004_v37 = vadd.f32 %v2003_v33, %v1834_v32  ;;  %v668_v33 = vld [vmem:[#allocation2 + $0x198] sm:$0xff] }
 0x30f   : > { %v2339_v35 = vadd.f32 %v2338_v30, %v2170_v31 }
 0x311   : > { %v2425_v36 = vadd.f32 %v2339_v35, %v661_v34 }
 0x313   : > { %2489 = vst [vmem:[#allocation2 + $0x88] sm:$0xff] %v2425_v36 }
 0x314   : > { %v2172_v38 = vpop.f32.mrf.mxu2  ;;  %v1836_v41 = vpop.f32.mrf.mxu0 }
 0x315   : > { %v2341_v39 = vpop.f32.mrf.mxu3  ;;  %v2173_v40 = vadd.f32 %v2172_v38, %v2004_v37  ;;  %v2005_v42 = vpop.f32.mrf.mxu1 }
 0x316   : > { %v2006_v46 = vadd.f32 %v2005_v42, %v1836_v41  ;;  %v669_v42 = vld [vmem:[#allocation2 + $0x38] sm:$0xff] }
 0x317   : > { %v2342_v44 = vadd.f32 %v2341_v39, %v2173_v40 }
 0x319   : > { %v2426_v45 = vadd.f32 %v2342_v44, %v662_v43 }
 0x31b   : > { %2490 = vst [vmem:[#allocation2 + $0xa8] sm:$0xff] %v2426_v45 }
 0x31c   : > { %v2174_v47 = vpop.f32.mrf.mxu2  ;;  %v1839_v50 = vpop.f32.mrf.mxu0 }
 0x31d   : > { %v2343_v48 = vpop.f32.mrf.mxu3  ;;  %v2175_v49 = vadd.f32 %v2174_v47, %v2006_v46  ;;  %v2008_v51 = vpop.f32.mrf.mxu1 }
 0x31e   : > { %v2009_v55 = vadd.f32 %v2008_v51, %v1839_v50  ;;  %v670_v51 = vld [vmem:[#allocation2 + $0xc0] sm:$0xff] }
 0x31f   : > { %v2344_v53 = vadd.f32 %v2343_v48, %v2175_v49 }
 0x321   : > { %v2427_v54 = vadd.f32 %v2344_v53, %v663_v52 }
 0x323   : > { %2491 = vst [vmem:[#allocation2 + $0x1c8] sm:$0xff] %v2427_v54 }
 0x324   : > { %v2177_v56 = vpop.f32.mrf.mxu2  ;;  %v1841_v59 = vpop.f32.mrf.mxu0 }
 0x325   : > { %v2346_v57 = vpop.f32.mrf.mxu3  ;;  %v2178_v58 = vadd.f32 %v2177_v56, %v2009_v55  ;;  %v2010_v60 = vpop.f32.mrf.mxu1 }
 0x326   : > { %v2011_v0 = vadd.f32 %v2010_v60, %v1841_v59  ;;  %v671_v60 = vld [vmem:[#allocation2 + $0x1c0] sm:$0xff] }
 0x327   : > { %v2347_v62 = vadd.f32 %v2346_v57, %v2178_v58 }
 0x329   : > { %v2428_v63 = vadd.f32 %v2347_v62, %v664_v61 }
 0x32b   : > { %2492 = vst [vmem:[#allocation2 + $0x170] sm:$0xff] %v2428_v63 }
 0x32c   : > { %v2179_v1 = vpop.f32.mrf.mxu2  ;;  %v1844_v4 = vpop.f32.mrf.mxu0 }
 0x32d   : > { %v2348_v2 = vpop.f32.mrf.mxu3  ;;  %v2180_v3 = vadd.f32 %v2179_v1, %v2011_v0  ;;  %v2013_v5 = vpop.f32.mrf.mxu1 }
 0x32e   : > { %v2014_v9 = vadd.f32 %v2013_v5, %v1844_v4  ;;  %v672_v5 = vld [vmem:[#allocation2 + $0x158] sm:$0xff] }
 0x32f   : > { %v2349_v7 = vadd.f32 %v2348_v2, %v2180_v3 }
 0x331   : > { %v2429_v8 = vadd.f32 %v2349_v7, %v665_v6 }
 0x333   : > { %2493 = vst [vmem:[#allocation2 + $0x178] sm:$0xff] %v2429_v8 }
 0x334   : > { %v2182_v10 = vpop.f32.mrf.mxu2  ;;  %v1846_v13 = vpop.f32.mrf.mxu0 }
 0x335   : > { %v2351_v11 = vpop.f32.mrf.mxu3  ;;  %v2183_v12 = vadd.f32 %v2182_v10, %v2014_v9  ;;  %v2015_v14 = vpop.f32.mrf.mxu1 }
 0x336   : > { %v2016_v18 = vadd.f32 %v2015_v14, %v1846_v13 }
 0x337   : > { %v2352_v16 = vadd.f32 %v2351_v11, %v2183_v12  ;;  %v673_v12 = vld [vmem:[#allocation2 + $0x10] sm:$0xff] }
 0x339   : > { %v2430_v17 = vadd.f32 %v2352_v16, %v666_v15 }
 0x33b   : > { %2494 = vst [vmem:[#allocation2 + $0x68] sm:$0xff] %v2430_v17 }
 0x33c   : > { %v2184_v19 = vpop.f32.mrf.mxu2  ;;  %v1849_v22 = vpop.f32.mrf.mxu0 }
 0x33d   : > { %v2353_v20 = vpop.f32.mrf.mxu3  ;;  %v2185_v21 = vadd.f32 %v2184_v19, %v2016_v18  ;;  %v2018_v23 = vpop.f32.mrf.mxu1 }
 0x33e   : > { %v2019_v27 = vadd.f32 %v2018_v23, %v1849_v22 }
 0x33f   : > { %v2354_v25 = vadd.f32 %v2353_v20, %v2185_v21  ;;  %v674_v21 = vld [vmem:[#allocation2 + $0x58] sm:$0xff] }
 0x341   : > { %v2431_v26 = vadd.f32 %v2354_v25, %v667_v24 }
 0x343   : > { %2495 = vst [vmem:[#allocation2 + $0x190] sm:$0xff] %v2431_v26 }
 0x344   : > { %v2187_v28 = vpop.f32.mrf.mxu2  ;;  %v1851_v31 = vpop.f32.mrf.mxu0 }
 0x345   : > { %v2356_v29 = vpop.f32.mrf.mxu3  ;;  %v2188_v30 = vadd.f32 %v2187_v28, %v2019_v27  ;;  %v2020_v32 = vpop.f32.mrf.mxu1 }
 0x346   : > { %v2021_v36 = vadd.f32 %v2020_v32, %v1851_v31 }
 0x347   : > { %v2357_v34 = vadd.f32 %v2356_v29, %v2188_v30  ;;  %v675_v29 = vld [vmem:[#allocation2 + $0xa0] sm:$0xff] }
 0x349   : > { %v2432_v35 = vadd.f32 %v2357_v34, %v668_v33 }
 0x34b   : > { %2496 = vst [vmem:[#allocation2 + $0x198] sm:$0xff] %v2432_v35 }
 0x34c   : > { %v2189_v37 = vpop.f32.mrf.mxu2  ;;  %v1854_v40 = vpop.f32.mrf.mxu0 }
 0x34d   : > { %v2358_v38 = vpop.f32.mrf.mxu3  ;;  %v2190_v39 = vadd.f32 %v2189_v37, %v2021_v36  ;;  %v2023_v41 = vpop.f32.mrf.mxu1 }
 0x34e   : > { %v2024_v45 = vadd.f32 %v2023_v41, %v1854_v40 }
 0x34f   : > { %v2359_v43 = vadd.f32 %v2358_v38, %v2190_v39 }
 0x351   : > { %v2433_v44 = vadd.f32 %v2359_v43, %v669_v42 }
 0x353   : > { %2497 = vst [vmem:[#allocation2 + $0x38] sm:$0xff] %v2433_v44 }
 0x354   : > { %v2192_v46 = vpop.f32.mrf.mxu2  ;;  %v1856_v49 = vpop.f32.mrf.mxu0 }
 0x355   : > { %v2361_v47 = vpop.f32.mrf.mxu3  ;;  %v2193_v48 = vadd.f32 %v2192_v46, %v2024_v45  ;;  %v2025_v50 = vpop.f32.mrf.mxu1 }
 0x356   : > { %v2026_v54 = vadd.f32 %v2025_v50, %v1856_v49 }
 0x357   : > { %v2362_v52 = vadd.f32 %v2361_v47, %v2193_v48 }
 0x359   : > { %v2434_v53 = vadd.f32 %v2362_v52, %v670_v51 }
 0x35b   : > { %2498 = vst [vmem:[#allocation2 + $0xc0] sm:$0xff] %v2434_v53 }
 0x35c   : > { %v2194_v55 = vpop.f32.mrf.mxu2  ;;  %v1859_v58 = vpop.f32.mrf.mxu0 }
 0x35d   : > { %v2363_v56 = vpop.f32.mrf.mxu3  ;;  %v2195_v57 = vadd.f32 %v2194_v55, %v2026_v54  ;;  %v2028_v59 = vpop.f32.mrf.mxu1 }
 0x35e   : > { %v2029_v63 = vadd.f32 %v2028_v59, %v1859_v58 }
 0x35f   : > { %v2364_v61 = vadd.f32 %v2363_v56, %v2195_v57 }
 0x361   : > { %v2435_v62 = vadd.f32 %v2364_v61, %v671_v60 }
 0x363   : > { %2499 = vst [vmem:[#allocation2 + $0x1c0] sm:$0xff] %v2435_v62 }
 0x364   : > { %v2197_v0 = vpop.f32.mrf.mxu2  ;;  %v1861_v3 = vpop.f32.mrf.mxu0 }
 0x365   : > { %v2366_v1 = vpop.f32.mrf.mxu3  ;;  %v2198_v2 = vadd.f32 %v2197_v0, %v2029_v63  ;;  %v2030_v4 = vpop.f32.mrf.mxu1 }
 0x366   : > { %v2031_v8 = vadd.f32 %v2030_v4, %v1861_v3 }
 0x367   : > { %v2367_v6 = vadd.f32 %v2366_v1, %v2198_v2 }
 0x369   : > { %v2436_v7 = vadd.f32 %v2367_v6, %v672_v5 }
 0x36b   : > { %2500 = vst [vmem:[#allocation2 + $0x158] sm:$0xff] %v2436_v7 }
 0x36c   : > { %v2199_v9 = vpop.f32.mrf.mxu2  ;;  %v1864_v13 = vpop.f32.mrf.mxu0 }
 0x36d   : > { %v2368_v10 = vpop.f32.mrf.mxu3  ;;  %v2200_v11 = vadd.f32 %v2199_v9, %v2031_v8  ;;  %v2033_v14 = vpop.f32.mrf.mxu1 }
 0x36e   : > { %v2034_v17 = vadd.f32 %v2033_v14, %v1864_v13 }
 0x36f   : > { %v2369_v15 = vadd.f32 %v2368_v10, %v2200_v11 }
 0x371   : > { %v2437_v16 = vadd.f32 %v2369_v15, %v673_v12 }
 0x373   : > { %2501 = vst [vmem:[#allocation2 + $0x10] sm:$0xff] %v2437_v16 }
 0x374   : > { %v2202_v18 = vpop.f32.mrf.mxu2  ;;  %v1866_v23 = vpop.f32.mrf.mxu0 }
 0x375   : > { %v2371_v19 = vpop.f32.mrf.mxu3  ;;  %v2203_v20 = vadd.f32 %v2202_v18, %v2034_v17  ;;  %v2035_v24 = vpop.f32.mrf.mxu1 }
 0x376   : > { %v2036_v26 = vadd.f32 %v2035_v24, %v1866_v23 }
 0x377   : > { %v2372_v22 = vadd.f32 %v2371_v19, %v2203_v20 }
 0x379   : > { %v2438_v25 = vadd.f32 %v2372_v22, %v674_v21 }
 0x37b   : > { %2502 = vst [vmem:[#allocation2 + $0x58] sm:$0xff] %v2438_v25 }
 0x37c   : > { %v2204_v27 = vpop.f32.mrf.mxu2 }
 0x37d   : > { %v2205_v28 = vadd.f32 %v2204_v27, %v2036_v26  ;;  %v2373_v30 = vpop.f32.mrf.mxu3 }
 0x37f   : > { %v2374_v31 = vadd.f32 %v2373_v30, %v2205_v28  ;;  %2507 = sbr.rel (%p4128_p11) target bundleno = 1323 (0x52b), region = 67 }
 0x381   : > { %v2439_v32 = vadd.f32 %v2374_v31, %v675_v29 }
 0x383   : > { %2503 = vst [vmem:[#allocation2 + $0xa0] sm:$0xff] %v2439_v32 }
 0x384   : > { %v5263_v33 = vld [vmem:[#allocation2 + $0xb0] sm:$0xff]  ;;  %v5267_v35 = vld [vmem:[#allocation2 + $0xd8] sm:$0xff]  ;;  %v5277_v41 = vld [vmem:[#allocation2 + $0x168] sm:$0xff] }
 0x385   : > { %v5265_v34 = vld [vmem:[#allocation2 + $0x1b0] sm:$0xff]  ;;  %v5271_v37 = vld [vmem:[#allocation2 + $0x18] sm:$0xff]  ;;  %v5283_v45 = vld [vmem:[#allocation2 + $0x48] sm:$0xff] }
 0x386   : > { %v2572_v36 = vadd.f32 %v5265_v34, %v5263_v33  ;;  %v5274_v39 = vld [vmem:[#allocation2 + $0x50] sm:$0xff]  ;;  %v5286_v47 = vld [vmem:[#allocation2 + $0x180] sm:$0xff]  ;;  %v5292_v51 = vld [vmem:[#allocation2 + $0x118] sm:$0xff] }
 0x387   : > { %v5280_v43 = vld [vmem:[#allocation2 + $0x130] sm:$0xff]  ;;  %v5295_v53 = vld [vmem:[#allocation2 + $0x98] sm:$0xff]  ;;  %v5298_v55 = vld [vmem:[#allocation2 + $0x120] sm:$0xff] }
 0x388   : > { %v2573_v38 = vadd.f32 %v2572_v36, %v5267_v35  ;;  %v5289_v49 = vld [vmem:[#allocation2 + $0x110] sm:$0xff]  ;;  %v5304_v59 = vld [vmem:[#allocation2 + $0x108] sm:$0xff]  ;;  %v5307_v61 = vld [vmem:[#allocation2 + $0x60] sm:$0xff] }
 0x389   : > { %v5301_v57 = vld [vmem:[#allocation2 + $0x150] sm:$0xff]  ;;  %v5310_v63 = vld [vmem:[#allocation2 + $0xe0] sm:$0xff]  ;;  %v5313_v1 = vld [vmem:[#allocation2 + $0x188] sm:$0xff] }
 0x38a   : > { %v2574_v40 = vadd.f32 %v2573_v38, %v5271_v37  ;;  %v5316_v3 = vld [vmem:[#allocation2 + $0x138] sm:$0xff]  ;;  %v5319_v5 = vld [vmem:[#allocation2 + $0x140] sm:$0xff]  ;;  %v5325_v9 = vld [vmem:[#allocation2 + $0x1a8] sm:$0xff] }
 0x38b   : > { %v5322_v7 = vld [vmem:[#allocation2 + $0x80] sm:$0xff]  ;;  %v5328_v11 = vld [vmem:[#allocation2 + $0x1b8] sm:$0xff]  ;;  %v5331_v13 = vld [vmem:[#allocation2 + $0x28] sm:$0xff] }
 0x38c   : > { %v2575_v42 = vadd.f32 %v2574_v40, %v5274_v39  ;;  %v5334_v15 = vld [vmem:[#allocation2 + $0x1e8] sm:$0xff]  ;;  %v5337_v17 = vld [vmem:[#allocation2 + $0xf8] sm:$0xff]  ;;  %v5340_v19 = vld [vmem:[#allocation2 + $0x160] sm:$0xff] }
 0x38d   : > { %v5343_v21 = vld [vmem:[#allocation2 + $0x30] sm:$0xff]  ;;  %v5346_v23 = vld [vmem:[#allocation2 + $0x1e0] sm:$0xff]  ;;  %v5355_v29 = vld [vmem:[#allocation2 + $0x8] sm:$0xff] }
 0x38e   : > { %v2576_v44 = vadd.f32 %v2575_v42, %v5277_v41  ;;  %v5349_v25 = vld [vmem:[#allocation2] sm:$0xff]  ;;  %v5352_v27 = vld [vmem:[#allocation2 + $0xf0] sm:$0xff]  ;;  %6186 = vst [vmem:[#allocation5_spill] sm:$0xff] %v5355_v29  ;;  %v5358_v31 = vld [vmem:[#allocation2 + $0x148] sm:$0xff] }
 0x38f   : > { %6185 = vst [vmem:[#allocation4_spill] sm:$0xff] %v5352_v27  ;;  %v5361_v36 = vld [vmem:[#allocation2 + $0x1d0] sm:$0xff]  ;;  %v5364_v40 = vld [vmem:[#allocation2 + $0x100] sm:$0xff] }
 0x390   : > { %v2577_v46 = vadd.f32 %v2576_v44, %v5280_v43  ;;  %6187 = vst [vmem:[#allocation6_spill] sm:$0xff] %v5358_v31  ;;  %v5367_v44 = vld [vmem:[#allocation2 + $0xc8] sm:$0xff] }
 0x391   : > { %6188 = vst [vmem:[#allocation7_spill] sm:$0xff] %v5361_v36 }
 0x392   : > { %v2578_v48 = vadd.f32 %v2577_v46, %v5283_v45  ;;  %6189 = vst [vmem:[#allocation8_spill] sm:$0xff] %v5364_v40 }
 0x393   : > { %6190 = vst [vmem:[#allocation9_spill] sm:$0xff] %v5367_v44 }
 0x394   : > { %v2579_v50 = vadd.f32 %v2578_v48, %v5286_v47  ;;  %v5370_v48 = vld [vmem:[#allocation2 + $0x40] sm:$0xff] }
 0x395   : > { %6191 = vst [vmem:[#allocation10_spill] sm:$0xff] %v5370_v48 }
 0x396   : > { %v2580_v52 = vadd.f32 %v2579_v50, %v5289_v49 }
 0x398   : > { %v2581_v54 = vadd.f32 %v2580_v52, %v5292_v51  ;;  %v5373_v52 = vld [vmem:[#allocation2 + $0x1f8] sm:$0xff] }
 0x399   : > { %6192 = vst [vmem:[#allocation11_spill] sm:$0xff] %v5373_v52 }
 0x39a   : > { %v2582_v56 = vadd.f32 %v2581_v54, %v5295_v53 }
 0x39c   : > { %v2583_v58 = vadd.f32 %v2582_v56, %v5298_v55  ;;  %v5376_v56 = vld [vmem:[#allocation2 + $0x20] sm:$0xff] }
 0x39d   : > { %6193 = vst [vmem:[#allocation12_spill] sm:$0xff] %v5376_v56 }
 0x39e   : > { %v2584_v60 = vadd.f32 %v2583_v58, %v5301_v57 }
 0x3a0   : > { %v2585_v62 = vadd.f32 %v2584_v60, %v5304_v59  ;;  %v5379_v60 = vld [vmem:[#allocation2 + $0x128] sm:$0xff] }
 0x3a1   : > { %6194 = vst [vmem:[#allocation13_spill] sm:$0xff] %v5379_v60 }
 0x3a2   : > { %v2586_v0 = vadd.f32 %v2585_v62, %v5307_v61 }
 0x3a4   : > { %v2587_v2 = vadd.f32 %v2586_v0, %v5310_v63  ;;  %v5382_v0 = vld [vmem:[#allocation2 + $0x1a0] sm:$0xff] }
 0x3a5   : > { %6195 = vst [vmem:[#allocation14_spill] sm:$0xff] %v5382_v0 }
 0x3a6   : > { %v2588_v4 = vadd.f32 %v2587_v2, %v5313_v1 }
 0x3a8   : > { %v2589_v6 = vadd.f32 %v2588_v4, %v5316_v3  ;;  %v5385_v4 = vld [vmem:[#allocation2 + $0x1f0] sm:$0xff] }
 0x3a9   : > { %6196 = vst [vmem:[#allocation15_spill] sm:$0xff] %v5385_v4 }
 0x3aa   : > { %v2590_v8 = vadd.f32 %v2589_v6, %v5319_v5 }
 0x3ac   : > { %v2591_v10 = vadd.f32 %v2590_v8, %v5322_v7  ;;  %v5388_v8 = vld [vmem:[#allocation2 + $0xe8] sm:$0xff] }
 0x3ad   : > { %6197 = vst [vmem:[#allocation16_spill] sm:$0xff] %v5388_v8 }
 0x3ae   : > { %v2592_v12 = vadd.f32 %v2591_v10, %v5325_v9 }
 0x3b0   : > { %v2593_v14 = vadd.f32 %v2592_v12, %v5328_v11  ;;  %v5391_v12 = vld [vmem:[#allocation2 + $0x78] sm:$0xff] }
 0x3b1   : > { %6198 = vst [vmem:[#allocation17_spill] sm:$0xff] %v5391_v12 }
 0x3b2   : > { %v2594_v16 = vadd.f32 %v2593_v14, %v5331_v13 }
 0x3b4   : > { %v2595_v18 = vadd.f32 %v2594_v16, %v5334_v15  ;;  %v5394_v16 = vld [vmem:[#allocation2 + $0x70] sm:$0xff] }
 0x3b5   : > { %6199 = vst [vmem:[#allocation18_spill] sm:$0xff] %v5394_v16 }
 0x3b6   : > { %v2596_v20 = vadd.f32 %v2595_v18, %v5337_v17 }
 0x3b8   : > { %v2597_v22 = vadd.f32 %v2596_v20, %v5340_v19  ;;  %v2553_v20 = vld [vmem:[#allocation2 + $0x90] sm:$0xff] }
 0x3ba   : > { %v2598_v24 = vadd.f32 %v2597_v22, %v5343_v21 }
 0x3bc   : > { %v2599_v26 = vadd.f32 %v2598_v24, %v5346_v23  ;;  %v2554_v24 = vld [vmem:[#allocation2 + $0x1d8] sm:$0xff] }
 0x3be   : > { %v2600_v28 = vadd.f32 %v2599_v26, %v5349_v25 }
 0x3c0   : > { %v2601_v30 = vadd.f32 %v2600_v28, %v5352_v27  ;;  %v2555_v28 = vld [vmem:[#allocation2 + $0xd0] sm:$0xff] }
 0x3c2   : > { %v2602_v32 = vadd.f32 %v2601_v30, %v5355_v29 }
 0x3c4   : > { %v2603_v38 = vadd.f32 %v2602_v32, %v5358_v31  ;;  %v2556_v32 = vld [vmem:[#allocation2 + $0xb8] sm:$0xff] }
 0x3c6   : > { %v2604_v42 = vadd.f32 %v2603_v38, %v5361_v36 }
 0x3c8   : > { %v2605_v46 = vadd.f32 %v2604_v42, %v5364_v40  ;;  %v2557_v42 = vld [vmem:[#allocation2 + $0x88] sm:$0xff]  ;;  %v2571_v40 = vld [vmem:[#allocation2 + $0xa0] sm:$0xff] }
 0x3ca   : > { %v2606_v50 = vadd.f32 %v2605_v46, %v5367_v44  ;;  %v2570_v44 = vld [vmem:[#allocation2 + $0x58] sm:$0xff] }
 0x3cc   : > { %v2607_v54 = vadd.f32 %v2606_v50, %v5370_v48  ;;  %v2558_v50 = vld [vmem:[#allocation2 + $0xa8] sm:$0xff]  ;;  %v2569_v48 = vld [vmem:[#allocation2 + $0x10] sm:$0xff] }
 0x3ce   : > { %v2608_v58 = vadd.f32 %v2607_v54, %v5373_v52  ;;  %v2568_v52 = vld [vmem:[#allocation2 + $0x158] sm:$0xff] }
 0x3d0   : > { %v2609_v62 = vadd.f32 %v2608_v58, %v5376_v56  ;;  %v2559_v58 = vld [vmem:[#allocation2 + $0x1c8] sm:$0xff]  ;;  %v2567_v56 = vld [vmem:[#allocation2 + $0x1c0] sm:$0xff] }
 0x3d2   : > { %v2610_v2 = vadd.f32 %v2609_v62, %v5379_v60  ;;  %v2566_v60 = vld [vmem:[#allocation2 + $0xc0] sm:$0xff] }
 0x3d4   : > { %v2611_v6 = vadd.f32 %v2610_v2, %v5382_v0  ;;  %v2560_v2 = vld [vmem:[#allocation2 + $0x170] sm:$0xff]  ;;  %v2565_v0 = vld [vmem:[#allocation2 + $0x38] sm:$0xff] }
 0x3d6   : > { %v2612_v10 = vadd.f32 %v2611_v6, %v5385_v4  ;;  %v2563_v4 = vld [vmem:[#allocation2 + $0x190] sm:$0xff] }
 0x3d8   : > { %v2613_v14 = vadd.f32 %v2612_v10, %v5388_v8  ;;  %v2561_v10 = vld [vmem:[#allocation2 + $0x178] sm:$0xff] }
 0x3da   : > { %v2614_v18 = vadd.f32 %v2613_v14, %v5391_v12  ;;  %v2562_v14 = vld [vmem:[#allocation2 + $0x68] sm:$0xff] }
 0x3dc   : > { %v2615_v22 = vadd.f32 %v2614_v18, %v5394_v16  ;;  %v2564_v16 = vld [vmem:[#allocation2 + $0x198] sm:$0xff] }
 0x3de   : > { %v2616_v26 = vadd.f32 %v2615_v22, %v2553_v20 }
 0x3e0   : > { %v2617_v30 = vadd.f32 %v2616_v26, %v2554_v24 }
 0x3e2   : > { %v2618_v38 = vadd.f32 %v2617_v30, %v2555_v28 }
 0x3e4   : > { %v2619_v46 = vadd.f32 %v2618_v38, %v2556_v32 }
 0x3e6   : > { %v2620_v54 = vadd.f32 %v2619_v46, %v2557_v42 }
 0x3e8   : > { %v2621_v62 = vadd.f32 %v2620_v54, %v2558_v50 }
 0x3ea   : > { %v2622_v6 = vadd.f32 %v2621_v62, %v2559_v58 }
 0x3ec   : > { %v2623_v8 = vadd.f32 %v2622_v6, %v2560_v2 }
 0x3ee   : > { %v2624_v12 = vadd.f32 %v2623_v8, %v2561_v10 }
 0x3f0   : > { %v2625_v18 = vadd.f32 %v2624_v12, %v2562_v14 }
 0x3f2   : > { %v2626_v22 = vadd.f32 %v2625_v18, %v2563_v4 }
 0x3f4   : > { %v2627_v26 = vadd.f32 %v2626_v22, %v2564_v16 }
 0x3f6   : > { %v2628_v30 = vadd.f32 %v2627_v26, %v2565_v0 }
 0x3f8   : > { %v2629_v38 = vadd.f32 %v2628_v30, %v2566_v60 }
 0x3fa   : > { %v2630_v46 = vadd.f32 %v2629_v38, %v2567_v56 }
 0x3fc   : > { %v2631_v54 = vadd.f32 %v2630_v46, %v2568_v52 }
 0x3fe   : > { %v2632_v62 = vadd.f32 %v2631_v54, %v2569_v48 }
 0x400   : > { %v2633_v6 = vadd.f32 %v2632_v62, %v2570_v44 }
 0x402   : > { %v2634_v36 = vadd.f32 %v2633_v6, %v2571_v40 }
 0x404   : > { %v2635_v8 = vrot.slane %v2634_v36, 4 }
 0x406   : > { %v2636_v31 = vadd.f32 %v2635_v8, %v2634_v36 }
 0x408   : > { %v2637_v12 = vrot.slane %v2636_v31, 2 }
 0x40a   : > { %v2638_v29 = vadd.f32 %v2637_v12, %v2636_v31 }
 0x40c   : > { %v2639_v18 = vrot.slane %v2638_v29, 1 }
 0x40e   : > { %v2640_v27 = vadd.f32 %v2639_v18, %v2638_v29 }
 0x410   : > { %v5398_v22 = vmul.f32 0.001953125, %v2640_v27 }
 0x412   : > { %v5401_v26 = vsub.f32 %v2553_v20, %v5398_v22  ;;  %v5404_v30 = vsub.f32 %v2554_v24, %v5398_v22  ;;  %v5407_v38 = vsub.f32 %v2555_v28, %v5398_v22  ;;  %v5410_v46 = vsub.f32 %v2556_v32, %v5398_v22 }
 0x413   : > { %v5413_v36 = vsub.f32 %v2557_v42, %v5398_v22  ;;  %v5416_v31 = vsub.f32 %v2558_v50, %v5398_v22  ;;  %v5419_v27 = vsub.f32 %v2559_v58, %v5398_v22  ;;  %v5422_v29 = vsub.f32 %v2560_v2, %v5398_v22 }
 0x414   : > { %v5425_v20 = vsub.f32 %v2561_v10, %v5398_v22  ;;  %v5428_v24 = vsub.f32 %v2562_v14, %v5398_v22  ;;  %v5431_v28 = vsub.f32 %v2563_v4, %v5398_v22  ;;  %v5434_v32 = vsub.f32 %v2564_v16, %v5398_v22 }
 0x415   : > { %v5437_v42 = vsub.f32 %v2565_v0, %v5398_v22  ;;  %v5440_v50 = vsub.f32 %v2566_v60, %v5398_v22  ;;  %v5443_v58 = vsub.f32 %v2567_v56, %v5398_v22  ;;  %v5446_v2 = vsub.f32 %v2568_v52, %v5398_v22 }
 0x416   : > { %6200 = vst [vmem:[#allocation19_spill] sm:$0xff] %v5434_v32  ;;  %v5449_v10 = vsub.f32 %v2569_v48, %v5398_v22  ;;  %v5452_v4 = vsub.f32 %v2570_v44, %v5398_v22  ;;  %v5455_v16 = vsub.f32 %v2571_v40, %v5398_v22  ;;  %v5459_v0 = vsub.f32 %v5263_v33, %v5398_v22 }
 0x417   : > { %6201 = vst [vmem:[#allocation20_spill] sm:$0xff] %v5437_v42  ;;  %v5463_v56 = vsub.f32 %v5265_v34, %v5398_v22  ;;  %v5467_v52 = vsub.f32 %v5267_v35, %v5398_v22  ;;  %v5471_v48 = vsub.f32 %v5271_v37, %v5398_v22  ;;  %v5479_v33 = vsub.f32 %v5274_v39, %v5398_v22 }
 0x418   : > { %6202 = vst [vmem:[#allocation21_spill] sm:$0xff] %v5440_v50  ;;  %v2706_v40 = vmul.f32 %v5459_v0, %v5459_v0  ;;  %v5485_v35 = vsub.f32 %v5277_v41, %v5398_v22  ;;  %v5491_v14 = vsub.f32 %v5280_v43, %v5398_v22  ;;  %v5497_v62 = vsub.f32 %v5283_v45, %v5398_v22 }
 0x419   : > { %6203 = vst [vmem:[#allocation22_spill] sm:$0xff] %v5443_v58  ;;  %v2707_v44 = vmul.f32 %v5463_v56, %v5463_v56  ;;  %v2708_v34 = vmul.f32 %v5467_v52, %v5467_v52  ;;  %v2709_v37 = vmul.f32 %v5471_v48, %v5471_v48  ;;  %v2710_v54 = vmul.f32 %v5479_v33, %v5479_v33 }
 0x41a   : > { %6204 = vst [vmem:[#allocation23_spill] sm:$0xff] %v5446_v2  ;;  %v2711_v41 = vmul.f32 %v5485_v35, %v5485_v35  ;;  %v5503_v8 = vsub.f32 %v5286_v47, %v5398_v22  ;;  %v2712_v43 = vmul.f32 %v5491_v14, %v5491_v14  ;;  %v5509_v18 = vsub.f32 %v5289_v49, %v5398_v22 }
 0x41b   : > { %6205 = vst [vmem:[#allocation24_spill] sm:$0xff] %v5449_v10  ;;  %v2770_v60 = vadd.f32 %v2707_v44, %v2706_v40  ;;  %v2713_v45 = vmul.f32 %v5497_v62, %v5497_v62  ;;  %v5515_v44 = vsub.f32 %v5292_v51, %v5398_v22 }
 0x41c   : > { %6206 = vst [vmem:[#allocation25_spill] sm:$0xff] %v5452_v4  ;;  %v2714_v47 = vmul.f32 %v5503_v8, %v5503_v8  ;;  %v2715_v49 = vmul.f32 %v5509_v18, %v5509_v18 }
 0x41d   : > { %v2771_v39 = vadd.f32 %v2770_v60, %v2708_v34  ;;  %v2716_v51 = vmul.f32 %v5515_v44, %v5515_v44 }
 0x41f   : > { %v2772_v6 = vadd.f32 %v2771_v39, %v2709_v37  ;;  %v5521_v37 = vsub.f32 %v5295_v53, %v5398_v22 }
 0x421   : > { %v2773_v12 = vadd.f32 %v2772_v6, %v2710_v54  ;;  %v5527_v54 = vsub.f32 %v5298_v55, %v5398_v22  ;;  %v2717_v53 = vmul.f32 %v5521_v37, %v5521_v37 }
 0x423   : > { %v2774_v40 = vadd.f32 %v2773_v12, %v2711_v41  ;;  %v5533_v41 = vsub.f32 %v5301_v57, %v5398_v22  ;;  %v2718_v55 = vmul.f32 %v5527_v54, %v5527_v54 }
 0x425   : > { %v2775_v34 = vadd.f32 %v2774_v40, %v2712_v43  ;;  %v5539_v43 = vsub.f32 %v5304_v59, %v5398_v22  ;;  %v2719_v57 = vmul.f32 %v5533_v41, %v5533_v41 }
 0x427   : > { %v2776_v60 = vadd.f32 %v2775_v34, %v2713_v45  ;;  %v5545_v45 = vsub.f32 %v5307_v61, %v5398_v22  ;;  %v2720_v59 = vmul.f32 %v5539_v43, %v5539_v43 }
 0x429   : > { %v2777_v39 = vadd.f32 %v2776_v60, %v2714_v47  ;;  %v5551_v47 = vsub.f32 %v5310_v63, %v5398_v22  ;;  %v2721_v61 = vmul.f32 %v5545_v45, %v5545_v45 }
 0x42b   : > { %v2778_v6 = vadd.f32 %v2777_v39, %v2715_v49  ;;  %v5557_v49 = vsub.f32 %v5313_v1, %v5398_v22  ;;  %v2722_v63 = vmul.f32 %v5551_v47, %v5551_v47 }
 0x42d   : > { %v2779_v12 = vadd.f32 %v2778_v6, %v2716_v51  ;;  %v5563_v51 = vsub.f32 %v5316_v3, %v5398_v22  ;;  %v2723_v1 = vmul.f32 %v5557_v49, %v5557_v49 }
 0x42f   : > { %v2780_v40 = vadd.f32 %v2779_v12, %v2717_v53  ;;  %v5569_v53 = vsub.f32 %v5319_v5, %v5398_v22  ;;  %v2724_v3 = vmul.f32 %v5563_v51, %v5563_v51 }
 0x431   : > { %v2781_v34 = vadd.f32 %v2780_v40, %v2718_v55  ;;  %v5575_v55 = vsub.f32 %v5322_v7, %v5398_v22  ;;  %v2725_v5 = vmul.f32 %v5569_v53, %v5569_v53 }
 0x433   : > { %v2782_v60 = vadd.f32 %v2781_v34, %v2719_v57  ;;  %v5581_v57 = vsub.f32 %v5325_v9, %v5398_v22  ;;  %v2726_v7 = vmul.f32 %v5575_v55, %v5575_v55 }
 0x435   : > { %v2783_v39 = vadd.f32 %v2782_v60, %v2720_v59  ;;  %v5587_v59 = vsub.f32 %v5328_v11, %v5398_v22  ;;  %v2727_v9 = vmul.f32 %v5581_v57, %v5581_v57 }
 0x437   : > { %v2784_v6 = vadd.f32 %v2783_v39, %v2721_v61  ;;  %v5593_v61 = vsub.f32 %v5331_v13, %v5398_v22  ;;  %v2728_v11 = vmul.f32 %v5587_v59, %v5587_v59 }
 0x439   : > { %v2785_v12 = vadd.f32 %v2784_v6, %v2722_v63  ;;  %v5599_v63 = vsub.f32 %v5334_v15, %v5398_v22  ;;  %v2729_v13 = vmul.f32 %v5593_v61, %v5593_v61 }
 0x43b   : > { %v2786_v40 = vadd.f32 %v2785_v12, %v2723_v1  ;;  %v5605_v1 = vsub.f32 %v5337_v17, %v5398_v22  ;;  %v2730_v15 = vmul.f32 %v5599_v63, %v5599_v63 }
 0x43d   : > { %v2787_v34 = vadd.f32 %v2786_v40, %v2724_v3  ;;  %v5611_v3 = vsub.f32 %v5340_v19, %v5398_v22  ;;  %v2731_v17 = vmul.f32 %v5605_v1, %v5605_v1 }
 0x43f   : > { %v2788_v60 = vadd.f32 %v2787_v34, %v2725_v5  ;;  %v5617_v5 = vsub.f32 %v5343_v21, %v5398_v22  ;;  %v2732_v19 = vmul.f32 %v5611_v3, %v5611_v3 }
 0x441   : > { %v2789_v39 = vadd.f32 %v2788_v60, %v2726_v7  ;;  %6207 = vst [vmem:[#allocation26_spill] sm:$0xff] %v5617_v5  ;;  %v5623_v7 = vsub.f32 %v5346_v23, %v5398_v22  ;;  %v2733_v21 = vmul.f32 %v5617_v5, %v5617_v5 }
 0x443   : > { %v2790_v6 = vadd.f32 %v2789_v39, %v2727_v9  ;;  %6208 = vst [vmem:[#allocation27_spill] sm:$0xff] %v5623_v7  ;;  %v5629_v9 = vsub.f32 %v5349_v25, %v5398_v22  ;;  %v2734_v23 = vmul.f32 %v5623_v7, %v5623_v7 }
 0x445   : > { %v2791_v12 = vadd.f32 %v2790_v6, %v2728_v11  ;;  %6209 = vst [vmem:[#allocation28_spill] sm:$0xff] %v5629_v9  ;;  %v6210_v11 = vld [vmem:[#allocation4_spill] sm:$0xff]  ;;  %v6212_v6 = vld [vmem:[#allocation5_spill] sm:$0xff]  ;;  %v2735_v25 = vmul.f32 %v5629_v9, %v5629_v9 }
 0x446   : > { %v5635_v39 = vsub.f32 %v6210_v11, %v5398_v22  ;;  %v6216_v11 = vld [vmem:[#allocation7_spill] sm:$0xff] }
 0x447   : > { %v2792_v40 = vadd.f32 %v2791_v12, %v2729_v13  ;;  %v5641_v12 = vsub.f32 %v6212_v6, %v5398_v22  ;;  %v5653_v7 = vsub.f32 %v6216_v11, %v5398_v22  ;;  %v6218_v6 = vld [vmem:[#allocation8_spill] sm:$0xff]  ;;  %v6222_v11 = vld [vmem:[#allocation10_spill] sm:$0xff] }
 0x448   : > { %6211 = vst [vmem:[#allocation4_spill] sm:$0xff] %v5635_v39  ;;  %v5659_v9 = vsub.f32 %v6218_v6, %v5398_v22  ;;  %v6224_v6 = vld [vmem:[#allocation11_spill] sm:$0xff] }
 0x449   : > { %v2793_v34 = vadd.f32 %v2792_v40, %v2730_v15  ;;  %6213 = vst [vmem:[#allocation5_spill] sm:$0xff] %v5641_v12  ;;  %v6214_v40 = vld [vmem:[#allocation6_spill] sm:$0xff] }
 0x44a   : > { %v5647_v5 = vsub.f32 %v6214_v40, %v5398_v22  ;;  %6217 = vst [vmem:[#allocation7_spill] sm:$0xff] %v5653_v7  ;;  %v6220_v40 = vld [vmem:[#allocation9_spill] sm:$0xff] }
 0x44b   : > { %v2794_v60 = vadd.f32 %v2793_v34, %v2731_v17  ;;  %v2736_v17 = vmul.f32 %v5635_v39, %v5635_v39  ;;  %6219 = vst [vmem:[#allocation8_spill] sm:$0xff] %v5659_v9  ;;  %v5665_v39 = vsub.f32 %v6220_v40, %v5398_v22  ;;  %v6226_v40 = vld [vmem:[#allocation12_spill] sm:$0xff] }
 0x44c   : > { %6215 = vst [vmem:[#allocation6_spill] sm:$0xff] %v5647_v5 }
 0x44d   : > { %v2795_v13 = vadd.f32 %v2794_v60, %v2732_v19  ;;  %v2737_v19 = vmul.f32 %v5641_v12, %v5641_v12  ;;  %6221 = vst [vmem:[#allocation9_spill] sm:$0xff] %v5665_v39  ;;  %v5671_v12 = vsub.f32 %v6222_v11, %v5398_v22  ;;  %v6228_v11 = vld [vmem:[#allocation13_spill] sm:$0xff] }
 0x44f   : > { %v2796_v15 = vadd.f32 %v2795_v13, %v2733_v21  ;;  %v2738_v21 = vmul.f32 %v5647_v5, %v5647_v5  ;;  %6223 = vst [vmem:[#allocation10_spill] sm:$0xff] %v5671_v12  ;;  %v5677_v5 = vsub.f32 %v6224_v6, %v5398_v22  ;;  %v6230_v6 = vld [vmem:[#allocation14_spill] sm:$0xff] }
 0x451   : > { %v2797_v34 = vadd.f32 %v2796_v15, %v2734_v23  ;;  %v2739_v23 = vmul.f32 %v5653_v7, %v5653_v7  ;;  %6225 = vst [vmem:[#allocation11_spill] sm:$0xff] %v5677_v5  ;;  %v5683_v7 = vsub.f32 %v6226_v40, %v5398_v22  ;;  %v6231_v40 = vld [vmem:[#allocation15_spill] sm:$0xff] }
 0x453   : > { %v2798_v60 = vadd.f32 %v2797_v34, %v2735_v25  ;;  %v2740_v25 = vmul.f32 %v5659_v9, %v5659_v9  ;;  %6227 = vst [vmem:[#allocation12_spill] sm:$0xff] %v5683_v7  ;;  %v5689_v9 = vsub.f32 %v6228_v11, %v5398_v22  ;;  %v6233_v11 = vld [vmem:[#allocation16_spill] sm:$0xff] }
 0x455   : > { %v2799_v13 = vadd.f32 %v2798_v60, %v2736_v17  ;;  %v2741_v17 = vmul.f32 %v5665_v39, %v5665_v39  ;;  %6229 = vst [vmem:[#allocation13_spill] sm:$0xff] %v5689_v9  ;;  %v5695_v39 = vsub.f32 %v6230_v6, %v5398_v22  ;;  %v6234_v6 = vld [vmem:[#allocation17_spill] sm:$0xff] }
 0x457   : > { %v2800_v15 = vadd.f32 %v2799_v13, %v2737_v19  ;;  %v2742_v19 = vmul.f32 %v5671_v12, %v5671_v12  ;;  %v5701_v12 = vsub.f32 %v6231_v40, %v5398_v22  ;;  %v6235_v40 = vld [vmem:[#allocation18_spill] sm:$0xff] }
 0x459   : > { %v2801_v34 = vadd.f32 %v2800_v15, %v2738_v21  ;;  %v2743_v21 = vmul.f32 %v5677_v5, %v5677_v5  ;;  %6232 = vst [vmem:[#allocation14_spill] sm:$0xff] %v5701_v12  ;;  %v5707_v5 = vsub.f32 %v6233_v11, %v5398_v22 }
 0x45b   : > { %v2802_v60 = vadd.f32 %v2801_v34, %v2739_v23  ;;  %v2744_v23 = vmul.f32 %v5683_v7, %v5683_v7  ;;  %v5713_v7 = vsub.f32 %v6234_v6, %v5398_v22 }
 0x45d   : > { %v2803_v13 = vadd.f32 %v2802_v60, %v2740_v25  ;;  %v2745_v25 = vmul.f32 %v5689_v9, %v5689_v9  ;;  %v5719_v9 = vsub.f32 %v6235_v40, %v5398_v22  ;;  %v2749_v11 = vmul.f32 %v5713_v7, %v5713_v7 }
 0x45e   : > { %v2752_v22 = vmul.f32 %v5404_v30, %v5404_v30  ;;  %v2753_v40 = vmul.f32 %v5407_v38, %v5407_v38 }
 0x45f   : > { %v2804_v15 = vadd.f32 %v2803_v13, %v2741_v17  ;;  %v2746_v17 = vmul.f32 %v5695_v39, %v5695_v39 }
 0x461   : > { %v2805_v34 = vadd.f32 %v2804_v15, %v2742_v19  ;;  %v2747_v19 = vmul.f32 %v5701_v12, %v5701_v12  ;;  %v2751_v12 = vmul.f32 %v5401_v26, %v5401_v26 }
 0x463   : > { %v2806_v60 = vadd.f32 %v2805_v34, %v2743_v21  ;;  %v2748_v21 = vmul.f32 %v5707_v5, %v5707_v5 }
 0x465   : > { %v2807_v13 = vadd.f32 %v2806_v60, %v2744_v23  ;;  %v2750_v60 = vmul.f32 %v5719_v9, %v5719_v9 }
 0x467   : > { %v2808_v15 = vadd.f32 %v2807_v13, %v2745_v25 }
 0x469   : > { %v2809_v34 = vadd.f32 %v2808_v15, %v2746_v17  ;;  %v2754_v15 = vmul.f32 %v5410_v46, %v5410_v46 }
 0x46b   : > { %v2810_v23 = vadd.f32 %v2809_v34, %v2747_v19  ;;  %v2755_v34 = vmul.f32 %v5413_v36, %v5413_v36 }
 0x46d   : > { %v2811_v6 = vadd.f32 %v2810_v23, %v2748_v21  ;;  %v2756_v23 = vmul.f32 %v5416_v31, %v5416_v31 }
 0x46f   : > { %v2812_v25 = vadd.f32 %v2811_v6, %v2749_v11  ;;  %v2757_v6 = vmul.f32 %v5419_v27, %v5419_v27 }
 0x471   : > { %v2813_v13 = vadd.f32 %v2812_v25, %v2750_v60  ;;  %v2758_v25 = vmul.f32 %v5422_v29, %v5422_v29 }
 0x473   : > { %v2814_v17 = vadd.f32 %v2813_v13, %v2751_v12  ;;  %v2759_v13 = vmul.f32 %v5425_v20, %v5425_v20 }
 0x475   : > { %v2815_v19 = vadd.f32 %v2814_v17, %v2752_v22  ;;  %v2760_v17 = vmul.f32 %v5428_v24, %v5428_v24 }
 0x477   : > { %v2816_v21 = vadd.f32 %v2815_v19, %v2753_v40  ;;  %v2761_v19 = vmul.f32 %v5431_v28, %v5431_v28 }
 0x479   : > { %v2817_v11 = vadd.f32 %v2816_v21, %v2754_v15  ;;  %v2762_v21 = vmul.f32 %v5434_v32, %v5434_v32 }
 0x47b   : > { %v2818_v60 = vadd.f32 %v2817_v11, %v2755_v34  ;;  %v2763_v11 = vmul.f32 %v5437_v42, %v5437_v42 }
 0x47d   : > { %v2819_v12 = vadd.f32 %v2818_v60, %v2756_v23  ;;  %v2764_v60 = vmul.f32 %v5440_v50, %v5440_v50 }
 0x47f   : > { %v2820_v22 = vadd.f32 %v2819_v12, %v2757_v6  ;;  %v2765_v12 = vmul.f32 %v5443_v58, %v5443_v58 }
 0x481   : > { %v2821_v40 = vadd.f32 %v2820_v22, %v2758_v25  ;;  %v2766_v22 = vmul.f32 %v5446_v2, %v5446_v2 }
 0x483   : > { %v2822_v15 = vadd.f32 %v2821_v40, %v2759_v13  ;;  %v2767_v40 = vmul.f32 %v5449_v10, %v5449_v10 }
 0x485   : > { %v2823_v34 = vadd.f32 %v2822_v15, %v2760_v17  ;;  %v2768_v15 = vmul.f32 %v5452_v4, %v5452_v4 }
 0x487   : > { %v2824_v23 = vadd.f32 %v2823_v34, %v2761_v19  ;;  %v2769_v34 = vmul.f32 %v5455_v16, %v5455_v16 }
 0x489   : > { %v2825_v6 = vadd.f32 %v2824_v23, %v2762_v21 }
 0x48b   : > { %v2826_v25 = vadd.f32 %v2825_v6, %v2763_v11 }
 0x48d   : > { %v2827_v13 = vadd.f32 %v2826_v25, %v2764_v60 }
 0x48f   : > { %v2828_v17 = vadd.f32 %v2827_v13, %v2765_v12 }
 0x491   : > { %v2829_v19 = vadd.f32 %v2828_v17, %v2766_v22 }
 0x493   : > { %v2830_v21 = vadd.f32 %v2829_v19, %v2767_v40 }
 0x495   : > { %v2831_v23 = vadd.f32 %v2830_v21, %v2768_v15 }
 0x497   : > { %v2832_v50 = vadd.f32 %v2831_v23, %v2769_v34 }
 0x499   : > { %v2833_v58 = vrot.slane %v2832_v50, 4 }
 0x49b   : > { %v2834_v11 = vadd.f32 %v2833_v58, %v2832_v50  ;;  %v5768_v50 = vld [vmem:[%s6146_s2] ss:$0 sm:$0xff] }
 0x49d   : > { %v2835_v6 = vrot.slane %v2834_v11, 2 }
 0x49f   : > { %v2836_v42 = vadd.f32 %v2835_v6, %v2834_v11 }
 0x4a1   : > { %v2837_v2 = vrot.slane %v2836_v42, 1 }
 0x4a3   : > { %v2838_v60 = vadd.f32 %v2837_v2, %v2836_v42 }
 0x4a5   : > { %v2839_v25 = vmul.f32 0.001953125, %v2838_v60 }
 0x4a7   : > { %v2840_v32 = vadd.f32 1e-05, %v2839_v25 }
 0x4a9   : > { %4527 = vrsqrt.f32 %v2840_v32  ;;  %vm2847_vm0 = vweird.f32 %v2840_v32 }
 0x4af   : > { %v4528_v12 = vpop.eup %4527 }
 0x4b0   : > { %v2842_v13 = vmul.f32 %v4528_v12, %v2840_v32  ;;  %vm2848_vm1 = vweird.f32 %v4528_v12  ;;  %v5779_v32 = vld [vmem:[%s6147_s3] ss:$0 sm:$0xff] }
 0x4b1   : > { %vm2849_vm2 = vmor %vm2847_vm0, %vm2848_vm1 }
 0x4b2   : > { %v2843_v10 = vmul.f32 %v4528_v12, %v2842_v13 }
 0x4b4   : > { %v2844_v4 = vmul.f32 0.5, %v2843_v10 }
 0x4b6   : > { %v2845_v22 = vsub.f32 1.5, %v2844_v4 }
 0x4b8   : > { %v2846_v40 = vmul.f32 %v4528_v12, %v2845_v22 }
 0x4ba   : > { %v5770_v58 = vsel %vm2849_vm2, %v4528_v12, %v2846_v40 }
 0x4bb   : > { %v2851_v42 = vmul.f32 %v5770_v58, %v5459_v0  ;;  %v2852_v2 = vmul.f32 %v5770_v58, %v5463_v56  ;;  %v2853_v10 = vmul.f32 %v5770_v58, %v5467_v52  ;;  %v2854_v4 = vmul.f32 %v5770_v58, %v5471_v48 }
 0x4bc   : > { %v2855_v17 = vmul.f32 %v5770_v58, %v5479_v33  ;;  %v2856_v0 = vmul.f32 %v5770_v58, %v5485_v35  ;;  %v2857_v56 = vmul.f32 %v5770_v58, %v5491_v14  ;;  %v2858_v15 = vmul.f32 %v5770_v58, %v5497_v62 }
 0x4bd   : > { %v2919_v19 = vmul.f32 %v5768_v50, %v2851_v42  ;;  %v2920_v34 = vmul.f32 %v5768_v50, %v2852_v2  ;;  %v2921_v52 = vmul.f32 %v5768_v50, %v2853_v10  ;;  %v2922_v48 = vmul.f32 %v5768_v50, %v2854_v4 }
 0x4be   : > { %v2923_v21 = vmul.f32 %v5768_v50, %v2855_v17  ;;  %v2924_v33 = vmul.f32 %v5768_v50, %v2856_v0  ;;  %v2925_v35 = vmul.f32 %v5768_v50, %v2857_v56  ;;  %v2926_v23 = vmul.f32 %v5768_v50, %v2858_v15 }
 0x4bf   : > { %v2987_v14 = vadd.f32 %v5779_v32, %v2919_v19  ;;  %v2988_v62 = vadd.f32 %v5779_v32, %v2920_v34  ;;  %v2989_v11 = vadd.f32 %v5779_v32, %v2921_v52  ;;  %v2990_v6 = vadd.f32 %v5779_v32, %v2922_v48 }
 0x4c0   : > { %v2991_v60 = vadd.f32 %v5779_v32, %v2923_v21  ;;  %v2992_v25 = vadd.f32 %v5779_v32, %v2924_v33  ;;  %v2993_v12 = vadd.f32 %v5779_v32, %v2925_v35  ;;  %v2994_v13 = vadd.f32 %v5779_v32, %v2926_v23 }
 0x4c1   : > { %vm3051_vm3 = vcmp.ge.f32.partialorder %v2987_v14, 0.0  ;;  %vm3052_vm4 = vcmp.ge.f32.partialorder %v2988_v62, 0.0  ;;  %v3115_v22 = vmul.f32 0.2, %v2987_v14  ;;  %v3116_v40 = vmul.f32 0.2, %v2988_v62 }
 0x4c2   : > { %vm3053_vm5 = vcmp.ge.f32.partialorder %v2989_v11, 0.0  ;;  %vm3054_vm6 = vcmp.ge.f32.partialorder %v2990_v6, 0.0  ;;  %v3117_v42 = vmul.f32 0.2, %v2989_v11  ;;  %v3118_v2 = vmul.f32 0.2, %v2990_v6 }
 0x4c3   : > { %v3179_v10 = vsel %vm3051_vm3, %v2987_v14, %v3115_v22  ;;  %v3180_v4 = vsel %vm3052_vm4, %v2988_v62, %v3116_v40  ;;  %vm3055_vm7 = vcmp.ge.f32.partialorder %v2991_v60, 0.0  ;;  %vm3056_vm8 = vcmp.ge.f32.partialorder %v2992_v25, 0.0 }
 0x4c4   : > { %v4296_v17 = vpack.c.bf16 %v3180_v4, %v3179_v10  ;;  %v3181_v0 = vsel %vm3053_vm5, %v2989_v11, %v3117_v42  ;;  %v3182_v56 = vsel %vm3054_vm6, %v2990_v6, %v3118_v2  ;;  %v3119_v15 = vmul.f32 0.2, %v2991_v60 }
 0x4c5   : > { %v4301_v19 = vpack.c.bf16 %v3182_v56, %v3181_v0  ;;  %v3120_v34 = vmul.f32 0.2, %v2992_v25  ;;  %vm3057_vm9 = vcmp.ge.f32.partialorder %v2993_v12, 0.0  ;;  %vm3058_vm10 = vcmp.ge.f32.partialorder %v2994_v13, 0.0 }
 0x4c6   : > { %4297 = vst [vmem:[%s6148_s4] sm:$0xff] %v4296_v17   ;;  %v3183_v52 = vsel %vm3055_vm7, %v2991_v60, %v3119_v15  ;;  %v3121_v48 = vmul.f32 0.2, %v2993_v12  ;;  %v3122_v21 = vmul.f32 0.2, %v2994_v13  ;;  %v2859_v33 = vmul.f32 %v5770_v58, %v5503_v8 }
 0x4c7   : > { %4453 = vst [vmem:[%s6148_s4 + $0x8] sm:$0xff] %v4301_v19   ;;  %v3184_v35 = vsel %vm3056_vm8, %v2992_v25, %v3120_v34  ;;  %v2860_v23 = vmul.f32 %v5770_v58, %v5509_v18  ;;  %v2861_v14 = vmul.f32 %v5770_v58, %v5515_v44  ;;  %v2862_v62 = vmul.f32 %v5770_v58, %v5521_v37 }
 0x4c8   : > { %v4306_v11 = vpack.c.bf16 %v3184_v35, %v3183_v52  ;;  %v3185_v6 = vsel %vm3057_vm9, %v2993_v12, %v3121_v48  ;;  %v3186_v60 = vsel %vm3058_vm10, %v2994_v13, %v3122_v21  ;;  %v2927_v22 = vmul.f32 %v5768_v50, %v2859_v33 }
 0x4c9   : > { %v4311_v8 = vpack.c.bf16 %v3186_v60, %v3185_v6  ;;  %v2928_v40 = vmul.f32 %v5768_v50, %v2860_v23  ;;  %v2929_v42 = vmul.f32 %v5768_v50, %v2861_v14  ;;  %v2930_v25 = vmul.f32 %v5768_v50, %v2862_v62 }
 0x4ca   : > { %4454 = vst [vmem:[%s6148_s4 + $0x10] sm:$0xff] %v4306_v11   ;;  %v2995_v18 = vadd.f32 %v5779_v32, %v2927_v22  ;;  %v2863_v44 = vmul.f32 %v5770_v58, %v5527_v54  ;;  %v2864_v37 = vmul.f32 %v5770_v58, %v5533_v41  ;;  %v2865_v12 = vmul.f32 %v5770_v58, %v5539_v43 }
 0x4cb   : > { %4455 = vst [vmem:[%s6148_s4 + $0x18] sm:$0xff] %v4311_v8   ;;  %v2996_v13 = vadd.f32 %v5779_v32, %v2928_v40  ;;  %v2997_v2 = vadd.f32 %v5779_v32, %v2929_v42  ;;  %v2998_v10 = vadd.f32 %v5779_v32, %v2930_v25  ;;  %v2866_v4 = vmul.f32 %v5770_v58, %v5545_v45 }
 0x4cc   : > { %vm3059_vm11 = vcmp.ge.f32.partialorder %v2995_v18, 0.0  ;;  %v3123_v54 = vmul.f32 0.2, %v2995_v18  ;;  %v2931_v41 = vmul.f32 %v5768_v50, %v2863_v44  ;;  %v2932_v17 = vmul.f32 %v5768_v50, %v2864_v37 }
 0x4cd   : > { %vm3060_vm12 = vcmp.ge.f32.partialorder %v2996_v13, 0.0  ;;  %v3124_v43 = vmul.f32 0.2, %v2996_v13  ;;  %vm3061_vm13 = vcmp.ge.f32.partialorder %v2997_v2, 0.0  ;;  %vm3062_vm14 = vcmp.ge.f32.partialorder %v2998_v10, 0.0 }
 0x4ce   : > { %v3187_v0 = vsel %vm3059_vm11, %v2995_v18, %v3123_v54  ;;  %v3125_v56 = vmul.f32 0.2, %v2997_v2  ;;  %v3126_v15 = vmul.f32 0.2, %v2998_v10  ;;  %v2999_v19 = vadd.f32 %v5779_v32, %v2931_v41 }
 0x4cf   : > { %v3188_v34 = vsel %vm3060_vm12, %v2996_v13, %v3124_v43  ;;  %v3000_v52 = vadd.f32 %v5779_v32, %v2932_v17  ;;  %v2933_v45 = vmul.f32 %v5768_v50, %v2865_v12  ;;  %v2934_v48 = vmul.f32 %v5768_v50, %v2866_v4 }
 0x4d0   : > { %v4316_v21 = vpack.c.bf16 %v3188_v34, %v3187_v0  ;;  %v3189_v33 = vsel %vm3061_vm13, %v2997_v2, %v3125_v56  ;;  %v3190_v35 = vsel %vm3062_vm14, %v2998_v10, %v3126_v15  ;;  %vm3063_vm15 = vcmp.ge.f32.partialorder %v2999_v19, 0.0 }
 0x4d1   : > { %v4321_v23 = vpack.c.bf16 %v3190_v35, %v3189_v33  ;;  %vm3064_vm0 = vcmp.ge.f32.partialorder %v3000_v52, 0.0  ;;  %v3127_v14 = vmul.f32 0.2, %v2999_v19  ;;  %v3128_v62 = vmul.f32 0.2, %v3000_v52 }
 0x4d2   : > { %4456 = vst [vmem:[%s6148_s4 + $0x20] sm:$0xff] %v4316_v21   ;;  %v3001_v11 = vadd.f32 %v5779_v32, %v2933_v45  ;;  %v3002_v6 = vadd.f32 %v5779_v32, %v2934_v48  ;;  %v2867_v60 = vmul.f32 %v5770_v58, %v5551_v47  ;;  %v2868_v22 = vmul.f32 %v5770_v58, %v5557_v49 }
 0x4d3   : > { %4457 = vst [vmem:[%s6148_s4 + $0x28] sm:$0xff] %v4321_v23   ;;  %v3191_v8 = vsel %vm3063_vm15, %v2999_v19, %v3127_v14  ;;  %v3192_v40 = vsel %vm3064_vm0, %v3000_v52, %v3128_v62  ;;  %v2869_v42 = vmul.f32 %v5770_v58, %v5563_v51  ;;  %v2870_v25 = vmul.f32 %v5770_v58, %v5569_v53 }
 0x4d4   : > { %v4326_v18 = vpack.c.bf16 %v3192_v40, %v3191_v8  ;;  %vm3065_vm1 = vcmp.ge.f32.partialorder %v3001_v11, 0.0  ;;  %vm3066_vm2 = vcmp.ge.f32.partialorder %v3002_v6, 0.0  ;;  %v3129_v44 = vmul.f32 0.2, %v3001_v11 }
 0x4d5   : > { %v3130_v47 = vmul.f32 0.2, %v3002_v6  ;;  %v2935_v37 = vmul.f32 %v5768_v50, %v2867_v60  ;;  %v2936_v49 = vmul.f32 %v5768_v50, %v2868_v22  ;;  %v2937_v12 = vmul.f32 %v5768_v50, %v2869_v42 }
 0x4d6   : > { %4458 = vst [vmem:[%s6148_s4 + $0x30] sm:$0xff] %v4326_v18   ;;  %v3193_v13 = vsel %vm3065_vm1, %v3001_v11, %v3129_v44  ;;  %v2938_v51 = vmul.f32 %v5768_v50, %v2870_v25  ;;  %v2871_v53 = vmul.f32 %v5770_v58, %v5575_v55  ;;  %v2872_v2 = vmul.f32 %v5770_v58, %v5581_v57  ;;  %v6236_v44 = vld [vmem:[#allocation26_spill] sm:$0xff] }
 0x4d7   : > { %v3194_v10 = vsel %vm3066_vm2, %v3002_v6, %v3130_v47  ;;  %v3003_v4 = vadd.f32 %v5779_v32, %v2935_v37  ;;  %v3004_v54 = vadd.f32 %v5779_v32, %v2936_v49  ;;  %v3005_v41 = vadd.f32 %v5779_v32, %v2937_v12  ;;  %v6237_v49 = vld [vmem:[#allocation27_spill] sm:$0xff] }
 0x4d8   : > { %v4331_v17 = vpack.c.bf16 %v3194_v10, %v3193_v13  ;;  %v3006_v43 = vadd.f32 %v5779_v32, %v2938_v51  ;;  %v2939_v0 = vmul.f32 %v5768_v50, %v2871_v53  ;;  %v2940_v56 = vmul.f32 %v5768_v50, %v2872_v2  ;;  %v6238_v53 = vld [vmem:[#allocation28_spill] sm:$0xff] }
 0x4d9   : > { %vm3067_vm3 = vcmp.ge.f32.partialorder %v3003_v4, 0.0  ;;  %vm3068_vm4 = vcmp.ge.f32.partialorder %v3004_v54, 0.0  ;;  %v3131_v55 = vmul.f32 0.2, %v3003_v4  ;;  %v3132_v15 = vmul.f32 0.2, %v3004_v54 }
 0x4da   : > { %4459 = vst [vmem:[%s6148_s4 + $0x38] sm:$0xff] %v4331_v17   ;;  %vm3069_vm5 = vcmp.ge.f32.partialorder %v3005_v41, 0.0  ;;  %vm3070_vm6 = vcmp.ge.f32.partialorder %v3006_v43, 0.0  ;;  %v3133_v57 = vmul.f32 0.2, %v3005_v41  ;;  %v3007_v19 = vadd.f32 %v5779_v32, %v2939_v0 }
 0x4db   : > { %v3195_v34 = vsel %vm3067_vm3, %v3003_v4, %v3131_v55  ;;  %v3196_v52 = vsel %vm3068_vm4, %v3004_v54, %v3132_v15  ;;  %v3134_v45 = vmul.f32 0.2, %v3006_v43  ;;  %v3008_v48 = vadd.f32 %v5779_v32, %v2940_v56 }
 0x4dc   : > { %v4336_v21 = vpack.c.bf16 %v3196_v52, %v3195_v34  ;;  %v3197_v33 = vsel %vm3069_vm5, %v3005_v41, %v3133_v57  ;;  %vm3071_vm7 = vcmp.ge.f32.partialorder %v3007_v19, 0.0  ;;  %v3135_v35 = vmul.f32 0.2, %v3007_v19 }
 0x4dd   : > { %v3198_v23 = vsel %vm3070_vm6, %v3006_v43, %v3134_v45  ;;  %vm3072_vm8 = vcmp.ge.f32.partialorder %v3008_v48, 0.0  ;;  %v3136_v14 = vmul.f32 0.2, %v3008_v48  ;;  %v2873_v62 = vmul.f32 %v5770_v58, %v5587_v59 }
 0x4de   : > { %4460 = vst [vmem:[%s6148_s4 + $0x40] sm:$0xff] %v4336_v21   ;;  %v4341_v11 = vpack.c.bf16 %v3198_v23, %v3197_v33  ;;  %v3199_v6 = vsel %vm3071_vm7, %v3007_v19, %v3135_v35  ;;  %v2874_v60 = vmul.f32 %v5770_v58, %v5593_v61  ;;  %v2875_v22 = vmul.f32 %v5770_v58, %v5599_v63  ;;  %v6239_v23 = vld [vmem:[#allocation4_spill] sm:$0xff] }
 0x4df   : > { %v3200_v8 = vsel %vm3072_vm8, %v3008_v48, %v3136_v14  ;;  %v2941_v40 = vmul.f32 %v5768_v50, %v2873_v62  ;;  %v2876_v42 = vmul.f32 %v5770_v58, %v5605_v1  ;;  %v2877_v59 = vmul.f32 %v5770_v58, %v5611_v3  ;;  %v6240_v62 = vld [vmem:[#allocation5_spill] sm:$0xff] }
 0x4e0   : > { %4461 = vst [vmem:[%s6148_s4 + $0x48] sm:$0xff] %v4341_v11   ;;  %v4346_v25 = vpack.c.bf16 %v3200_v8, %v3199_v6  ;;  %v2942_v18 = vmul.f32 %v5768_v50, %v2874_v60  ;;  %v2943_v61 = vmul.f32 %v5768_v50, %v2875_v22  ;;  %v2878_v63 = vmul.f32 %v5770_v58, %v6236_v44  ;;  %v6241_v6 = vld [vmem:[#allocation6_spill] sm:$0xff]  ;;  %v6243_v44 = vld [vmem:[#allocation8_spill] sm:$0xff] }
 0x4e1   : > { %v3009_v47 = vadd.f32 %v5779_v32, %v2941_v40  ;;  %v2944_v37 = vmul.f32 %v5768_v50, %v2876_v42  ;;  %v2945_v1 = vmul.f32 %v5768_v50, %v2877_v59  ;;  %v2879_v3 = vmul.f32 %v5770_v58, %v6237_v49  ;;  %v6242_v42 = vld [vmem:[#allocation7_spill] sm:$0xff] }
 0x4e2   : > { %4462 = vst [vmem:[%s6148_s4 + $0x50] sm:$0xff] %v4346_v25   ;;  %v3010_v12 = vadd.f32 %v5779_v32, %v2942_v18  ;;  %v3011_v13 = vadd.f32 %v5779_v32, %v2943_v61  ;;  %v2946_v51 = vmul.f32 %v5768_v50, %v2878_v63  ;;  %v2880_v2 = vmul.f32 %v5770_v58, %v6238_v53  ;;  %v6244_v53 = vld [vmem:[#allocation9_spill] sm:$0xff] }
 0x4e3   : > { %vm3073_vm9 = vcmp.ge.f32.partialorder %v3009_v47, 0.0  ;;  %v3137_v10 = vmul.f32 0.2, %v3009_v47  ;;  %v3012_v4 = vadd.f32 %v5779_v32, %v2944_v37  ;;  %v3013_v54 = vadd.f32 %v5779_v32, %v2945_v1 }
 0x4e4   : > { %vm3074_vm10 = vcmp.ge.f32.partialorder %v3010_v12, 0.0  ;;  %v3138_v41 = vmul.f32 0.2, %v3010_v12  ;;  %vm3075_vm11 = vcmp.ge.f32.partialorder %v3011_v13, 0.0  ;;  %v3139_v17 = vmul.f32 0.2, %v3011_v13 }
 0x4e5   : > { %v3201_v43 = vsel %vm3073_vm9, %v3009_v47, %v3137_v10  ;;  %vm3076_vm12 = vcmp.ge.f32.partialorder %v3012_v4, 0.0  ;;  %v3140_v0 = vmul.f32 0.2, %v3012_v4  ;;  %v3014_v56 = vadd.f32 %v5779_v32, %v2946_v51 }
 0x4e6   : > { %v3202_v55 = vsel %vm3074_vm10, %v3010_v12, %v3138_v41  ;;  %v3203_v15 = vsel %vm3075_vm11, %v3011_v13, %v3139_v17  ;;  %vm3077_vm13 = vcmp.ge.f32.partialorder %v3013_v54, 0.0  ;;  %v3141_v57 = vmul.f32 0.2, %v3013_v54 }
 0x4e7   : > { %v4351_v19 = vpack.c.bf16 %v3202_v55, %v3201_v43  ;;  %v3204_v34 = vsel %vm3076_vm12, %v3012_v4, %v3140_v0  ;;  %vm3078_vm14 = vcmp.ge.f32.partialorder %v3014_v56, 0.0  ;;  %v3142_v52 = vmul.f32 0.2, %v3014_v56 }
 0x4e8   : > { %v4356_v45 = vpack.c.bf16 %v3204_v34, %v3203_v15  ;;  %v3205_v48 = vsel %vm3077_vm13, %v3013_v54, %v3141_v57  ;;  %v2947_v21 = vmul.f32 %v5768_v50, %v2879_v3  ;;  %v2948_v33 = vmul.f32 %v5768_v50, %v2880_v2 }
 0x4e9   : > { %4463 = vst [vmem:[%s6148_s4 + $0x58] sm:$0xff] %v4351_v19   ;;  %v3206_v35 = vsel %vm3078_vm14, %v3014_v56, %v3142_v52  ;;  %v2881_v14 = vmul.f32 %v5770_v58, %v6239_v23  ;;  %v2882_v11 = vmul.f32 %v5770_v58, %v6240_v62  ;;  %v2883_v60 = vmul.f32 %v5770_v58, %v6241_v6  ;;  %v6245_v19 = vld [vmem:[#allocation10_spill] sm:$0xff]  ;;  %v6246_v52 = vld [vmem:[#allocation11_spill] sm:$0xff] }
 0x4ea   : > { %4464 = vst [vmem:[%s6148_s4 + $0x60] sm:$0xff] %v4356_v45   ;;  %v4361_v22 = vpack.c.bf16 %v3206_v35, %v3205_v48  ;;  %v3015_v8 = vadd.f32 %v5779_v32, %v2947_v21  ;;  %v3016_v40 = vadd.f32 %v5779_v32, %v2948_v33  ;;  %v2884_v59 = vmul.f32 %v5770_v58, %v6242_v42  ;;  %v6248_v42 = vld [vmem:[#allocation13_spill] sm:$0xff] }
 0x4eb   : > { %v2949_v25 = vmul.f32 %v5768_v50, %v2881_v14  ;;  %v2950_v18 = vmul.f32 %v5768_v50, %v2882_v11  ;;  %v2951_v61 = vmul.f32 %v5768_v50, %v2883_v60  ;;  %v2885_v63 = vmul.f32 %v5770_v58, %v6243_v44  ;;  %v6247_v60 = vld [vmem:[#allocation12_spill] sm:$0xff] }
 0x4ec   : > { %4465 = vst [vmem:[%s6148_s4 + $0x68] sm:$0xff] %v4361_v22   ;;  %vm3079_vm15 = vcmp.ge.f32.partialorder %v3015_v8, 0.0  ;;  %vm3080_vm0 = vcmp.ge.f32.partialorder %v3016_v40, 0.0  ;;  %v3143_v47 = vmul.f32 0.2, %v3015_v8  ;;  %v2952_v37 = vmul.f32 %v5768_v50, %v2884_v59 }
 0x4ed   : > { %v3144_v1 = vmul.f32 0.2, %v3016_v40  ;;  %v3017_v49 = vadd.f32 %v5779_v32, %v2949_v25  ;;  %v3018_v3 = vadd.f32 %v5779_v32, %v2950_v18  ;;  %v3019_v12 = vadd.f32 %v5779_v32, %v2951_v61 }
 0x4ee   : > { %v3207_v13 = vsel %vm3079_vm15, %v3015_v8, %v3143_v47  ;;  %v3020_v51 = vadd.f32 %v5779_v32, %v2952_v37  ;;  %v2886_v2 = vmul.f32 %v5770_v58, %v6244_v53  ;;  %v2953_v10 = vmul.f32 %v5768_v50, %v2885_v63  ;;  %v6249_v63 = vld [vmem:[#allocation14_spill] sm:$0xff] }
 0x4ef   : > { %v3208_v4 = vsel %vm3080_vm0, %v3016_v40, %v3144_v1  ;;  %vm3081_vm1 = vcmp.ge.f32.partialorder %v3017_v49, 0.0  ;;  %vm3082_vm2 = vcmp.ge.f32.partialorder %v3018_v3, 0.0  ;;  %v3145_v54 = vmul.f32 0.2, %v3017_v49 }
 0x4f0   : > { %v4366_v41 = vpack.c.bf16 %v3208_v4, %v3207_v13  ;;  %v3146_v17 = vmul.f32 0.2, %v3018_v3  ;;  %vm3083_vm3 = vcmp.ge.f32.partialorder %v3019_v12, 0.0  ;;  %vm3084_vm4 = vcmp.ge.f32.partialorder %v3020_v51, 0.0 }
 0x4f1   : > { %v3209_v43 = vsel %vm3081_vm1, %v3017_v49, %v3145_v54  ;;  %v3147_v0 = vmul.f32 0.2, %v3019_v12  ;;  %v3148_v56 = vmul.f32 0.2, %v3020_v51  ;;  %v2954_v55 = vmul.f32 %v5768_v50, %v2886_v2 }
 0x4f2   : > { %4466 = vst [vmem:[%s6148_s4 + $0x70] sm:$0xff] %v4366_v41   ;;  %v3210_v15 = vsel %vm3082_vm2, %v3018_v3, %v3146_v17  ;;  %v3021_v57 = vadd.f32 %v5779_v32, %v2953_v10  ;;  %v2887_v34 = vmul.f32 %v5770_v58, %v6245_v19  ;;  %v2888_v45 = vmul.f32 %v5770_v58, %v6246_v52 }
 0x4f3   : > { %v4371_v48 = vpack.c.bf16 %v3210_v15, %v3209_v43  ;;  %v3211_v21 = vsel %vm3083_vm3, %v3019_v12, %v3147_v0  ;;  %v3212_v33 = vsel %vm3084_vm4, %v3020_v51, %v3148_v56  ;;  %v3022_v35 = vadd.f32 %v5779_v32, %v2954_v55 }
 0x4f4   : > { %v4376_v23 = vpack.c.bf16 %v3212_v33, %v3211_v21  ;;  %vm3085_vm5 = vcmp.ge.f32.partialorder %v3021_v57, 0.0  ;;  %v3149_v14 = vmul.f32 0.2, %v3021_v57  ;;  %v2955_v62 = vmul.f32 %v5768_v50, %v2887_v34 }
 0x4f5   : > { %4467 = vst [vmem:[%s6148_s4 + $0x78] sm:$0xff] %v4371_v48   ;;  %vm3086_vm6 = vcmp.ge.f32.partialorder %v3022_v35, 0.0  ;;  %v3150_v11 = vmul.f32 0.2, %v3022_v35  ;;  %v2956_v6 = vmul.f32 %v5768_v50, %v2888_v45  ;;  %v2889_v22 = vmul.f32 %v5770_v58, %v6247_v60 }
 0x4f6   : > { %4468 = vst [vmem:[%s6148_s4 + $0x80] sm:$0xff] %v4376_v23   ;;  %v3213_v8 = vsel %vm3085_vm5, %v3021_v57, %v3149_v14  ;;  %v3023_v40 = vadd.f32 %v5779_v32, %v2955_v62  ;;  %v2890_v59 = vmul.f32 %v5770_v58, %v6248_v42  ;;  %v2891_v25 = vmul.f32 %v5770_v58, %v5695_v39 }
 0x4f7   : > { %v3214_v18 = vsel %vm3086_vm6, %v3022_v35, %v3150_v11  ;;  %v3024_v61 = vadd.f32 %v5779_v32, %v2956_v6  ;;  %v2957_v44 = vmul.f32 %v5768_v50, %v2889_v22  ;;  %v2892_v47 = vmul.f32 %v5770_v58, %v6249_v63 }
 0x4f8   : > { %v4381_v37 = vpack.c.bf16 %v3214_v18, %v3213_v8  ;;  %vm3087_vm7 = vcmp.ge.f32.partialorder %v3023_v40, 0.0  ;;  %v3151_v1 = vmul.f32 0.2, %v3023_v40  ;;  %v2958_v49 = vmul.f32 %v5768_v50, %v2890_v59 }
 0x4f9   : > { %vm3088_vm8 = vcmp.ge.f32.partialorder %v3024_v61, 0.0  ;;  %v3152_v3 = vmul.f32 0.2, %v3024_v61  ;;  %v3025_v12 = vadd.f32 %v5779_v32, %v2957_v44  ;;  %v2959_v13 = vmul.f32 %v5768_v50, %v2891_v25 }
 0x4fa   : > { %4469 = vst [vmem:[%s6148_s4 + $0x88] sm:$0xff] %v4381_v37   ;;  %v3215_v39 = vsel %vm3087_vm7, %v3023_v40, %v3151_v1  ;;  %v3026_v51 = vadd.f32 %v5779_v32, %v2958_v49  ;;  %v2960_v53 = vmul.f32 %v5768_v50, %v2892_v47  ;;  %v2893_v2 = vmul.f32 %v5770_v58, %v5707_v5 }
 0x4fb   : > { %v3216_v10 = vsel %vm3088_vm8, %v3024_v61, %v3152_v3  ;;  %vm3089_vm9 = vcmp.ge.f32.partialorder %v3025_v12, 0.0  ;;  %v3153_v4 = vmul.f32 0.2, %v3025_v12  ;;  %v3027_v54 = vadd.f32 %v5779_v32, %v2959_v13 }
 0x4fc   : > { %v4386_v41 = vpack.c.bf16 %v3216_v10, %v3215_v39  ;;  %vm3090_vm10 = vcmp.ge.f32.partialorder %v3026_v51, 0.0  ;;  %v3154_v17 = vmul.f32 0.2, %v3026_v51  ;;  %v3028_v43 = vadd.f32 %v5779_v32, %v2960_v53 }
 0x4fd   : > { %v3217_v0 = vsel %vm3089_vm9, %v3025_v12, %v3153_v4  ;;  %vm3091_vm11 = vcmp.ge.f32.partialorder %v3027_v54, 0.0  ;;  %v3155_v56 = vmul.f32 0.2, %v3027_v54  ;;  %v2894_v55 = vmul.f32 %v5770_v58, %v5713_v7 }
 0x4fe   : > { %4470 = vst [vmem:[%s6148_s4 + $0x90] sm:$0xff] %v4386_v41   ;;  %v3218_v5 = vsel %vm3090_vm10, %v3026_v51, %v3154_v17  ;;  %vm3092_vm12 = vcmp.ge.f32.partialorder %v3028_v43, 0.0  ;;  %v3156_v15 = vmul.f32 0.2, %v3028_v43  ;;  %v2961_v57 = vmul.f32 %v5768_v50, %v2893_v2 }
 0x4ff   : > { %v4391_v19 = vpack.c.bf16 %v3218_v5, %v3217_v0  ;;  %v3219_v34 = vsel %vm3091_vm11, %v3027_v54, %v3155_v56  ;;  %v2962_v52 = vmul.f32 %v5768_v50, %v2894_v55  ;;  %v2895_v45 = vmul.f32 %v5770_v58, %v5719_v9 }
 0x500   : > { %v3220_v48 = vsel %vm3092_vm12, %v3028_v43, %v3156_v15  ;;  %v3029_v21 = vadd.f32 %v5779_v32, %v2961_v57  ;;  %v2896_v7 = vmul.f32 %v5770_v58, %v5401_v26  ;;  %v2897_v33 = vmul.f32 %v5770_v58, %v5404_v30 }
 0x501   : > { %4471 = vst [vmem:[%s6148_s4 + $0x98] sm:$0xff] %v4391_v19   ;;  %v4396_v35 = vpack.c.bf16 %v3220_v48, %v3219_v34  ;;  %v3030_v23 = vadd.f32 %v5779_v32, %v2962_v52  ;;  %v2963_v14 = vmul.f32 %v5768_v50, %v2895_v45  ;;  %v2898_v9 = vmul.f32 %v5770_v58, %v5407_v38 }
 0x502   : > { %vm3093_vm13 = vcmp.ge.f32.partialorder %v3029_v21, 0.0  ;;  %v3157_v62 = vmul.f32 0.2, %v3029_v21  ;;  %v2964_v11 = vmul.f32 %v5768_v50, %v2896_v7  ;;  %v2965_v26 = vmul.f32 %v5768_v50, %v2897_v33 }
 0x503   : > { %4472 = vst [vmem:[%s6148_s4 + $0xa0] sm:$0xff] %v4396_v35   ;;  %vm3094_vm14 = vcmp.ge.f32.partialorder %v3030_v23, 0.0  ;;  %v3158_v30 = vmul.f32 0.2, %v3030_v23  ;;  %v3031_v6 = vadd.f32 %v5779_v32, %v2963_v14  ;;  %v2966_v60 = vmul.f32 %v5768_v50, %v2898_v9  ;;  %v6250_v14 = vld [vmem:[#allocation19_spill] sm:$0xff] }
 0x504   : > { %v3221_v22 = vsel %vm3093_vm13, %v3029_v21, %v3157_v62  ;;  %v3032_v8 = vadd.f32 %v5779_v32, %v2964_v11  ;;  %v3033_v38 = vadd.f32 %v5779_v32, %v2965_v26  ;;  %v2899_v40 = vmul.f32 %v5770_v58, %v5410_v46  ;;  %v6251_v62 = vld [vmem:[#allocation20_spill] sm:$0xff] }
 0x505   : > { %v3222_v42 = vsel %vm3094_vm14, %v3030_v23, %v3158_v30  ;;  %vm3095_vm15 = vcmp.ge.f32.partialorder %v3031_v6, 0.0  ;;  %v3159_v59 = vmul.f32 0.2, %v3031_v6  ;;  %v3034_v25 = vadd.f32 %v5779_v32, %v2966_v60 }
 0x506   : > { %v4401_v18 = vpack.c.bf16 %v3222_v42, %v3221_v22  ;;  %vm3096_vm0 = vcmp.ge.f32.partialorder %v3032_v8, 0.0  ;;  %v3160_v61 = vmul.f32 0.2, %v3032_v8  ;;  %vm3097_vm1 = vcmp.ge.f32.partialorder %v3033_v38, 0.0  ;;  %v6253_v22 = vld [vmem:[#allocation22_spill] sm:$0xff] }
 0x507   : > { %v3223_v44 = vsel %vm3095_vm15, %v3031_v6, %v3159_v59  ;;  %vm3098_vm2 = vcmp.ge.f32.partialorder %v3034_v25, 0.0  ;;  %v3161_v63 = vmul.f32 0.2, %v3033_v38  ;;  %v3162_v47 = vmul.f32 0.2, %v3034_v25  ;;  %v6252_v6 = vld [vmem:[#allocation21_spill] sm:$0xff] }
 0x508   : > { %4473 = vst [vmem:[%s6148_s4 + $0xa8] sm:$0xff] %v4401_v18   ;;  %v3224_v37 = vsel %vm3096_vm0, %v3032_v8, %v3160_v61  ;;  %v2900_v46 = vmul.f32 %v5770_v58, %v5413_v36  ;;  %v2967_v1 = vmul.f32 %v5768_v50, %v2899_v40  ;;  %v2901_v49 = vmul.f32 %v5770_v58, %v5416_v31 }
 0x509   : > { %v4406_v3 = vpack.c.bf16 %v3224_v37, %v3223_v44  ;;  %v3225_v12 = vsel %vm3097_vm1, %v3033_v38, %v3161_v63  ;;  %v3226_v13 = vsel %vm3098_vm2, %v3034_v25, %v3162_v47  ;;  %v2902_v39 = vmul.f32 %v5770_v58, %v5419_v27  ;;  %v6254_v63 = vld [vmem:[#allocation23_spill] sm:$0xff]  ;;  %v6255_v37 = vld [vmem:[#allocation24_spill] sm:$0xff] }
 0x50a   : > { %v4411_v51 = vpack.c.bf16 %v3226_v13, %v3225_v12  ;;  %v2968_v53 = vmul.f32 %v5768_v50, %v2900_v46  ;;  %v3035_v2 = vadd.f32 %v5779_v32, %v2967_v1  ;;  %v2969_v10 = vmul.f32 %v5768_v50, %v2901_v49 }
 0x50b   : > { %4474 = vst [vmem:[%s6148_s4 + $0xb0] sm:$0xff] %v4406_v3   ;;  %v2970_v36 = vmul.f32 %v5768_v50, %v2902_v39  ;;  %v2903_v31 = vmul.f32 %v5770_v58, %v5422_v29  ;;  %v2904_v4 = vmul.f32 %v5770_v58, %v5425_v20  ;;  %v2905_v27 = vmul.f32 %v5770_v58, %v5428_v24 }
 0x50c   : > { %4475 = vst [vmem:[%s6148_s4 + $0xb8] sm:$0xff] %v4411_v51   ;;  %v3036_v54 = vadd.f32 %v5779_v32, %v2968_v53  ;;  %vm3099_vm3 = vcmp.ge.f32.partialorder %v3035_v2, 0.0  ;;  %v3163_v41 = vmul.f32 0.2, %v3035_v2  ;;  %v3037_v17 = vadd.f32 %v5779_v32, %v2969_v10 }
 0x50d   : > { %v3038_v43 = vadd.f32 %v5779_v32, %v2970_v36  ;;  %v2971_v29 = vmul.f32 %v5768_v50, %v2903_v31  ;;  %v2972_v0 = vmul.f32 %v5768_v50, %v2904_v4  ;;  %v2906_v20 = vmul.f32 %v5770_v58, %v5431_v28 }
 0x50e   : > { %vm3100_vm4 = vcmp.ge.f32.partialorder %v3036_v54, 0.0  ;;  %v3164_v24 = vmul.f32 0.2, %v3036_v54  ;;  %v3227_v56 = vsel %vm3099_vm3, %v3035_v2, %v3163_v41  ;;  %vm3101_vm5 = vcmp.ge.f32.partialorder %v3037_v17, 0.0 }
 0x50f   : > { %vm3102_vm6 = vcmp.ge.f32.partialorder %v3038_v43, 0.0  ;;  %v3165_v55 = vmul.f32 0.2, %v3037_v17  ;;  %v3166_v5 = vmul.f32 0.2, %v3038_v43  ;;  %v3039_v15 = vadd.f32 %v5779_v32, %v2971_v29 }
 0x510   : > { %v3228_v57 = vsel %vm3100_vm4, %v3036_v54, %v3164_v24  ;;  %v3040_v19 = vadd.f32 %v5779_v32, %v2972_v0  ;;  %v2973_v34 = vmul.f32 %v5768_v50, %v2905_v27  ;;  %v2974_v52 = vmul.f32 %v5768_v50, %v2906_v20  ;;  %v6256_v24 = vld [vmem:[#allocation25_spill] sm:$0xff] }
 0x511   : > { %v4416_v45 = vpack.c.bf16 %v3228_v57, %v3227_v56  ;;  %v3229_v48 = vsel %vm3101_vm5, %v3037_v17, %v3165_v55  ;;  %v3230_v21 = vsel %vm3102_vm6, %v3038_v43, %v3166_v5  ;;  %vm3103_vm7 = vcmp.ge.f32.partialorder %v3039_v15, 0.0 }
 0x512   : > { %v4421_v28 = vpack.c.bf16 %v3230_v21, %v3229_v48  ;;  %vm3104_vm8 = vcmp.ge.f32.partialorder %v3040_v19, 0.0  ;;  %v3167_v7 = vmul.f32 0.2, %v3039_v15  ;;  %v3168_v33 = vmul.f32 0.2, %v3040_v19 }
 0x513   : > { %4476 = vst [vmem:[%s6148_s4 + $0xc0] sm:$0xff] %v4416_v45   ;;  %v3041_v35 = vadd.f32 %v5779_v32, %v2973_v34  ;;  %v3042_v23 = vadd.f32 %v5779_v32, %v2974_v52  ;;  %v2907_v9 = vmul.f32 %v5770_v58, %v6250_v14  ;;  %v2908_v11 = vmul.f32 %v5770_v58, %v6251_v62 }
 0x514   : > { %4477 = vst [vmem:[%s6148_s4 + $0xc8] sm:$0xff] %v4421_v28   ;;  %v3231_v26 = vsel %vm3103_vm7, %v3039_v15, %v3167_v7  ;;  %v3232_v30 = vsel %vm3104_vm8, %v3040_v19, %v3168_v33  ;;  %v2909_v60 = vmul.f32 %v5770_v58, %v6252_v6  ;;  %v2910_v8 = vmul.f32 %v5770_v58, %v6253_v22 }
 0x515   : > { %v4426_v38 = vpack.c.bf16 %v3232_v30, %v3231_v26  ;;  %vm3105_vm9 = vcmp.ge.f32.partialorder %v3041_v35, 0.0  ;;  %vm3106_vm10 = vcmp.ge.f32.partialorder %v3042_v23, 0.0  ;;  %v3169_v40 = vmul.f32 0.2, %v3041_v35 }
 0x516   : > { %v3170_v42 = vmul.f32 0.2, %v3042_v23  ;;  %v2975_v59 = vmul.f32 %v5768_v50, %v2907_v9  ;;  %v2976_v25 = vmul.f32 %v5768_v50, %v2908_v11  ;;  %v2977_v18 = vmul.f32 %v5768_v50, %v2909_v60 }
 0x517   : > { %4478 = vst [vmem:[%s6148_s4 + $0xd0] sm:$0xff] %v4426_v38   ;;  %v3233_v61 = vsel %vm3105_vm9, %v3041_v35, %v3169_v40  ;;  %v2978_v44 = vmul.f32 %v5768_v50, %v2910_v8  ;;  %v2911_v47 = vmul.f32 %v5770_v58, %v6254_v63  ;;  %v2912_v46 = vmul.f32 %v5770_v58, %v6255_v37 }
 0x518   : > { %v3234_v1 = vsel %vm3106_vm10, %v3042_v23, %v3170_v42  ;;  %v3043_v49 = vadd.f32 %v5779_v32, %v2975_v59  ;;  %v3044_v3 = vadd.f32 %v5779_v32, %v2976_v25  ;;  %v3045_v12 = vadd.f32 %v5779_v32, %v2977_v18 }
 0x519   : > { %v4431_v13 = vpack.c.bf16 %v3234_v1, %v3233_v61  ;;  %v3046_v39 = vadd.f32 %v5779_v32, %v2978_v44  ;;  %v2979_v51 = vmul.f32 %v5768_v50, %v2911_v47  ;;  %v2980_v53 = vmul.f32 %v5768_v50, %v2912_v46 }
 0x51a   : > { %vm3107_vm11 = vcmp.ge.f32.partialorder %v3043_v49, 0.0  ;;  %vm3108_vm12 = vcmp.ge.f32.partialorder %v3044_v3, 0.0  ;;  %v3171_v2 = vmul.f32 0.2, %v3043_v49  ;;  %v3172_v10 = vmul.f32 0.2, %v3044_v3 }
 0x51b   : > { %4479 = vst [vmem:[%s6148_s4 + $0xd8] sm:$0xff] %v4431_v13   ;;  %vm3109_vm13 = vcmp.ge.f32.partialorder %v3045_v12, 0.0  ;;  %vm3110_vm14 = vcmp.ge.f32.partialorder %v3046_v39, 0.0  ;;  %v3173_v36 = vmul.f32 0.2, %v3045_v12  ;;  %v3047_v31 = vadd.f32 %v5779_v32, %v2979_v51 }
 0x51c   : > { %v3235_v4 = vsel %vm3107_vm11, %v3043_v49, %v3171_v2  ;;  %v3236_v27 = vsel %vm3108_vm12, %v3044_v3, %v3172_v10  ;;  %v3174_v54 = vmul.f32 0.2, %v3046_v39  ;;  %v3048_v41 = vadd.f32 %v5779_v32, %v2980_v53 }
 0x51d   : > { %v4436_v17 = vpack.c.bf16 %v3236_v27, %v3235_v4  ;;  %v3237_v43 = vsel %vm3109_vm13, %v3045_v12, %v3173_v36  ;;  %vm3111_vm15 = vcmp.ge.f32.partialorder %v3047_v31, 0.0  ;;  %v3175_v29 = vmul.f32 0.2, %v3047_v31 }
 0x51e   : > { %v3238_v0 = vsel %vm3110_vm14, %v3046_v39, %v3174_v54  ;;  %vm3112_vm0 = vcmp.ge.f32.partialorder %v3048_v41, 0.0  ;;  %v3176_v20 = vmul.f32 0.2, %v3048_v41  ;;  %v2913_v56 = vmul.f32 %v5770_v58, %v6256_v24 }
 0x51f   : > { %4480 = vst [vmem:[%s6148_s4 + $0xe0] sm:$0xff] %v4436_v17   ;;  %v4441_v55 = vpack.c.bf16 %v3238_v0, %v3237_v43  ;;  %v3239_v5 = vsel %vm3111_vm15, %v3047_v31, %v3175_v29  ;;  %v2914_v15 = vmul.f32 %v5770_v58, %v5455_v16 }
 0x520   : > { %v3240_v57 = vsel %vm3112_vm0, %v3048_v41, %v3176_v20  ;;  %v2981_v19 = vmul.f32 %v5768_v50, %v2913_v56 }
 0x521   : > { %4481 = vst [vmem:[%s6148_s4 + $0xe8] sm:$0xff] %v4441_v55   ;;  %v4446_v34 = vpack.c.bf16 %v3240_v57, %v3239_v5  ;;  %v2982_v52 = vmul.f32 %v5768_v50, %v2914_v15 }
 0x522   : > { %v3049_v45 = vadd.f32 %v5779_v32, %v2981_v19 }
 0x523   : > { %4482 = vst [vmem:[%s6148_s4 + $0xf0] sm:$0xff] %v4446_v34   ;;  %v3050_v48 = vadd.f32 %v5779_v32, %v2982_v52 }
 0x524   : > { %vm3113_vm1 = vcmp.ge.f32.partialorder %v3049_v45, 0.0  ;;  %v3177_v16 = vmul.f32 0.2, %v3049_v45 }
 0x525   : > { %vm3114_vm2 = vcmp.ge.f32.partialorder %v3050_v48, 0.0  ;;  %v3178_v58 = vmul.f32 0.2, %v3050_v48 }
 0x526   : > { %v3241_v21 = vsel %vm3113_vm1, %v3049_v45, %v3177_v16 }
 0x527   : > { %v3242_v28 = vsel %vm3114_vm2, %v3050_v48, %v3178_v58 }
 0x528   : > { %v4451_v7 = vpack.c.bf16 %v3242_v28, %v3241_v21 }
 0x52a   : > { %4483 = vst [vmem:[%s6148_s4 + $0xf8] sm:$0xff] %v4451_v7  }
 0x52b PF: > { %s14_s19 = sadd.s32 1, %s4567_s19   ;;  %s6257_s15 = smov %s4555_s16 }
 0x52c   : > { %p11_p12 = scmp.ge.s32.totalorder %s14_s19, 4   ;;  %s6258_s16 = smov %s4630_s23 }
 0x52d   : > { %s6259_s17 = smov %s4563_s18  ;;  %s6260_s18 = smov %s6262_s20 }
 0x52e   :  { %13 = sbr.rel (!%p11_p12) target bundleno = 3 (0x3), region = 111 }

// kernel: discriminator_forward.6
= control target key start
LH: loop header
LB: loop body
LE: loop exit
PB: predicated region body
PF: predicated region fallthrough
CT: control target
= control target key end

     0   :  { %s3041_s0 = inlined_call_operand.vmem [shape: bf16[128,2048], index: 0, kind: input, shape index: {}]   ;;  %s3042_s1 = inlined_call_operand.vmem [shape: bf16[2048,256], index: 1, kind: input, shape index: {}]   ;;  %s3043_s2 = inlined_call_operand.vmem [shape: f32[1,256], index: 2, kind: input, shape index: {}]   ;;  %s3044_s3 = inlined_call_operand.vmem [shape: f32[1,256], index: 3, kind: input, shape index: {}]   ;;  %s3045_s4 = inlined_call_operand.vmem [shape: bf16[128,256], index: 4, kind: output, shape index: {}]  }
   0x1   :  { %3049 = sst [smem:[#allocation9_spill]] %s3041_s0 }
   0x2   :  { %3050 = sst [smem:[#allocation10_spill]] %s3042_s1 }
   0x3   :  { %s2404_s15 = smov 0   ;;  %s2406_s16 = smov 0  }
   0x4   :  { %s2408_s17 = smov 0   ;;  %s2410_s18 = smov 0  }
   0x5   :  { %s2412_s19 = smov 0   ;;  %s2414_s20 = smov 0  }
   0x6   :  { %s2416_s21 = smov 0   ;;  %s2418_s22 = smov 0  }
   0x7   :  { %s2420_s23 = smov 0   ;;  %s2422_s24 = smov 0  }
   0x8   :  { %s2424_s25 = smov 0  }
   0x9 LB: > { %3051 = sst [smem:[#allocation6_spill]] %s2372_s24  ;;  %s1807_s26 = sadd.s32 4294967295, %s2376_s25   ;;  %s2376_s25 = sphi %s2424_s25, %s14_s25   ;;  %s2372_s24 = sphi %s2422_s24, %s3061_s24   ;;  %s2368_s23 = sphi %s2420_s23, %s3069_s23   ;;  %s2364_s22 = sphi %s2418_s22, %s3059_s22   ;;  %s2360_s21 = sphi %s2416_s21, %s3068_s21   ;;  %s2356_s20 = sphi %s2414_s20, %s3067_s20   ;;  %s2352_s19 = sphi %s2412_s19, %s3066_s19   ;;  %s2348_s18 = sphi %s2410_s18, %s3065_s18   ;;  %s2344_s17 = sphi %s2408_s17, %s3064_s17   ;;  %s2340_s16 = sphi %s2406_s16, %s3063_s16   ;;  %s2336_s15 = sphi %s2404_s15, %s3062_s15  }
   0xa   : > { %s23_s27 = sadd.s32 1, %s2368_s23  ;;  %s26_s28 = sadd.s32 1, %s2372_s24 }
   0xb   : > { %p24_p0 = scmp.ge.s32.totalorder %s23_s27, 4  ;;  %s33_s29 = sadd.s32 1, %s2356_s20 }
   0xc   : > { %p40_p1 = scmp.ne.s32.totalorder %s2356_s20, %s2352_s19  ;;  %p41_p2 = scmp.eq.s32.totalorder %s2376_s25, 0 }
   0xd   : > { %s3071_s27 = smov (%p24_p0, %s23_s27), 0  ;;  %s3073_s28 = smov (!%p24_p0, %s26_s28), %s2372_s24 }
   0xe   : > { %3052 = sst [smem:[#allocation7_spill]] %s3071_s27  ;;  %s30_s30 = ssub.s32 %s2368_s23, %s3071_s27 }
   0xf   : > { %p28_p3 = scmp.ge.s32.totalorder %s3073_s28, 2  ;;  %p31_p4 = scmp.eq.s32.totalorder %s30_s30, 0 }
  0x10   : > { %p2471_p5 = por %p41_p2, %p40_p1  ;;  %s61_s6 = sadd.s32 1, %s2348_s18 }
  0x11   : > { %s3075_s28 = smov (%p28_p3, %s3073_s28), 0  ;;  %p68_p6 = scmp.ne.s32.totalorder %s2348_s18, %s2344_s17 }
  0x12   : > { %3054 = sst [smem:[#allocation8_spill]] %s3075_s28  ;;  %s57_s8 = ssub.s32 %s2372_s24, %s3075_s28 }
  0x13   : > { %s2479_s7 = scalar_select %p31_p4, %s2356_s20, %s33_s29  }
  0x14   : > { %s58_s9 = sor.u32 %s57_s8, %s30_s30  ;;  %p137_p7 = scmp.eq.s32.totalorder %s57_s8, 0 }
  0x15   : > { %p59_p8 = scmp.eq.s32.totalorder %s58_s9, 0  ;;  %p2485_p9 = por %p68_p6, %p41_p2 }
  0x16   : > { %s139_s11 = sadd.s32 1, %s2340_s16  ;;  %p149_p10 = scmp.ne.s32.totalorder %s2340_s16, %s2336_s15 }
  0x17   : > { %s2493_s12 = scalar_select %p59_p8, %s2348_s18, %s61_s6  }
  0x18   : > { %s2496_s13 = scalar_select %p137_p7, %s2340_s16, %s139_s11  }
  0x19   : > { %p150_p11 = scmp.eq.s32.totalorder %s1807_s26, 7  ;;  %p1810_p13 = scmp.ge.s32.totalorder %s2376_s25, 8 }
  0x1b   : > { %p2498_p12 = por %p150_p11, %p149_p10  ;;  %172 = sbr.rel (%p1810_p13) target bundleno = 148 (0x94), region = 16 }
  0x20   : > { %175 = sbr.rel (!%p2471_p5) target bundleno = 74 (0x4a), region = 20  ;;  %s177_s29 = sand.u32 (%p2471_p5), 1, %s2356_s20  }
  0x21   : > { %s2084_s30 = sshll.u32 (%p2471_p5), %s2368_s23, 4  ;;  %s1811_s8 = sshll.u32 (%p2471_p5), %s177_s29, 8 }
  0x22   : > { %s3057_s0 = sld [smem:[#allocation9_spill]] (%p2471_p5)  ;;  %s2515_s26 = scalar_lea.vmem (%p2471_p5), [#allocation3], %s1811_s8 }
  0x28   : > { %s2510_s11 = scalar_lea.vmem %s3057_s0, %s2084_s30 }
  0x29   : > { %v195_v0 = vld [vmem:[%s2510_s11] sm:$0xff]  ;;  %v197_v1 = vld [vmem:[%s2510_s11 + $0x8] sm:$0xff] }
  0x2a   : > { %v199_v2 = vld [vmem:[%s2510_s11 + $0x40] sm:$0xff]  ;;  %196 = vst [vmem:[%s2515_s26] sm:$0xff] %v195_v0  ;;  %v201_v3 = vld [vmem:[%s2510_s11 + $0x48] sm:$0xff] }
  0x2b   : > { %198 = vst [vmem:[%s2515_s26 + $0x8] sm:$0xff] %v197_v1  ;;  %v203_v4 = vld [vmem:[%s2510_s11 + $0x80] sm:$0xff]  ;;  %v205_v5 = vld [vmem:[%s2510_s11 + $0x88] sm:$0xff] }
  0x2c   : > { %200 = vst [vmem:[%s2515_s26 + $0x10] sm:$0xff] %v199_v2  ;;  %v207_v6 = vld [vmem:[%s2510_s11 + $0xc0] sm:$0xff]  ;;  %v209_v7 = vld [vmem:[%s2510_s11 + $0xc8] sm:$0xff] }
  0x2d   : > { %202 = vst [vmem:[%s2515_s26 + $0x18] sm:$0xff] %v201_v3  ;;  %v211_v8 = vld [vmem:[%s2510_s11 + $0x100] sm:$0xff]  ;;  %v213_v9 = vld [vmem:[%s2510_s11 + $0x108] sm:$0xff] }
  0x2e   : > { %204 = vst [vmem:[%s2515_s26 + $0x20] sm:$0xff] %v203_v4  ;;  %v215_v10 = vld [vmem:[%s2510_s11 + $0x140] sm:$0xff]  ;;  %v217_v11 = vld [vmem:[%s2510_s11 + $0x148] sm:$0xff] }
  0x2f   : > { %206 = vst [vmem:[%s2515_s26 + $0x28] sm:$0xff] %v205_v5  ;;  %v219_v12 = vld [vmem:[%s2510_s11 + $0x180] sm:$0xff]  ;;  %v221_v13 = vld [vmem:[%s2510_s11 + $0x188] sm:$0xff] }
  0x30   : > { %208 = vst [vmem:[%s2515_s26 + $0x30] sm:$0xff] %v207_v6  ;;  %v223_v14 = vld [vmem:[%s2510_s11 + $0x1c0] sm:$0xff]  ;;  %v225_v15 = vld [vmem:[%s2510_s11 + $0x1c8] sm:$0xff] }
  0x31   : > { %210 = vst [vmem:[%s2515_s26 + $0x38] sm:$0xff] %v209_v7  ;;  %v227_v16 = vld [vmem:[%s2510_s11 + $0x200] sm:$0xff]  ;;  %v229_v17 = vld [vmem:[%s2510_s11 + $0x208] sm:$0xff] }
  0x32   : > { %212 = vst [vmem:[%s2515_s26 + $0x40] sm:$0xff] %v211_v8  ;;  %v231_v18 = vld [vmem:[%s2510_s11 + $0x240] sm:$0xff]  ;;  %v233_v19 = vld [vmem:[%s2510_s11 + $0x248] sm:$0xff] }
  0x33   : > { %214 = vst [vmem:[%s2515_s26 + $0x48] sm:$0xff] %v213_v9  ;;  %v235_v20 = vld [vmem:[%s2510_s11 + $0x280] sm:$0xff]  ;;  %v237_v21 = vld [vmem:[%s2510_s11 + $0x288] sm:$0xff] }
  0x34   : > { %216 = vst [vmem:[%s2515_s26 + $0x50] sm:$0xff] %v215_v10  ;;  %v239_v22 = vld [vmem:[%s2510_s11 + $0x2c0] sm:$0xff]  ;;  %v241_v23 = vld [vmem:[%s2510_s11 + $0x2c8] sm:$0xff] }
  0x35   : > { %218 = vst [vmem:[%s2515_s26 + $0x58] sm:$0xff] %v217_v11  ;;  %v243_v24 = vld [vmem:[%s2510_s11 + $0x300] sm:$0xff]  ;;  %v245_v25 = vld [vmem:[%s2510_s11 + $0x308] sm:$0xff] }
  0x36   : > { %220 = vst [vmem:[%s2515_s26 + $0x60] sm:$0xff] %v219_v12  ;;  %v247_v26 = vld [vmem:[%s2510_s11 + $0x340] sm:$0xff]  ;;  %v249_v27 = vld [vmem:[%s2510_s11 + $0x348] sm:$0xff] }
  0x37   : > { %222 = vst [vmem:[%s2515_s26 + $0x68] sm:$0xff] %v221_v13  ;;  %v251_v28 = vld [vmem:[%s2510_s11 + $0x380] sm:$0xff]  ;;  %v253_v29 = vld [vmem:[%s2510_s11 + $0x388] sm:$0xff] }
  0x38   : > { %224 = vst [vmem:[%s2515_s26 + $0x70] sm:$0xff] %v223_v14  ;;  %v255_v30 = vld [vmem:[%s2510_s11 + $0x3c0] sm:$0xff]  ;;  %v257_v31 = vld [vmem:[%s2510_s11 + $0x3c8] sm:$0xff] }
  0x39   : > { %226 = vst [vmem:[%s2515_s26 + $0x78] sm:$0xff] %v225_v15 }
  0x3a   : > { %228 = vst [vmem:[%s2515_s26 + $0x80] sm:$0xff] %v227_v16 }
  0x3b   : > { %230 = vst [vmem:[%s2515_s26 + $0x88] sm:$0xff] %v229_v17 }
  0x3c   : > { %232 = vst [vmem:[%s2515_s26 + $0x90] sm:$0xff] %v231_v18 }
  0x3d   : > { %234 = vst [vmem:[%s2515_s26 + $0x98] sm:$0xff] %v233_v19 }
  0x3e   : > { %236 = vst [vmem:[%s2515_s26 + $0xa0] sm:$0xff] %v235_v20 }
  0x3f   : > { %238 = vst [vmem:[%s2515_s26 + $0xa8] sm:$0xff] %v237_v21 }
  0x40   : > { %240 = vst [vmem:[%s2515_s26 + $0xb0] sm:$0xff] %v239_v22 }
  0x41   : > { %242 = vst [vmem:[%s2515_s26 + $0xb8] sm:$0xff] %v241_v23 }
  0x42   : > { %244 = vst [vmem:[%s2515_s26 + $0xc0] sm:$0xff] %v243_v24 }
  0x43   : > { %246 = vst [vmem:[%s2515_s26 + $0xc8] sm:$0xff] %v245_v25 }
  0x44   : > { %248 = vst [vmem:[%s2515_s26 + $0xd0] sm:$0xff] %v247_v26 }
  0x45   : > { %250 = vst [vmem:[%s2515_s26 + $0xd8] sm:$0xff] %v249_v27 }
  0x46   : > { %252 = vst [vmem:[%s2515_s26 + $0xe0] sm:$0xff] %v251_v28 }
  0x47   : > { %254 = vst [vmem:[%s2515_s26 + $0xe8] sm:$0xff] %v253_v29 }
  0x48   : > { %256 = vst [vmem:[%s2515_s26 + $0xf0] sm:$0xff] %v255_v30 }
  0x49   : > { %258 = vst [vmem:[%s2515_s26 + $0xf8] sm:$0xff] %v257_v31 }
  0x4a PF: > { %264 = sbr.rel (!%p2485_p9) target bundleno = 148 (0x94), region = 43  ;;  %s266_s5 = sand.u32 (%p2485_p9), 1, %s2348_s18  }
  0x4b   : > { %s2085_s29 = sshll.u32 (%p2485_p9), %s2368_s23, 7  ;;  %s1814_s30 = sshll.u32 (%p2485_p9), %s266_s5, 8 }
  0x4c   : > { %s271_s8 = sadd.s32 (%p2485_p9), %s2372_s24, %s2085_s29  ;;  %s3058_s1 = sld [smem:[#allocation10_spill]] (%p2485_p9) }
  0x4d   : > { %s1817_s6 = sshll.u32 (%p2485_p9), %s271_s8, 2  ;;  %s2591_s10 = scalar_lea.vmem (%p2485_p9), [#allocation4], %s1814_s30 }
  0x52   : > { %s2586_s28 = scalar_lea.vmem %s3058_s1, %s1817_s6 }
  0x53   : > { %v290_v32 = vld [vmem:[%s2586_s28] sm:$0xf]  ;;  %v292_v33 = vld [vmem:[%s2586_s28 + $0x8] sm:$0xf]  ;;  %v294_v34 = vld [vmem:[%s2586_s28 + $0x10] sm:$0xf] }
  0x54   : > { %291 = vst [vmem:[%s2591_s10] sm:$0xf] %v290_v32  ;;  %v296_v35 = vld [vmem:[%s2586_s28 + $0x18] sm:$0xf]  ;;  %v298_v36 = vld [vmem:[%s2586_s28 + $0x20] sm:$0xf] }
  0x55   : > { %293 = vst [vmem:[%s2591_s10 + $0x4] sm:$0xf] %v292_v33  ;;  %v300_v37 = vld [vmem:[%s2586_s28 + $0x28] sm:$0xf]  ;;  %v302_v38 = vld [vmem:[%s2586_s28 + $0x30] sm:$0xf] }
  0x56   : > { %295 = vst [vmem:[%s2591_s10 + $0x8] sm:$0xf] %v294_v34  ;;  %v304_v39 = vld [vmem:[%s2586_s28 + $0x38] sm:$0xf]  ;;  %v306_v40 = vld [vmem:[%s2586_s28 + $0x40] sm:$0xf] }
  0x57   : > { %297 = vst [vmem:[%s2591_s10 + $0xc] sm:$0xf] %v296_v35  ;;  %v308_v41 = vld [vmem:[%s2586_s28 + $0x48] sm:$0xf]  ;;  %v310_v42 = vld [vmem:[%s2586_s28 + $0x50] sm:$0xf] }
  0x58   : > { %299 = vst [vmem:[%s2591_s10 + $0x10] sm:$0xf] %v298_v36  ;;  %v312_v43 = vld [vmem:[%s2586_s28 + $0x58] sm:$0xf]  ;;  %v314_v44 = vld [vmem:[%s2586_s28 + $0x60] sm:$0xf] }
  0x59   : > { %301 = vst [vmem:[%s2591_s10 + $0x14] sm:$0xf] %v300_v37  ;;  %v316_v45 = vld [vmem:[%s2586_s28 + $0x68] sm:$0xf]  ;;  %v318_v46 = vld [vmem:[%s2586_s28 + $0x70] sm:$0xf] }
  0x5a   : > { %303 = vst [vmem:[%s2591_s10 + $0x18] sm:$0xf] %v302_v38  ;;  %v320_v47 = vld [vmem:[%s2586_s28 + $0x78] sm:$0xf]  ;;  %v322_v48 = vld [vmem:[%s2586_s28 + $0x80] sm:$0xf] }
  0x5b   : > { %305 = vst [vmem:[%s2591_s10 + $0x1c] sm:$0xf] %v304_v39  ;;  %v324_v49 = vld [vmem:[%s2586_s28 + $0x88] sm:$0xf]  ;;  %v326_v50 = vld [vmem:[%s2586_s28 + $0x90] sm:$0xf] }
  0x5c   : > { %307 = vst [vmem:[%s2591_s10 + $0x20] sm:$0xf] %v306_v40  ;;  %v328_v51 = vld [vmem:[%s2586_s28 + $0x98] sm:$0xf]  ;;  %v330_v52 = vld [vmem:[%s2586_s28 + $0xa0] sm:$0xf] }
  0x5d   : > { %309 = vst [vmem:[%s2591_s10 + $0x24] sm:$0xf] %v308_v41  ;;  %v332_v53 = vld [vmem:[%s2586_s28 + $0xa8] sm:$0xf]  ;;  %v334_v54 = vld [vmem:[%s2586_s28 + $0xb0] sm:$0xf] }
  0x5e   : > { %311 = vst [vmem:[%s2591_s10 + $0x28] sm:$0xf] %v310_v42  ;;  %v336_v55 = vld [vmem:[%s2586_s28 + $0xb8] sm:$0xf]  ;;  %v338_v56 = vld [vmem:[%s2586_s28 + $0xc0] sm:$0xf] }
  0x5f   : > { %313 = vst [vmem:[%s2591_s10 + $0x2c] sm:$0xf] %v312_v43  ;;  %v340_v57 = vld [vmem:[%s2586_s28 + $0xc8] sm:$0xf]  ;;  %v342_v58 = vld [vmem:[%s2586_s28 + $0xd0] sm:$0xf] }
  0x60   : > { %315 = vst [vmem:[%s2591_s10 + $0x30] sm:$0xf] %v314_v44  ;;  %v344_v59 = vld [vmem:[%s2586_s28 + $0xd8] sm:$0xf]  ;;  %v346_v60 = vld [vmem:[%s2586_s28 + $0xe0] sm:$0xf] }
  0x61   : > { %317 = vst [vmem:[%s2591_s10 + $0x34] sm:$0xf] %v316_v45  ;;  %v348_v61 = vld [vmem:[%s2586_s28 + $0xe8] sm:$0xf]  ;;  %v350_v62 = vld [vmem:[%s2586_s28 + $0xf0] sm:$0xf] }
  0x62   : > { %319 = vst [vmem:[%s2591_s10 + $0x38] sm:$0xf] %v318_v46  ;;  %v352_v63 = vld [vmem:[%s2586_s28 + $0xf8] sm:$0xf]  ;;  %v354_v0 = vld [vmem:[%s2586_s28 + $0x100] sm:$0xf] }
  0x63   : > { %321 = vst [vmem:[%s2591_s10 + $0x3c] sm:$0xf] %v320_v47  ;;  %v356_v1 = vld [vmem:[%s2586_s28 + $0x108] sm:$0xf]  ;;  %v358_v2 = vld [vmem:[%s2586_s28 + $0x110] sm:$0xf] }
  0x64   : > { %323 = vst [vmem:[%s2591_s10 + $0x40] sm:$0xf] %v322_v48  ;;  %v360_v3 = vld [vmem:[%s2586_s28 + $0x118] sm:$0xf]  ;;  %v362_v4 = vld [vmem:[%s2586_s28 + $0x120] sm:$0xf] }
  0x65   : > { %325 = vst [vmem:[%s2591_s10 + $0x44] sm:$0xf] %v324_v49  ;;  %v364_v5 = vld [vmem:[%s2586_s28 + $0x128] sm:$0xf]  ;;  %v366_v6 = vld [vmem:[%s2586_s28 + $0x130] sm:$0xf] }
  0x66   : > { %327 = vst [vmem:[%s2591_s10 + $0x48] sm:$0xf] %v326_v50  ;;  %v368_v7 = vld [vmem:[%s2586_s28 + $0x138] sm:$0xf]  ;;  %v370_v8 = vld [vmem:[%s2586_s28 + $0x140] sm:$0xf] }
  0x67   : > { %329 = vst [vmem:[%s2591_s10 + $0x4c] sm:$0xf] %v328_v51  ;;  %v372_v9 = vld [vmem:[%s2586_s28 + $0x148] sm:$0xf]  ;;  %v374_v10 = vld [vmem:[%s2586_s28 + $0x150] sm:$0xf] }
  0x68   : > { %331 = vst [vmem:[%s2591_s10 + $0x50] sm:$0xf] %v330_v52  ;;  %v376_v11 = vld [vmem:[%s2586_s28 + $0x158] sm:$0xf]  ;;  %v378_v12 = vld [vmem:[%s2586_s28 + $0x160] sm:$0xf] }
  0x69   : > { %333 = vst [vmem:[%s2591_s10 + $0x54] sm:$0xf] %v332_v53  ;;  %v380_v13 = vld [vmem:[%s2586_s28 + $0x168] sm:$0xf]  ;;  %v382_v14 = vld [vmem:[%s2586_s28 + $0x170] sm:$0xf] }
  0x6a   : > { %335 = vst [vmem:[%s2591_s10 + $0x58] sm:$0xf] %v334_v54  ;;  %v384_v15 = vld [vmem:[%s2586_s28 + $0x178] sm:$0xf]  ;;  %v386_v16 = vld [vmem:[%s2586_s28 + $0x180] sm:$0xf] }
  0x6b   : > { %337 = vst [vmem:[%s2591_s10 + $0x5c] sm:$0xf] %v336_v55  ;;  %v388_v17 = vld [vmem:[%s2586_s28 + $0x188] sm:$0xf]  ;;  %v390_v18 = vld [vmem:[%s2586_s28 + $0x190] sm:$0xf] }
  0x6c   : > { %339 = vst [vmem:[%s2591_s10 + $0x60] sm:$0xf] %v338_v56  ;;  %v392_v19 = vld [vmem:[%s2586_s28 + $0x198] sm:$0xf]  ;;  %v394_v20 = vld [vmem:[%s2586_s28 + $0x1a0] sm:$0xf] }
  0x6d   : > { %341 = vst [vmem:[%s2591_s10 + $0x64] sm:$0xf] %v340_v57  ;;  %v396_v21 = vld [vmem:[%s2586_s28 + $0x1a8] sm:$0xf]  ;;  %v398_v22 = vld [vmem:[%s2586_s28 + $0x1b0] sm:$0xf] }
  0x6e   : > { %343 = vst [vmem:[%s2591_s10 + $0x68] sm:$0xf] %v342_v58  ;;  %v400_v23 = vld [vmem:[%s2586_s28 + $0x1b8] sm:$0xf]  ;;  %v402_v24 = vld [vmem:[%s2586_s28 + $0x1c0] sm:$0xf] }
  0x6f   : > { %345 = vst [vmem:[%s2591_s10 + $0x6c] sm:$0xf] %v344_v59  ;;  %v404_v25 = vld [vmem:[%s2586_s28 + $0x1c8] sm:$0xf]  ;;  %v406_v26 = vld [vmem:[%s2586_s28 + $0x1d0] sm:$0xf] }
  0x70   : > { %347 = vst [vmem:[%s2591_s10 + $0x70] sm:$0xf] %v346_v60  ;;  %v408_v27 = vld [vmem:[%s2586_s28 + $0x1d8] sm:$0xf]  ;;  %v410_v28 = vld [vmem:[%s2586_s28 + $0x1e0] sm:$0xf] }
  0x71   : > { %349 = vst [vmem:[%s2591_s10 + $0x74] sm:$0xf] %v348_v61  ;;  %v412_v29 = vld [vmem:[%s2586_s28 + $0x1e8] sm:$0xf]  ;;  %v414_v30 = vld [vmem:[%s2586_s28 + $0x1f0] sm:$0xf] }
  0x72   : > { %351 = vst [vmem:[%s2591_s10 + $0x78] sm:$0xf] %v350_v62  ;;  %v416_v31 = vld [vmem:[%s2586_s28 + $0x1f8] sm:$0xf] }
  0x73   : > { %353 = vst [vmem:[%s2591_s10 + $0x7c] sm:$0xf] %v352_v63 }
  0x74   : > { %355 = vst [vmem:[%s2591_s10 + $0x80] sm:$0xf] %v354_v0 }
  0x75   : > { %357 = vst [vmem:[%s2591_s10 + $0x84] sm:$0xf] %v356_v1 }
  0x76   : > { %359 = vst [vmem:[%s2591_s10 + $0x88] sm:$0xf] %v358_v2 }
  0x77   : > { %361 = vst [vmem:[%s2591_s10 + $0x8c] sm:$0xf] %v360_v3 }
  0x78   : > { %363 = vst [vmem:[%s2591_s10 + $0x90] sm:$0xf] %v362_v4 }
  0x79   : > { %365 = vst [vmem:[%s2591_s10 + $0x94] sm:$0xf] %v364_v5 }
  0x7a   : > { %367 = vst [vmem:[%s2591_s10 + $0x98] sm:$0xf] %v366_v6 }
  0x7b   : > { %369 = vst [vmem:[%s2591_s10 + $0x9c] sm:$0xf] %v368_v7 }
  0x7c   : > { %371 = vst [vmem:[%s2591_s10 + $0xa0] sm:$0xf] %v370_v8 }
  0x7d   : > { %373 = vst [vmem:[%s2591_s10 + $0xa4] sm:$0xf] %v372_v9 }
  0x7e   : > { %375 = vst [vmem:[%s2591_s10 + $0xa8] sm:$0xf] %v374_v10 }
  0x7f   : > { %377 = vst [vmem:[%s2591_s10 + $0xac] sm:$0xf] %v376_v11 }
  0x80   : > { %379 = vst [vmem:[%s2591_s10 + $0xb0] sm:$0xf] %v378_v12 }
  0x81   : > { %381 = vst [vmem:[%s2591_s10 + $0xb4] sm:$0xf] %v380_v13 }
  0x82   : > { %383 = vst [vmem:[%s2591_s10 + $0xb8] sm:$0xf] %v382_v14 }
  0x83   : > { %385 = vst [vmem:[%s2591_s10 + $0xbc] sm:$0xf] %v384_v15 }
  0x84   : > { %387 = vst [vmem:[%s2591_s10 + $0xc0] sm:$0xf] %v386_v16 }
  0x85   : > { %389 = vst [vmem:[%s2591_s10 + $0xc4] sm:$0xf] %v388_v17 }
  0x86   : > { %391 = vst [vmem:[%s2591_s10 + $0xc8] sm:$0xf] %v390_v18 }
  0x87   : > { %393 = vst [vmem:[%s2591_s10 + $0xcc] sm:$0xf] %v392_v19 }
  0x88   : > { %395 = vst [vmem:[%s2591_s10 + $0xd0] sm:$0xf] %v394_v20 }
  0x89   : > { %397 = vst [vmem:[%s2591_s10 + $0xd4] sm:$0xf] %v396_v21 }
  0x8a   : > { %399 = vst [vmem:[%s2591_s10 + $0xd8] sm:$0xf] %v398_v22 }
  0x8b   : > { %401 = vst [vmem:[%s2591_s10 + $0xdc] sm:$0xf] %v400_v23 }
  0x8c   : > { %403 = vst [vmem:[%s2591_s10 + $0xe0] sm:$0xf] %v402_v24 }
  0x8d   : > { %405 = vst [vmem:[%s2591_s10 + $0xe4] sm:$0xf] %v404_v25 }
  0x8e   : > { %407 = vst [vmem:[%s2591_s10 + $0xe8] sm:$0xf] %v406_v26 }
  0x8f   : > { %409 = vst [vmem:[%s2591_s10 + $0xec] sm:$0xf] %v408_v27 }
  0x90   : > { %411 = vst [vmem:[%s2591_s10 + $0xf0] sm:$0xf] %v410_v28 }
  0x91   : > { %413 = vst [vmem:[%s2591_s10 + $0xf4] sm:$0xf] %v412_v29 }
  0x92   : > { %415 = vst [vmem:[%s2591_s10 + $0xf8] sm:$0xf] %v414_v30 }
  0x93   : > { %417 = vst [vmem:[%s2591_s10 + $0xfc] sm:$0xf] %v416_v31 }
  0x94 PF: > { %p1818_p0 = scmp.ge.s32.totalorder %s2376_s25, 1  ;;  %p580_p1 = scmp.lt.s32.totalorder %s2376_s25, 9 }
  0x96   : > { %p581_p2 = pnand %p1818_p0, %p580_p1 }
  0x97   : > { %s587_s0 = sand.u32 (!%p581_p2), 1, %s2352_s19   ;;  %s594_s11 = sand.u32 (!%p581_p2), 1, %s2344_s17  }
  0x98   : > { %584 = sbr.rel (%p581_p2) target bundleno = 636 (0x27c), region = 92  ;;  %s1819_s26 = sshll.u32 (!%p581_p2), %s587_s0, 8 }
  0x99   : > { %s1820_s28 = sshll.u32 (!%p581_p2), %s594_s11, 8  ;;  %s625_s5 = sand.u32 (!%p581_p2), 1, %s2336_s15  }
  0x9a   : > { %p630_p3 = scmp.lt.s32.totalorder (!%p581_p2), %s2364_s22, 1  ;;  %s1821_s29 = sshll.u32 (!%p581_p2), %s625_s5, 6 }
  0x9b   : > { %s2735_s24 = scalar_lea.vmem (!%p581_p2), [#allocation3], %s1819_s26  ;;  %s2737_s17 = scalar_lea.vmem (!%p581_p2), [#allocation4], %s1820_s28 }
  0x9c   : > { %s2739_s19 = scalar_lea.vmem (!%p581_p2), [#allocation5], %s1821_s29  ;;  %p1822_p4 = scmp.ne.s32.totalorder (!%p581_p2), %s2360_s21, 0 }
  0x9d   : > { %s2725_s30 = scalar_select %p630_p3, %s2364_s22, 1 }
  0x9e   : > { %639 = sbr.rel (%p1822_p4) target bundleno = 180 (0xb4), region = 104 }
  0x9f   : > { %s632_s9 = scalar_lea.vmem %s3043_s2, %s2725_s30  ;;  %s635_s27 = scalar_lea.vmem %s3044_s3, %s2725_s30 }
  0xa3   : > { %v2378_v32 = vmov 0.0  }
  0xa4   : > { %640 = vst [vmem:[#allocation2 + $0x30] sm:$0xff] %v2378_v32 }
  0xa5   : > { %641 = vst [vmem:[#allocation2] sm:$0xff] %v2378_v32 }
  0xa6   : > { %642 = vst [vmem:[#allocation2 + $0x58] sm:$0xff] %v2378_v32 }
  0xa7   : > { %643 = vst [vmem:[#allocation2 + $0x18] sm:$0xff] %v2378_v32 }
  0xa8   : > { %644 = vst [vmem:[#allocation2 + $0x50] sm:$0xff] %v2378_v32 }
  0xa9   : > { %645 = vst [vmem:[#allocation2 + $0x68] sm:$0xff] %v2378_v32 }
  0xaa   : > { %646 = vst [vmem:[#allocation2 + $0x8] sm:$0xff] %v2378_v32 }
  0xab   : > { %647 = vst [vmem:[#allocation2 + $0x48] sm:$0xff] %v2378_v32 }
  0xac   : > { %648 = vst [vmem:[#allocation2 + $0x40] sm:$0xff] %v2378_v32 }
  0xad   : > { %649 = vst [vmem:[#allocation2 + $0x20] sm:$0xff] %v2378_v32 }
  0xae   : > { %650 = vst [vmem:[#allocation2 + $0x10] sm:$0xff] %v2378_v32 }
  0xaf   : > { %651 = vst [vmem:[#allocation2 + $0x38] sm:$0xff] %v2378_v32 }
  0xb0   : > { %652 = vst [vmem:[#allocation2 + $0x60] sm:$0xff] %v2378_v32 }
  0xb1   : > { %653 = vst [vmem:[#allocation2 + $0x70] sm:$0xff] %v2378_v32 }
  0xb2   : > { %654 = vst [vmem:[#allocation2 + $0x78] sm:$0xff] %v2378_v32 }
  0xb3   : > { %655 = vst [vmem:[#allocation2 + $0x28] sm:$0xff] %v2378_v32 }
  0xb4 PF: > { %v2125_v33 = vld [vmem:[%s2737_s17 + $0x38] sm:$0xff]  ;;  %v2124_v37 = vld [vmem:[%s2737_s17 + $0x30] sm:$0xff]  ;;  %v2123_v41 = vld [vmem:[%s2737_s17 + $0x28] sm:$0xff]  ;;  %p2079_p5 = scmp.ne.s32.totalorder %s2360_s21, 3 }
  0xb5   : > { %v2133_v34 = vld [vmem:[%s2737_s17 + $0x78] sm:$0xff]  ;;  %1120 = vmatpush.bf16.msra.mxu0 %v2125_v33  ;;  %v2132_v38 = vld [vmem:[%s2737_s17 + $0x70] sm:$0xff]  ;;  %v2131_v42 = vld [vmem:[%s2737_s17 + $0x68] sm:$0xff] }
  0xb6   : > { %v2141_v35 = vld [vmem:[%s2737_s17 + $0xb8] sm:$0xff]  ;;  %1169 = vmatpush.bf16.msra.mxu1 %v2133_v34  ;;  %v2140_v39 = vld [vmem:[%s2737_s17 + $0xb0] sm:$0xff]  ;;  %v2139_v43 = vld [vmem:[%s2737_s17 + $0xa8] sm:$0xff] }
  0xb7   : > { %v2149_v36 = vld [vmem:[%s2737_s17 + $0xf8] sm:$0xff]  ;;  %1218 = vmatpush.bf16.msra.mxu2 %v2141_v35  ;;  %v2148_v40 = vld [vmem:[%s2737_s17 + $0xf0] sm:$0xff]  ;;  %v2147_v44 = vld [vmem:[%s2737_s17 + $0xe8] sm:$0xff] }
  0xb8   : > { %1267 = vmatpush.bf16.msra.mxu3 %v2149_v36  ;;  %v2122_v45 = vld [vmem:[%s2737_s17 + $0x20] sm:$0xff]  ;;  %v2121_v49 = vld [vmem:[%s2737_s17 + $0x18] sm:$0xff]  ;;  %v2120_v53 = vld [vmem:[%s2737_s17 + $0x10] sm:$0xff] }
  0xb9   : > { %1121 = vmatpush.bf16.msra.mxu0 %v2124_v37  ;;  %v2130_v46 = vld [vmem:[%s2737_s17 + $0x60] sm:$0xff]  ;;  %v2129_v50 = vld [vmem:[%s2737_s17 + $0x58] sm:$0xff]  ;;  %v2128_v54 = vld [vmem:[%s2737_s17 + $0x50] sm:$0xff] }
  0xba   : > { %1170 = vmatpush.bf16.msra.mxu1 %v2132_v38  ;;  %v2138_v47 = vld [vmem:[%s2737_s17 + $0xa0] sm:$0xff]  ;;  %v2137_v51 = vld [vmem:[%s2737_s17 + $0x98] sm:$0xff]  ;;  %v2136_v55 = vld [vmem:[%s2737_s17 + $0x90] sm:$0xff] }
  0xbb   : > { %1219 = vmatpush.bf16.msra.mxu2 %v2140_v39  ;;  %v2146_v48 = vld [vmem:[%s2737_s17 + $0xe0] sm:$0xff]  ;;  %v2145_v52 = vld [vmem:[%s2737_s17 + $0xd8] sm:$0xff]  ;;  %v2144_v56 = vld [vmem:[%s2737_s17 + $0xd0] sm:$0xff] }
  0xbc   : > { %1268 = vmatpush.bf16.msra.mxu3 %v2148_v40  ;;  %v2119_v57 = vld [vmem:[%s2737_s17 + $0x8] sm:$0xff]  ;;  %v2118_v61 = vld [vmem:[%s2737_s17] sm:$0xff]  ;;  %v2088_v2 = vld [vmem:[%s2735_s24 + $0xc] sm:$0xf0] }
  0xbd   : > { %1122 = vmatpush.bf16.msra.mxu0 %v2123_v41  ;;  %v2127_v58 = vld [vmem:[%s2737_s17 + $0x48] sm:$0xff]  ;;  %v2126_v62 = vld [vmem:[%s2737_s17 + $0x40] sm:$0xff]  ;;  %v1827_v4 = vld [vmem:[%s2735_s24 + $0x10] sm:$0xf0] }
  0xbe   : > { %1171 = vmatpush.bf16.msra.mxu1 %v2131_v42  ;;  %v2135_v59 = vld [vmem:[%s2737_s17 + $0x88] sm:$0xff]  ;;  %v2134_v63 = vld [vmem:[%s2737_s17 + $0x80] sm:$0xff]  ;;  %v2089_v6 = vld [vmem:[%s2735_s24 + $0x14] sm:$0xf0] }
  0xbf   : > { %1220 = vmatpush.bf16.msra.mxu2 %v2139_v43  ;;  %v2143_v60 = vld [vmem:[%s2737_s17 + $0xc8] sm:$0xff]  ;;  %v2142_v0 = vld [vmem:[%s2737_s17 + $0xc0] sm:$0xff]  ;;  %v1835_v8 = vld [vmem:[%s2735_s24 + $0x18] sm:$0xf0] }
  0xc0   : > { %1269 = vmatpush.bf16.msra.mxu3 %v2147_v44  ;;  %v1825_v1 = vld [vmem:[%s2735_s24] sm:$0xf]  ;;  %v2086_v3 = vld [vmem:[%s2735_s24 + $0x4] sm:$0xf]  ;;  %v1833_v5 = vld [vmem:[%s2735_s24 + $0x8] sm:$0xf] }
  0xc1   : > { %1123 = vmatpush.bf16.msra.mxu0 %v2122_v45  ;;  %v2087_v7 = vld [vmem:[%s2735_s24 + $0xc] sm:$0xf]  ;;  %v1826_v9 = vor.u32 %v2088_v2, %v1825_v1  ;;  %v1830_v10 = vor.u32 %v2086_v3, %v1827_v4  ;;  %v1834_v11 = vor.u32 %v2089_v6, %v1833_v5  ;;  %v1841_v13 = vld [vmem:[%s2735_s24 + $0x20] sm:$0xf]  ;;  %v2092_v14 = vld [vmem:[%s2735_s24 + $0x2c] sm:$0xf0] }
  0xc2   : > { %1172 = vmatpush.bf16.msra.mxu1 %v2130_v46  ;;  %v1838_v12 = vor.u32 %v2087_v7, %v1835_v8  ;;  %v2090_v15 = vld [vmem:[%s2735_s24 + $0x24] sm:$0xf]  ;;  %v1843_v16 = vld [vmem:[%s2735_s24 + $0x30] sm:$0xf0]  ;;  %v1849_v17 = vld [vmem:[%s2735_s24 + $0x28] sm:$0xf]  ;;  %v1842_v21 = vor.u32 %v2092_v14, %v1841_v13 }
  0xc3   : > { %1221 = vmatpush.bf16.msra.mxu2 %v2138_v47  ;;  %v2093_v18 = vld [vmem:[%s2735_s24 + $0x34] sm:$0xf0]  ;;  %v2091_v19 = vld [vmem:[%s2735_s24 + $0x2c] sm:$0xf]  ;;  %v1851_v20 = vld [vmem:[%s2735_s24 + $0x38] sm:$0xf0]  ;;  %v1846_v22 = vor.u32 %v2090_v15, %v1843_v16 }
  0xc4   : > { %1270 = vmatpush.bf16.msra.mxu3 %v2146_v48  ;;  %v1850_v23 = vor.u32 %v2093_v18, %v1849_v17  ;;  %v1854_v24 = vor.u32 %v2091_v19, %v1851_v20  ;;  %v1857_v25 = vld [vmem:[%s2735_s24 + $0x40] sm:$0xf]  ;;  %v2096_v26 = vld [vmem:[%s2735_s24 + $0x4c] sm:$0xf0]  ;;  %v2094_v27 = vld [vmem:[%s2735_s24 + $0x44] sm:$0xf] }
  0xc5   : > { %1124 = vmatpush.bf16.msra.mxu0 %v2121_v49  ;;  %v1859_v28 = vld [vmem:[%s2735_s24 + $0x50] sm:$0xf0]  ;;  %v1865_v29 = vld [vmem:[%s2735_s24 + $0x48] sm:$0xf]  ;;  %v2097_v30 = vld [vmem:[%s2735_s24 + $0x54] sm:$0xf0]  ;;  %v1858_v33 = vor.u32 %v2096_v26, %v1857_v25 }
  0xc6   : > { %1173 = vmatpush.bf16.msra.mxu1 %v2129_v50  ;;  %v2095_v31 = vld [vmem:[%s2735_s24 + $0x4c] sm:$0xf]  ;;  %v1867_v32 = vld [vmem:[%s2735_s24 + $0x58] sm:$0xf0]  ;;  %v1862_v34 = vor.u32 %v2094_v27, %v1859_v28  ;;  %v1866_v35 = vor.u32 %v2097_v30, %v1865_v29  ;;  %v1873_v37 = vld [vmem:[%s2735_s24 + $0x60] sm:$0xf] }
  0xc7   : > { %1222 = vmatpush.bf16.msra.mxu2 %v2137_v51  ;;  %v1870_v36 = vor.u32 %v2095_v31, %v1867_v32  ;;  %v2100_v38 = vld [vmem:[%s2735_s24 + $0x6c] sm:$0xf0]  ;;  %v2098_v39 = vld [vmem:[%s2735_s24 + $0x64] sm:$0xf]  ;;  %v1875_v40 = vld [vmem:[%s2735_s24 + $0x70] sm:$0xf0] }
  0xc8   : > { %1271 = vmatpush.bf16.msra.mxu3 %v2145_v52  ;;  %v1881_v41 = vld [vmem:[%s2735_s24 + $0x68] sm:$0xf]  ;;  %v2101_v42 = vld [vmem:[%s2735_s24 + $0x74] sm:$0xf0]  ;;  %v2099_v43 = vld [vmem:[%s2735_s24 + $0x6c] sm:$0xf]  ;;  %v1874_v45 = vor.u32 %v2100_v38, %v1873_v37  ;;  %v1878_v46 = vor.u32 %v2098_v39, %v1875_v40 }
  0xc9   : > { %1125 = vmatpush.bf16.msra.mxu0 %v2120_v53  ;;  %v1883_v44 = vld [vmem:[%s2735_s24 + $0x78] sm:$0xf0]  ;;  %v1882_v47 = vor.u32 %v2101_v42, %v1881_v41  ;;  %v1889_v49 = vld [vmem:[%s2735_s24 + $0x80] sm:$0xf]  ;;  %v2104_v50 = vld [vmem:[%s2735_s24 + $0x8c] sm:$0xf0] }
  0xca   : > { %1174 = vmatpush.bf16.msra.mxu1 %v2128_v54  ;;  %v1886_v48 = vor.u32 %v2099_v43, %v1883_v44  ;;  %v2102_v51 = vld [vmem:[%s2735_s24 + $0x84] sm:$0xf]  ;;  %v1891_v52 = vld [vmem:[%s2735_s24 + $0x90] sm:$0xf0]  ;;  %v1897_v53 = vld [vmem:[%s2735_s24 + $0x88] sm:$0xf] }
  0xcb   : > { %1223 = vmatpush.bf16.msra.mxu2 %v2136_v55  ;;  %v2105_v54 = vld [vmem:[%s2735_s24 + $0x94] sm:$0xf0]  ;;  %v2103_v55 = vld [vmem:[%s2735_s24 + $0x8c] sm:$0xf]  ;;  %v1913_v1 = vld [vmem:[%s2735_s24 + $0xa8] sm:$0xf] }
  0xcc   : > { %1272 = vmatpush.bf16.msra.mxu3 %v2144_v56  ;;  %v1899_v56 = vld [vmem:[%s2735_s24 + $0x98] sm:$0xf0]  ;;  %v2109_v2 = vld [vmem:[%s2735_s24 + $0xb4] sm:$0xf0]  ;;  %v2107_v3 = vld [vmem:[%s2735_s24 + $0xac] sm:$0xf] }
  0xcd   : > { %1126 = vmatpush.bf16.msra.mxu0 %v2119_v57  ;;  %v1890_v57 = vor.u32 %v2104_v50, %v1889_v49  ;;  %v1915_v4 = vld [vmem:[%s2735_s24 + $0xb8] sm:$0xf0]  ;;  %v1914_v7 = vor.u32 %v2109_v2, %v1913_v1  ;;  %v1929_v13 = vld [vmem:[%s2735_s24 + $0xc8] sm:$0xf]  ;;  %v2113_v14 = vld [vmem:[%s2735_s24 + $0xd4] sm:$0xf0] }
  0xce   : > { %1175 = vmatpush.bf16.msra.mxu1 %v2127_v58  ;;  %v1894_v58 = vor.u32 %v2102_v51, %v1891_v52  ;;  %v1918_v8 = vor.u32 %v2107_v3, %v1915_v4  ;;  %v2111_v15 = vld [vmem:[%s2735_s24 + $0xcc] sm:$0xf]  ;;  %v1931_v16 = vld [vmem:[%s2735_s24 + $0xd8] sm:$0xf0]  ;;  %v1930_v19 = vor.u32 %v2113_v14, %v1929_v13  ;;  %v1945_v25 = vld [vmem:[%s2735_s24 + $0xe8] sm:$0xf] }
  0xcf   : > { %1224 = vmatpush.bf16.msra.mxu2 %v2135_v59  ;;  %v1898_v59 = vor.u32 %v2105_v54, %v1897_v53  ;;  %v1934_v20 = vor.u32 %v2111_v15, %v1931_v16  ;;  %v2117_v26 = vld [vmem:[%s2735_s24 + $0xf4] sm:$0xf0]  ;;  %v2115_v27 = vld [vmem:[%s2735_s24 + $0xec] sm:$0xf]  ;;  %v1947_v28 = vld [vmem:[%s2735_s24 + $0xf8] sm:$0xf0] }
  0xd0   : > { %1273 = vmatpush.bf16.msra.mxu3 %v2143_v60  ;;  %v1902_v60 = vor.u32 %v2103_v55, %v1899_v56  ;;  %v1946_v31 = vor.u32 %v2117_v26, %v1945_v25  ;;  %v1950_v32 = vor.u32 %v2115_v27, %v1947_v28  ;;  %v656_v41 = vld [vmem:[#allocation2 + $0x30] sm:$0xff]  ;;  %v657_v50 = vld [vmem:[#allocation2] sm:$0xff]  ;;  %v659_v4 = vld [vmem:[#allocation2 + $0x18] sm:$0xff] }
  0xd1   : > { %1127 = vmatpush.bf16.msra.mxu0 %v2118_v61  ;;  %v1905_v61 = vld [vmem:[%s2735_s24 + $0xa0] sm:$0xf]  ;;  %v660_v13 = vld [vmem:[#allocation2 + $0x50] sm:$0xff] }
  0xd2   : > { %1176 = vmatpush.bf16.msra.mxu1 %v2126_v62  ;;  %v2108_v62 = vld [vmem:[%s2735_s24 + $0xac] sm:$0xf0] }
  0xd3   : > { %1225 = vmatpush.bf16.msra.mxu2 %v2134_v63  ;;  %v2106_v63 = vld [vmem:[%s2735_s24 + $0xa4] sm:$0xf]  ;;  %v1906_v5 = vor.u32 %v2108_v62, %v1905_v61 }
  0xd4   : > { %1274 = vmatpush.bf16.msra.mxu3 %v2142_v0  ;;  %1128 = vmatmul.bf16.vlgmr.msra.gmra.mxu0 %v1826_v9  ;;  %v1907_v0 = vld [vmem:[%s2735_s24 + $0xb0] sm:$0xf0]  ;;  %v1921_v9 = vld [vmem:[%s2735_s24 + $0xc0] sm:$0xf] }
  0xd5   : > { %1177 = vmatmul.bf16.vlgmr.msra.gmra.mxu1 %v1830_v10  ;;  %v1910_v6 = vor.u32 %v2106_v63, %v1907_v0  ;;  %v2112_v10 = vld [vmem:[%s2735_s24 + $0xcc] sm:$0xf0] }
  0xd6   : > { %1226 = vmatmul.bf16.vlgmr.msra.gmra.mxu2 %v1834_v11  ;;  %v2110_v11 = vld [vmem:[%s2735_s24 + $0xc4] sm:$0xf]  ;;  %v1922_v17 = vor.u32 %v2112_v10, %v1921_v9 }
  0xd7   : > { %1275 = vmatmul.bf16.vlgmr.msra.gmra.mxu3 %v1838_v12  ;;  %v1923_v12 = vld [vmem:[%s2735_s24 + $0xd0] sm:$0xf0] }
  0xd8   : > { %v1926_v18 = vor.u32 %v2110_v11, %v1923_v12 }
  0xe4   : > { %1133 = vmatmul.bf16.gmra.mxu0 %v1842_v21  ;;  %v1937_v21 = vld [vmem:[%s2735_s24 + $0xe0] sm:$0xf] }
  0xe5   : > { %1182 = vmatmul.bf16.gmra.mxu1 %v1846_v22  ;;  %v2116_v22 = vld [vmem:[%s2735_s24 + $0xec] sm:$0xf0] }
  0xe6   : > { %1231 = vmatmul.bf16.gmra.mxu2 %v1850_v23  ;;  %v2114_v23 = vld [vmem:[%s2735_s24 + $0xe4] sm:$0xf]  ;;  %v1938_v29 = vor.u32 %v2116_v22, %v1937_v21  ;;  %v661_v22 = vld [vmem:[#allocation2 + $0x68] sm:$0xff] }
  0xe7   : > { %1280 = vmatmul.bf16.gmra.mxu3 %v1854_v24  ;;  %v1939_v24 = vld [vmem:[%s2735_s24 + $0xf0] sm:$0xf0] }
  0xe8   : > { %v1942_v30 = vor.u32 %v2114_v23, %v1939_v24 }
  0xf4   : > { %1138 = vmatmul.bf16.gmra.mxu0 %v1858_v33 }
  0xf5   : > { %1187 = vmatmul.bf16.gmra.mxu1 %v1862_v34 }
  0xf6   : > { %1236 = vmatmul.bf16.gmra.mxu2 %v1866_v35 }
  0xf7   : > { %1285 = vmatmul.bf16.gmra.mxu3 %v1870_v36 }
 0x104   : > { %1143 = vmatmul.bf16.gmra.mxu0 %v1874_v45 }
 0x105   : > { %1192 = vmatmul.bf16.gmra.mxu1 %v1878_v46 }
 0x106   : > { %1241 = vmatmul.bf16.gmra.mxu2 %v1882_v47 }
 0x107   : > { %1290 = vmatmul.bf16.gmra.mxu3 %v1886_v48 }
 0x114   : > { %1148 = vmatmul.bf16.gmra.mxu0 %v1890_v57 }
 0x115   : > { %1197 = vmatmul.bf16.gmra.mxu1 %v1894_v58 }
 0x116   : > { %1246 = vmatmul.bf16.gmra.mxu2 %v1898_v59  ;;  %v658_v59 = vld [vmem:[#allocation2 + $0x58] sm:$0xff] }
 0x117   : > { %1295 = vmatmul.bf16.gmra.mxu3 %v1902_v60 }
 0x124   : > { %1153 = vmatmul.bf16.gmra.mxu0 %v1906_v5 }
 0x125   : > { %1202 = vmatmul.bf16.gmra.mxu1 %v1910_v6 }
 0x126   : > { %1251 = vmatmul.bf16.gmra.mxu2 %v1914_v7 }
 0x127   : > { %1300 = vmatmul.bf16.gmra.mxu3 %v1918_v8 }
 0x134   : > { %1158 = vmatmul.bf16.gmra.mxu0 %v1922_v17 }
 0x135   : > { %1207 = vmatmul.bf16.gmra.mxu1 %v1926_v18 }
 0x136   : > { %1256 = vmatmul.bf16.gmra.mxu2 %v1930_v19 }
 0x137   : > { %1305 = vmatmul.bf16.gmra.mxu3 %v1934_v20 }
 0x144   : > { %1163 = vmatmul.bf16.gmra.mxu0 %v1938_v29 }
 0x145   : > { %1212 = vmatmul.bf16.gmra.mxu1 %v1942_v30 }
 0x146   : > { %1261 = vmatmul.bf16.gmra.mxu2 %v1946_v31  ;;  %v662_v31 = vld [vmem:[#allocation2 + $0x8] sm:$0xff] }
 0x147   : > { %1310 = vmatmul.bf16.gmra.mxu3 %v1950_v32 }
 0x151   : > { %v1129_v33 = vpop.f32.mrf.mxu0 }
 0x152   : > { %v1178_v34 = vpop.f32.mrf.mxu1 }
 0x153   : > { %v1179_v35 = vadd.f32 %v1178_v34, %v1129_v33 }
 0x159   : > { %v1227_v36 = vpop.f32.mrf.mxu2  ;;  %v1131_v39 = vpop.f32.mrf.mxu0 }
 0x15a   : > { %v1276_v37 = vpop.f32.mrf.mxu3  ;;  %v1228_v38 = vadd.f32 %v1227_v36, %v1179_v35  ;;  %v1180_v40 = vpop.f32.mrf.mxu1 }
 0x15b   : > { %v1181_v44 = vadd.f32 %v1180_v40, %v1131_v39  ;;  %v663_v40 = vld [vmem:[#allocation2 + $0x48] sm:$0xff] }
 0x15c   : > { %v1277_v42 = vadd.f32 %v1276_v37, %v1228_v38 }
 0x15e   : > { %v1316_v43 = vadd.f32 %v1277_v42, %v656_v41 }
 0x160   : > { %1332 = vst [vmem:[#allocation2 + $0x30] sm:$0xff] %v1316_v43 }
 0x161   : > { %v1229_v45 = vpop.f32.mrf.mxu2  ;;  %v1134_v48 = vpop.f32.mrf.mxu0 }
 0x162   : > { %v1278_v46 = vpop.f32.mrf.mxu3  ;;  %v1230_v47 = vadd.f32 %v1229_v45, %v1181_v44  ;;  %v1183_v49 = vpop.f32.mrf.mxu1 }
 0x163   : > { %v1184_v53 = vadd.f32 %v1183_v49, %v1134_v48  ;;  %v664_v49 = vld [vmem:[#allocation2 + $0x40] sm:$0xff] }
 0x164   : > { %v1279_v51 = vadd.f32 %v1278_v46, %v1230_v47 }
 0x166   : > { %v1317_v52 = vadd.f32 %v1279_v51, %v657_v50 }
 0x168   : > { %1333 = vst [vmem:[#allocation2] sm:$0xff] %v1317_v52 }
 0x169   : > { %v1232_v54 = vpop.f32.mrf.mxu2  ;;  %v1136_v57 = vpop.f32.mrf.mxu0 }
 0x16a   : > { %v1281_v55 = vpop.f32.mrf.mxu3  ;;  %v1233_v56 = vadd.f32 %v1232_v54, %v1184_v53  ;;  %v1185_v58 = vpop.f32.mrf.mxu1 }
 0x16b   : > { %v1186_v62 = vadd.f32 %v1185_v58, %v1136_v57  ;;  %v665_v58 = vld [vmem:[#allocation2 + $0x20] sm:$0xff] }
 0x16c   : > { %v1282_v60 = vadd.f32 %v1281_v55, %v1233_v56 }
 0x16e   : > { %v1318_v61 = vadd.f32 %v1282_v60, %v658_v59 }
 0x170   : > { %1334 = vst [vmem:[#allocation2 + $0x58] sm:$0xff] %v1318_v61 }
 0x171   : > { %v1234_v63 = vpop.f32.mrf.mxu2  ;;  %v1139_v2 = vpop.f32.mrf.mxu0 }
 0x172   : > { %v1283_v0 = vpop.f32.mrf.mxu3  ;;  %v1235_v1 = vadd.f32 %v1234_v63, %v1186_v62  ;;  %v1188_v3 = vpop.f32.mrf.mxu1 }
 0x173   : > { %v1189_v7 = vadd.f32 %v1188_v3, %v1139_v2  ;;  %v666_v3 = vld [vmem:[#allocation2 + $0x10] sm:$0xff] }
 0x174   : > { %v1284_v5 = vadd.f32 %v1283_v0, %v1235_v1 }
 0x176   : > { %v1319_v6 = vadd.f32 %v1284_v5, %v659_v4 }
 0x178   : > { %1335 = vst [vmem:[#allocation2 + $0x18] sm:$0xff] %v1319_v6 }
 0x179   : > { %v1237_v8 = vpop.f32.mrf.mxu2  ;;  %v1141_v11 = vpop.f32.mrf.mxu0 }
 0x17a   : > { %v1286_v9 = vpop.f32.mrf.mxu3  ;;  %v1238_v10 = vadd.f32 %v1237_v8, %v1189_v7  ;;  %v1190_v12 = vpop.f32.mrf.mxu1 }
 0x17b   : > { %v1191_v16 = vadd.f32 %v1190_v12, %v1141_v11  ;;  %v667_v12 = vld [vmem:[#allocation2 + $0x38] sm:$0xff] }
 0x17c   : > { %v1287_v14 = vadd.f32 %v1286_v9, %v1238_v10 }
 0x17e   : > { %v1320_v15 = vadd.f32 %v1287_v14, %v660_v13 }
 0x180   : > { %1336 = vst [vmem:[#allocation2 + $0x50] sm:$0xff] %v1320_v15 }
 0x181   : > { %v1239_v17 = vpop.f32.mrf.mxu2  ;;  %v1144_v20 = vpop.f32.mrf.mxu0 }
 0x182   : > { %v1288_v18 = vpop.f32.mrf.mxu3  ;;  %v1240_v19 = vadd.f32 %v1239_v17, %v1191_v16  ;;  %v1193_v21 = vpop.f32.mrf.mxu1 }
 0x183   : > { %v1194_v25 = vadd.f32 %v1193_v21, %v1144_v20  ;;  %v668_v21 = vld [vmem:[#allocation2 + $0x60] sm:$0xff] }
 0x184   : > { %v1289_v23 = vadd.f32 %v1288_v18, %v1240_v19 }
 0x186   : > { %v1321_v24 = vadd.f32 %v1289_v23, %v661_v22 }
 0x188   : > { %1337 = vst [vmem:[#allocation2 + $0x68] sm:$0xff] %v1321_v24 }
 0x189   : > { %v1242_v26 = vpop.f32.mrf.mxu2  ;;  %v1146_v29 = vpop.f32.mrf.mxu0 }
 0x18a   : > { %v1291_v27 = vpop.f32.mrf.mxu3  ;;  %v1243_v28 = vadd.f32 %v1242_v26, %v1194_v25  ;;  %v1195_v30 = vpop.f32.mrf.mxu1 }
 0x18b   : > { %v1196_v34 = vadd.f32 %v1195_v30, %v1146_v29 }
 0x18c   : > { %v1292_v32 = vadd.f32 %v1291_v27, %v1243_v28  ;;  %v669_v28 = vld [vmem:[#allocation2 + $0x70] sm:$0xff] }
 0x18e   : > { %v1322_v33 = vadd.f32 %v1292_v32, %v662_v31 }
 0x190   : > { %1338 = vst [vmem:[#allocation2 + $0x8] sm:$0xff] %v1322_v33 }
 0x191   : > { %v1244_v35 = vpop.f32.mrf.mxu2  ;;  %v1149_v38 = vpop.f32.mrf.mxu0 }
 0x192   : > { %v1293_v36 = vpop.f32.mrf.mxu3  ;;  %v1245_v37 = vadd.f32 %v1244_v35, %v1196_v34  ;;  %v1198_v39 = vpop.f32.mrf.mxu1 }
 0x193   : > { %v1199_v43 = vadd.f32 %v1198_v39, %v1149_v38 }
 0x194   : > { %v1294_v41 = vadd.f32 %v1293_v36, %v1245_v37  ;;  %v670_v37 = vld [vmem:[#allocation2 + $0x78] sm:$0xff] }
 0x196   : > { %v1323_v42 = vadd.f32 %v1294_v41, %v663_v40 }
 0x198   : > { %1339 = vst [vmem:[#allocation2 + $0x48] sm:$0xff] %v1323_v42 }
 0x199   : > { %v1247_v44 = vpop.f32.mrf.mxu2  ;;  %v1151_v47 = vpop.f32.mrf.mxu0 }
 0x19a   : > { %v1296_v45 = vpop.f32.mrf.mxu3  ;;  %v1248_v46 = vadd.f32 %v1247_v44, %v1199_v43  ;;  %v1200_v48 = vpop.f32.mrf.mxu1 }
 0x19b   : > { %v1201_v52 = vadd.f32 %v1200_v48, %v1151_v47 }
 0x19c   : > { %v1297_v50 = vadd.f32 %v1296_v45, %v1248_v46  ;;  %v671_v45 = vld [vmem:[#allocation2 + $0x28] sm:$0xff] }
 0x19e   : > { %v1324_v51 = vadd.f32 %v1297_v50, %v664_v49 }
 0x1a0   : > { %1340 = vst [vmem:[#allocation2 + $0x40] sm:$0xff] %v1324_v51 }
 0x1a1   : > { %v1249_v53 = vpop.f32.mrf.mxu2  ;;  %v1154_v56 = vpop.f32.mrf.mxu0 }
 0x1a2   : > { %v1298_v54 = vpop.f32.mrf.mxu3  ;;  %v1250_v55 = vadd.f32 %v1249_v53, %v1201_v52  ;;  %v1203_v57 = vpop.f32.mrf.mxu1 }
 0x1a3   : > { %v1204_v61 = vadd.f32 %v1203_v57, %v1154_v56 }
 0x1a4   : > { %v1299_v59 = vadd.f32 %v1298_v54, %v1250_v55 }
 0x1a6   : > { %v1325_v60 = vadd.f32 %v1299_v59, %v665_v58 }
 0x1a8   : > { %1341 = vst [vmem:[#allocation2 + $0x20] sm:$0xff] %v1325_v60 }
 0x1a9   : > { %v1252_v62 = vpop.f32.mrf.mxu2  ;;  %v1156_v1 = vpop.f32.mrf.mxu0 }
 0x1aa   : > { %v1301_v63 = vpop.f32.mrf.mxu3  ;;  %v1253_v0 = vadd.f32 %v1252_v62, %v1204_v61  ;;  %v1205_v2 = vpop.f32.mrf.mxu1 }
 0x1ab   : > { %v1206_v6 = vadd.f32 %v1205_v2, %v1156_v1 }
 0x1ac   : > { %v1302_v4 = vadd.f32 %v1301_v63, %v1253_v0 }
 0x1ae   : > { %v1326_v5 = vadd.f32 %v1302_v4, %v666_v3 }
 0x1b0   : > { %1342 = vst [vmem:[#allocation2 + $0x10] sm:$0xff] %v1326_v5 }
 0x1b1   : > { %v1254_v7 = vpop.f32.mrf.mxu2  ;;  %v1159_v10 = vpop.f32.mrf.mxu0 }
 0x1b2   : > { %v1303_v8 = vpop.f32.mrf.mxu3  ;;  %v1255_v9 = vadd.f32 %v1254_v7, %v1206_v6  ;;  %v1208_v11 = vpop.f32.mrf.mxu1 }
 0x1b3   : > { %v1209_v15 = vadd.f32 %v1208_v11, %v1159_v10 }
 0x1b4   : > { %v1304_v13 = vadd.f32 %v1303_v8, %v1255_v9 }
 0x1b6   : > { %v1327_v14 = vadd.f32 %v1304_v13, %v667_v12 }
 0x1b8   : > { %1343 = vst [vmem:[#allocation2 + $0x38] sm:$0xff] %v1327_v14 }
 0x1b9   : > { %v1257_v16 = vpop.f32.mrf.mxu2  ;;  %v1161_v19 = vpop.f32.mrf.mxu0 }
 0x1ba   : > { %v1306_v17 = vpop.f32.mrf.mxu3  ;;  %v1258_v18 = vadd.f32 %v1257_v16, %v1209_v15  ;;  %v1210_v20 = vpop.f32.mrf.mxu1 }
 0x1bb   : > { %v1211_v24 = vadd.f32 %v1210_v20, %v1161_v19 }
 0x1bc   : > { %v1307_v22 = vadd.f32 %v1306_v17, %v1258_v18 }
 0x1be   : > { %v1328_v23 = vadd.f32 %v1307_v22, %v668_v21 }
 0x1c0   : > { %1344 = vst [vmem:[#allocation2 + $0x60] sm:$0xff] %v1328_v23 }
 0x1c1   : > { %v1259_v25 = vpop.f32.mrf.mxu2  ;;  %v1164_v29 = vpop.f32.mrf.mxu0 }
 0x1c2   : > { %v1308_v26 = vpop.f32.mrf.mxu3  ;;  %v1260_v27 = vadd.f32 %v1259_v25, %v1211_v24  ;;  %v1213_v30 = vpop.f32.mrf.mxu1 }
 0x1c3   : > { %v1214_v33 = vadd.f32 %v1213_v30, %v1164_v29 }
 0x1c4   : > { %v1309_v31 = vadd.f32 %v1308_v26, %v1260_v27 }
 0x1c6   : > { %v1329_v32 = vadd.f32 %v1309_v31, %v669_v28 }
 0x1c8   : > { %1345 = vst [vmem:[#allocation2 + $0x70] sm:$0xff] %v1329_v32 }
 0x1c9   : > { %v1262_v34 = vpop.f32.mrf.mxu2  ;;  %v1166_v39 = vpop.f32.mrf.mxu0 }
 0x1ca   : > { %v1311_v35 = vpop.f32.mrf.mxu3  ;;  %v1263_v36 = vadd.f32 %v1262_v34, %v1214_v33  ;;  %v1215_v40 = vpop.f32.mrf.mxu1 }
 0x1cb   : > { %v1216_v42 = vadd.f32 %v1215_v40, %v1166_v39 }
 0x1cc   : > { %v1312_v38 = vadd.f32 %v1311_v35, %v1263_v36 }
 0x1ce   : > { %v1330_v41 = vadd.f32 %v1312_v38, %v670_v37 }
 0x1d0   : > { %1346 = vst [vmem:[#allocation2 + $0x78] sm:$0xff] %v1330_v41 }
 0x1d1   : > { %v1264_v43 = vpop.f32.mrf.mxu2 }
 0x1d2   : > { %v1265_v44 = vadd.f32 %v1264_v43, %v1216_v42  ;;  %v1313_v46 = vpop.f32.mrf.mxu3 }
 0x1d4   : > { %v1314_v47 = vadd.f32 %v1313_v46, %v1265_v44  ;;  %1351 = sbr.rel (%p2079_p5) target bundleno = 618 (0x26a), region = 108 }
 0x1d6   : > { %v1331_v48 = vadd.f32 %v1314_v47, %v671_v45 }
 0x1d8   : > { %1347 = vst [vmem:[#allocation2 + $0x28] sm:$0xff] %v1331_v48 }
 0x1d9   : > { %v1352_v49 = vld [vmem:[#allocation2 + $0x30] sm:$0xff]  ;;  %v1353_v50 = vld [vmem:[#allocation2] sm:$0xff]  ;;  %v1354_v51 = vld [vmem:[#allocation2 + $0x58] sm:$0xff] }
 0x1da   : > { %v1368_v52 = vadd.f32 %v1353_v50, %v1352_v49  ;;  %v1355_v53 = vld [vmem:[#allocation2 + $0x18] sm:$0xff]  ;;  %v1356_v55 = vld [vmem:[#allocation2 + $0x50] sm:$0xff]  ;;  %v1357_v57 = vld [vmem:[#allocation2 + $0x68] sm:$0xff] }
 0x1db   : > { %v1358_v59 = vld [vmem:[#allocation2 + $0x8] sm:$0xff]  ;;  %v1360_v63 = vld [vmem:[#allocation2 + $0x40] sm:$0xff]  ;;  %v1362_v3 = vld [vmem:[#allocation2 + $0x10] sm:$0xff] }
 0x1dc   : > { %v1369_v54 = vadd.f32 %v1368_v52, %v1354_v51  ;;  %v1359_v61 = vld [vmem:[#allocation2 + $0x48] sm:$0xff]  ;;  %v1361_v1 = vld [vmem:[#allocation2 + $0x20] sm:$0xff]  ;;  %v1363_v5 = vld [vmem:[#allocation2 + $0x38] sm:$0xff] }
 0x1dd   : > { %v1364_v7 = vld [vmem:[#allocation2 + $0x60] sm:$0xff]  ;;  %v1365_v9 = vld [vmem:[#allocation2 + $0x70] sm:$0xff]  ;;  %v1366_v11 = vld [vmem:[#allocation2 + $0x78] sm:$0xff] }
 0x1de   : > { %v1370_v56 = vadd.f32 %v1369_v54, %v1355_v53 }
 0x1df   : > { %v1367_v13 = vld [vmem:[#allocation2 + $0x28] sm:$0xff] }
 0x1e0   : > { %v1371_v58 = vadd.f32 %v1370_v56, %v1356_v55 }
 0x1e2   : > { %v1372_v60 = vadd.f32 %v1371_v58, %v1357_v57 }
 0x1e4   : > { %v1373_v62 = vadd.f32 %v1372_v60, %v1358_v59 }
 0x1e6   : > { %v1374_v0 = vadd.f32 %v1373_v62, %v1359_v61 }
 0x1e8   : > { %v1375_v2 = vadd.f32 %v1374_v0, %v1360_v63 }
 0x1ea   : > { %v1376_v4 = vadd.f32 %v1375_v2, %v1361_v1 }
 0x1ec   : > { %v1377_v6 = vadd.f32 %v1376_v4, %v1362_v3 }
 0x1ee   : > { %v1378_v8 = vadd.f32 %v1377_v6, %v1363_v5 }
 0x1f0   : > { %v1379_v10 = vadd.f32 %v1378_v8, %v1364_v7 }
 0x1f2   : > { %v1380_v12 = vadd.f32 %v1379_v10, %v1365_v9 }
 0x1f4   : > { %v1381_v14 = vadd.f32 %v1380_v12, %v1366_v11 }
 0x1f6   : > { %v1382_v15 = vadd.f32 %v1381_v14, %v1367_v13 }
 0x1f8   : > { %v1383_v16 = vrot.slane %v1382_v15, 4 }
 0x1fa   : > { %v1384_v17 = vadd.f32 %v1383_v16, %v1382_v15 }
 0x1fc   : > { %v1385_v18 = vrot.slane %v1384_v17, 2 }
 0x1fe   : > { %v1386_v19 = vadd.f32 %v1385_v18, %v1384_v17 }
 0x200   : > { %v1387_v20 = vrot.slane %v1386_v19, 1 }
 0x202   : > { %v1388_v21 = vadd.f32 %v1387_v20, %v1386_v19  ;;  %v2904_v20 = vld [vmem:[%s632_s9] ss:$0 sm:$0xff] }
 0x204   : > { %v1389_v22 = vmul.f32 0.0078125, %v1388_v21 }
 0x206   : > { %v2839_v23 = vsub.f32 %v1352_v49, %v1389_v22  ;;  %v2841_v24 = vsub.f32 %v1353_v50, %v1389_v22  ;;  %v2843_v25 = vsub.f32 %v1354_v51, %v1389_v22  ;;  %v2845_v26 = vsub.f32 %v1355_v53, %v1389_v22 }
 0x207   : > { %v2851_v29 = vsub.f32 %v1356_v55, %v1389_v22  ;;  %v2855_v31 = vsub.f32 %v1357_v57, %v1389_v22  ;;  %v2859_v34 = vsub.f32 %v1358_v59, %v1389_v22  ;;  %v1397_v37 = vsub.f32 %v1359_v61, %v1389_v22 }
 0x208   : > { %v1406_v27 = vmul.f32 %v2839_v23, %v2839_v23  ;;  %v1407_v28 = vmul.f32 %v2841_v24, %v2841_v24  ;;  %v1408_v30 = vmul.f32 %v2843_v25, %v2843_v25  ;;  %v1409_v32 = vmul.f32 %v2845_v26, %v2845_v26 }
 0x209   : > { %v1410_v35 = vmul.f32 %v2851_v29, %v2851_v29  ;;  %v1411_v38 = vmul.f32 %v2855_v31, %v2855_v31  ;;  %v2865_v40 = vsub.f32 %v1360_v63, %v1389_v22  ;;  %v1412_v41 = vmul.f32 %v2859_v34, %v2859_v34 }
 0x20a   : > { %v1422_v33 = vadd.f32 %v1407_v28, %v1406_v27  ;;  %v2869_v43 = vsub.f32 %v1361_v1, %v1389_v22  ;;  %v1413_v44 = vmul.f32 %v1397_v37, %v1397_v37  ;;  %v2871_v46 = vsub.f32 %v1362_v3, %v1389_v22  ;;  %v2917_v28 = vld [vmem:[%s635_s27] ss:$0 sm:$0xff] }
 0x20b   : > { %v1414_v47 = vmul.f32 %v2865_v40, %v2865_v40  ;;  %v2875_v49 = vsub.f32 %v1363_v5, %v1389_v22  ;;  %v2879_v52 = vsub.f32 %v1364_v7, %v1389_v22  ;;  %v2883_v55 = vsub.f32 %v1365_v9, %v1389_v22 }
 0x20c   : > { %v1423_v36 = vadd.f32 %v1422_v33, %v1408_v30  ;;  %v1415_v50 = vmul.f32 %v2869_v43, %v2869_v43  ;;  %v1416_v53 = vmul.f32 %v2871_v46, %v2871_v46  ;;  %v2887_v58 = vsub.f32 %v1366_v11, %v1389_v22 }
 0x20d   : > { %v1417_v56 = vmul.f32 %v2875_v49, %v2875_v49  ;;  %v1418_v59 = vmul.f32 %v2879_v52, %v2879_v52  ;;  %v2891_v61 = vsub.f32 %v1367_v13, %v1389_v22  ;;  %v1419_v62 = vmul.f32 %v2883_v55, %v2883_v55 }
 0x20e   : > { %v1424_v39 = vadd.f32 %v1423_v36, %v1409_v32  ;;  %v1420_v0 = vmul.f32 %v2887_v58, %v2887_v58 }
 0x20f   : > { %v1421_v2 = vmul.f32 %v2891_v61, %v2891_v61 }
 0x210   : > { %v1425_v42 = vadd.f32 %v1424_v39, %v1410_v35 }
 0x212   : > { %v1426_v45 = vadd.f32 %v1425_v42, %v1411_v38 }
 0x214   : > { %v1427_v48 = vadd.f32 %v1426_v45, %v1412_v41 }
 0x216   : > { %v1428_v51 = vadd.f32 %v1427_v48, %v1413_v44 }
 0x218   : > { %v1429_v54 = vadd.f32 %v1428_v51, %v1414_v47 }
 0x21a   : > { %v1430_v57 = vadd.f32 %v1429_v54, %v1415_v50 }
 0x21c   : > { %v1431_v60 = vadd.f32 %v1430_v57, %v1416_v53 }
 0x21e   : > { %v1432_v63 = vadd.f32 %v1431_v60, %v1417_v56 }
 0x220   : > { %v1433_v1 = vadd.f32 %v1432_v63, %v1418_v59 }
 0x222   : > { %v1434_v3 = vadd.f32 %v1433_v1, %v1419_v62 }
 0x224   : > { %v1435_v4 = vadd.f32 %v1434_v3, %v1420_v0 }
 0x226   : > { %v1436_v5 = vadd.f32 %v1435_v4, %v1421_v2 }
 0x228   : > { %v1437_v6 = vrot.slane %v1436_v5, 4 }
 0x22a   : > { %v1438_v7 = vadd.f32 %v1437_v6, %v1436_v5 }
 0x22c   : > { %v1439_v8 = vrot.slane %v1438_v7, 2 }
 0x22e   : > { %v1440_v9 = vadd.f32 %v1439_v8, %v1438_v7 }
 0x230   : > { %v1441_v10 = vrot.slane %v1440_v9, 1 }
 0x232   : > { %v1442_v11 = vadd.f32 %v1441_v10, %v1440_v9 }
 0x234   : > { %v1443_v12 = vmul.f32 0.0078125, %v1442_v11 }
 0x236   : > { %v1444_v13 = vadd.f32 1e-05, %v1443_v12 }
 0x238   : > { %2288 = vrsqrt.f32 %v1444_v13  ;;  %vm1451_vm0 = vweird.f32 %v1444_v13 }
 0x23e   : > { %v2289_v14 = vpop.eup %2288 }
 0x23f   : > { %v1446_v15 = vmul.f32 %v2289_v14, %v1444_v13  ;;  %vm1452_vm1 = vweird.f32 %v2289_v14 }
 0x240   : > { %vm1453_vm2 = vmor %vm1451_vm0, %vm1452_vm1 }
 0x241   : > { %v1447_v16 = vmul.f32 %v2289_v14, %v1446_v15 }
 0x243   : > { %v1448_v17 = vmul.f32 0.5, %v1447_v16 }
 0x245   : > { %v1449_v18 = vsub.f32 1.5, %v1448_v17 }
 0x247   : > { %v1450_v19 = vmul.f32 %v2289_v14, %v1449_v18 }
 0x249   : > { %v2906_v21 = vsel %vm1453_vm2, %v2289_v14, %v1450_v19 }
 0x24a   : > { %v1455_v22 = vmul.f32 %v2906_v21, %v2839_v23  ;;  %v1456_v27 = vmul.f32 %v2906_v21, %v2841_v24  ;;  %v1457_v30 = vmul.f32 %v2906_v21, %v2843_v25  ;;  %v1458_v32 = vmul.f32 %v2906_v21, %v2845_v26 }
 0x24b   : > { %v1459_v33 = vmul.f32 %v2906_v21, %v2851_v29  ;;  %v1460_v23 = vmul.f32 %v2906_v21, %v2855_v31  ;;  %v1461_v24 = vmul.f32 %v2906_v21, %v2859_v34  ;;  %v1462_v35 = vmul.f32 %v2906_v21, %v1397_v37 }
 0x24c   : > { %v1475_v36 = vmul.f32 %v2904_v20, %v1455_v22  ;;  %v1476_v38 = vmul.f32 %v2904_v20, %v1456_v27  ;;  %v1477_v25 = vmul.f32 %v2904_v20, %v1457_v30  ;;  %v1478_v39 = vmul.f32 %v2904_v20, %v1458_v32 }
 0x24d   : > { %v1479_v26 = vmul.f32 %v2904_v20, %v1459_v33  ;;  %v1480_v29 = vmul.f32 %v2904_v20, %v1460_v23  ;;  %v1481_v41 = vmul.f32 %v2904_v20, %v1461_v24  ;;  %v1482_v31 = vmul.f32 %v2904_v20, %v1462_v35 }
 0x24e   : > { %v1495_v34 = vadd.f32 %v2917_v28, %v1475_v36  ;;  %v1496_v37 = vadd.f32 %v2917_v28, %v1476_v38  ;;  %v1497_v42 = vadd.f32 %v2917_v28, %v1477_v25  ;;  %v1498_v44 = vadd.f32 %v2917_v28, %v1478_v39 }
 0x24f   : > { %v1499_v45 = vadd.f32 %v2917_v28, %v1479_v26  ;;  %v1500_v47 = vadd.f32 %v2917_v28, %v1480_v29  ;;  %v1501_v48 = vadd.f32 %v2917_v28, %v1481_v41  ;;  %v1502_v50 = vadd.f32 %v2917_v28, %v1482_v31 }
 0x250   : > { %vm1511_vm3 = vcmp.ge.f32.partialorder %v1495_v34, 0.0  ;;  %vm1512_vm4 = vcmp.ge.f32.partialorder %v1496_v37, 0.0  ;;  %v1527_v51 = vmul.f32 0.2, %v1495_v34  ;;  %v1528_v53 = vmul.f32 0.2, %v1496_v37 }
 0x251   : > { %vm1513_vm5 = vcmp.ge.f32.partialorder %v1497_v42, 0.0  ;;  %vm1514_vm6 = vcmp.ge.f32.partialorder %v1498_v44, 0.0  ;;  %v1529_v54 = vmul.f32 0.2, %v1497_v42  ;;  %v1530_v56 = vmul.f32 0.2, %v1498_v44 }
 0x252   : > { %v1543_v57 = vsel %vm1511_vm3, %v1495_v34, %v1527_v51  ;;  %v1544_v59 = vsel %vm1512_vm4, %v1496_v37, %v1528_v53  ;;  %vm1515_vm7 = vcmp.ge.f32.partialorder %v1499_v45, 0.0  ;;  %vm1516_vm8 = vcmp.ge.f32.partialorder %v1500_v47, 0.0 }
 0x253   : > { %v2153_v60 = vpack.c.bf16 %v1544_v59, %v1543_v57  ;;  %v1545_v62 = vsel %vm1513_vm5, %v1497_v42, %v1529_v54  ;;  %v1546_v63 = vsel %vm1514_vm6, %v1498_v44, %v1530_v56  ;;  %v1531_v0 = vmul.f32 0.2, %v1499_v45 }
 0x254   : > { %v2158_v1 = vpack.c.bf16 %v1546_v63, %v1545_v62  ;;  %v1532_v2 = vmul.f32 0.2, %v1500_v47  ;;  %vm1517_vm9 = vcmp.ge.f32.partialorder %v1501_v48, 0.0  ;;  %vm1518_vm10 = vcmp.ge.f32.partialorder %v1502_v50, 0.0 }
 0x255   : > { %2154 = vst [vmem:[%s2739_s19] sm:$0xff] %v2153_v60   ;;  %v1547_v3 = vsel %vm1515_vm7, %v1499_v45, %v1531_v0  ;;  %v1533_v4 = vmul.f32 0.2, %v1501_v48  ;;  %v1534_v5 = vmul.f32 0.2, %v1502_v50  ;;  %v1463_v6 = vmul.f32 %v2906_v21, %v2865_v40 }
 0x256   : > { %2190 = vst [vmem:[%s2739_s19 + $0x8] sm:$0xff] %v2158_v1   ;;  %v1548_v7 = vsel %vm1516_vm8, %v1500_v47, %v1532_v2  ;;  %v1464_v8 = vmul.f32 %v2906_v21, %v2869_v43  ;;  %v1465_v9 = vmul.f32 %v2906_v21, %v2871_v46  ;;  %v1466_v10 = vmul.f32 %v2906_v21, %v2875_v49 }
 0x257   : > { %v2163_v11 = vpack.c.bf16 %v1548_v7, %v1547_v3  ;;  %v1549_v12 = vsel %vm1517_vm9, %v1501_v48, %v1533_v4  ;;  %v1550_v13 = vsel %vm1518_vm10, %v1502_v50, %v1534_v5  ;;  %v1483_v14 = vmul.f32 %v2904_v20, %v1463_v6 }
 0x258   : > { %v2168_v15 = vpack.c.bf16 %v1550_v13, %v1549_v12  ;;  %v1484_v40 = vmul.f32 %v2904_v20, %v1464_v8  ;;  %v1485_v16 = vmul.f32 %v2904_v20, %v1465_v9  ;;  %v1486_v17 = vmul.f32 %v2904_v20, %v1466_v10 }
 0x259   : > { %2191 = vst [vmem:[%s2739_s19 + $0x10] sm:$0xff] %v2163_v11   ;;  %v1503_v43 = vadd.f32 %v2917_v28, %v1483_v14  ;;  %v1467_v46 = vmul.f32 %v2906_v21, %v2879_v52  ;;  %v1468_v49 = vmul.f32 %v2906_v21, %v2883_v55  ;;  %v1469_v18 = vmul.f32 %v2906_v21, %v2887_v58 }
 0x25a   : > { %2192 = vst [vmem:[%s2739_s19 + $0x18] sm:$0xff] %v2168_v15   ;;  %v1504_v19 = vadd.f32 %v2917_v28, %v1484_v40  ;;  %v1505_v22 = vadd.f32 %v2917_v28, %v1485_v16  ;;  %v1506_v27 = vadd.f32 %v2917_v28, %v1486_v17  ;;  %v1470_v30 = vmul.f32 %v2906_v21, %v2891_v61 }
 0x25b   : > { %vm1519_vm11 = vcmp.ge.f32.partialorder %v1503_v43, 0.0  ;;  %v1535_v32 = vmul.f32 0.2, %v1503_v43  ;;  %v1487_v52 = vmul.f32 %v2904_v20, %v1467_v46  ;;  %v1488_v33 = vmul.f32 %v2904_v20, %v1468_v49 }
 0x25c   : > { %vm1520_vm12 = vcmp.ge.f32.partialorder %v1504_v19, 0.0  ;;  %v1536_v55 = vmul.f32 0.2, %v1504_v19  ;;  %vm1521_vm13 = vcmp.ge.f32.partialorder %v1505_v22, 0.0  ;;  %vm1522_vm14 = vcmp.ge.f32.partialorder %v1506_v27, 0.0 }
 0x25d   : > { %v1551_v58 = vsel %vm1519_vm11, %v1503_v43, %v1535_v32  ;;  %v1537_v23 = vmul.f32 0.2, %v1505_v22  ;;  %v1538_v24 = vmul.f32 0.2, %v1506_v27  ;;  %v1507_v35 = vadd.f32 %v2917_v28, %v1487_v52 }
 0x25e   : > { %v1552_v36 = vsel %vm1520_vm12, %v1504_v19, %v1536_v55  ;;  %v1508_v61 = vadd.f32 %v2917_v28, %v1488_v33  ;;  %v1489_v21 = vmul.f32 %v2904_v20, %v1469_v18  ;;  %v1490_v38 = vmul.f32 %v2904_v20, %v1470_v30 }
 0x25f   : > { %v2173_v25 = vpack.c.bf16 %v1552_v36, %v1551_v58  ;;  %v1553_v39 = vsel %vm1521_vm13, %v1505_v22, %v1537_v23  ;;  %v1554_v26 = vsel %vm1522_vm14, %v1506_v27, %v1538_v24  ;;  %vm1523_vm15 = vcmp.ge.f32.partialorder %v1507_v35, 0.0 }
 0x260   : > { %v2178_v29 = vpack.c.bf16 %v1554_v26, %v1553_v39  ;;  %vm1524_vm0 = vcmp.ge.f32.partialorder %v1508_v61, 0.0  ;;  %v1539_v41 = vmul.f32 0.2, %v1507_v35  ;;  %v1540_v31 = vmul.f32 0.2, %v1508_v61 }
 0x261   : > { %2193 = vst [vmem:[%s2739_s19 + $0x20] sm:$0xff] %v2173_v25   ;;  %v1509_v34 = vadd.f32 %v2917_v28, %v1489_v21  ;;  %v1510_v37 = vadd.f32 %v2917_v28, %v1490_v38 }
 0x262   : > { %2194 = vst [vmem:[%s2739_s19 + $0x28] sm:$0xff] %v2178_v29   ;;  %v1555_v42 = vsel %vm1523_vm15, %v1507_v35, %v1539_v41  ;;  %v1556_v44 = vsel %vm1524_vm0, %v1508_v61, %v1540_v31 }
 0x263   : > { %v2183_v45 = vpack.c.bf16 %v1556_v44, %v1555_v42  ;;  %vm1525_vm1 = vcmp.ge.f32.partialorder %v1509_v34, 0.0  ;;  %vm1526_vm2 = vcmp.ge.f32.partialorder %v1510_v37, 0.0  ;;  %v1541_v20 = vmul.f32 0.2, %v1509_v34 }
 0x264   : > { %v1542_v47 = vmul.f32 0.2, %v1510_v37 }
 0x265   : > { %2195 = vst [vmem:[%s2739_s19 + $0x30] sm:$0xff] %v2183_v45   ;;  %v1557_v48 = vsel %vm1525_vm1, %v1509_v34, %v1541_v20 }
 0x266   : > { %v1558_v50 = vsel %vm1526_vm2, %v1510_v37, %v1542_v47 }
 0x267   : > { %v2188_v51 = vpack.c.bf16 %v1558_v50, %v1557_v48 }
 0x269   : > { %2196 = vst [vmem:[%s2739_s19 + $0x38] sm:$0xff] %v2188_v51  }
 0x26a PF: > { %1597 = sbr.rel (!%p2498_p12) target bundleno = 636 (0x27c), region = 112  ;;  %s2081_s27 = sshll.u32 (%p2498_p12), %s2364_s22, 2  ;;  %v1616_v28 = vld [vmem:[%s2739_s19] sm:$0xf] (%p2498_p12)  ;;  %v1618_v53 = vld [vmem:[%s2739_s19 + $0x4] sm:$0xf] (%p2498_p12) }
 0x26b   : > { %s1599_s26 = scalar_lea.vmem (%p2498_p12), %s3045_s4, %s2081_s27  ;;  %v1620_v54 = vld [vmem:[%s2739_s19 + $0x8] sm:$0xf] (%p2498_p12)  ;;  %v1622_v56 = vld [vmem:[%s2739_s19 + $0xc] sm:$0xf] (%p2498_p12)  ;;  %v1624_v57 = vld [vmem:[%s2739_s19 + $0x10] sm:$0xf] (%p2498_p12) }
 0x26c   : > { %1617 = vst [vmem:[%s1599_s26] sm:$0xf] (%p2498_p12), %v1616_v28  ;;  %v1626_v59 = vld [vmem:[%s2739_s19 + $0x14] sm:$0xf] (%p2498_p12)  ;;  %v1628_v60 = vld [vmem:[%s2739_s19 + $0x18] sm:$0xf] (%p2498_p12) }
 0x26d   : > { %1619 = vst [vmem:[%s1599_s26 + $0x8] sm:$0xf] (%p2498_p12), %v1618_v53  ;;  %v1630_v62 = vld [vmem:[%s2739_s19 + $0x1c] sm:$0xf] (%p2498_p12)  ;;  %v1632_v63 = vld [vmem:[%s2739_s19 + $0x20] sm:$0xf] (%p2498_p12) }
 0x26e   : > { %1621 = vst [vmem:[%s1599_s26 + $0x10] sm:$0xf] (%p2498_p12), %v1620_v54  ;;  %v1634_v0 = vld [vmem:[%s2739_s19 + $0x24] sm:$0xf] (%p2498_p12)  ;;  %v1636_v1 = vld [vmem:[%s2739_s19 + $0x28] sm:$0xf] (%p2498_p12) }
 0x26f   : > { %1623 = vst [vmem:[%s1599_s26 + $0x18] sm:$0xf] %v1622_v56  ;;  %v1638_v2 = vld [vmem:[%s2739_s19 + $0x2c] sm:$0xf]  ;;  %v1640_v3 = vld [vmem:[%s2739_s19 + $0x30] sm:$0xf] }
 0x270   : > { %1625 = vst [vmem:[%s1599_s26 + $0x20] sm:$0xf] %v1624_v57  ;;  %v1642_v4 = vld [vmem:[%s2739_s19 + $0x34] sm:$0xf]  ;;  %v1644_v5 = vld [vmem:[%s2739_s19 + $0x38] sm:$0xf] }
 0x271   : > { %1627 = vst [vmem:[%s1599_s26 + $0x28] sm:$0xf] %v1626_v59  ;;  %v1646_v6 = vld [vmem:[%s2739_s19 + $0x3c] sm:$0xf] }
 0x272   : > { %1629 = vst [vmem:[%s1599_s26 + $0x30] sm:$0xf] %v1628_v60 }
 0x273   : > { %1631 = vst [vmem:[%s1599_s26 + $0x38] sm:$0xf] %v1630_v62 }
 0x274   : > { %1633 = vst [vmem:[%s1599_s26 + $0x40] sm:$0xf] %v1632_v63 }
 0x275   : > { %1635 = vst [vmem:[%s1599_s26 + $0x48] sm:$0xf] %v1634_v0 }
 0x276   : > { %1637 = vst [vmem:[%s1599_s26 + $0x50] sm:$0xf] %v1636_v1 }
 0x277   : > { %1639 = vst [vmem:[%s1599_s26 + $0x58] sm:$0xf] %v1638_v2 }
 0x278   : > { %1641 = vst [vmem:[%s1599_s26 + $0x60] sm:$0xf] %v1640_v3 }
 0x279   : > { %1643 = vst [vmem:[%s1599_s26 + $0x68] sm:$0xf] %v1642_v4 }
 0x27a   : > { %1645 = vst [vmem:[%s1599_s26 + $0x70] sm:$0xf] %v1644_v5 }
 0x27b   : > { %1647 = vst [vmem:[%s1599_s26 + $0x78] sm:$0xf] %v1646_v6 }
 0x27c PF: > { %s14_s25 = sadd.s32 1, %s2376_s25   ;;  %s3059_s22 = sld [smem:[#allocation6_spill]] }
 0x27d   : > { %p11_p6 = scmp.ge.s32.totalorder %s14_s25, 10   ;;  %s3060_s14 = sld [smem:[#allocation7_spill]] }
 0x27e   : > { %s3061_s24 = sld [smem:[#allocation8_spill]]  ;;  %s3062_s15 = smov %s2340_s16 }
 0x27f   : > { %s3063_s16 = smov %s2496_s13  ;;  %s3064_s17 = smov %s2348_s18 }
 0x280   : > { %s3065_s18 = smov %s2493_s12  ;;  %s3066_s19 = smov %s2356_s20 }
 0x281   : > { %s3067_s20 = smov %s2479_s7  ;;  %s3068_s21 = smov %s2368_s23 }
 0x282   :  { %13 = sbr.rel (!%p11_p6) target bundleno = 9 (0x9), region = 198 }
 0x283   : > { %s3069_s23 = smov %s3060_s14 }

// kernel: discriminator_forward.7
= control target key start
LH: loop header
LB: loop body
LE: loop exit
PB: predicated region body
PF: predicated region fallthrough
CT: control target
= control target key end

     0   :  { %s4529_s18 = smov 0   ;;  %s4531_s19 = smov 0   ;;  %s5453_s0 = inlined_call_operand.vmem [shape: bf16[32,4096], index: 0, kind: input, shape index: {}]   ;;  %s5454_s1 = inlined_call_operand.vmem [shape: bf16[4096,512], index: 1, kind: input, shape index: {}]   ;;  %s5455_s2 = inlined_call_operand.vmem [shape: f32[1,512], index: 2, kind: input, shape index: {}]   ;;  %s5456_s3 = inlined_call_operand.vmem [shape: f32[1,512], index: 3, kind: input, shape index: {}]   ;;  %s5457_s4 = inlined_call_operand.vmem [shape: f32[16,512], index: 4, kind: input, shape index: {}]   ;;  %s5458_s5 = inlined_call_operand.vmem [shape: f32[2,1], index: 5, kind: output, shape index: {}]  }
   0x1   :  { %s4533_s20 = smov 0  }
   0x2 LB: > { %s4545_s21 = sadd.s32 4294967295, %s4496_s20   ;;  %s4548_s22 = sadd.s32 1, %s4496_s20   ;;  %s4496_s20 = sphi %s4533_s20, %s5461_s20   ;;  %s4492_s19 = sphi %s4531_s19, %s5460_s19   ;;  %s4488_s18 = sphi %s4529_s18, %s5459_s18  }
   0x3   : > { %s19_s23 = ssub.s32 %s4496_s20, %s4548_s22  ;;  %s22_s24 = sadd.s32 1, %s4492_s19 }
   0x4   : > { %p20_p0 = scmp.eq.s32.totalorder %s19_s23, 0  ;;  %p29_p1 = scmp.ne.s32.totalorder %s4492_s19, %s4488_s18 }
   0x5   : > { %p30_p2 = scmp.eq.s32.totalorder %s4496_s20, 0  ;;  %p3062_p4 = scmp.ge.s32.totalorder %s4496_s20, 4 }
   0x6   : > { %s4557_s25 = scalar_select %p20_p0, %s4492_s19, %s22_s24  }
   0x7   : > { %p31_p3 = por %p30_p2, %p29_p1  ;;  %174 = sbr.rel (%p3062_p4) target bundleno = 32 (0x20), region = 28 }
   0xc   : > { %177 = sbr.rel (!%p31_p3) target bundleno = 32 (0x20), region = 32  ;;  %s179_s26 = sand.u32 (%p31_p3), 1, %s4492_s19  }
   0xd   : > { %s4163_s27 = sshll.u32 (%p31_p3), %s4496_s20, 5  ;;  %s3063_s28 = sshll.u32 (%p31_p3), %s179_s26, 7 }
   0xe   : > { %s4565_s6 = scalar_lea.vmem (%p31_p3), %s5453_s0, %s4163_s27  ;;  %s181_s7 = scalar_lea.vmem (%p31_p3), [#allocation3], %s3063_s28 }
   0xf   : > { %v197_v0 = vld [vmem:[%s4565_s6] sm:$0xff] (%p31_p3)  ;;  %v199_v1 = vld [vmem:[%s4565_s6 + $0x8] sm:$0xff] (%p31_p3)  ;;  %v201_v2 = vld [vmem:[%s4565_s6 + $0x10] sm:$0xff] (%p31_p3) }
  0x10   : > { %198 = vst [vmem:[%s181_s7] sm:$0xff] (%p31_p3), %v197_v0  ;;  %v203_v3 = vld [vmem:[%s4565_s6 + $0x18] sm:$0xff] (%p31_p3)  ;;  %v205_v4 = vld [vmem:[%s4565_s6 + $0x80] sm:$0xff] (%p31_p3)  ;;  %v207_v5 = vld [vmem:[%s4565_s6 + $0x88] sm:$0xff] (%p31_p3) }
  0x11   : > { %200 = vst [vmem:[%s181_s7 + $0x8] sm:$0xff] %v199_v1  ;;  %v209_v6 = vld [vmem:[%s4565_s6 + $0x90] sm:$0xff]  ;;  %v211_v7 = vld [vmem:[%s4565_s6 + $0x98] sm:$0xff]  ;;  %v213_v8 = vld [vmem:[%s4565_s6 + $0x100] sm:$0xff] }
  0x12   : > { %202 = vst [vmem:[%s181_s7 + $0x10] sm:$0xff] %v201_v2  ;;  %v215_v9 = vld [vmem:[%s4565_s6 + $0x108] sm:$0xff]  ;;  %v217_v10 = vld [vmem:[%s4565_s6 + $0x110] sm:$0xff]  ;;  %v219_v11 = vld [vmem:[%s4565_s6 + $0x118] sm:$0xff] }
  0x13   : > { %204 = vst [vmem:[%s181_s7 + $0x18] sm:$0xff] %v203_v3  ;;  %v221_v12 = vld [vmem:[%s4565_s6 + $0x180] sm:$0xff]  ;;  %v223_v13 = vld [vmem:[%s4565_s6 + $0x188] sm:$0xff]  ;;  %v225_v14 = vld [vmem:[%s4565_s6 + $0x190] sm:$0xff] }
  0x14   : > { %206 = vst [vmem:[%s181_s7 + $0x20] sm:$0xff] %v205_v4  ;;  %v227_v15 = vld [vmem:[%s4565_s6 + $0x198] sm:$0xff] }
  0x15   : > { %208 = vst [vmem:[%s181_s7 + $0x28] sm:$0xff] %v207_v5 }
  0x16   : > { %210 = vst [vmem:[%s181_s7 + $0x30] sm:$0xff] %v209_v6 }
  0x17   : > { %212 = vst [vmem:[%s181_s7 + $0x38] sm:$0xff] %v211_v7 }
  0x18   : > { %214 = vst [vmem:[%s181_s7 + $0x40] sm:$0xff] %v213_v8 }
  0x19   : > { %216 = vst [vmem:[%s181_s7 + $0x48] sm:$0xff] %v215_v9 }
  0x1a   : > { %218 = vst [vmem:[%s181_s7 + $0x50] sm:$0xff] %v217_v10 }
  0x1b   : > { %220 = vst [vmem:[%s181_s7 + $0x58] sm:$0xff] %v219_v11 }
  0x1c   : > { %222 = vst [vmem:[%s181_s7 + $0x60] sm:$0xff] %v221_v12 }
  0x1d   : > { %224 = vst [vmem:[%s181_s7 + $0x68] sm:$0xff] %v223_v13 }
  0x1e   : > { %226 = vst [vmem:[%s181_s7 + $0x70] sm:$0xff] %v225_v14 }
  0x1f   : > { %228 = vst [vmem:[%s181_s7 + $0x78] sm:$0xff] %v227_v15 }
  0x20 PF: > { %p3066_p5 = scmp.ge.s32.totalorder %s4496_s20, 1  ;;  %p243_p6 = scmp.lt.s32.totalorder %s4496_s20, 5 }
  0x22   : > { %p244_p7 = pnand %p3066_p5, %p243_p6 }
  0x23   : > { %s250_s8 = sand.u32 (!%p244_p7), 1, %s4488_s18   ;;  %s3068_s9 = sshll.u32 (!%p244_p7), %s4545_s21, 7 }
  0x24   : > { %247 = sbr.rel (%p244_p7) target bundleno = 760 (0x2f8), region = 59  ;;  %s3067_s10 = sshll.u32 (!%p244_p7), %s250_s8, 7 }
  0x25   : > { %p280_p8 = scmp.lt.s32.totalorder (!%p244_p7), %s3068_s9, 511  ;;  %s4592_s15 = scalar_lea.vmem (!%p244_p7), [#allocation3], %s3067_s10 }
  0x26   : > { %p3071_p9 = scmp.ne.s32.totalorder (!%p244_p7), %s4545_s21, 0 }
  0x29   : > { %s5463_s9 = smov (!%p280_p8, %s3068_s9), 511  ;;  %289 = sbr.rel (%p3071_p9) target bundleno = 63 (0x3f), region = 67 }
  0x2a   : > { %s4164_s11 = sshll.u32 %s5463_s9, 4 }
  0x2b   : > { %s4590_s14 = scalar_lea.vmem %s5454_s1, %s4164_s11 }
  0x2e   : > { %v4498_v16 = vmov 0.0  }
  0x2f   : > { %290 = vst [vmem:[#allocation2 + $0x30] sm:$0xff] %v4498_v16 }
  0x30   : > { %291 = vst [vmem:[#allocation2] sm:$0xff] %v4498_v16 }
  0x31   : > { %292 = vst [vmem:[#allocation2 + $0x58] sm:$0xff] %v4498_v16 }
  0x32   : > { %293 = vst [vmem:[#allocation2 + $0x18] sm:$0xff] %v4498_v16 }
  0x33   : > { %294 = vst [vmem:[#allocation2 + $0x50] sm:$0xff] %v4498_v16 }
  0x34   : > { %295 = vst [vmem:[#allocation2 + $0x68] sm:$0xff] %v4498_v16 }
  0x35   : > { %296 = vst [vmem:[#allocation2 + $0x8] sm:$0xff] %v4498_v16 }
  0x36   : > { %297 = vst [vmem:[#allocation2 + $0x48] sm:$0xff] %v4498_v16 }
  0x37   : > { %298 = vst [vmem:[#allocation2 + $0x40] sm:$0xff] %v4498_v16 }
  0x38   : > { %299 = vst [vmem:[#allocation2 + $0x20] sm:$0xff] %v4498_v16 }
  0x39   : > { %300 = vst [vmem:[#allocation2 + $0x10] sm:$0xff] %v4498_v16 }
  0x3a   : > { %301 = vst [vmem:[#allocation2 + $0x38] sm:$0xff] %v4498_v16 }
  0x3b   : > { %302 = vst [vmem:[#allocation2 + $0x60] sm:$0xff] %v4498_v16 }
  0x3c   : > { %303 = vst [vmem:[#allocation2 + $0x70] sm:$0xff] %v4498_v16 }
  0x3d   : > { %304 = vst [vmem:[#allocation2 + $0x78] sm:$0xff] %v4498_v16 }
  0x3e   : > { %305 = vst [vmem:[#allocation2 + $0x28] sm:$0xff] %v4498_v16 }
  0x3f PF: > { %v3250_v17 = vld [vmem:[%s4590_s14 + $0xe0] sm:$0xf]  ;;  %v4211_v18 = vld [vmem:[%s4590_s14 + $0xec] sm:$0xf0]  ;;  %p4160_p10 = scmp.ne.s32.totalorder %s4545_s21, 3 }
  0x40   : > { %v3378_v19 = vld [vmem:[%s4590_s14 + $0x1e0] sm:$0xf]  ;;  %v3251_v20 = vor.u32 %v4211_v18, %v3250_v17  ;;  %v4243_v21 = vld [vmem:[%s4590_s14 + $0x1ec] sm:$0xf0] }
  0x41   : > { %v3506_v22 = vld [vmem:[%s4590_s14 + $0x2e0] sm:$0xf]  ;;  %v4275_v23 = vld [vmem:[%s4590_s14 + $0x2ec] sm:$0xf0]  ;;  %v3379_v24 = vor.u32 %v4243_v21, %v3378_v19 }
  0x42   : > { %v3507_v25 = vor.u32 %v4275_v23, %v3506_v22  ;;  %v3634_v26 = vld [vmem:[%s4590_s14 + $0x3e0] sm:$0xf]  ;;  %v4307_v27 = vld [vmem:[%s4590_s14 + $0x3ec] sm:$0xf0]  ;;  %1954 = vmatpush.bf16.msra.mxu0 %v3251_v20 }
  0x43   : > { %v3234_v28 = vld [vmem:[%s4590_s14 + $0xc0] sm:$0xf]  ;;  %v3635_v29 = vor.u32 %v4307_v27, %v3634_v26  ;;  %v4207_v30 = vld [vmem:[%s4590_s14 + $0xcc] sm:$0xf0]  ;;  %1973 = vmatpush.bf16.msra.mxu1 %v3379_v24 }
  0x44   : > { %v3362_v31 = vld [vmem:[%s4590_s14 + $0x1c0] sm:$0xf]  ;;  %v4239_v32 = vld [vmem:[%s4590_s14 + $0x1cc] sm:$0xf0]  ;;  %1992 = vmatpush.bf16.msra.mxu2 %v3507_v25  ;;  %v3235_v33 = vor.u32 %v4207_v30, %v3234_v28 }
  0x45   : > { %v3363_v34 = vor.u32 %v4239_v32, %v3362_v31  ;;  %v3490_v35 = vld [vmem:[%s4590_s14 + $0x2c0] sm:$0xf]  ;;  %v4271_v36 = vld [vmem:[%s4590_s14 + $0x2cc] sm:$0xf0]  ;;  %2011 = vmatpush.bf16.msra.mxu3 %v3635_v29 }
  0x46   : > { %v3618_v37 = vld [vmem:[%s4590_s14 + $0x3c0] sm:$0xf]  ;;  %v3491_v38 = vor.u32 %v4271_v36, %v3490_v35  ;;  %v4303_v39 = vld [vmem:[%s4590_s14 + $0x3cc] sm:$0xf0]  ;;  %1955 = vmatpush.bf16.msra.mxu0 %v3235_v33 }
  0x47   : > { %v3218_v40 = vld [vmem:[%s4590_s14 + $0xa0] sm:$0xf]  ;;  %v4203_v41 = vld [vmem:[%s4590_s14 + $0xac] sm:$0xf0]  ;;  %v3619_v42 = vor.u32 %v4303_v39, %v3618_v37  ;;  %1974 = vmatpush.bf16.msra.mxu1 %v3363_v34 }
  0x48   : > { %v3346_v43 = vld [vmem:[%s4590_s14 + $0x1a0] sm:$0xf]  ;;  %v4235_v44 = vld [vmem:[%s4590_s14 + $0x1ac] sm:$0xf0]  ;;  %v3219_v46 = vor.u32 %v4203_v41, %v3218_v40  ;;  %1993 = vmatpush.bf16.msra.mxu2 %v3491_v38 }
  0x49   : > { %v3474_v45 = vld [vmem:[%s4590_s14 + $0x2a0] sm:$0xf]  ;;  %v4267_v47 = vld [vmem:[%s4590_s14 + $0x2ac] sm:$0xf0]  ;;  %v3347_v50 = vor.u32 %v4235_v44, %v3346_v43  ;;  %2012 = vmatpush.bf16.msra.mxu3 %v3619_v42 }
  0x4a   : > { %v3602_v48 = vld [vmem:[%s4590_s14 + $0x3a0] sm:$0xf]  ;;  %v4299_v49 = vld [vmem:[%s4590_s14 + $0x3ac] sm:$0xf0]  ;;  %v3475_v51 = vor.u32 %v4267_v47, %v3474_v45  ;;  %1956 = vmatpush.bf16.msra.mxu0 %v3219_v46  ;;  %v4165_v47 = vld [vmem:[%s4592_s15 + $0x4] sm:$0xf] }
  0x4b   : > { %v3202_v52 = vld [vmem:[%s4590_s14 + $0x80] sm:$0xf]  ;;  %v4199_v53 = vld [vmem:[%s4590_s14 + $0x8c] sm:$0xf0]  ;;  %v3603_v55 = vor.u32 %v4299_v49, %v3602_v48  ;;  %1975 = vmatpush.bf16.msra.mxu1 %v3347_v50  ;;  %v3076_v48 = vld [vmem:[%s4592_s15 + $0x20] sm:$0xf0] }
  0x4c   : > { %v3330_v54 = vld [vmem:[%s4590_s14 + $0x180] sm:$0xf]  ;;  %v4231_v56 = vld [vmem:[%s4590_s14 + $0x18c] sm:$0xf0]  ;;  %v3203_v61 = vor.u32 %v4199_v53, %v3202_v52  ;;  %1994 = vmatpush.bf16.msra.mxu2 %v3475_v51  ;;  %v3082_v52 = vld [vmem:[%s4592_s15 + $0x8] sm:$0xf] }
  0x4d   : > { %v3458_v57 = vld [vmem:[%s4590_s14 + $0x280] sm:$0xf]  ;;  %v4263_v58 = vld [vmem:[%s4590_s14 + $0x28c] sm:$0xf0]  ;;  %v3331_v62 = vor.u32 %v4231_v56, %v3330_v54  ;;  %2013 = vmatpush.bf16.msra.mxu3 %v3603_v55 }
  0x4e   : > { %v3586_v59 = vld [vmem:[%s4590_s14 + $0x380] sm:$0xf]  ;;  %v4295_v60 = vld [vmem:[%s4590_s14 + $0x38c] sm:$0xf0]  ;;  %v3459_v63 = vor.u32 %v4263_v58, %v3458_v57  ;;  %1957 = vmatpush.bf16.msra.mxu0 %v3203_v61  ;;  %v4170_v57 = vld [vmem:[%s4592_s15 + $0x24] sm:$0xf0] }
  0x4f   : > { %v3186_v0 = vld [vmem:[%s4590_s14 + $0x60] sm:$0xf]  ;;  %v4195_v1 = vld [vmem:[%s4590_s14 + $0x6c] sm:$0xf0]  ;;  %v3587_v3 = vor.u32 %v4295_v60, %v3586_v59  ;;  %1976 = vmatpush.bf16.msra.mxu1 %v3331_v62  ;;  %v4166_v58 = vld [vmem:[%s4592_s15 + $0xc] sm:$0xf] }
  0x50   : > { %v3314_v2 = vld [vmem:[%s4590_s14 + $0x160] sm:$0xf]  ;;  %v4227_v4 = vld [vmem:[%s4590_s14 + $0x16c] sm:$0xf0]  ;;  %v3187_v9 = vor.u32 %v4195_v1, %v3186_v0  ;;  %1995 = vmatpush.bf16.msra.mxu2 %v3459_v63  ;;  %v3084_v59 = vld [vmem:[%s4592_s15 + $0x28] sm:$0xf0] }
  0x51   : > { %v3442_v5 = vld [vmem:[%s4590_s14 + $0x260] sm:$0xf]  ;;  %v4259_v6 = vld [vmem:[%s4590_s14 + $0x26c] sm:$0xf0]  ;;  %v3315_v10 = vor.u32 %v4227_v4, %v3314_v2  ;;  %2014 = vmatpush.bf16.msra.mxu3 %v3587_v3 }
  0x52   : > { %v3570_v7 = vld [vmem:[%s4590_s14 + $0x360] sm:$0xf]  ;;  %v4291_v8 = vld [vmem:[%s4590_s14 + $0x36c] sm:$0xf0]  ;;  %v3443_v11 = vor.u32 %v4259_v6, %v3442_v5  ;;  %1958 = vmatpush.bf16.msra.mxu0 %v3187_v9  ;;  %v4679_v6 = vor.u32 %v4165_v47, %v3076_v48 }
  0x53   : > { %v3170_v12 = vld [vmem:[%s4590_s14 + $0x40] sm:$0xf]  ;;  %v4191_v13 = vld [vmem:[%s4590_s14 + $0x4c] sm:$0xf0]  ;;  %v3571_v15 = vor.u32 %v4291_v8, %v3570_v7  ;;  %1977 = vmatpush.bf16.msra.mxu1 %v3315_v10  ;;  %v4681_v7 = vor.u32 %v4170_v57, %v3082_v52  ;;  %v4685_v10 = vor.u32 %v4166_v58, %v3084_v59 }
  0x54   : > { %v3298_v14 = vld [vmem:[%s4590_s14 + $0x140] sm:$0xf]  ;;  %v4223_v16 = vld [vmem:[%s4590_s14 + $0x14c] sm:$0xf0]  ;;  %v3171_v21 = vor.u32 %v4191_v13, %v3170_v12  ;;  %1996 = vmatpush.bf16.msra.mxu2 %v3443_v11 }
  0x55   : > { %v3426_v17 = vld [vmem:[%s4590_s14 + $0x240] sm:$0xf]  ;;  %v4255_v18 = vld [vmem:[%s4590_s14 + $0x24c] sm:$0xf0]  ;;  %v3299_v22 = vor.u32 %v4223_v16, %v3298_v14  ;;  %2015 = vmatpush.bf16.msra.mxu3 %v3571_v15 }
  0x56   : > { %v3554_v19 = vld [vmem:[%s4590_s14 + $0x340] sm:$0xf]  ;;  %v4287_v20 = vld [vmem:[%s4590_s14 + $0x34c] sm:$0xf0]  ;;  %v3427_v23 = vor.u32 %v4255_v18, %v3426_v17  ;;  %1959 = vmatpush.bf16.msra.mxu0 %v3171_v21 }
  0x57   : > { %v3154_v24 = vld [vmem:[%s4590_s14 + $0x20] sm:$0xf]  ;;  %v4187_v25 = vld [vmem:[%s4590_s14 + $0x2c] sm:$0xf0]  ;;  %v3555_v27 = vor.u32 %v4287_v20, %v3554_v19  ;;  %1978 = vmatpush.bf16.msra.mxu1 %v3299_v22 }
  0x58   : > { %v3282_v26 = vld [vmem:[%s4590_s14 + $0x120] sm:$0xf]  ;;  %v4219_v28 = vld [vmem:[%s4590_s14 + $0x12c] sm:$0xf0]  ;;  %v3155_v34 = vor.u32 %v4187_v25, %v3154_v24  ;;  %1997 = vmatpush.bf16.msra.mxu2 %v3427_v23 }
  0x59   : > { %v3410_v29 = vld [vmem:[%s4590_s14 + $0x220] sm:$0xf]  ;;  %v4251_v30 = vld [vmem:[%s4590_s14 + $0x22c] sm:$0xf0]  ;;  %v3283_v38 = vor.u32 %v4219_v28, %v3282_v26  ;;  %2016 = vmatpush.bf16.msra.mxu3 %v3555_v27 }
  0x5a   : > { %v3538_v31 = vld [vmem:[%s4590_s14 + $0x320] sm:$0xf]  ;;  %v4283_v32 = vld [vmem:[%s4590_s14 + $0x32c] sm:$0xf0]  ;;  %v3411_v39 = vor.u32 %v4251_v30, %v3410_v29  ;;  %1960 = vmatpush.bf16.msra.mxu0 %v3155_v34 }
  0x5b   : > { %v3138_v33 = vld [vmem:[%s4590_s14] sm:$0xf]  ;;  %v4183_v35 = vld [vmem:[%s4590_s14 + $0xc] sm:$0xf0]  ;;  %v3539_v43 = vor.u32 %v4283_v32, %v3538_v31  ;;  %1979 = vmatpush.bf16.msra.mxu1 %v3283_v38 }
  0x5c   : > { %v3266_v36 = vld [vmem:[%s4590_s14 + $0x100] sm:$0xf]  ;;  %v4215_v37 = vld [vmem:[%s4590_s14 + $0x10c] sm:$0xf0]  ;;  %v3139_v51 = vor.u32 %v4183_v35, %v3138_v33  ;;  %1998 = vmatpush.bf16.msra.mxu2 %v3411_v39 }
  0x5d   : > { %v3394_v40 = vld [vmem:[%s4590_s14 + $0x200] sm:$0xf]  ;;  %v4247_v41 = vld [vmem:[%s4590_s14 + $0x20c] sm:$0xf0]  ;;  %v3267_v55 = vor.u32 %v4215_v37, %v3266_v36  ;;  %2017 = vmatpush.bf16.msra.mxu3 %v3539_v43 }
  0x5e   : > { %v3522_v42 = vld [vmem:[%s4590_s14 + $0x300] sm:$0xf]  ;;  %v4279_v44 = vld [vmem:[%s4590_s14 + $0x30c] sm:$0xf0]  ;;  %v3395_v56 = vor.u32 %v4247_v41, %v3394_v40  ;;  %1961 = vmatpush.bf16.msra.mxu0 %v3139_v51 }
  0x5f   : > { %v3074_v45 = vld [vmem:[%s4592_s15] sm:$0xf]  ;;  %v4403_v50 = vld [vmem:[%s4590_s14 + $0x6ec] sm:$0xf0]  ;;  %v3523_v60 = vor.u32 %v4279_v44, %v3522_v42  ;;  %1980 = vmatpush.bf16.msra.mxu1 %v3267_v55  ;;  %v3116_v55 = vld [vmem:[%s4592_s15 + $0x68] sm:$0xf0] }
  0x60   : > { %v4169_v46 = vld [vmem:[%s4592_s15 + $0x1c] sm:$0xf0]  ;;  %v4371_v54 = vld [vmem:[%s4590_s14 + $0x5ec] sm:$0xf0]  ;;  %1999 = vmatpush.bf16.msra.mxu2 %v3395_v56 }
  0x61   : > { %v4018_v49 = vld [vmem:[%s4590_s14 + $0x6e0] sm:$0xf]  ;;  %v4339_v63 = vld [vmem:[%s4590_s14 + $0x4ec] sm:$0xf0]  ;;  %v4674_v1 = vor.u32 %v4169_v46, %v3074_v45  ;;  %2018 = vmatpush.bf16.msra.mxu3 %v3523_v60  ;;  %v4173_v45 = vld [vmem:[%s4592_s15 + $0x44] sm:$0xf] }
  0x62   : > { %v3890_v53 = vld [vmem:[%s4590_s14 + $0x5e0] sm:$0xf]  ;;  %v4019_v61 = vor.u32 %v4403_v50, %v4018_v49  ;;  %v4435_v3 = vld [vmem:[%s4590_s14 + $0x7ec] sm:$0xf0]  ;;  %1981 = vmatmul.bf16.vlgmr.msra.gmra.mxu1 %v4679_v6  ;;  %v3108_v46 = vld [vmem:[%s4592_s15 + $0x60] sm:$0xf0] }
  0x63   : > { %v3762_v62 = vld [vmem:[%s4590_s14 + $0x4e0] sm:$0xf]  ;;  %v3891_v2 = vor.u32 %v4371_v54, %v3890_v53  ;;  %v4399_v5 = vld [vmem:[%s4590_s14 + $0x6cc] sm:$0xf0]  ;;  %1962 = vmatmul.bf16.vlgmr.msra.gmra.mxu0 %v4674_v1  ;;  %2000 = vmatmul.bf16.vlgmr.msra.gmra.mxu2 %v4681_v7  ;;  %v3114_v49 = vld [vmem:[%s4592_s15 + $0x48] sm:$0xf] }
  0x64   : > { %v4146_v0 = vld [vmem:[%s4590_s14 + $0x7e0] sm:$0xf]  ;;  %v4367_v9 = vld [vmem:[%s4590_s14 + $0x5cc] sm:$0xf0]  ;;  %v3763_v11 = vor.u32 %v4339_v63, %v3762_v62  ;;  %2068 = vmatpush.bf16.msrb.mxu2 %v4019_v61  ;;  %2019 = vmatmul.bf16.vlgmr.msra.gmra.mxu3 %v4685_v10  ;;  %v4178_v53 = vld [vmem:[%s4592_s15 + $0x64] sm:$0xf0] }
  0x65   : > { %v4002_v4 = vld [vmem:[%s4590_s14 + $0x6c0] sm:$0xf]  ;;  %v4147_v12 = vor.u32 %v4435_v3, %v4146_v0  ;;  %v4335_v15 = vld [vmem:[%s4590_s14 + $0x4cc] sm:$0xf0]  ;;  %2049 = vmatpush.bf16.msrb.mxu1 %v3891_v2  ;;  %v4174_v54 = vld [vmem:[%s4592_s15 + $0x4c] sm:$0xf]  ;;  %v4731_v3 = vor.u32 %v4173_v45, %v3108_v46 }
  0x66   : > { %v3874_v8 = vld [vmem:[%s4590_s14 + $0x5c0] sm:$0xf]  ;;  %v4003_v13 = vor.u32 %v4399_v5, %v4002_v4  ;;  %v4431_v18 = vld [vmem:[%s4590_s14 + $0x7cc] sm:$0xf0]  ;;  %2030 = vmatpush.bf16.msrb.mxu0 %v3763_v11  ;;  %v4733_v4 = vor.u32 %v4178_v53, %v3114_v49  ;;  %v4167_v49 = vld [vmem:[%s4592_s15 + $0x14] sm:$0xf] }
  0x67   : > { %v3746_v14 = vld [vmem:[%s4590_s14 + $0x4c0] sm:$0xf]  ;;  %v3875_v17 = vor.u32 %v4367_v9, %v3874_v8  ;;  %v4395_v20 = vld [vmem:[%s4590_s14 + $0x6ac] sm:$0xf0]  ;;  %2087 = vmatpush.bf16.msrb.mxu3 %v4147_v12  ;;  %v4737_v9 = vor.u32 %v4174_v54, %v3116_v55  ;;  %v3252_v53 = vld [vmem:[%s4590_s14 + $0xf0] sm:$0xf0] }
  0x68   : > { %v4130_v16 = vld [vmem:[%s4590_s14 + $0x7c0] sm:$0xf]  ;;  %v4363_v22 = vld [vmem:[%s4590_s14 + $0x5ac] sm:$0xf0]  ;;  %v3747_v23 = vor.u32 %v4335_v15, %v3746_v14  ;;  %2069 = vmatpush.bf16.msrb.mxu2 %v4003_v13  ;;  %v4305_v54 = vld [vmem:[%s4590_s14 + $0x3e4] sm:$0xf] }
  0x69   : > { %v3986_v19 = vld [vmem:[%s4590_s14 + $0x6a0] sm:$0xf]  ;;  %v4131_v24 = vor.u32 %v4431_v18, %v4130_v16  ;;  %v4331_v27 = vld [vmem:[%s4590_s14 + $0x4ac] sm:$0xf0]  ;;  %2050 = vmatpush.bf16.msrb.mxu1 %v3875_v17 }
  0x6a   : > { %v3858_v21 = vld [vmem:[%s4590_s14 + $0x5a0] sm:$0xf]  ;;  %v3987_v25 = vor.u32 %v4395_v20, %v3986_v19  ;;  %v4427_v30 = vld [vmem:[%s4590_s14 + $0x7ac] sm:$0xf0]  ;;  %2031 = vmatpush.bf16.msrb.mxu0 %v3747_v23 }
  0x6b   : > { %v3730_v26 = vld [vmem:[%s4590_s14 + $0x4a0] sm:$0xf]  ;;  %v3859_v29 = vor.u32 %v4363_v22, %v3858_v21  ;;  %v4391_v32 = vld [vmem:[%s4590_s14 + $0x68c] sm:$0xf0]  ;;  %2088 = vmatpush.bf16.msrb.mxu3 %v4131_v24 }
  0x6c   : > { %v4114_v28 = vld [vmem:[%s4590_s14 + $0x7a0] sm:$0xf]  ;;  %v4359_v34 = vld [vmem:[%s4590_s14 + $0x58c] sm:$0xf0]  ;;  %v3731_v35 = vor.u32 %v4331_v27, %v3730_v26  ;;  %2070 = vmatpush.bf16.msrb.mxu2 %v3987_v25 }
  0x6d   : > { %v3970_v31 = vld [vmem:[%s4590_s14 + $0x680] sm:$0xf]  ;;  %v4327_v37 = vld [vmem:[%s4590_s14 + $0x48c] sm:$0xf0]  ;;  %v4115_v39 = vor.u32 %v4427_v30, %v4114_v28  ;;  %2051 = vmatpush.bf16.msrb.mxu1 %v3859_v29 }
  0x6e   : > { %v3842_v33 = vld [vmem:[%s4590_s14 + $0x580] sm:$0xf]  ;;  %v3971_v40 = vor.u32 %v4391_v32, %v3970_v31  ;;  %v4423_v41 = vld [vmem:[%s4590_s14 + $0x78c] sm:$0xf0]  ;;  %2032 = vmatpush.bf16.msrb.mxu0 %v3731_v35  ;;  %v4273_v35 = vld [vmem:[%s4590_s14 + $0x2e4] sm:$0xf] }
  0x6f   : > { %v3714_v36 = vld [vmem:[%s4590_s14 + $0x480] sm:$0xf]  ;;  %v3843_v44 = vor.u32 %v4359_v34, %v3842_v33  ;;  %v4387_v48 = vld [vmem:[%s4590_s14 + $0x66c] sm:$0xf0]  ;;  %2089 = vmatpush.bf16.msrb.mxu3 %v4115_v39  ;;  %v4241_v39 = vld [vmem:[%s4590_s14 + $0x1e4] sm:$0xf] }
  0x70   : > { %v4098_v38 = vld [vmem:[%s4590_s14 + $0x780] sm:$0xf]  ;;  %v4355_v51 = vld [vmem:[%s4590_s14 + $0x56c] sm:$0xf0]  ;;  %v3715_v52 = vor.u32 %v4327_v37, %v3714_v36  ;;  %2071 = vmatpush.bf16.msrb.mxu2 %v3971_v40  ;;  %v3508_v36 = vld [vmem:[%s4590_s14 + $0x2f0] sm:$0xf0] }
  0x71   : > { %v3106_v42 = vld [vmem:[%s4592_s15 + $0x40] sm:$0xf]  ;;  %v4099_v56 = vor.u32 %v4423_v41, %v4098_v38  ;;  %v4323_v59 = vld [vmem:[%s4590_s14 + $0x46c] sm:$0xf0]  ;;  %2052 = vmatpush.bf16.msrb.mxu1 %v3843_v44  ;;  %v3380_v40 = vld [vmem:[%s4590_s14 + $0x1f0] sm:$0xf0] }
  0x72   : > { %v4177_v43 = vld [vmem:[%s4592_s15 + $0x5c] sm:$0xf0]  ;;  %v4419_v63 = vld [vmem:[%s4590_s14 + $0x76c] sm:$0xf0]  ;;  %2033 = vmatpush.bf16.msrb.mxu0 %v3715_v52  ;;  %1986 = vmatmul.bf16.gmra.mxu1 %v4731_v3  ;;  %v4209_v52 = vld [vmem:[%s4590_s14 + $0xe4] sm:$0xf]  ;;  %v3383_v55 = vor.u32 %v4241_v39, %v3380_v40 }
  0x73   : > { %v3954_v47 = vld [vmem:[%s4590_s14 + $0x660] sm:$0xf]  ;;  %v4726_v61 = vor.u32 %v4177_v43, %v3106_v42  ;;  %v4383_v2 = vld [vmem:[%s4590_s14 + $0x64c] sm:$0xf0]  ;;  %2090 = vmatpush.bf16.msrb.mxu3 %v4099_v56  ;;  %2005 = vmatmul.bf16.gmra.mxu2 %v4733_v4  ;;  %v3636_v56 = vld [vmem:[%s4590_s14 + $0x3f0] sm:$0xf0] }
  0x74   : > { %v3826_v50 = vld [vmem:[%s4590_s14 + $0x560] sm:$0xf]  ;;  %v3955_v57 = vor.u32 %v4387_v48, %v3954_v47  ;;  %v4351_v8 = vld [vmem:[%s4590_s14 + $0x54c] sm:$0xf0]  ;;  %2024 = vmatmul.bf16.gmra.mxu3 %v4737_v9  ;;  %v3204_v39 = vld [vmem:[%s4590_s14 + $0x90] sm:$0xf0] }
  0x75   : > { %v3698_v58 = vld [vmem:[%s4590_s14 + $0x460] sm:$0xf]  ;;  %v3827_v62 = vor.u32 %v4355_v51, %v3826_v50  ;;  %v4319_v15 = vld [vmem:[%s4590_s14 + $0x44c] sm:$0xf0]  ;;  %1967 = vmatmul.bf16.gmra.mxu0 %v4726_v61  ;;  %v3092_v50 = vld [vmem:[%s4592_s15 + $0x30] sm:$0xf0]  ;;  %v3511_v51 = vor.u32 %v4273_v35, %v3508_v36 }
  0x76   : > { %v4082_v60 = vld [vmem:[%s4590_s14 + $0x760] sm:$0xf]  ;;  %v3699_v11 = vor.u32 %v4323_v59, %v3698_v58  ;;  %2072 = vmatpush.bf16.msrb.mxu2 %v3955_v57  ;;  %v4415_v18 = vld [vmem:[%s4590_s14 + $0x74c] sm:$0xf0]  ;;  %v4269_v57 = vld [vmem:[%s4590_s14 + $0x2c4] sm:$0xf] }
  0x77   : > { %v3938_v0 = vld [vmem:[%s4590_s14 + $0x640] sm:$0xf]  ;;  %v4083_v12 = vor.u32 %v4419_v63, %v4082_v60  ;;  %2053 = vmatpush.bf16.msrb.mxu1 %v3827_v62  ;;  %v4379_v20 = vld [vmem:[%s4590_s14 + $0x62c] sm:$0xf0]  ;;  %v3492_v58 = vld [vmem:[%s4590_s14 + $0x2d0] sm:$0xf0] }
  0x78   : > { %v3810_v5 = vld [vmem:[%s4590_s14 + $0x540] sm:$0xf]  ;;  %v3939_v13 = vor.u32 %v4383_v2, %v3938_v0  ;;  %v4347_v22 = vld [vmem:[%s4590_s14 + $0x52c] sm:$0xf0]  ;;  %2034 = vmatpush.bf16.msrb.mxu0 %v3699_v11  ;;  %v3098_v60 = vld [vmem:[%s4592_s15 + $0x18] sm:$0xf] }
  0x79   : > { %v3682_v14 = vld [vmem:[%s4590_s14 + $0x440] sm:$0xf]  ;;  %v3811_v17 = vor.u32 %v4351_v8, %v3810_v5  ;;  %2091 = vmatpush.bf16.msrb.mxu3 %v4083_v12  ;;  %v4315_v27 = vld [vmem:[%s4590_s14 + $0x42c] sm:$0xf0]  ;;  %v4172_v62 = vld [vmem:[%s4592_s15 + $0x34] sm:$0xf0]  ;;  %v3255_v5 = vor.u32 %v4209_v52, %v3252_v53  ;;  %v3639_v12 = vor.u32 %v4305_v54, %v3636_v56 }
  0x7a   : > { %v4066_v16 = vld [vmem:[%s4590_s14 + $0x740] sm:$0xf]  ;;  %v3683_v23 = vor.u32 %v4319_v15, %v3682_v14  ;;  %2073 = vmatpush.bf16.msrb.mxu2 %v3939_v13  ;;  %v4411_v29 = vld [vmem:[%s4590_s14 + $0x72c] sm:$0xf0]  ;;  %v4168_v63 = vld [vmem:[%s4592_s15 + $0x1c] sm:$0xf]  ;;  %v3495_v13 = vor.u32 %v4269_v57, %v3492_v58 }
  0x7b   : > { %v3922_v19 = vld [vmem:[%s4590_s14 + $0x620] sm:$0xf]  ;;  %v4067_v25 = vor.u32 %v4415_v18, %v4066_v16  ;;  %2054 = vmatpush.bf16.msrb.mxu1 %v3811_v17  ;;  %v4375_v32 = vld [vmem:[%s4590_s14 + $0x60c] sm:$0xf0]  ;;  %v3100_v2 = vld [vmem:[%s4592_s15 + $0x38] sm:$0xf0]  ;;  %v4788_v18 = vor.u32 %v4167_v49, %v3092_v50 }
  0x7c   : > { %v3794_v21 = vld [vmem:[%s4590_s14 + $0x520] sm:$0xf]  ;;  %v3923_v26 = vor.u32 %v4379_v20, %v3922_v19  ;;  %v4343_v34 = vld [vmem:[%s4590_s14 + $0x50c] sm:$0xf0]  ;;  %2035 = vmatpush.bf16.msrb.mxu0 %v3683_v23  ;;  %v4205_v8 = vld [vmem:[%s4590_s14 + $0xc4] sm:$0xf]  ;;  %v4795_v23 = vor.u32 %v4168_v63, %v3100_v2 }
  0x7d   : > { %v3666_v24 = vld [vmem:[%s4590_s14 + $0x420] sm:$0xf]  ;;  %v3795_v30 = vor.u32 %v4347_v22, %v3794_v21  ;;  %2092 = vmatpush.bf16.msrb.mxu3 %v4067_v25  ;;  %v4311_v43 = vld [vmem:[%s4590_s14 + $0x40c] sm:$0xf0]  ;;  %v3236_v11 = vld [vmem:[%s4590_s14 + $0xd0] sm:$0xf0]  ;;  %v4793_v22 = vor.u32 %v4172_v62, %v3098_v60 }
  0x7e   : > { %v4050_v28 = vld [vmem:[%s4590_s14 + $0x720] sm:$0xf]  ;;  %v3667_v37 = vor.u32 %v4315_v27, %v3666_v24  ;;  %2074 = vmatpush.bf16.msrb.mxu2 %v3923_v26  ;;  %v4407_v45 = vld [vmem:[%s4590_s14 + $0x70c] sm:$0xf0]  ;;  %v4237_v14 = vld [vmem:[%s4590_s14 + $0x1c4] sm:$0xf]  ;;  %v3239_v24 = vor.u32 %v4205_v8, %v3236_v11 }
  0x7f   : > { %v3906_v31 = vld [vmem:[%s4590_s14 + $0x600] sm:$0xf]  ;;  %v4051_v41 = vor.u32 %v4411_v29, %v4050_v28  ;;  %2055 = vmatpush.bf16.msrb.mxu1 %v3795_v30  ;;  %v3090_v47 = vld [vmem:[%s4592_s15 + $0x10] sm:$0xf]  ;;  %v3364_v15 = vld [vmem:[%s4590_s14 + $0x1d0] sm:$0xf0] }
  0x80   : > { %v3778_v33 = vld [vmem:[%s4590_s14 + $0x500] sm:$0xf]  ;;  %v3907_v42 = vor.u32 %v4375_v32, %v3906_v31  ;;  %v4171_v48 = vld [vmem:[%s4592_s15 + $0x2c] sm:$0xf0]  ;;  %2036 = vmatpush.bf16.msrb.mxu0 %v3667_v37  ;;  %v4301_v16 = vld [vmem:[%s4590_s14 + $0x3c4] sm:$0xf]  ;;  %v3367_v25 = vor.u32 %v4237_v14, %v3364_v15 }
  0x81   : > { %v3650_v38 = vld [vmem:[%s4590_s14 + $0x400] sm:$0xf]  ;;  %v3779_v46 = vor.u32 %v4343_v34, %v3778_v33  ;;  %2093 = vmatpush.bf16.msrb.mxu3 %v4051_v41  ;;  %v4786_v17 = vor.u32 %v4171_v48, %v3090_v47  ;;  %v3620_v19 = vld [vmem:[%s4590_s14 + $0x3d0] sm:$0xf0]  ;;  %v4265_v20 = vld [vmem:[%s4590_s14 + $0x2a4] sm:$0xf] }
  0x82   : > { %v4034_v44 = vld [vmem:[%s4590_s14 + $0x700] sm:$0xf]  ;;  %v3651_v59 = vor.u32 %v4311_v43, %v3650_v38  ;;  %2075 = vmatpush.bf16.msrb.mxu2 %v3907_v42  ;;  %v3476_v21 = vld [vmem:[%s4590_s14 + $0x2b0] sm:$0xf0]  ;;  %v4201_v26 = vld [vmem:[%s4590_s14 + $0xa4] sm:$0xf]  ;;  %v3623_v28 = vor.u32 %v4301_v16, %v3620_v19 }
  0x83   : > { %v4035_v0 = vor.u32 %v4407_v45, %v4034_v44  ;;  %2056 = vmatpush.bf16.msrb.mxu1 %v3779_v46  ;;  %v3220_v27 = vld [vmem:[%s4590_s14 + $0xb0] sm:$0xf0]  ;;  %v3479_v29 = vor.u32 %v4265_v20, %v3476_v21  ;;  %v4233_v30 = vld [vmem:[%s4590_s14 + $0x1a4] sm:$0xf]  ;;  %v3122_v53 = vld [vmem:[%s4592_s15 + $0x50] sm:$0xf] }
  0x84   : > { %2037 = vmatpush.bf16.msrb.mxu0 %v3651_v59  ;;  %v3348_v31 = vld [vmem:[%s4590_s14 + $0x1b0] sm:$0xf0]  ;;  %v4297_v32 = vld [vmem:[%s4590_s14 + $0x3a4] sm:$0xf]  ;;  %v3223_v36 = vor.u32 %v4201_v26, %v3220_v27  ;;  %v4179_v54 = vld [vmem:[%s4592_s15 + $0x6c] sm:$0xf0] }
  0x85   : > { %2094 = vmatpush.bf16.msrb.mxu3 %v4035_v0  ;;  %v3604_v33 = vld [vmem:[%s4590_s14 + $0x3b0] sm:$0xf0]  ;;  %v4261_v34 = vld [vmem:[%s4590_s14 + $0x284] sm:$0xf]  ;;  %2076 = vmatmul.bf16.vlgmr.msrb.gmra.mxu2 %v4793_v22  ;;  %v3351_v37 = vor.u32 %v4233_v30, %v3348_v31  ;;  %v3130_v2 = vld [vmem:[%s4592_s15 + $0x58] sm:$0xf] }
  0x86   : > { %2144 = vmatpush.bf16.msra.mxu2 %v3511_v51  ;;  %2057 = vmatmul.bf16.vlgmr.msrb.gmra.mxu1 %v4788_v18  ;;  %v3460_v35 = vld [vmem:[%s4590_s14 + $0x290] sm:$0xf0]  ;;  %v4197_v38 = vld [vmem:[%s4590_s14 + $0x84] sm:$0xf]  ;;  %v3607_v40 = vor.u32 %v4297_v32, %v3604_v33  ;;  %v4176_v8 = vld [vmem:[%s4592_s15 + $0x5c] sm:$0xf] }
  0x87   : > { %2125 = vmatpush.bf16.msra.mxu1 %v3383_v55  ;;  %2038 = vmatmul.bf16.vlgmr.msrb.gmra.mxu0 %v4786_v17  ;;  %v3463_v41 = vor.u32 %v4261_v34, %v3460_v35  ;;  %v4229_v42 = vld [vmem:[%s4590_s14 + $0x184] sm:$0xf]  ;;  %v3332_v43 = vld [vmem:[%s4590_s14 + $0x190] sm:$0xf0]  ;;  %v3207_v48 = vor.u32 %v4197_v38, %v3204_v39  ;;  %v3132_v11 = vld [vmem:[%s4592_s15 + $0x78] sm:$0xf0] }
  0x88   : > { %2106 = vmatpush.bf16.msra.mxu0 %v3255_v5  ;;  %2095 = vmatmul.bf16.vlgmr.msrb.gmra.mxu3 %v4795_v23  ;;  %v4293_v44 = vld [vmem:[%s4590_s14 + $0x384] sm:$0xf]  ;;  %v3588_v45 = vld [vmem:[%s4590_s14 + $0x390] sm:$0xf0]  ;;  %v3335_v49 = vor.u32 %v4229_v42, %v3332_v43  ;;  %v4180_v5 = vld [vmem:[%s4592_s15 + $0x74] sm:$0xf0]  ;;  %v4847_v31 = vor.u32 %v4176_v8, %v3132_v11 }
  0x89   : > { %2163 = vmatpush.bf16.msra.mxu3 %v3639_v12  ;;  %v4257_v46 = vld [vmem:[%s4590_s14 + $0x264] sm:$0xf]  ;;  %v3444_v47 = vld [vmem:[%s4590_s14 + $0x270] sm:$0xf0]  ;;  %v3591_v52 = vor.u32 %v4293_v44, %v3588_v45  ;;  %v4845_v30 = vor.u32 %v4180_v5, %v3130_v2 }
  0x8a   : > { %2145 = vmatpush.bf16.msra.mxu2 %v3495_v13  ;;  %v4193_v50 = vld [vmem:[%s4590_s14 + $0x64] sm:$0xf]  ;;  %v3188_v51 = vld [vmem:[%s4590_s14 + $0x70] sm:$0xf0]  ;;  %v3447_v57 = vor.u32 %v4257_v46, %v3444_v47 }
  0x8b   : > { %2126 = vmatpush.bf16.msra.mxu1 %v3367_v25  ;;  %v4175_v55 = vld [vmem:[%s4592_s15 + $0x54] sm:$0xf]  ;;  %v4225_v58 = vld [vmem:[%s4590_s14 + $0x164] sm:$0xf]  ;;  %v3191_v12 = vor.u32 %v4193_v50, %v3188_v51  ;;  %v4838_v25 = vor.u32 %v4179_v54, %v3122_v53 }
  0x8c   : > { %2107 = vmatpush.bf16.msra.mxu0 %v3239_v24  ;;  %v3124_v56 = vld [vmem:[%s4592_s15 + $0x70] sm:$0xf0]  ;;  %v4289_v60 = vld [vmem:[%s4590_s14 + $0x364] sm:$0xf] }
  0x8d   : > { %2164 = vmatpush.bf16.msra.mxu3 %v3623_v28  ;;  %v3316_v59 = vld [vmem:[%s4590_s14 + $0x170] sm:$0xf0]  ;;  %v4253_v63 = vld [vmem:[%s4590_s14 + $0x244] sm:$0xf]  ;;  %v4840_v26 = vor.u32 %v4175_v55, %v3124_v56 }
  0x8e   : > { %2146 = vmatpush.bf16.msra.mxu2 %v3479_v29  ;;  %v3572_v62 = vld [vmem:[%s4590_s14 + $0x370] sm:$0xf0]  ;;  %v3319_v13 = vor.u32 %v4225_v58, %v3316_v59  ;;  %v4189_v14 = vld [vmem:[%s4590_s14 + $0x44] sm:$0xf] }
  0x8f   : > { %2127 = vmatpush.bf16.msra.mxu1 %v3351_v37  ;;  %v3428_v0 = vld [vmem:[%s4590_s14 + $0x250] sm:$0xf0]  ;;  %v3575_v16 = vor.u32 %v4289_v60, %v3572_v62  ;;  %v4221_v20 = vld [vmem:[%s4590_s14 + $0x144] sm:$0xf] }
  0x90   : > { %2108 = vmatpush.bf16.msra.mxu0 %v3223_v36  ;;  %v3172_v15 = vld [vmem:[%s4590_s14 + $0x50] sm:$0xf0]  ;;  %v3431_v19 = vor.u32 %v4253_v63, %v3428_v0  ;;  %v4285_v24 = vld [vmem:[%s4590_s14 + $0x344] sm:$0xf] }
  0x91   : > { %2165 = vmatpush.bf16.msra.mxu3 %v3607_v40  ;;  %v3300_v21 = vld [vmem:[%s4590_s14 + $0x150] sm:$0xf0]  ;;  %v4249_v28 = vld [vmem:[%s4590_s14 + $0x224] sm:$0xf]  ;;  %v3175_v32 = vor.u32 %v4189_v14, %v3172_v15 }
  0x92   : > { %2147 = vmatpush.bf16.msra.mxu2 %v3463_v41  ;;  %v3556_v27 = vld [vmem:[%s4590_s14 + $0x350] sm:$0xf0]  ;;  %v3303_v33 = vor.u32 %v4221_v20, %v3300_v21  ;;  %v4185_v34 = vld [vmem:[%s4590_s14 + $0x24] sm:$0xf] }
  0x93   : > { %2128 = vmatpush.bf16.msra.mxu1 %v3335_v49  ;;  %v3412_v29 = vld [vmem:[%s4590_s14 + $0x230] sm:$0xf0]  ;;  %v3559_v36 = vor.u32 %v4285_v24, %v3556_v27  ;;  %v4217_v38 = vld [vmem:[%s4590_s14 + $0x124] sm:$0xf] }
  0x94   : > { %2109 = vmatpush.bf16.msra.mxu0 %v3207_v48  ;;  %v3156_v35 = vld [vmem:[%s4590_s14 + $0x30] sm:$0xf0]  ;;  %v3415_v37 = vor.u32 %v4249_v28, %v3412_v29  ;;  %v4281_v40 = vld [vmem:[%s4590_s14 + $0x324] sm:$0xf] }
  0x95   : > { %2166 = vmatpush.bf16.msra.mxu3 %v3591_v52  ;;  %v3284_v39 = vld [vmem:[%s4590_s14 + $0x130] sm:$0xf0]  ;;  %v4245_v42 = vld [vmem:[%s4590_s14 + $0x204] sm:$0xf]  ;;  %2081 = vmatmul.bf16.gmra.mxu2 %v4845_v30  ;;  %v3159_v46 = vor.u32 %v4185_v34, %v3156_v35 }
  0x96   : > { %2148 = vmatpush.bf16.msra.mxu2 %v3447_v57  ;;  %2062 = vmatmul.bf16.gmra.mxu1 %v4840_v26  ;;  %v3540_v41 = vld [vmem:[%s4590_s14 + $0x330] sm:$0xf0]  ;;  %v4401_v44 = vld [vmem:[%s4590_s14 + $0x6e4] sm:$0xf]  ;;  %v3287_v47 = vor.u32 %v4217_v38, %v3284_v39 }
  0x97   : > { %2129 = vmatpush.bf16.msra.mxu1 %v3319_v13  ;;  %2043 = vmatmul.bf16.gmra.mxu0 %v4838_v25  ;;  %v3396_v43 = vld [vmem:[%s4590_s14 + $0x210] sm:$0xf0]  ;;  %v4181_v48 = vld [vmem:[%s4590_s14 + $0x4] sm:$0xf]  ;;  %v3543_v51 = vor.u32 %v4281_v40, %v3540_v41 }
  0x98   : > { %2110 = vmatpush.bf16.msra.mxu0 %v3191_v12  ;;  %2100 = vmatmul.bf16.gmra.mxu3 %v4847_v31  ;;  %v4020_v45 = vld [vmem:[%s4590_s14 + $0x6f0] sm:$0xf0]  ;;  %v4213_v50 = vld [vmem:[%s4590_s14 + $0x104] sm:$0xf]  ;;  %v3399_v52 = vor.u32 %v4245_v42, %v3396_v43 }
  0x99   : > { %2167 = vmatpush.bf16.msra.mxu3 %v3575_v16  ;;  %v3140_v49 = vld [vmem:[%s4590_s14 + $0x10] sm:$0xf0]  ;;  %v4277_v54 = vld [vmem:[%s4590_s14 + $0x304] sm:$0xf]  ;;  %v4023_v56 = vor.u32 %v4401_v44, %v4020_v45 }
  0x9a   : > { %2149 = vmatpush.bf16.msra.mxu2 %v3431_v19  ;;  %v3268_v53 = vld [vmem:[%s4590_s14 + $0x110] sm:$0xf0]  ;;  %v4337_v57 = vld [vmem:[%s4590_s14 + $0x4e4] sm:$0xf]  ;;  %v3143_v0 = vor.u32 %v4181_v48, %v3140_v49 }
  0x9b   : > { %2130 = vmatpush.bf16.msra.mxu1 %v3303_v33  ;;  %v3524_v55 = vld [vmem:[%s4590_s14 + $0x310] sm:$0xf0]  ;;  %v4369_v59 = vld [vmem:[%s4590_s14 + $0x5e4] sm:$0xf]  ;;  %v3271_v2 = vor.u32 %v4213_v50, %v3268_v53 }
  0x9c   : > { %2111 = vmatpush.bf16.msra.mxu0 %v3175_v32  ;;  %v3764_v58 = vld [vmem:[%s4590_s14 + $0x4f0] sm:$0xf0]  ;;  %v4433_v62 = vld [vmem:[%s4590_s14 + $0x7e4] sm:$0xf]  ;;  %v3527_v11 = vor.u32 %v4277_v54, %v3524_v55 }
  0x9d   : > { %2168 = vmatpush.bf16.msra.mxu3 %v3559_v36  ;;  %v3892_v60 = vld [vmem:[%s4590_s14 + $0x5f0] sm:$0xf0]  ;;  %v4397_v5 = vld [vmem:[%s4590_s14 + $0x6c4] sm:$0xf]  ;;  %v3767_v12 = vor.u32 %v4337_v57, %v3764_v58 }
  0x9e   : > { %2150 = vmatpush.bf16.msra.mxu2 %v3415_v37  ;;  %v4148_v63 = vld [vmem:[%s4590_s14 + $0x7f0] sm:$0xf0]  ;;  %v3895_v13 = vor.u32 %v4369_v59, %v3892_v60  ;;  %v4333_v15 = vld [vmem:[%s4590_s14 + $0x4c4] sm:$0xf] }
  0x9f   : > { %2131 = vmatpush.bf16.msra.mxu1 %v3287_v47  ;;  %v4004_v8 = vld [vmem:[%s4590_s14 + $0x6d0] sm:$0xf0]  ;;  %v4151_v14 = vor.u32 %v4433_v62, %v4148_v63  ;;  %v4365_v20 = vld [vmem:[%s4590_s14 + $0x5c4] sm:$0xf] }
  0xa0   : > { %2112 = vmatpush.bf16.msra.mxu0 %v3159_v46  ;;  %v3748_v16 = vld [vmem:[%s4590_s14 + $0x4d0] sm:$0xf0]  ;;  %v4007_v19 = vor.u32 %v4397_v5, %v4004_v8  ;;  %v4429_v27 = vld [vmem:[%s4590_s14 + $0x7c4] sm:$0xf] }
  0xa1   : > { %2169 = vmatpush.bf16.msra.mxu3 %v3543_v51  ;;  %v3876_v21 = vld [vmem:[%s4590_s14 + $0x5d0] sm:$0xf0]  ;;  %v3751_v24 = vor.u32 %v4333_v15, %v3748_v16  ;;  %v4393_v29 = vld [vmem:[%s4590_s14 + $0x6a4] sm:$0xf] }
  0xa2   : > { %2151 = vmatpush.bf16.msra.mxu2 %v3399_v52  ;;  %v4132_v28 = vld [vmem:[%s4590_s14 + $0x7d0] sm:$0xf0]  ;;  %v4329_v33 = vld [vmem:[%s4590_s14 + $0x4a4] sm:$0xf]  ;;  %v3879_v35 = vor.u32 %v4365_v20, %v3876_v21 }
  0xa3   : > { %2132 = vmatpush.bf16.msra.mxu1 %v3271_v2  ;;  %v3988_v32 = vld [vmem:[%s4590_s14 + $0x6b0] sm:$0xf0]  ;;  %v4135_v36 = vor.u32 %v4429_v27, %v4132_v28  ;;  %v4361_v37 = vld [vmem:[%s4590_s14 + $0x5a4] sm:$0xf] }
  0xa4   : > { %2113 = vmatpush.bf16.msra.mxu0 %v3143_v0  ;;  %v3732_v34 = vld [vmem:[%s4590_s14 + $0x4b0] sm:$0xf0]  ;;  %v3991_v39 = vor.u32 %v4393_v29, %v3988_v32  ;;  %v4425_v41 = vld [vmem:[%s4590_s14 + $0x7a4] sm:$0xf] }
  0xa5   : > { %2170 = vmatpush.bf16.msra.mxu3 %v3527_v11  ;;  %v3860_v38 = vld [vmem:[%s4590_s14 + $0x5b0] sm:$0xf0]  ;;  %v3735_v40 = vor.u32 %v4329_v33, %v3732_v34  ;;  %v4389_v43 = vld [vmem:[%s4590_s14 + $0x684] sm:$0xf]  ;;  %2152 = vmatmul.bf16.vlgmr.msra.gmra.mxu2 %v4681_v7 }
  0xa6   : > { %2220 = vmatpush.bf16.msrb.mxu2 %v4023_v56  ;;  %v4116_v42 = vld [vmem:[%s4590_s14 + $0x7b0] sm:$0xf0]  ;;  %2133 = vmatmul.bf16.vlgmr.msra.gmra.mxu1 %v4679_v6  ;;  %v4325_v45 = vld [vmem:[%s4590_s14 + $0x484] sm:$0xf]  ;;  %v3863_v47 = vor.u32 %v4361_v37, %v3860_v38 }
  0xa7   : > { %2201 = vmatpush.bf16.msrb.mxu1 %v3895_v13  ;;  %2114 = vmatmul.bf16.vlgmr.msra.gmra.mxu0 %v4674_v1  ;;  %v3972_v44 = vld [vmem:[%s4590_s14 + $0x690] sm:$0xf0]  ;;  %v4119_v48 = vor.u32 %v4425_v41, %v4116_v42  ;;  %v4357_v49 = vld [vmem:[%s4590_s14 + $0x584] sm:$0xf] }
  0xa8   : > { %2182 = vmatpush.bf16.msrb.mxu0 %v3767_v12  ;;  %v3716_v46 = vld [vmem:[%s4590_s14 + $0x490] sm:$0xf0]  ;;  %2171 = vmatmul.bf16.vlgmr.msra.gmra.mxu3 %v4685_v10  ;;  %v3975_v51 = vor.u32 %v4389_v43, %v3972_v44  ;;  %v4421_v53 = vld [vmem:[%s4590_s14 + $0x784] sm:$0xf] }
  0xa9   : > { %2239 = vmatpush.bf16.msrb.mxu3 %v4151_v14  ;;  %v3844_v50 = vld [vmem:[%s4590_s14 + $0x590] sm:$0xf0]  ;;  %v3719_v52 = vor.u32 %v4325_v45, %v3716_v46  ;;  %v4385_v55 = vld [vmem:[%s4590_s14 + $0x664] sm:$0xf] }
  0xaa   : > { %2221 = vmatpush.bf16.msrb.mxu2 %v4007_v19  ;;  %v4100_v54 = vld [vmem:[%s4590_s14 + $0x790] sm:$0xf0]  ;;  %v4321_v57 = vld [vmem:[%s4590_s14 + $0x464] sm:$0xf]  ;;  %v3847_v59 = vor.u32 %v4357_v49, %v3844_v50  ;;  %v3258_v49 = vld [vmem:[%s4590_s14 + $0xe8] sm:$0xf] }
  0xab   : > { %2202 = vmatpush.bf16.msrb.mxu1 %v3879_v35  ;;  %v3956_v56 = vld [vmem:[%s4590_s14 + $0x670] sm:$0xf0]  ;;  %v4103_v60 = vor.u32 %v4421_v53, %v4100_v54  ;;  %v4353_v62 = vld [vmem:[%s4590_s14 + $0x564] sm:$0xf]  ;;  %v4212_v50 = vld [vmem:[%s4590_s14 + $0xf4] sm:$0xf0] }
  0xac   : > { %2183 = vmatpush.bf16.msrb.mxu0 %v3751_v24  ;;  %v3700_v58 = vld [vmem:[%s4590_s14 + $0x470] sm:$0xf0]  ;;  %v3959_v0 = vor.u32 %v4385_v55, %v3956_v56  ;;  %v4417_v5 = vld [vmem:[%s4590_s14 + $0x764] sm:$0xf] }
  0xad   : > { %2240 = vmatpush.bf16.msrb.mxu3 %v4135_v36  ;;  %v3828_v63 = vld [vmem:[%s4590_s14 + $0x570] sm:$0xf0]  ;;  %v3703_v2 = vor.u32 %v4321_v57, %v3700_v58  ;;  %v4381_v11 = vld [vmem:[%s4590_s14 + $0x644] sm:$0xf] }
  0xae   : > { %2222 = vmatpush.bf16.msrb.mxu2 %v3991_v39  ;;  %v4084_v8 = vld [vmem:[%s4590_s14 + $0x770] sm:$0xf0]  ;;  %v4317_v13 = vld [vmem:[%s4590_s14 + $0x444] sm:$0xf]  ;;  %v3831_v15 = vor.u32 %v4353_v62, %v3828_v63  ;;  %v3259_v63 = vor.u32 %v4212_v50, %v3258_v49  ;;  %v3338_v49 = vld [vmem:[%s4590_s14 + $0x188] sm:$0xf] }
  0xaf   : > { %2203 = vmatpush.bf16.msrb.mxu1 %v3863_v47  ;;  %v3940_v12 = vld [vmem:[%s4590_s14 + $0x650] sm:$0xf0]  ;;  %v4087_v16 = vor.u32 %v4417_v5, %v4084_v8  ;;  %v4349_v19 = vld [vmem:[%s4590_s14 + $0x544] sm:$0xf]  ;;  %v3514_v47 = vld [vmem:[%s4590_s14 + $0x2e8] sm:$0xf] }
  0xb0   : > { %2184 = vmatpush.bf16.msrb.mxu0 %v3735_v40  ;;  %v3684_v14 = vld [vmem:[%s4590_s14 + $0x450] sm:$0xf0]  ;;  %v3943_v21 = vor.u32 %v4381_v11, %v3940_v12  ;;  %v4413_v27 = vld [vmem:[%s4590_s14 + $0x744] sm:$0xf]  ;;  %v3498_v5 = vld [vmem:[%s4590_s14 + $0x2c8] sm:$0xf] }
  0xb1   : > { %2241 = vmatpush.bf16.msrb.mxu3 %v4119_v48  ;;  %v3812_v20 = vld [vmem:[%s4590_s14 + $0x550] sm:$0xf0]  ;;  %v3687_v24 = vor.u32 %v4317_v13, %v3684_v14  ;;  %v4377_v29 = vld [vmem:[%s4590_s14 + $0x624] sm:$0xf]  ;;  %v4276_v48 = vld [vmem:[%s4590_s14 + $0x2f4] sm:$0xf0] }
  0xb2   : > { %2223 = vmatpush.bf16.msrb.mxu2 %v3975_v51  ;;  %v4068_v28 = vld [vmem:[%s4590_s14 + $0x750] sm:$0xf0]  ;;  %v4313_v33 = vld [vmem:[%s4590_s14 + $0x424] sm:$0xf]  ;;  %v3815_v35 = vor.u32 %v4349_v19, %v3812_v20  ;;  %v3515_v62 = vor.u32 %v4276_v48, %v3514_v47  ;;  %v4272_v8 = vld [vmem:[%s4590_s14 + $0x2d4] sm:$0xf0] }
  0xb3   : > { %2204 = vmatpush.bf16.msrb.mxu1 %v3847_v59  ;;  %v3924_v32 = vld [vmem:[%s4590_s14 + $0x630] sm:$0xf0]  ;;  %v4071_v36 = vor.u32 %v4413_v27, %v4068_v28  ;;  %v4345_v37 = vld [vmem:[%s4590_s14 + $0x524] sm:$0xf]  ;;  %v3386_v59 = vld [vmem:[%s4590_s14 + $0x1e8] sm:$0xf]  ;;  %v3499_v20 = vor.u32 %v4272_v8, %v3498_v5 }
  0xb4   : > { %2185 = vmatpush.bf16.msrb.mxu0 %v3719_v52  ;;  %v3668_v34 = vld [vmem:[%s4590_s14 + $0x430] sm:$0xf0]  ;;  %v4409_v39 = vld [vmem:[%s4590_s14 + $0x724] sm:$0xf]  ;;  %v3927_v40 = vor.u32 %v4377_v29, %v3924_v32  ;;  %v3242_v11 = vld [vmem:[%s4590_s14 + $0xc8] sm:$0xf] }
  0xb5   : > { %2242 = vmatpush.bf16.msrb.mxu3 %v4103_v60  ;;  %v3796_v38 = vld [vmem:[%s4590_s14 + $0x530] sm:$0xf0]  ;;  %v3671_v41 = vor.u32 %v4313_v33, %v3668_v34  ;;  %v4373_v43 = vld [vmem:[%s4590_s14 + $0x604] sm:$0xf]  ;;  %2157 = vmatmul.bf16.gmra.mxu2 %v4733_v4  ;;  %v4244_v60 = vld [vmem:[%s4590_s14 + $0x1f4] sm:$0xf0] }
  0xb6   : > { %2224 = vmatpush.bf16.msrb.mxu2 %v3959_v0  ;;  %v4052_v42 = vld [vmem:[%s4590_s14 + $0x730] sm:$0xf0]  ;;  %2138 = vmatmul.bf16.gmra.mxu1 %v4731_v3  ;;  %v4309_v45 = vld [vmem:[%s4590_s14 + $0x404] sm:$0xf]  ;;  %v3799_v51 = vor.u32 %v4345_v37, %v3796_v38  ;;  %v3642_v0 = vld [vmem:[%s4590_s14 + $0x3e8] sm:$0xf] }
  0xb7   : > { %2205 = vmatpush.bf16.msrb.mxu1 %v3831_v15  ;;  %v3908_v44 = vld [vmem:[%s4590_s14 + $0x610] sm:$0xf0]  ;;  %2119 = vmatmul.bf16.gmra.mxu0 %v4726_v61  ;;  %v4055_v52 = vor.u32 %v4409_v39, %v4052_v42  ;;  %v4341_v53 = vld [vmem:[%s4590_s14 + $0x504] sm:$0xf]  ;;  %v4208_v12 = vld [vmem:[%s4590_s14 + $0xd4] sm:$0xf0]  ;;  %v3387_v15 = vor.u32 %v4244_v60, %v3386_v59 }
  0xb8   : > { %2186 = vmatpush.bf16.msrb.mxu0 %v3703_v2  ;;  %v3652_v46 = vld [vmem:[%s4590_s14 + $0x410] sm:$0xf0]  ;;  %2176 = vmatmul.bf16.gmra.mxu3 %v4737_v9  ;;  %v4405_v55 = vld [vmem:[%s4590_s14 + $0x704] sm:$0xf]  ;;  %v3911_v56 = vor.u32 %v4373_v43, %v3908_v44  ;;  %v4308_v2 = vld [vmem:[%s4590_s14 + $0x3f4] sm:$0xf0] }
  0xb9   : > { %2243 = vmatpush.bf16.msrb.mxu3 %v4087_v16  ;;  %v3780_v54 = vld [vmem:[%s4590_s14 + $0x510] sm:$0xf0]  ;;  %v3655_v57 = vor.u32 %v4309_v45, %v3652_v46  ;;  %v3643_v16 = vor.u32 %v4308_v2, %v3642_v0  ;;  %v3370_v19 = vld [vmem:[%s4590_s14 + $0x1c8] sm:$0xf]  ;;  %v4304_v28 = vld [vmem:[%s4590_s14 + $0x3d4] sm:$0xf0] }
  0xba   : > { %2225 = vmatpush.bf16.msrb.mxu2 %v3943_v21  ;;  %v4036_v58 = vld [vmem:[%s4590_s14 + $0x710] sm:$0xf0]  ;;  %v3783_v13 = vor.u32 %v4341_v53, %v3780_v54  ;;  %v3243_v21 = vor.u32 %v4208_v12, %v3242_v11  ;;  %v3626_v27 = vld [vmem:[%s4590_s14 + $0x3c8] sm:$0xf]  ;;  %v4268_v32 = vld [vmem:[%s4590_s14 + $0x2b4] sm:$0xf0] }
  0xbb   : > { %2206 = vmatpush.bf16.msrb.mxu1 %v3815_v35  ;;  %v4039_v14 = vor.u32 %v4405_v55, %v4036_v58  ;;  %v3482_v29 = vld [vmem:[%s4590_s14 + $0x2a8] sm:$0xf]  ;;  %v3627_v34 = vor.u32 %v4304_v28, %v3626_v27  ;;  %v4236_v38 = vld [vmem:[%s4590_s14 + $0x1b4] sm:$0xf0] }
  0xbc   : > { %2187 = vmatpush.bf16.msrb.mxu0 %v3687_v24  ;;  %v4240_v24 = vld [vmem:[%s4590_s14 + $0x1d4] sm:$0xf0]  ;;  %v3226_v35 = vld [vmem:[%s4590_s14 + $0xa8] sm:$0xf] }
  0xbd   : > { %2244 = vmatpush.bf16.msrb.mxu3 %v4071_v36  ;;  %v3371_v33 = vor.u32 %v4240_v24, %v3370_v19  ;;  %v4204_v36 = vld [vmem:[%s4590_s14 + $0xb4] sm:$0xf0]  ;;  %v3354_v37 = vld [vmem:[%s4590_s14 + $0x1a8] sm:$0xf] }
  0xbe   : > { %2226 = vmatpush.bf16.msrb.mxu2 %v3927_v40  ;;  %v3610_v39 = vld [vmem:[%s4590_s14 + $0x3a8] sm:$0xf]  ;;  %v4300_v40 = vld [vmem:[%s4590_s14 + $0x3b4] sm:$0xf0]  ;;  %v3227_v42 = vor.u32 %v4204_v36, %v3226_v35  ;;  %v3355_v45 = vor.u32 %v4236_v38, %v3354_v37 }
  0xbf   : > { %2207 = vmatpush.bf16.msrb.mxu1 %v3799_v51  ;;  %v3466_v43 = vld [vmem:[%s4590_s14 + $0x288] sm:$0xf]  ;;  %v4264_v44 = vld [vmem:[%s4590_s14 + $0x294] sm:$0xf0]  ;;  %v3611_v46 = vor.u32 %v4300_v40, %v3610_v39 }
  0xc0   : > { %2188 = vmatpush.bf16.msrb.mxu0 %v3671_v41  ;;  %v3483_v41 = vor.u32 %v4268_v32, %v3482_v29  ;;  %v3210_v47 = vld [vmem:[%s4590_s14 + $0x88] sm:$0xf]  ;;  %v4200_v48 = vld [vmem:[%s4590_s14 + $0x94] sm:$0xf0]  ;;  %v3467_v53 = vor.u32 %v4264_v44, %v3466_v43 }
  0xc1   : > { %2245 = vmatpush.bf16.msrb.mxu3 %v4055_v52  ;;  %v4232_v50 = vld [vmem:[%s4590_s14 + $0x194] sm:$0xf0]  ;;  %v3594_v51 = vld [vmem:[%s4590_s14 + $0x388] sm:$0xf]  ;;  %v3211_v54 = vor.u32 %v4200_v48, %v3210_v47 }
  0xc2   : > { %2227 = vmatpush.bf16.msrb.mxu2 %v3911_v56  ;;  %v4296_v52 = vld [vmem:[%s4590_s14 + $0x394] sm:$0xf0]  ;;  %v3450_v55 = vld [vmem:[%s4590_s14 + $0x268] sm:$0xf] }
  0xc3   : > { %2208 = vmatpush.bf16.msrb.mxu1 %v3783_v13  ;;  %v4260_v56 = vld [vmem:[%s4590_s14 + $0x274] sm:$0xf0]  ;;  %v3595_v58 = vor.u32 %v4296_v52, %v3594_v51  ;;  %v3194_v59 = vld [vmem:[%s4590_s14 + $0x68] sm:$0xf] }
  0xc4   : > { %2189 = vmatpush.bf16.msrb.mxu0 %v3655_v57  ;;  %v3339_v57 = vor.u32 %v4232_v50, %v3338_v49  ;;  %v4196_v60 = vld [vmem:[%s4590_s14 + $0x74] sm:$0xf0]  ;;  %v3578_v0 = vld [vmem:[%s4590_s14 + $0x368] sm:$0xf]  ;;  %v3451_v5 = vor.u32 %v4260_v56, %v3450_v55 }
  0xc5   : > { %2246 = vmatpush.bf16.msrb.mxu3 %v4039_v14  ;;  %2228 = vmatmul.bf16.vlgmr.msrb.gmra.mxu2 %v4793_v22  ;;  %v4292_v2 = vld [vmem:[%s4590_s14 + $0x374] sm:$0xf0]  ;;  %v3195_v8 = vor.u32 %v4196_v60, %v3194_v59  ;;  %v3434_v11 = vld [vmem:[%s4590_s14 + $0x248] sm:$0xf] }
  0xc6   : > { %2296 = vmatpush.bf16.msra.mxu2 %v3515_v62  ;;  %2209 = vmatmul.bf16.vlgmr.msrb.gmra.mxu1 %v4788_v18  ;;  %v3322_v62 = vld [vmem:[%s4590_s14 + $0x168] sm:$0xf]  ;;  %v4256_v12 = vld [vmem:[%s4590_s14 + $0x254] sm:$0xf0]  ;;  %v3579_v14 = vor.u32 %v4292_v2, %v3578_v0 }
  0xc7   : > { %2277 = vmatpush.bf16.msra.mxu1 %v3387_v15  ;;  %2190 = vmatmul.bf16.vlgmr.msrb.gmra.mxu0 %v4786_v17  ;;  %v3178_v15 = vld [vmem:[%s4590_s14 + $0x48] sm:$0xf]  ;;  %v4288_v24 = vld [vmem:[%s4590_s14 + $0x354] sm:$0xf0]  ;;  %v3435_v27 = vor.u32 %v4256_v12, %v3434_v11 }
  0xc8   : > { %2258 = vmatpush.bf16.msra.mxu0 %v3259_v63  ;;  %2247 = vmatmul.bf16.vlgmr.msrb.gmra.mxu3 %v4795_v23  ;;  %v4228_v63 = vld [vmem:[%s4590_s14 + $0x174] sm:$0xf0]  ;;  %v3306_v19 = vld [vmem:[%s4590_s14 + $0x148] sm:$0xf] }
  0xc9   : > { %2315 = vmatpush.bf16.msra.mxu3 %v3643_v16  ;;  %v3323_v13 = vor.u32 %v4228_v63, %v3322_v62  ;;  %v4192_v16 = vld [vmem:[%s4590_s14 + $0x54] sm:$0xf0]  ;;  %v3418_v29 = vld [vmem:[%s4590_s14 + $0x228] sm:$0xf] }
  0xca   : > { %2297 = vmatpush.bf16.msra.mxu2 %v3499_v20  ;;  %v4224_v20 = vld [vmem:[%s4590_s14 + $0x154] sm:$0xf0]  ;;  %v3179_v28 = vor.u32 %v4192_v16, %v3178_v15  ;;  %v3162_v35 = vld [vmem:[%s4590_s14 + $0x28] sm:$0xf] }
  0xcb   : > { %2278 = vmatpush.bf16.msra.mxu1 %v3371_v33  ;;  %v4252_v32 = vld [vmem:[%s4590_s14 + $0x234] sm:$0xf0]  ;;  %v3307_v33 = vor.u32 %v4224_v20, %v3306_v19  ;;  %v3290_v37 = vld [vmem:[%s4590_s14 + $0x128] sm:$0xf] }
  0xcc   : > { %2259 = vmatpush.bf16.msra.mxu0 %v3243_v21  ;;  %v3562_v21 = vld [vmem:[%s4590_s14 + $0x348] sm:$0xf]  ;;  %v4188_v36 = vld [vmem:[%s4590_s14 + $0x34] sm:$0xf0] }
  0xcd   : > { %2316 = vmatpush.bf16.msra.mxu3 %v3627_v34  ;;  %v3563_v34 = vor.u32 %v4288_v24, %v3562_v21  ;;  %v4220_v38 = vld [vmem:[%s4590_s14 + $0x134] sm:$0xf0]  ;;  %v3546_v39 = vld [vmem:[%s4590_s14 + $0x328] sm:$0xf]  ;;  %v3163_v43 = vor.u32 %v4188_v36, %v3162_v35 }
  0xce   : > { %2298 = vmatpush.bf16.msra.mxu2 %v3483_v41  ;;  %v4284_v40 = vld [vmem:[%s4590_s14 + $0x334] sm:$0xf0]  ;;  %v3402_v41 = vld [vmem:[%s4590_s14 + $0x208] sm:$0xf]  ;;  %v3291_v47 = vor.u32 %v4220_v38, %v3290_v37 }
  0xcf   : > { %2279 = vmatpush.bf16.msra.mxu1 %v3355_v45  ;;  %v4248_v44 = vld [vmem:[%s4590_s14 + $0x214] sm:$0xf0]  ;;  %v3146_v45 = vld [vmem:[%s4590_s14 + $0x8] sm:$0xf]  ;;  %v3547_v48 = vor.u32 %v4284_v40, %v3546_v39 }
  0xd0   : > { %2260 = vmatpush.bf16.msra.mxu0 %v3227_v42  ;;  %v3419_v42 = vor.u32 %v4252_v32, %v3418_v29  ;;  %v3274_v49 = vld [vmem:[%s4590_s14 + $0x108] sm:$0xf]  ;;  %v4216_v50 = vld [vmem:[%s4590_s14 + $0x114] sm:$0xf0] }
  0xd1   : > { %2317 = vmatpush.bf16.msra.mxu3 %v3611_v46  ;;  %v4184_v46 = vld [vmem:[%s4590_s14 + $0x14] sm:$0xf0]  ;;  %v3530_v51 = vld [vmem:[%s4590_s14 + $0x308] sm:$0xf]  ;;  %v3275_v0 = vor.u32 %v4216_v50, %v3274_v49 }
  0xd2   : > { %2299 = vmatpush.bf16.msra.mxu2 %v3467_v53  ;;  %v4280_v52 = vld [vmem:[%s4590_s14 + $0x314] sm:$0xf0]  ;;  %v4026_v53 = vld [vmem:[%s4590_s14 + $0x6e8] sm:$0xf]  ;;  %v3147_v59 = vor.u32 %v4184_v46, %v3146_v45 }
  0xd3   : > { %2280 = vmatpush.bf16.msra.mxu1 %v3339_v57  ;;  %v3770_v55 = vld [vmem:[%s4590_s14 + $0x4e8] sm:$0xf]  ;;  %v4340_v56 = vld [vmem:[%s4590_s14 + $0x4f4] sm:$0xf0]  ;;  %v3531_v2 = vor.u32 %v4280_v52, %v3530_v51 }
  0xd4   : > { %2261 = vmatpush.bf16.msra.mxu0 %v3211_v54  ;;  %v4404_v54 = vld [vmem:[%s4590_s14 + $0x6f4] sm:$0xf0]  ;;  %v3898_v57 = vld [vmem:[%s4590_s14 + $0x5e8] sm:$0xf] }
  0xd5   : > { %2318 = vmatpush.bf16.msra.mxu3 %v3595_v58  ;;  %2233 = vmatmul.bf16.gmra.mxu2 %v4845_v30  ;;  %v3403_v58 = vor.u32 %v4248_v44, %v3402_v41  ;;  %v4372_v60 = vld [vmem:[%s4590_s14 + $0x5f4] sm:$0xf0]  ;;  %v4154_v62 = vld [vmem:[%s4590_s14 + $0x7e8] sm:$0xf] }
  0xd6   : > { %2300 = vmatpush.bf16.msra.mxu2 %v3451_v5  ;;  %2214 = vmatmul.bf16.gmra.mxu1 %v4840_v26  ;;  %v4436_v63 = vld [vmem:[%s4590_s14 + $0x7f4] sm:$0xf0]  ;;  %v4027_v5 = vor.u32 %v4404_v54, %v4026_v53  ;;  %v4010_v11 = vld [vmem:[%s4590_s14 + $0x6c8] sm:$0xf] }
  0xd7   : > { %2281 = vmatpush.bf16.msra.mxu1 %v3323_v13  ;;  %2195 = vmatmul.bf16.gmra.mxu0 %v4838_v25  ;;  %v4400_v12 = vld [vmem:[%s4590_s14 + $0x6d4] sm:$0xf0]  ;;  %v3899_v13 = vor.u32 %v4372_v60, %v3898_v57  ;;  %v3754_v15 = vld [vmem:[%s4590_s14 + $0x4c8] sm:$0xf] }
  0xd8   : > { %2262 = vmatpush.bf16.msra.mxu0 %v3195_v8  ;;  %2252 = vmatmul.bf16.gmra.mxu3 %v4847_v31  ;;  %v3771_v8 = vor.u32 %v4340_v56, %v3770_v55  ;;  %v4336_v16 = vld [vmem:[%s4590_s14 + $0x4d4] sm:$0xf0]  ;;  %v3882_v19 = vld [vmem:[%s4590_s14 + $0x5c8] sm:$0xf] }
  0xd9   : > { %2319 = vmatpush.bf16.msra.mxu3 %v3579_v14  ;;  %v4155_v14 = vor.u32 %v4436_v63, %v4154_v62  ;;  %v4368_v20 = vld [vmem:[%s4590_s14 + $0x5d4] sm:$0xf0]  ;;  %v4138_v21 = vld [vmem:[%s4590_s14 + $0x7c8] sm:$0xf] }
  0xda   : > { %2301 = vmatpush.bf16.msra.mxu2 %v3435_v27  ;;  %v4432_v24 = vld [vmem:[%s4590_s14 + $0x7d4] sm:$0xf0]  ;;  %v4011_v27 = vor.u32 %v4400_v12, %v4010_v11  ;;  %v3883_v29 = vor.u32 %v4368_v20, %v3882_v19  ;;  %v3738_v35 = vld [vmem:[%s4590_s14 + $0x4a8] sm:$0xf] }
  0xdb   : > { %2282 = vmatpush.bf16.msra.mxu1 %v3307_v33  ;;  %v4139_v32 = vor.u32 %v4432_v24, %v4138_v21  ;;  %v3994_v33 = vld [vmem:[%s4590_s14 + $0x6a8] sm:$0xf]  ;;  %v4332_v36 = vld [vmem:[%s4590_s14 + $0x4b4] sm:$0xf0] }
  0xdc   : > { %2263 = vmatpush.bf16.msra.mxu0 %v3179_v28  ;;  %v3755_v28 = vor.u32 %v4336_v16, %v3754_v15  ;;  %v3866_v37 = vld [vmem:[%s4590_s14 + $0x5a8] sm:$0xf]  ;;  %v4364_v39 = vld [vmem:[%s4590_s14 + $0x5b4] sm:$0xf0]  ;;  %v3739_v44 = vor.u32 %v4332_v36, %v3738_v35 }
  0xdd   : > { %2320 = vmatpush.bf16.msra.mxu3 %v3563_v34  ;;  %v4396_v34 = vld [vmem:[%s4590_s14 + $0x6b4] sm:$0xf0]  ;;  %v4122_v40 = vld [vmem:[%s4590_s14 + $0x7a8] sm:$0xf] }
  0xde   : > { %2302 = vmatpush.bf16.msra.mxu2 %v3419_v42  ;;  %v4428_v41 = vld [vmem:[%s4590_s14 + $0x7b4] sm:$0xf0]  ;;  %v3978_v45 = vld [vmem:[%s4590_s14 + $0x688] sm:$0xf] }
  0xdf   : > { %2283 = vmatpush.bf16.msra.mxu1 %v3291_v47  ;;  %v5037_v42 = vpop.f32.mrf.mxu1  ;;  %v4392_v46 = vld [vmem:[%s4590_s14 + $0x694] sm:$0xf0]  ;;  %v3867_v47 = vor.u32 %v4364_v39, %v3866_v37  ;;  %v3722_v49 = vld [vmem:[%s4590_s14 + $0x488] sm:$0xf] }
  0xe0   : > { %2264 = vmatpush.bf16.msra.mxu0 %v3163_v43  ;;  %v5032_v38 = vpop.f32.mrf.mxu0  ;;  %v3995_v43 = vor.u32 %v4396_v34, %v3994_v33  ;;  %v4328_v50 = vld [vmem:[%s4590_s14 + $0x494] sm:$0xf0]  ;;  %v3850_v51 = vld [vmem:[%s4590_s14 + $0x588] sm:$0xf]  ;;  %v3979_v55 = vor.u32 %v4392_v46, %v3978_v45 }
  0xe1   : > { %2321 = vmatpush.bf16.msra.mxu3 %v3547_v48  ;;  %v4123_v48 = vor.u32 %v4428_v41, %v4122_v40  ;;  %v4360_v52 = vld [vmem:[%s4590_s14 + $0x594] sm:$0xf0]  ;;  %v4106_v53 = vld [vmem:[%s4590_s14 + $0x788] sm:$0xf]  ;;  %v3723_v56 = vor.u32 %v4328_v50, %v3722_v49 }
  0xe2   : > { %2303 = vmatpush.bf16.msra.mxu2 %v3403_v58  ;;  %v4424_v54 = vld [vmem:[%s4590_s14 + $0x794] sm:$0xf0]  ;;  %v3962_v57 = vld [vmem:[%s4590_s14 + $0x668] sm:$0xf]  ;;  %v3851_v60 = vor.u32 %v4360_v52, %v3850_v51 }
  0xe3   : > { %2284 = vmatpush.bf16.msra.mxu1 %v3275_v0  ;;  %v4388_v58 = vld [vmem:[%s4590_s14 + $0x674] sm:$0xf0]  ;;  %v4107_v62 = vor.u32 %v4424_v54, %v4106_v53  ;;  %v3706_v63 = vld [vmem:[%s4590_s14 + $0x468] sm:$0xf] }
  0xe4   : > { %2265 = vmatpush.bf16.msra.mxu0 %v3147_v59  ;;  %v4324_v0 = vld [vmem:[%s4590_s14 + $0x474] sm:$0xf0]  ;;  %v4090_v12 = vld [vmem:[%s4590_s14 + $0x768] sm:$0xf]  ;;  %v3963_v15 = vor.u32 %v4388_v58, %v3962_v57 }
  0xe5   : > { %2322 = vmatpush.bf16.msra.mxu3 %v3531_v2  ;;  %2304 = vmatmul.bf16.vlgmr.msra.gmra.mxu2 %v4681_v7  ;;  %v3834_v2 = vld [vmem:[%s4590_s14 + $0x568] sm:$0xf]  ;;  %v4356_v11 = vld [vmem:[%s4590_s14 + $0x574] sm:$0xf0]  ;;  %v3707_v16 = vor.u32 %v4324_v0, %v3706_v63 }
  0xe6   : > { %2372 = vmatpush.bf16.msrb.mxu2 %v4027_v5  ;;  %2285 = vmatmul.bf16.vlgmr.msra.gmra.mxu1 %v4679_v6  ;;  %v5053_v59 = vpop.f32.mrf.mxu2  ;;  %v3946_v19 = vld [vmem:[%s4590_s14 + $0x648] sm:$0xf]  ;;  %v4384_v20 = vld [vmem:[%s4590_s14 + $0x654] sm:$0xf0]  ;;  %v3835_v21 = vor.u32 %v4356_v11, %v3834_v2 }
  0xe7   : > { %2353 = vmatpush.bf16.msrb.mxu1 %v3899_v13  ;;  %2266 = vmatmul.bf16.vlgmr.msra.gmra.mxu0 %v4674_v1  ;;  %v5058_v5 = vpop.f32.mrf.mxu3  ;;  %v4420_v13 = vld [vmem:[%s4590_s14 + $0x774] sm:$0xf0]  ;;  %v4074_v33 = vld [vmem:[%s4590_s14 + $0x748] sm:$0xf]  ;;  %v3947_v35 = vor.u32 %v4384_v20, %v3946_v19  ;;  %v4242_v19 = vld [vmem:[%s4590_s14 + $0x1ec] sm:$0xf] }
  0xe8   : > { %2334 = vmatpush.bf16.msrb.mxu0 %v3771_v8  ;;  %2323 = vmatmul.bf16.vlgmr.msra.gmra.mxu3 %v4685_v10  ;;  %v5060_v8 = vpop.f32.mrf.mxu0  ;;  %v4091_v24 = vor.u32 %v4420_v13, %v4090_v12  ;;  %v4416_v34 = vld [vmem:[%s4590_s14 + $0x754] sm:$0xf0]  ;;  %v3930_v37 = vld [vmem:[%s4590_s14 + $0x628] sm:$0xf]  ;;  %v4274_v12 = vld [vmem:[%s4590_s14 + $0x2ec] sm:$0xf] }
  0xe9   : > { %2391 = vmatpush.bf16.msrb.mxu3 %v4155_v14  ;;  %v5065_v14 = vpop.f32.mrf.mxu1  ;;  %v4380_v39 = vld [vmem:[%s4590_s14 + $0x634] sm:$0xf0]  ;;  %v3802_v46 = vld [vmem:[%s4590_s14 + $0x528] sm:$0xf]  ;;  %v3516_v13 = vld [vmem:[%s4590_s14 + $0x2f8] sm:$0xf0] }
  0xea   : > { %2373 = vmatpush.bf16.msrb.mxu2 %v4011_v27  ;;  %v3690_v27 = vld [vmem:[%s4590_s14 + $0x448] sm:$0xf]  ;;  %v4316_v45 = vld [vmem:[%s4590_s14 + $0x434] sm:$0xf0]  ;;  %v3931_v54 = vor.u32 %v4380_v39, %v3930_v37  ;;  %v4270_v39 = vld [vmem:[%s4590_s14 + $0x2cc] sm:$0xf] }
  0xeb   : > { %2354 = vmatpush.bf16.msrb.mxu1 %v3883_v29  ;;  %v3818_v29 = vld [vmem:[%s4590_s14 + $0x548] sm:$0xf]  ;;  %v4348_v49 = vld [vmem:[%s4590_s14 + $0x534] sm:$0xf0] }
  0xec   : > { %2335 = vmatpush.bf16.msrb.mxu0 %v3755_v28  ;;  %v4320_v28 = vld [vmem:[%s4590_s14 + $0x454] sm:$0xf0]  ;;  %v4058_v50 = vld [vmem:[%s4590_s14 + $0x728] sm:$0xf] }
  0xed   : > { %2392 = vmatpush.bf16.msrb.mxu3 %v4139_v32  ;;  %v4352_v32 = vld [vmem:[%s4590_s14 + $0x554] sm:$0xf0]  ;;  %v3691_v36 = vor.u32 %v4320_v28, %v3690_v27  ;;  %v3914_v53 = vld [vmem:[%s4590_s14 + $0x608] sm:$0xf]  ;;  %v4306_v27 = vld [vmem:[%s4590_s14 + $0x3ec] sm:$0xf] }
  0xee   : > { %2374 = vmatpush.bf16.msrb.mxu2 %v3995_v43  ;;  %v5077_v40 = vpop.f32.mrf.mxu2  ;;  %v3819_v41 = vor.u32 %v4352_v32, %v3818_v29  ;;  %v4075_v43 = vor.u32 %v4416_v34, %v4074_v33  ;;  %v4412_v51 = vld [vmem:[%s4590_s14 + $0x734] sm:$0xf0]  ;;  %v3658_v57 = vld [vmem:[%s4590_s14 + $0x408] sm:$0xf]  ;;  %v3644_v28 = vld [vmem:[%s4590_s14 + $0x3f8] sm:$0xf0] }
  0xef   : > { %2355 = vmatpush.bf16.msrb.mxu1 %v3867_v47  ;;  %v5082_v47 = vpop.f32.mrf.mxu3  ;;  %v4312_v58 = vld [vmem:[%s4590_s14 + $0x414] sm:$0xf0]  ;;  %v3786_v63 = vld [vmem:[%s4590_s14 + $0x508] sm:$0xf] }
  0xf0   : > { %2336 = vmatpush.bf16.msrb.mxu0 %v3739_v44  ;;  %v3674_v44 = vld [vmem:[%s4590_s14 + $0x428] sm:$0xf]  ;;  %v4344_v0 = vld [vmem:[%s4590_s14 + $0x514] sm:$0xf0] }
  0xf1   : > { %2393 = vmatpush.bf16.msrb.mxu3 %v4123_v48  ;;  %v5089_v52 = vpop.f32.mrf.mxu1  ;;  %v4042_v2 = vld [vmem:[%s4590_s14 + $0x708] sm:$0xf]  ;;  %v4408_v11 = vld [vmem:[%s4590_s14 + $0x714] sm:$0xf0]  ;;  %v3787_v32 = vor.u32 %v4344_v0, %v3786_v63  ;;  %v4266_v63 = vld [vmem:[%s4590_s14 + $0x2ac] sm:$0xf] }
  0xf2   : > { %2375 = vmatpush.bf16.msrb.mxu2 %v3979_v55  ;;  %v5084_v48 = vpop.f32.mrf.mxu0  ;;  %v3675_v55 = vor.u32 %v4316_v45, %v3674_v44  ;;  %v4043_v33 = vor.u32 %v4408_v11, %v4042_v2  ;;  %v3647_v45 = vor.u32 %v4306_v27, %v3644_v28  ;;  %v3484_v0 = vld [vmem:[%s4590_s14 + $0x2b8] sm:$0xf0]  ;;  %v4234_v11 = vld [vmem:[%s4590_s14 + $0x1ac] sm:$0xf] }
  0xf3   : > { %2356 = vmatpush.bf16.msrb.mxu1 %v3851_v60  ;;  %v3803_v60 = vor.u32 %v4348_v49, %v3802_v46  ;;  %v4206_v46 = vld [vmem:[%s4590_s14 + $0xcc] sm:$0xf]  ;;  %v3244_v49 = vld [vmem:[%s4590_s14 + $0xd8] sm:$0xf0] }
  0xf4   : > { %2337 = vmatpush.bf16.msrb.mxu0 %v3723_v56  ;;  %v4376_v56 = vld [vmem:[%s4590_s14 + $0x614] sm:$0xf0]  ;;  %v3228_v2 = vld [vmem:[%s4590_s14 + $0xb8] sm:$0xf0]  ;;  %v4262_v27 = vld [vmem:[%s4590_s14 + $0x28c] sm:$0xf] }
  0xf5   : > { %2394 = vmatpush.bf16.msrb.mxu3 %v4107_v62  ;;  %v4059_v62 = vor.u32 %v4412_v51, %v4058_v50  ;;  %2309 = vmatmul.bf16.gmra.mxu2 %v4733_v4  ;;  %v3915_v20 = vor.u32 %v4376_v56, %v3914_v53  ;;  %v4238_v50 = vld [vmem:[%s4590_s14 + $0x1cc] sm:$0xf]  ;;  %v3372_v51 = vld [vmem:[%s4590_s14 + $0x1d8] sm:$0xf0] }
  0xf6   : > { %2376 = vmatpush.bf16.msrb.mxu2 %v3963_v15  ;;  %2290 = vmatmul.bf16.gmra.mxu1 %v4731_v3  ;;  %v4210_v15 = vld [vmem:[%s4590_s14 + $0xec] sm:$0xf]  ;;  %v5111_v29 = vpop.f32.mrf.mxu2  ;;  %v3468_v28 = vld [vmem:[%s4590_s14 + $0x298] sm:$0xf0] }
  0xf7   : > { %2357 = vmatpush.bf16.msrb.mxu1 %v3835_v21  ;;  %2271 = vmatmul.bf16.gmra.mxu0 %v4726_v61  ;;  %v3659_v21 = vor.u32 %v4312_v58, %v3658_v57  ;;  %v5113_v34 = vpop.f32.mrf.mxu3  ;;  %v4302_v53 = vld [vmem:[%s4590_s14 + $0x3cc] sm:$0xf]  ;;  %v3247_v57 = vor.u32 %v4206_v46, %v3244_v49  ;;  %v3596_v46 = vld [vmem:[%s4590_s14 + $0x398] sm:$0xf0] }
  0xf8   : > { %2338 = vmatpush.bf16.msrb.mxu0 %v3707_v16  ;;  %2328 = vmatmul.bf16.gmra.mxu3 %v4737_v9  ;;  %v3260_v16 = vld [vmem:[%s4590_s14 + $0xf8] sm:$0xf0] }
  0xf9   : > { %2395 = vmatpush.bf16.msrb.mxu3 %v4091_v24  ;;  %v3388_v24 = vld [vmem:[%s4590_s14 + $0x1f8] sm:$0xf0]  ;;  %v3263_v37 = vor.u32 %v4210_v15, %v3260_v16 }
  0xfa   : > { %2377 = vmatpush.bf16.msrb.mxu2 %v3947_v35  ;;  %v5115_v35 = vpop.f32.mrf.mxu0  ;;  %v3391_v44 = vor.u32 %v4242_v19, %v3388_v24  ;;  %v3612_v15 = vld [vmem:[%s4590_s14 + $0x3b8] sm:$0xf0] }
  0xfb   : > { %2358 = vmatpush.bf16.msrb.mxu1 %v3819_v41  ;;  %v3500_v41 = vld [vmem:[%s4590_s14 + $0x2d8] sm:$0xf0] }
  0xfc   : > { %2339 = vmatpush.bf16.msrb.mxu0 %v3691_v36  ;;  %v3519_v36 = vor.u32 %v4274_v12, %v3516_v13  ;;  %v3503_v56 = vor.u32 %v4270_v39, %v3500_v41  ;;  %v3356_v13 = vld [vmem:[%s4590_s14 + $0x1b8] sm:$0xf0]  ;;  %v4198_v39 = vld [vmem:[%s4590_s14 + $0x8c] sm:$0xf] }
  0xfd   : > { %2396 = vmatpush.bf16.msrb.mxu3 %v4075_v43  ;;  %v5119_v43 = vpop.f32.mrf.mxu1  ;;  %v4230_v41 = vld [vmem:[%s4590_s14 + $0x18c] sm:$0xf] }
  0xfe   : > { %2378 = vmatpush.bf16.msrb.mxu2 %v3931_v54  ;;  %v3628_v54 = vld [vmem:[%s4590_s14 + $0x3d8] sm:$0xf0] }
  0xff   : > { %2359 = vmatpush.bf16.msrb.mxu1 %v3803_v60  ;;  %v3375_v60 = vor.u32 %v4238_v50, %v3372_v51  ;;  %v5137_v12 = vpop.f32.mrf.mxu3  ;;  %v4258_v50 = vld [vmem:[%s4590_s14 + $0x26c] sm:$0xf]  ;;  %v3452_v51 = vld [vmem:[%s4590_s14 + $0x278] sm:$0xf0] }
 0x100   : > { %2340 = vmatpush.bf16.msrb.mxu0 %v3675_v55  ;;  %v1983_v55 = vadd.f32 %v5037_v42, %v5032_v38  ;;  %v5132_v38 = vpop.f32.mrf.mxu2  ;;  %v4202_v42 = vld [vmem:[%s4590_s14 + $0xac] sm:$0xf] }
 0x101   : > { %2397 = vmatpush.bf16.msrb.mxu3 %v4059_v62  ;;  %v3631_v62 = vor.u32 %v4302_v53, %v3628_v54  ;;  %v3231_v24 = vor.u32 %v4202_v42, %v3228_v2  ;;  %v4194_v53 = vld [vmem:[%s4590_s14 + $0x6c] sm:$0xf]  ;;  %v1988_v2 = vadd.f32 %v5089_v52, %v5084_v48 }
 0x102   : > { %2379 = vmatpush.bf16.msrb.mxu2 %v3915_v20  ;;  %v2002_v58 = vadd.f32 %v5053_v59, %v1983_v55  ;;  %v4298_v59 = vld [vmem:[%s4590_s14 + $0x3ac] sm:$0xf] }
 0x103   : > { %2360 = vmatpush.bf16.msrb.mxu1 %v3787_v32  ;;  %v1985_v32 = vadd.f32 %v5065_v14, %v5060_v8  ;;  %v3471_v8 = vor.u32 %v4262_v27, %v3468_v28  ;;  %v4190_v27 = vld [vmem:[%s4590_s14 + $0x4c] sm:$0xf]  ;;  %v3180_v28 = vld [vmem:[%s4590_s14 + $0x58] sm:$0xf0] }
 0x104   : > { %2341 = vmatpush.bf16.msrb.mxu0 %v3659_v21  ;;  %v2021_v16 = vadd.f32 %v5058_v5, %v2002_v58  ;;  %v2039_v19 = vpop.f32.mrf.mxu0  ;;  %v3487_v21 = vor.u32 %v4266_v63, %v3484_v0  ;;  %v3212_v5 = vld [vmem:[%s4590_s14 + $0x98] sm:$0xf0]  ;;  %v4290_v63 = vld [vmem:[%s4590_s14 + $0x36c] sm:$0xf] }
 0x105   : > { %2398 = vmatpush.bf16.msrb.mxu3 %v4043_v33  ;;  %v2058_v20 = vpop.f32.mrf.mxu1  ;;  %v2004_v49 = vadd.f32 %v5077_v40, %v1985_v32  ;;  %2380 = vmatmul.bf16.vlgmr.msrb.gmra.mxu2 %v4793_v22  ;;  %v3215_v14 = vor.u32 %v4198_v39, %v3212_v5  ;;  %v3324_v58 = vld [vmem:[%s4590_s14 + $0x178] sm:$0xf0]  ;;  %v4222_v32 = vld [vmem:[%s4590_s14 + $0x14c] sm:$0xf]  ;;  %v2007_v39 = vadd.f32 %v5111_v29, %v1988_v2 }
 0x106   : > { %2448 = vmatpush.bf16.msra.mxu2 %v3519_v36  ;;  %v2040_v33 = vadd.f32 %v2039_v19, %v2021_v16  ;;  %v3359_v36 = vor.u32 %v4234_v11, %v3356_v13  ;;  %2361 = vmatmul.bf16.vlgmr.msrb.gmra.mxu1 %v4788_v18  ;;  %v3580_v0 = vld [vmem:[%s4590_s14 + $0x378] sm:$0xf0]  ;;  %v3455_v16 = vor.u32 %v4258_v50, %v3452_v51  ;;  %v4218_v51 = vld [vmem:[%s4590_s14 + $0x12c] sm:$0xf] }
 0x107   : > { %2429 = vmatpush.bf16.msra.mxu1 %v3391_v44  ;;  %2342 = vmatmul.bf16.vlgmr.msrb.gmra.mxu0 %v4786_v17  ;;  %v3340_v44 = vld [vmem:[%s4590_s14 + $0x198] sm:$0xf0]  ;;  %v2023_v42 = vadd.f32 %v5082_v47, %v2004_v49  ;;  %v4254_v47 = vld [vmem:[%s4590_s14 + $0x24c] sm:$0xf]  ;;  %v3583_v52 = vor.u32 %v4290_v63, %v3580_v0 }
 0x108   : > { %2410 = vmatpush.bf16.msra.mxu0 %v3263_v37  ;;  %v3615_v37 = vor.u32 %v4298_v59, %v3612_v15  ;;  %2399 = vmatmul.bf16.vlgmr.msrb.gmra.mxu3 %v4795_v23  ;;  %v2059_v54 = vadd.f32 %v2058_v20, %v2040_v33  ;;  %v3343_v55 = vor.u32 %v4230_v41, %v3340_v44  ;;  %v306_v15 = vld [vmem:[#allocation2 + $0x30] sm:$0xff]  ;;  %v3308_v33 = vld [vmem:[%s4590_s14 + $0x158] sm:$0xf0]  ;;  %v4250_v41 = vld [vmem:[%s4590_s14 + $0x22c] sm:$0xf] }
 0x109   : > { %2467 = vmatpush.bf16.msra.mxu3 %v3647_v45  ;;  %v4294_v45 = vld [vmem:[%s4590_s14 + $0x38c] sm:$0xf]  ;;  %v3311_v50 = vor.u32 %v4222_v32, %v3308_v33  ;;  %v3772_v32 = vld [vmem:[%s4590_s14 + $0x4f8] sm:$0xf0] }
 0x10a   : > { %2449 = vmatpush.bf16.msra.mxu2 %v3503_v56  ;;  %v3599_v40 = vor.u32 %v4294_v45, %v3596_v46  ;;  %v3196_v56 = vld [vmem:[%s4590_s14 + $0x78] sm:$0xf0]  ;;  %v3183_v45 = vor.u32 %v4190_v27, %v3180_v28  ;;  %v4186_v49 = vld [vmem:[%s4590_s14 + $0x2c] sm:$0xf] }
 0x10b   : > { %2430 = vmatpush.bf16.msra.mxu1 %v3375_v60  ;;  %v2077_v60 = vpop.f32.mrf.mxu2  ;;  %v3199_v19 = vor.u32 %v4194_v53, %v3196_v56  ;;  %v3420_v46 = vld [vmem:[%s4590_s14 + $0x238] sm:$0xf0]  ;;  %v4338_v28 = vld [vmem:[%s4590_s14 + $0x4ec] sm:$0xf] }
 0x10c   : > { %2411 = vmatpush.bf16.msra.mxu0 %v3247_v57  ;;  %v4226_v57 = vld [vmem:[%s4590_s14 + $0x16c] sm:$0xf]  ;;  %v2078_v11 = vadd.f32 %v2077_v60, %v2059_v54  ;;  %v2041_v13 = vpop.f32.mrf.mxu0  ;;  %v3292_v53 = vld [vmem:[%s4590_s14 + $0x138] sm:$0xf0]  ;;  %v3423_v2 = vor.u32 %v4250_v41, %v3420_v46 }
 0x10d   : > { %2468 = vmatpush.bf16.msra.mxu3 %v3631_v62  ;;  %v2096_v62 = vpop.f32.mrf.mxu3  ;;  %v2060_v59 = vpop.f32.mrf.mxu1  ;;  %v3327_v20 = vor.u32 %v4226_v57, %v3324_v58  ;;  %v2042_v48 = vadd.f32 %v2041_v13, %v2023_v42  ;;  %v3548_v56 = vld [vmem:[%s4590_s14 + $0x338] sm:$0xf0]  ;;  %v2026_v57 = vadd.f32 %v5113_v34, %v2007_v39  ;;  %v1990_v58 = vadd.f32 %v5119_v43, %v5115_v35  ;;  %v4246_v42 = vld [vmem:[%s4590_s14 + $0x20c] sm:$0xf] }
 0x10e   : > { %2450 = vmatpush.bf16.msra.mxu2 %v3487_v21  ;;  %v3436_v21 = vld [vmem:[%s4590_s14 + $0x258] sm:$0xf0]  ;;  %v3295_v13 = vor.u32 %v4218_v51, %v3292_v53  ;;  %v4370_v33 = vld [vmem:[%s4590_s14 + $0x5ec] sm:$0xf] }
 0x10f   : > { %2431 = vmatpush.bf16.msra.mxu1 %v3359_v36  ;;  %v4286_v36 = vld [vmem:[%s4590_s14 + $0x34c] sm:$0xf]  ;;  %v3439_v44 = vor.u32 %v4254_v47, %v3436_v21  ;;  %v3404_v34 = vld [vmem:[%s4590_s14 + $0x218] sm:$0xf0] }
 0x110   : > { %2412 = vmatpush.bf16.msra.mxu0 %v3231_v24  ;;  %v2097_v24 = vadd.f32 %v2096_v62, %v2078_v11  ;;  %v310_v62 = vld [vmem:[#allocation2 + $0x50] sm:$0xff]  ;;  %v4278_v47 = vld [vmem:[%s4590_s14 + $0x30c] sm:$0xf]  ;;  %v3532_v21 = vld [vmem:[%s4590_s14 + $0x318] sm:$0xf0] }
 0x111   : > { %2469 = vmatpush.bf16.msra.mxu3 %v3615_v37  ;;  %v3564_v37 = vld [vmem:[%s4590_s14 + $0x358] sm:$0xf0] }
 0x112   : > { %2451 = vmatpush.bf16.msra.mxu2 %v3471_v8  ;;  %v2562_v5 = vadd.f32 %v2097_v24, %v306_v15  ;;  %v3164_v8 = vld [vmem:[%s4590_s14 + $0x38] sm:$0xf0]  ;;  %v3567_v29 = vor.u32 %v4286_v36, %v3564_v37  ;;  %v4402_v24 = vld [vmem:[%s4590_s14 + $0x6ec] sm:$0xf]  ;;  %v3407_v36 = vor.u32 %v4246_v42, %v3404_v34 }
 0x113   : > { %2432 = vmatpush.bf16.msra.mxu1 %v3343_v55  ;;  %v2079_v54 = vpop.f32.mrf.mxu2  ;;  %v3167_v11 = vor.u32 %v4186_v49, %v3164_v8  ;;  %v3148_v15 = vld [vmem:[%s4590_s14 + $0x18] sm:$0xf0]  ;;  %v314_v49 = vld [vmem:[#allocation2 + $0x40] sm:$0xff] }
 0x114   : > { %2413 = vmatpush.bf16.msra.mxu0 %v3215_v14  ;;  %2578 = vst [vmem:[#allocation2 + $0x30] sm:$0xff] %v2562_v5  ;;  %v2061_v14 = vadd.f32 %v2060_v59, %v2042_v48  ;;  %v2044_v63 = vpop.f32.mrf.mxu0  ;;  %v4182_v59 = vld [vmem:[%s4590_s14 + $0xc] sm:$0xf]  ;;  %v4028_v48 = vld [vmem:[%s4590_s14 + $0x6f8] sm:$0xf0] }
 0x115   : > { %2470 = vmatpush.bf16.msra.mxu3 %v3599_v40  ;;  %v2098_v55 = vpop.f32.mrf.mxu3  ;;  %v4282_v40 = vld [vmem:[%s4590_s14 + $0x32c] sm:$0xf]  ;;  %v2063_v0 = vpop.f32.mrf.mxu1  ;;  %v2045_v43 = vadd.f32 %v2044_v63, %v2026_v57  ;;  %2385 = vmatmul.bf16.gmra.mxu2 %v4845_v30  ;;  %v3151_v37 = vor.u32 %v4182_v59, %v3148_v15  ;;  %v3900_v39 = vld [vmem:[%s4590_s14 + $0x5f8] sm:$0xf0] }
 0x116   : > { %2452 = vmatpush.bf16.msra.mxu2 %v3455_v16  ;;  %v2080_v60 = vadd.f32 %v2079_v54, %v2061_v14  ;;  %v3551_v16 = vor.u32 %v4282_v40, %v3548_v56  ;;  %2366 = vmatmul.bf16.gmra.mxu1 %v4840_v26  ;;  %v4434_v5 = vld [vmem:[%s4590_s14 + $0x7ec] sm:$0xf]  ;;  %v4156_v41 = vld [vmem:[%s4590_s14 + $0x7f8] sm:$0xf0]  ;;  %v4031_v14 = vor.u32 %v4402_v24, %v4028_v48 }
 0x117   : > { %2433 = vmatpush.bf16.msra.mxu1 %v3327_v20  ;;  %v3276_v20 = vld [vmem:[%s4590_s14 + $0x118] sm:$0xf0]  ;;  %2347 = vmatmul.bf16.gmra.mxu0 %v4838_v25  ;;  %v3903_v56 = vor.u32 %v4370_v33, %v3900_v39  ;;  %v4159_v57 = vor.u32 %v4434_v5, %v4156_v41  ;;  %v4390_v5 = vld [vmem:[%s4590_s14 + $0x68c] sm:$0xf] }
 0x118   : > { %2414 = vmatpush.bf16.msra.mxu0 %v3199_v19  ;;  %v2099_v35 = vadd.f32 %v2098_v55, %v2080_v60  ;;  %v4214_v19 = vld [vmem:[%s4590_s14 + $0x10c] sm:$0xf]  ;;  %2404 = vmatmul.bf16.gmra.mxu3 %v4847_v31  ;;  %v4012_v51 = vld [vmem:[%s4590_s14 + $0x6d8] sm:$0xf0] }
 0x119   : > { %2471 = vmatpush.bf16.msra.mxu3 %v3583_v52  ;;  %v2009_v52 = vadd.f32 %v5132_v38, %v1990_v58  ;;  %v3279_v38 = vor.u32 %v4214_v19, %v3276_v20  ;;  %v4334_v58 = vld [vmem:[%s4590_s14 + $0x4cc] sm:$0xf]  ;;  %v3756_v60 = vld [vmem:[%s4590_s14 + $0x4d8] sm:$0xf0] }
 0x11a   : > { %2453 = vmatpush.bf16.msra.mxu2 %v3439_v44  ;;  %v2566_v27 = vadd.f32 %v2099_v35, %v310_v62  ;;  %v2064_v44 = vadd.f32 %v2063_v0, %v2045_v43  ;;  %v4366_v62 = vld [vmem:[%s4590_s14 + $0x5cc] sm:$0xf]  ;;  %v3884_v63 = vld [vmem:[%s4590_s14 + $0x5d8] sm:$0xf0] }
 0x11b   : > { %2434 = vmatpush.bf16.msra.mxu1 %v3311_v50  ;;  %v2082_v46 = vpop.f32.mrf.mxu2  ;;  %v3775_v50 = vor.u32 %v4338_v28, %v3772_v32  ;;  %v2028_v53 = vadd.f32 %v5137_v12, %v2009_v52  ;;  %v4430_v0 = vld [vmem:[%s4590_s14 + $0x7cc] sm:$0xf]  ;;  %v4140_v42 = vld [vmem:[%s4590_s14 + $0x7d8] sm:$0xf0]  ;;  %v3887_v59 = vor.u32 %v4366_v62, %v3884_v63 }
 0x11c   : > { %2415 = vmatpush.bf16.msra.mxu0 %v3183_v45  ;;  %2582 = vst [vmem:[#allocation2 + $0x50] sm:$0xff] %v2566_v27  ;;  %v3535_v45 = vor.u32 %v4278_v47, %v3532_v21  ;;  %v2083_v54 = vadd.f32 %v2082_v46, %v2064_v44  ;;  %v2046_v55 = vpop.f32.mrf.mxu0  ;;  %v4143_v15 = vor.u32 %v4430_v0, %v4140_v42  ;;  %v4394_v35 = vld [vmem:[%s4590_s14 + $0x6ac] sm:$0xf]  ;;  %v3996_v43 = vld [vmem:[%s4590_s14 + $0x6b8] sm:$0xf0] }
 0x11d   : > { %2472 = vmatpush.bf16.msra.mxu3 %v3567_v29  ;;  %v2101_v8 = vpop.f32.mrf.mxu3  ;;  %v4398_v29 = vld [vmem:[%s4590_s14 + $0x6cc] sm:$0xf]  ;;  %v2065_v40 = vpop.f32.mrf.mxu1  ;;  %v3740_v20 = vld [vmem:[%s4590_s14 + $0x4b8] sm:$0xf0] }
 0x11e   : > { %2454 = vmatpush.bf16.msra.mxu2 %v3423_v2  ;;  %v2102_v2 = vadd.f32 %v2101_v8, %v2083_v54  ;;  %v4015_v12 = vor.u32 %v4398_v29, %v4012_v51  ;;  %v4362_v47 = vld [vmem:[%s4590_s14 + $0x5ac] sm:$0xf]  ;;  %v3868_v48 = vld [vmem:[%s4590_s14 + $0x5b8] sm:$0xf0] }
 0x11f   : > { %2435 = vmatpush.bf16.msra.mxu1 %v3295_v13  ;;  %v3759_v13 = vor.u32 %v4334_v58, %v3756_v60  ;;  %v4426_v52 = vld [vmem:[%s4590_s14 + $0x7ac] sm:$0xf]  ;;  %v4124_v27 = vld [vmem:[%s4590_s14 + $0x7b8] sm:$0xf0] }
 0x120   : > { %2416 = vmatpush.bf16.msra.mxu0 %v3167_v11  ;;  %v2047_v11 = vadd.f32 %v2046_v55, %v2028_v53  ;;  %v2570_v34 = vadd.f32 %v2102_v2, %v314_v49  ;;  %v3980_v41 = vld [vmem:[%s4590_s14 + $0x698] sm:$0xf0]  ;;  %v4326_v46 = vld [vmem:[%s4590_s14 + $0x48c] sm:$0xf] }
 0x121   : > { %2473 = vmatpush.bf16.msra.mxu3 %v3551_v16  ;;  %v4330_v16 = vld [vmem:[%s4590_s14 + $0x4ac] sm:$0xf]  ;;  %v3724_v49 = vld [vmem:[%s4590_s14 + $0x498] sm:$0xf0]  ;;  %v3983_v53 = vor.u32 %v4390_v5, %v3980_v41 }
 0x122   : > { %2455 = vmatpush.bf16.msra.mxu2 %v3407_v36  ;;  %2586 = vst [vmem:[#allocation2 + $0x40] sm:$0xff] %v2570_v34  ;;  %v2066_v19 = vadd.f32 %v2065_v40, %v2047_v11  ;;  %v318_v36 = vld [vmem:[#allocation2 + $0x60] sm:$0xff]  ;;  %v3743_v39 = vor.u32 %v4330_v16, %v3740_v20  ;;  %v4358_v8 = vld [vmem:[%s4590_s14 + $0x58c] sm:$0xf]  ;;  %v4108_v29 = vld [vmem:[%s4590_s14 + $0x798] sm:$0xf0]  ;;  %v3727_v54 = vor.u32 %v4326_v46, %v3724_v49 }
 0x123   : > { %2436 = vmatpush.bf16.msra.mxu1 %v3279_v38  ;;  %v2084_v21 = vpop.f32.mrf.mxu2  ;;  %v3871_v38 = vor.u32 %v4362_v47, %v3868_v48  ;;  %v3964_v55 = vld [vmem:[%s4590_s14 + $0x678] sm:$0xf0]  ;;  %v4418_v62 = vld [vmem:[%s4590_s14 + $0x76c] sm:$0xf] }
 0x124   : > { %2417 = vmatpush.bf16.msra.mxu0 %v3151_v37  ;;  %v2085_v28 = vadd.f32 %v2084_v21, %v2066_v19  ;;  %v5227_v32 = vpop.f32.mrf.mxu0  ;;  %v3999_v37 = vor.u32 %v4394_v35, %v3996_v43  ;;  %v3836_v60 = vld [vmem:[%s4590_s14 + $0x578] sm:$0xf0]  ;;  %v4350_v43 = vld [vmem:[%s4590_s14 + $0x54c] sm:$0xf] }
 0x125   : > { %2474 = vmatpush.bf16.msra.mxu3 %v3535_v45  ;;  %v2103_v24 = vpop.f32.mrf.mxu3  ;;  %v5229_v33 = vpop.f32.mrf.mxu1  ;;  %v4127_v45 = vor.u32 %v4426_v52, %v4124_v27  ;;  %2456 = vmatmul.bf16.vlgmr.msra.gmra.mxu2 %v4681_v7  ;;  %v3708_v7 = vld [vmem:[%s4590_s14 + $0x478] sm:$0xf0]  ;;  %v4414_v19 = vld [vmem:[%s4590_s14 + $0x74c] sm:$0xf] }
 0x126   : > { %2524 = vmatpush.bf16.msrb.mxu2 %v4031_v14  ;;  %v2104_v44 = vadd.f32 %v2103_v24, %v2085_v28  ;;  %2437 = vmatmul.bf16.vlgmr.msra.gmra.mxu1 %v4679_v6  ;;  %v3852_v14 = vld [vmem:[%s4590_s14 + $0x598] sm:$0xf0]  ;;  %v4322_v6 = vld [vmem:[%s4590_s14 + $0x46c] sm:$0xf] }
 0x127   : > { %2505 = vmatpush.bf16.msrb.mxu1 %v3903_v56  ;;  %2418 = vmatmul.bf16.vlgmr.msra.gmra.mxu0 %v4674_v1  ;;  %v4386_v1 = vld [vmem:[%s4590_s14 + $0x66c] sm:$0xf]  ;;  %v3855_v40 = vor.u32 %v4358_v8, %v3852_v14  ;;  %v4092_v63 = vld [vmem:[%s4590_s14 + $0x778] sm:$0xf0]  ;;  %v3711_v11 = vor.u32 %v4322_v6, %v3708_v7 }
 0x128   : > { %2486 = vmatpush.bf16.msrb.mxu0 %v3775_v50  ;;  %v4422_v50 = vld [vmem:[%s4590_s14 + $0x78c] sm:$0xf]  ;;  %v2574_v51 = vadd.f32 %v2104_v44, %v318_v36  ;;  %2475 = vmatmul.bf16.vlgmr.msra.gmra.mxu3 %v4685_v10  ;;  %v3967_v2 = vor.u32 %v4386_v1, %v3964_v55  ;;  %v3692_v35 = vld [vmem:[%s4590_s14 + $0x458] sm:$0xf0] }
 0x129   : > { %2543 = vmatpush.bf16.msrb.mxu3 %v4159_v57  ;;  %v4111_v56 = vor.u32 %v4422_v50, %v4108_v29  ;;  %v4354_v57 = vld [vmem:[%s4590_s14 + $0x56c] sm:$0xf]  ;;  %v3820_v16 = vld [vmem:[%s4590_s14 + $0x558] sm:$0xf0] }
 0x12a   : > { %2525 = vmatpush.bf16.msrb.mxu2 %v4015_v12  ;;  %2590 = vst [vmem:[#allocation2 + $0x60] sm:$0xff] %v2574_v51  ;;  %v4382_v12 = vld [vmem:[%s4590_s14 + $0x64c] sm:$0xf]  ;;  %v3839_v34 = vor.u32 %v4354_v57, %v3836_v60  ;;  %v4076_v20 = vld [vmem:[%s4590_s14 + $0x758] sm:$0xf0]  ;;  %v3823_v52 = vor.u32 %v4350_v43, %v3820_v16 }
 0x12b   : > { %2506 = vmatpush.bf16.msrb.mxu1 %v3887_v59  ;;  %v5248_v10 = vpop.f32.mrf.mxu2  ;;  %v4095_v59 = vor.u32 %v4418_v62, %v4092_v63  ;;  %v4378_v24 = vld [vmem:[%s4590_s14 + $0x62c] sm:$0xf]  ;;  %v3932_v48 = vld [vmem:[%s4590_s14 + $0x638] sm:$0xf0]  ;;  %v4079_v27 = vor.u32 %v4414_v19, %v4076_v20  ;;  %v307_v20 = vld [vmem:[#allocation2] sm:$0xff] }
 0x12c   : > { %2487 = vmatpush.bf16.msrb.mxu0 %v3759_v13  ;;  %v5255_v0 = vpop.f32.mrf.mxu0  ;;  %v3948_v13 = vld [vmem:[%s4590_s14 + $0x658] sm:$0xf0]  ;;  %v4314_v28 = vld [vmem:[%s4590_s14 + $0x42c] sm:$0xf]  ;;  %v3935_v49 = vor.u32 %v4378_v24, %v3932_v48 }
 0x12d   : > { %2544 = vmatpush.bf16.msrb.mxu3 %v4143_v15  ;;  %v5250_v58 = vpop.f32.mrf.mxu3  ;;  %v5257_v42 = vpop.f32.mrf.mxu1  ;;  %v4318_v15 = vld [vmem:[%s4590_s14 + $0x44c] sm:$0xf]  ;;  %v3951_v47 = vor.u32 %v4382_v12, %v3948_v13  ;;  %v3676_v36 = vld [vmem:[%s4590_s14 + $0x438] sm:$0xf0] }
 0x12e   : > { %2526 = vmatpush.bf16.msrb.mxu2 %v3999_v37  ;;  %v3695_v21 = vor.u32 %v4318_v15, %v3692_v35  ;;  %v4346_v37 = vld [vmem:[%s4590_s14 + $0x52c] sm:$0xf]  ;;  %v3804_v41 = vld [vmem:[%s4590_s14 + $0x538] sm:$0xf0]  ;;  %v3679_v8 = vor.u32 %v4314_v28, %v3676_v36 }
 0x12f   : > { %2507 = vmatpush.bf16.msrb.mxu1 %v3871_v38  ;;  %v4410_v44 = vld [vmem:[%s4590_s14 + $0x72c] sm:$0xf]  ;;  %v4060_v38 = vld [vmem:[%s4590_s14 + $0x738] sm:$0xf0]  ;;  %v3807_v29 = vor.u32 %v4346_v37, %v3804_v41 }
 0x130   : > { %2488 = vmatpush.bf16.msrb.mxu0 %v3743_v39  ;;  %v4374_v14 = vld [vmem:[%s4590_s14 + $0x60c] sm:$0xf]  ;;  %v3916_v50 = vld [vmem:[%s4590_s14 + $0x618] sm:$0xf0]  ;;  %v4063_v51 = vor.u32 %v4410_v44, %v4060_v38 }
 0x131   : > { %2545 = vmatpush.bf16.msrb.mxu3 %v4127_v45  ;;  %v4342_v1 = vld [vmem:[%s4590_s14 + $0x50c] sm:$0xf]  ;;  %v3788_v55 = vld [vmem:[%s4590_s14 + $0x518] sm:$0xf0] }
 0x132   : > { %2527 = vmatpush.bf16.msrb.mxu2 %v3983_v53  ;;  %v4310_v53 = vld [vmem:[%s4590_s14 + $0x40c] sm:$0xf]  ;;  %v3791_v57 = vor.u32 %v4342_v1, %v3788_v55 }
 0x133   : > { %2508 = vmatpush.bf16.msrb.mxu1 %v3855_v40  ;;  %v2155_v39 = vpop.f32.mrf.mxu2  ;;  %v4406_v6 = vld [vmem:[%s4590_s14 + $0x70c] sm:$0xf]  ;;  %v4044_v40 = vld [vmem:[%s4590_s14 + $0x718] sm:$0xf0] }
 0x134   : > { %2489 = vmatpush.bf16.msrb.mxu0 %v3727_v54  ;;  %v2120_v45 = vpop.f32.mrf.mxu0  ;;  %v3660_v54 = vld [vmem:[%s4590_s14 + $0x418] sm:$0xf0]  ;;  %v4047_v60 = vor.u32 %v4406_v6, %v4044_v40  ;;  %v311_v28 = vld [vmem:[#allocation2 + $0x68] sm:$0xff] }
 0x135   : > { %2546 = vmatpush.bf16.msrb.mxu3 %v4111_v56  ;;  %v2174_v5 = vpop.f32.mrf.mxu3  ;;  %v2139_v46 = vpop.f32.mrf.mxu1  ;;  %2461 = vmatmul.bf16.gmra.mxu2 %v4733_v4  ;;  %v3919_v56 = vor.u32 %v4374_v14, %v3916_v50  ;;  %v3663_v7 = vor.u32 %v4310_v53, %v3660_v54  ;;  %v315_v50 = vld [vmem:[#allocation2 + $0x20] sm:$0xff] }
 0x136   : > { %2528 = vmatpush.bf16.msrb.mxu2 %v3967_v2  ;;  %2442 = vmatmul.bf16.gmra.mxu1 %v4731_v3  ;;  %v2135_v3 = vadd.f32 %v5229_v33, %v5227_v32 }
 0x137   : > { %2509 = vmatpush.bf16.msrb.mxu1 %v3839_v34  ;;  %2423 = vmatmul.bf16.gmra.mxu0 %v4726_v61 }
 0x138   : > { %2490 = vmatpush.bf16.msrb.mxu0 %v3711_v11  ;;  %2480 = vmatmul.bf16.gmra.mxu3 %v4737_v9  ;;  %v2154_v4 = vadd.f32 %v5248_v10, %v2135_v3 }
 0x139   : > { %2547 = vmatpush.bf16.msrb.mxu3 %v4095_v59  ;;  %v2137_v59 = vadd.f32 %v5257_v42, %v5255_v0 }
 0x13a   : > { %2529 = vmatpush.bf16.msrb.mxu2 %v3951_v47  ;;  %v2173_v12 = vadd.f32 %v5250_v58, %v2154_v4  ;;  %v2140_v47 = vadd.f32 %v2139_v46, %v2120_v45 }
 0x13b   : > { %2510 = vmatpush.bf16.msrb.mxu1 %v3823_v52  ;;  %v2158_v62 = vpop.f32.mrf.mxu2  ;;  %v2156_v35 = vadd.f32 %v2155_v39, %v2137_v59 }
 0x13c   : > { %2491 = vmatpush.bf16.msrb.mxu0 %v3695_v21  ;;  %v2122_v61 = vpop.f32.mrf.mxu0  ;;  %v2159_v21 = vadd.f32 %v2158_v62, %v2140_v47 }
 0x13d   : > { %2548 = vmatpush.bf16.msrb.mxu3 %v4079_v27  ;;  %v2177_v63 = vpop.f32.mrf.mxu3  ;;  %v2141_v2 = vpop.f32.mrf.mxu1  ;;  %v2175_v43 = vadd.f32 %v2174_v5, %v2156_v35 }
 0x13e   : > { %2530 = vmatpush.bf16.msrb.mxu2 %v3935_v49  ;;  %v2142_v36 = vadd.f32 %v2141_v2, %v2122_v61 }
 0x13f   : > { %2511 = vmatpush.bf16.msrb.mxu1 %v3807_v29 }
 0x140   : > { %2492 = vmatpush.bf16.msrb.mxu0 %v3679_v8 }
 0x141   : > { %2549 = vmatpush.bf16.msrb.mxu3 %v4063_v51 }
 0x142   : > { %2531 = vmatpush.bf16.msrb.mxu2 %v3919_v56 }
 0x143   : > { %2512 = vmatpush.bf16.msrb.mxu1 %v3791_v57  ;;  %v2160_v9 = vpop.f32.mrf.mxu2 }
 0x144   : > { %2493 = vmatpush.bf16.msrb.mxu0 %v3663_v7  ;;  %v2191_v13 = vpop.f32.mrf.mxu0  ;;  %v2161_v5 = vadd.f32 %v2160_v9, %v2142_v36 }
 0x145   : > { %2550 = vmatpush.bf16.msrb.mxu3 %v4047_v60  ;;  %v2179_v11 = vpop.f32.mrf.mxu3  ;;  %v2210_v34 = vpop.f32.mrf.mxu1  ;;  %v2192_v15 = vadd.f32 %v2191_v13, %v2173_v12  ;;  %2532 = vmatmul.bf16.vlgmr.msrb.gmra.mxu2 %v4793_v22  ;;  %v2178_v22 = vadd.f32 %v2177_v63, %v2159_v21  ;;  %v308_v21 = vld [vmem:[#allocation2 + $0x58] sm:$0xff] }
 0x146   : > { %2513 = vmatmul.bf16.vlgmr.msrb.gmra.mxu1 %v4788_v18  ;;  %v2180_v46 = vadd.f32 %v2179_v11, %v2161_v5  ;;  %v312_v5 = vld [vmem:[#allocation2 + $0x8] sm:$0xff] }
 0x147   : > { %2494 = vmatmul.bf16.vlgmr.msrb.gmra.mxu0 %v4786_v17  ;;  %v2211_v32 = vadd.f32 %v2210_v34, %v2192_v15 }
 0x148   : > { %2551 = vmatmul.bf16.vlgmr.msrb.gmra.mxu3 %v4795_v23 }
 0x14b   : > { %v2229_v33 = vpop.f32.mrf.mxu2 }
 0x14c   : > { %v2230_v58 = vadd.f32 %v2229_v33, %v2211_v32  ;;  %v2193_v16 = vpop.f32.mrf.mxu0 }
 0x14d   : > { %v2248_v10 = vpop.f32.mrf.mxu3  ;;  %v2212_v19 = vpop.f32.mrf.mxu1  ;;  %v2194_v42 = vadd.f32 %v2193_v16, %v2175_v43 }
 0x14e   : > { %v2249_v0 = vadd.f32 %v2248_v10, %v2230_v58 }
 0x14f   : > { %v2213_v18 = vadd.f32 %v2212_v19, %v2194_v42 }
 0x150   : > { %v2563_v17 = vadd.f32 %v2249_v0, %v307_v20 }
 0x152   : > { %2579 = vst [vmem:[#allocation2] sm:$0xff] %v2563_v17 }
 0x153   : > { %v2231_v24 = vpop.f32.mrf.mxu2 }
 0x154   : > { %v2232_v52 = vadd.f32 %v2231_v24, %v2213_v18  ;;  %v2196_v23 = vpop.f32.mrf.mxu0 }
 0x155   : > { %v2250_v48 = vpop.f32.mrf.mxu3  ;;  %v2215_v27 = vpop.f32.mrf.mxu1  ;;  %v2197_v39 = vadd.f32 %v2196_v23, %v2178_v22  ;;  %2537 = vmatmul.bf16.gmra.mxu2 %v4845_v30 }
 0x156   : > { %v2251_v37 = vadd.f32 %v2250_v48, %v2232_v52  ;;  %2518 = vmatmul.bf16.gmra.mxu1 %v4840_v26 }
 0x157   : > { %2499 = vmatmul.bf16.gmra.mxu0 %v4838_v25  ;;  %v2216_v44 = vadd.f32 %v2215_v27, %v2197_v39 }
 0x158   : > { %v2567_v41 = vadd.f32 %v2251_v37, %v311_v28  ;;  %2556 = vmatmul.bf16.gmra.mxu3 %v4847_v31  ;;  %v319_v31 = vld [vmem:[#allocation2 + $0x70] sm:$0xff] }
 0x15a   : > { %2583 = vst [vmem:[#allocation2 + $0x68] sm:$0xff] %v2567_v41 }
 0x15b   : > { %v2234_v38 = vpop.f32.mrf.mxu2 }
 0x15c   : > { %v2235_v49 = vadd.f32 %v2234_v38, %v2216_v44  ;;  %v2198_v8 = vpop.f32.mrf.mxu0 }
 0x15d   : > { %v2253_v45 = vpop.f32.mrf.mxu3  ;;  %v2217_v14 = vpop.f32.mrf.mxu1  ;;  %v2199_v51 = vadd.f32 %v2198_v8, %v2180_v46 }
 0x15e   : > { %v2254_v29 = vadd.f32 %v2253_v45, %v2235_v49 }
 0x15f   : > { %v2218_v26 = vadd.f32 %v2217_v14, %v2199_v51 }
 0x160   : > { %v2571_v25 = vadd.f32 %v2254_v29, %v315_v50 }
 0x162   : > { %2587 = vst [vmem:[#allocation2 + $0x20] sm:$0xff] %v2571_v25 }
 0x163   : > { %v2236_v53 = vpop.f32.mrf.mxu2 }
 0x164   : > { %v2237_v1 = vadd.f32 %v2236_v53, %v2218_v26  ;;  %v2267_v30 = vpop.f32.mrf.mxu0  ;;  %v316_v26 = vld [vmem:[#allocation2 + $0x10] sm:$0xff] }
 0x165   : > { %v2255_v54 = vpop.f32.mrf.mxu3  ;;  %v2286_v55 = vpop.f32.mrf.mxu1 }
 0x166   : > { %v2256_v6 = vadd.f32 %v2255_v54, %v2237_v1  ;;  %v2287_v12 = vadd.f32 %v2286_v55, %v2267_v30 }
 0x168   : > { %v2575_v40 = vadd.f32 %v2256_v6, %v319_v31 }
 0x16a   : > { %2591 = vst [vmem:[#allocation2 + $0x70] sm:$0xff] %v2575_v40 }
 0x16b   : > { %v2305_v56 = vpop.f32.mrf.mxu2 }
 0x16c   : > { %v2269_v57 = vpop.f32.mrf.mxu0  ;;  %v2306_v13 = vadd.f32 %v2305_v56, %v2287_v12 }
 0x16d   : > { %v2324_v7 = vpop.f32.mrf.mxu3  ;;  %v2288_v60 = vpop.f32.mrf.mxu1 }
 0x16e   : > { %v2325_v15 = vadd.f32 %v2324_v7, %v2306_v13  ;;  %v2289_v33 = vadd.f32 %v2288_v60, %v2269_v57  ;;  %v320_v7 = vld [vmem:[#allocation2 + $0x78] sm:$0xff] }
 0x173   : > { %v2307_v62 = vpop.f32.mrf.mxu2 }
 0x174   : > { %v2272_v61 = vpop.f32.mrf.mxu0  ;;  %v2308_v43 = vadd.f32 %v2307_v62, %v2289_v33 }
 0x175   : > { %v2326_v63 = vpop.f32.mrf.mxu3  ;;  %v2291_v2 = vpop.f32.mrf.mxu1 }
 0x176   : > { %v2327_v20 = vadd.f32 %v2326_v63, %v2308_v43  ;;  %v2292_v17 = vadd.f32 %v2291_v2, %v2272_v61 }
 0x17b   : > { %v2310_v3 = vpop.f32.mrf.mxu2 }
 0x17c   : > { %v2274_v9 = vpop.f32.mrf.mxu0  ;;  %v2311_v48 = vadd.f32 %v2310_v3, %v2292_v17 }
 0x17d   : > { %v2329_v4 = vpop.f32.mrf.mxu3  ;;  %v2293_v11 = vpop.f32.mrf.mxu1 }
 0x17e   : > { %v2330_v28 = vadd.f32 %v2329_v4, %v2311_v48  ;;  %v2294_v41 = vadd.f32 %v2293_v11, %v2274_v9 }
 0x183   : > { %v2312_v34 = vpop.f32.mrf.mxu2 }
 0x184   : > { %v2343_v35 = vpop.f32.mrf.mxu0  ;;  %v2313_v45 = vadd.f32 %v2312_v34, %v2294_v41 }
 0x185   : > { %v2331_v59 = vpop.f32.mrf.mxu3  ;;  %v2362_v32 = vpop.f32.mrf.mxu1  ;;  %v2344_v10 = vadd.f32 %v2343_v35, %v2325_v15 }
 0x186   : > { %v2332_v50 = vadd.f32 %v2331_v59, %v2313_v45 }
 0x187   : > { %v2363_v58 = vadd.f32 %v2362_v32, %v2344_v10 }
 0x18b   : > { %v2381_v16 = vpop.f32.mrf.mxu2 }
 0x18c   : > { %v2382_v47 = vadd.f32 %v2381_v16, %v2363_v58  ;;  %v2345_v0 = vpop.f32.mrf.mxu0 }
 0x18d   : > { %v2400_v19 = vpop.f32.mrf.mxu3  ;;  %v2364_v42 = vpop.f32.mrf.mxu1  ;;  %v2346_v24 = vadd.f32 %v2345_v0, %v2327_v20 }
 0x18e   : > { %v2401_v18 = vadd.f32 %v2400_v19, %v2382_v47 }
 0x18f   : > { %v2365_v52 = vadd.f32 %v2364_v42, %v2346_v24  ;;  %v309_v24 = vld [vmem:[#allocation2 + $0x18] sm:$0xff] }
 0x190   : > { %v2564_v22 = vadd.f32 %v2401_v18, %v308_v21 }
 0x192   : > { %2580 = vst [vmem:[#allocation2 + $0x58] sm:$0xff] %v2564_v22 }
 0x193   : > { %v2383_v23 = vpop.f32.mrf.mxu2 }
 0x194   : > { %v2384_v36 = vadd.f32 %v2383_v23, %v2365_v52  ;;  %v2348_v37 = vpop.f32.mrf.mxu0 }
 0x195   : > { %v2402_v27 = vpop.f32.mrf.mxu3  ;;  %v2367_v39 = vpop.f32.mrf.mxu1  ;;  %v2349_v38 = vadd.f32 %v2348_v37, %v2330_v28 }
 0x196   : > { %v2403_v44 = vadd.f32 %v2402_v27, %v2384_v36 }
 0x197   : > { %v2368_v49 = vadd.f32 %v2367_v39, %v2349_v38  ;;  %v313_v38 = vld [vmem:[#allocation2 + $0x48] sm:$0xff] }
 0x198   : > { %v2568_v46 = vadd.f32 %v2403_v44, %v312_v5 }
 0x19a   : > { %2584 = vst [vmem:[#allocation2 + $0x8] sm:$0xff] %v2568_v46 }
 0x19b   : > { %v2386_v8 = vpop.f32.mrf.mxu2 }
 0x19c   : > { %v2387_v29 = vadd.f32 %v2386_v8, %v2368_v49  ;;  %v2350_v51 = vpop.f32.mrf.mxu0 }
 0x19d   : > { %v2405_v14 = vpop.f32.mrf.mxu3  ;;  %v2369_v25 = vpop.f32.mrf.mxu1  ;;  %v2351_v54 = vadd.f32 %v2350_v51, %v2332_v50 }
 0x19e   : > { %v2406_v53 = vadd.f32 %v2405_v14, %v2387_v29 }
 0x19f   : > { %v2370_v30 = vadd.f32 %v2369_v25, %v2351_v54 }
 0x1a0   : > { %v2572_v1 = vadd.f32 %v2406_v53, %v316_v26 }
 0x1a2   : > { %2588 = vst [vmem:[#allocation2 + $0x10] sm:$0xff] %v2572_v1  ;;  %v317_v1 = vld [vmem:[#allocation2 + $0x38] sm:$0xff] }
 0x1a3   : > { %v2388_v55 = vpop.f32.mrf.mxu2 }
 0x1a4   : > { %v2389_v6 = vadd.f32 %v2388_v55, %v2370_v30  ;;  %v2419_v40 = vpop.f32.mrf.mxu0 }
 0x1a5   : > { %v2407_v31 = vpop.f32.mrf.mxu3  ;;  %v2438_v56 = vpop.f32.mrf.mxu1 }
 0x1a6   : > { %v2408_v57 = vadd.f32 %v2407_v31, %v2389_v6  ;;  %v2439_v15 = vadd.f32 %v2438_v56, %v2419_v40 }
 0x1a8   : > { %v2576_v60 = vadd.f32 %v2408_v57, %v320_v7  ;;  %v321_v57 = vld [vmem:[#allocation2 + $0x28] sm:$0xff] }
 0x1aa   : > { %2592 = vst [vmem:[#allocation2 + $0x78] sm:$0xff] %v2576_v60 }
 0x1ab   : > { %v2457_v62 = vpop.f32.mrf.mxu2 }
 0x1ac   : > { %v2421_v61 = vpop.f32.mrf.mxu0  ;;  %v2458_v35 = vadd.f32 %v2457_v62, %v2439_v15 }
 0x1ad   : > { %v2476_v63 = vpop.f32.mrf.mxu3  ;;  %v2440_v2 = vpop.f32.mrf.mxu1 }
 0x1ae   : > { %v2477_v10 = vadd.f32 %v2476_v63, %v2458_v35  ;;  %v2441_v16 = vadd.f32 %v2440_v2, %v2421_v61 }
 0x1b3   : > { %v2459_v3 = vpop.f32.mrf.mxu2 }
 0x1b4   : > { %v2424_v9 = vpop.f32.mrf.mxu0  ;;  %v2460_v20 = vadd.f32 %v2459_v3, %v2441_v16 }
 0x1b5   : > { %v2478_v4 = vpop.f32.mrf.mxu3  ;;  %v2443_v11 = vpop.f32.mrf.mxu1 }
 0x1b6   : > { %v2479_v21 = vadd.f32 %v2478_v4, %v2460_v20  ;;  %v2444_v22 = vadd.f32 %v2443_v11, %v2424_v9 }
 0x1bb   : > { %v2462_v12 = vpop.f32.mrf.mxu2 }
 0x1bc   : > { %v2426_v34 = vpop.f32.mrf.mxu0  ;;  %v2463_v27 = vadd.f32 %v2462_v12, %v2444_v22 }
 0x1bd   : > { %v2481_v13 = vpop.f32.mrf.mxu3  ;;  %v2445_v59 = vpop.f32.mrf.mxu1 }
 0x1be   : > { %v2482_v5 = vadd.f32 %v2481_v13, %v2463_v27  ;;  %v2446_v45 = vadd.f32 %v2445_v59, %v2426_v34 }
 0x1c3   : > { %v2464_v32 = vpop.f32.mrf.mxu2 }
 0x1c4   : > { %v2495_v43 = vpop.f32.mrf.mxu0  ;;  %v2465_v14 = vadd.f32 %v2464_v32, %v2446_v45 }
 0x1c5   : > { %v2483_v33 = vpop.f32.mrf.mxu3  ;;  %v2514_v58 = vpop.f32.mrf.mxu1  ;;  %v2496_v19 = vadd.f32 %v2495_v43, %v2477_v10 }
 0x1c6   : > { %v2484_v26 = vadd.f32 %v2483_v33, %v2465_v14 }
 0x1c7   : > { %v2515_v47 = vadd.f32 %v2514_v58, %v2496_v19 }
 0x1cb   : > { %v2533_v0 = vpop.f32.mrf.mxu2 }
 0x1cc   : > { %v2534_v17 = vadd.f32 %v2533_v0, %v2515_v47  ;;  %v2497_v18 = vpop.f32.mrf.mxu0 }
 0x1cd   : > { %v2552_v42 = vpop.f32.mrf.mxu3  ;;  %v2516_v48 = vpop.f32.mrf.mxu1  ;;  %v2498_v23 = vadd.f32 %v2497_v18, %v2479_v21 }
 0x1ce   : > { %v2553_v52 = vadd.f32 %v2552_v42, %v2534_v17 }
 0x1cf   : > { %v2517_v36 = vadd.f32 %v2516_v48, %v2498_v23 }
 0x1d0   : > { %v2565_v28 = vadd.f32 %v2553_v52, %v309_v24 }
 0x1d2   : > { %2581 = vst [vmem:[#allocation2 + $0x18] sm:$0xff] %v2565_v28 }
 0x1d3   : > { %v2535_v37 = vpop.f32.mrf.mxu2 }
 0x1d4   : > { %v2536_v41 = vadd.f32 %v2535_v37, %v2517_v36  ;;  %v2500_v44 = vpop.f32.mrf.mxu0 }
 0x1d5   : > { %v2554_v39 = vpop.f32.mrf.mxu3  ;;  %v2501_v49 = vadd.f32 %v2500_v44, %v2482_v5  ;;  %v2519_v8 = vpop.f32.mrf.mxu1 }
 0x1d6   : > { %v2555_v46 = vadd.f32 %v2554_v39, %v2536_v41 }
 0x1d7   : > { %v2520_v29 = vadd.f32 %v2519_v8, %v2501_v49 }
 0x1d8   : > { %v2569_v50 = vadd.f32 %v2555_v46, %v313_v38 }
 0x1da   : > { %2585 = vst [vmem:[#allocation2 + $0x48] sm:$0xff] %v2569_v50 }
 0x1db   : > { %v2538_v51 = vpop.f32.mrf.mxu2 }
 0x1dc   : > { %v2539_v53 = vadd.f32 %v2538_v51, %v2520_v29  ;;  %v2502_v54 = vpop.f32.mrf.mxu0 }
 0x1dd   : > { %v2557_v25 = vpop.f32.mrf.mxu3  ;;  %v2503_v55 = vadd.f32 %v2502_v54, %v2484_v26  ;;  %v2521_v6 = vpop.f32.mrf.mxu1 }
 0x1de   : > { %v2558_v30 = vadd.f32 %v2557_v25, %v2539_v53 }
 0x1df   : > { %v2522_v40 = vadd.f32 %v2521_v6, %v2503_v55 }
 0x1e0   : > { %v2573_v31 = vadd.f32 %v2558_v30, %v317_v1 }
 0x1e2   : > { %2589 = vst [vmem:[#allocation2 + $0x38] sm:$0xff] %v2573_v31 }
 0x1e3   : > { %v2540_v56 = vpop.f32.mrf.mxu2 }
 0x1e4   : > { %v2541_v7 = vadd.f32 %v2540_v56, %v2522_v40 }
 0x1e5   : > { %v2559_v60 = vpop.f32.mrf.mxu3 }
 0x1e6   : > { %v2560_v62 = vadd.f32 %v2559_v60, %v2541_v7  ;;  %2597 = sbr.rel (%p4160_p10) target bundleno = 760 (0x2f8), region = 71 }
 0x1e8   : > { %v2577_v63 = vadd.f32 %v2560_v62, %v321_v57 }
 0x1ea   : > { %2593 = vst [vmem:[#allocation2 + $0x28] sm:$0xff] %v2577_v63 }
 0x1eb   : > { %v2598_v61 = vld [vmem:[#allocation2 + $0x30] sm:$0xff]  ;;  %v2599_v2 = vld [vmem:[#allocation2] sm:$0xff]  ;;  %v2600_v3 = vld [vmem:[#allocation2 + $0x58] sm:$0xff] }
 0x1ec   : > { %v2601_v4 = vld [vmem:[#allocation2 + $0x18] sm:$0xff]  ;;  %v2602_v9 = vld [vmem:[#allocation2 + $0x50] sm:$0xff]  ;;  %v2603_v11 = vld [vmem:[#allocation2 + $0x68] sm:$0xff] }
 0x1ed   : > { %v2604_v12 = vld [vmem:[#allocation2 + $0x8] sm:$0xff]  ;;  %v2606_v34 = vld [vmem:[#allocation2 + $0x40] sm:$0xff]  ;;  %v2614_v59 = vadd.f32 %v2602_v9, %v2598_v61  ;;  %v2623_v15 = vadd.f32 %v2603_v11, %v2599_v2  ;;  %v2608_v32 = vld [vmem:[#allocation2 + $0x10] sm:$0xff] }
 0x1ee   : > { %v2605_v13 = vld [vmem:[#allocation2 + $0x48] sm:$0xff]  ;;  %v2607_v35 = vld [vmem:[#allocation2 + $0x20] sm:$0xff]  ;;  %v2609_v33 = vld [vmem:[#allocation2 + $0x38] sm:$0xff]  ;;  %v2632_v10 = vadd.f32 %v2604_v12, %v2600_v3 }
 0x1ef   : > { %v2641_v43 = vadd.f32 %v2605_v13, %v2601_v4  ;;  %v2610_v58 = vld [vmem:[#allocation2 + $0x60] sm:$0xff]  ;;  %v2611_v16 = vld [vmem:[#allocation2 + $0x70] sm:$0xff]  ;;  %v2612_v19 = vld [vmem:[#allocation2 + $0x78] sm:$0xff]  ;;  %v2615_v20 = vadd.f32 %v2614_v59, %v2606_v34  ;;  %v2624_v47 = vadd.f32 %v2623_v15, %v2607_v35 }
 0x1f0   : > { %v2633_v42 = vadd.f32 %v2632_v10, %v2608_v32 }
 0x1f1   : > { %v2613_v0 = vld [vmem:[#allocation2 + $0x28] sm:$0xff]  ;;  %v2642_v21 = vadd.f32 %v2641_v43, %v2609_v33  ;;  %v2616_v17 = vadd.f32 %v2615_v20, %v2610_v58  ;;  %v2625_v18 = vadd.f32 %v2624_v47, %v2611_v16 }
 0x1f2   : > { %v2634_v24 = vadd.f32 %v2633_v42, %v2612_v19 }
 0x1f3   : > { %v2643_v48 = vadd.f32 %v2642_v21, %v2613_v0  ;;  %v2617_v22 = vrot.slane %v2616_v17, 4  ;;  %v2626_v52 = vrot.slane %v2625_v18, 4 }
 0x1f4   : > { %v2635_v23 = vrot.slane %v2634_v24, 4 }
 0x1f5   : > { %v2644_v27 = vrot.slane %v2643_v48, 4  ;;  %v2618_v28 = vadd.f32 %v2617_v22, %v2616_v17  ;;  %v2627_v36 = vadd.f32 %v2626_v52, %v2625_v18 }
 0x1f6   : > { %v2636_v37 = vadd.f32 %v2635_v23, %v2634_v24 }
 0x1f7   : > { %v2645_v39 = vadd.f32 %v2644_v27, %v2643_v48  ;;  %v2619_v5 = vrot.slane %v2618_v28, 2  ;;  %v2628_v41 = vrot.slane %v2627_v36, 2 }
 0x1f8   : > { %v2637_v44 = vrot.slane %v2636_v37, 2 }
 0x1f9   : > { %v2646_v38 = vrot.slane %v2645_v39, 2  ;;  %v2620_v45 = vadd.f32 %v2619_v5, %v2618_v28  ;;  %v2629_v46 = vadd.f32 %v2628_v41, %v2627_v36 }
 0x1fa   : > { %v2638_v49 = vadd.f32 %v2637_v44, %v2636_v37 }
 0x1fb   : > { %v2647_v8 = vadd.f32 %v2646_v38, %v2645_v39  ;;  %v2621_v14 = vrot.slane %v2620_v45, 1  ;;  %v2630_v50 = vrot.slane %v2629_v46, 1 }
 0x1fc   : > { %v2639_v29 = vrot.slane %v2638_v49, 1 }
 0x1fd   : > { %v2648_v51 = vrot.slane %v2647_v8, 1  ;;  %v2622_v25 = vadd.f32 %v2621_v14, %v2620_v45  ;;  %v2631_v26 = vadd.f32 %v2630_v50, %v2629_v46 }
 0x1fe   : > { %v2640_v53 = vadd.f32 %v2639_v29, %v2638_v49 }
 0x1ff   : > { %v2649_v54 = vadd.f32 %v2648_v51, %v2647_v8  ;;  %v2650_v1 = vmul.f32 0.03125, %v2622_v25  ;;  %v2651_v30 = vmul.f32 0.03125, %v2631_v26 }
 0x200   : > { %v2652_v55 = vmul.f32 0.03125, %v2640_v53 }
 0x201   : > { %v2653_v31 = vmul.f32 0.03125, %v2649_v54  ;;  %v5302_v6 = vsub.f32 %v2598_v61, %v2650_v1  ;;  %v5304_v40 = vsub.f32 %v2599_v2, %v2651_v30  ;;  %v5306_v56 = vsub.f32 %v2602_v9, %v2650_v1 }
 0x202   : > { %v5308_v7 = vsub.f32 %v2603_v11, %v2651_v30  ;;  %v5310_v57 = vsub.f32 %v2600_v3, %v2652_v55  ;;  %v5314_v62 = vsub.f32 %v2604_v12, %v2652_v55  ;;  %v5318_v59 = vsub.f32 %v2606_v34, %v2650_v1 }
 0x203   : > { %v5312_v60 = vsub.f32 %v2601_v4, %v2653_v31  ;;  %v5316_v63 = vsub.f32 %v2605_v13, %v2653_v31  ;;  %v5320_v15 = vsub.f32 %v2607_v35, %v2651_v30  ;;  %v5322_v61 = vsub.f32 %v2608_v32, %v2652_v55 }
 0x204   : > { %v5324_v2 = vsub.f32 %v2609_v33, %v2653_v31  ;;  %v5326_v9 = vsub.f32 %v2610_v58, %v2650_v1  ;;  %v5328_v11 = vsub.f32 %v2611_v16, %v2651_v30  ;;  %v5330_v3 = vsub.f32 %v2612_v19, %v2652_v55 }
 0x205   : > { %v5332_v4 = vsub.f32 %v2613_v0, %v2653_v31  ;;  %v2670_v12 = vmul.f32 %v5302_v6, %v5302_v6  ;;  %v2671_v13 = vmul.f32 %v5304_v40, %v5304_v40  ;;  %v2672_v34 = vmul.f32 %v5310_v57, %v5310_v57 }
 0x206   : > { %v2673_v35 = vmul.f32 %v5312_v60, %v5312_v60  ;;  %v2674_v32 = vmul.f32 %v5306_v56, %v5306_v56  ;;  %v2675_v33 = vmul.f32 %v5308_v7, %v5308_v7  ;;  %v2676_v10 = vmul.f32 %v5314_v62, %v5314_v62 }
 0x207   : > { %v2677_v43 = vmul.f32 %v5316_v63, %v5316_v63  ;;  %v2678_v58 = vmul.f32 %v5318_v59, %v5318_v59  ;;  %v2679_v16 = vmul.f32 %v5320_v15, %v5320_v15  ;;  %v2680_v19 = vmul.f32 %v5322_v61, %v5322_v61 }
 0x208   : > { %v2681_v20 = vmul.f32 %v5324_v2, %v5324_v2  ;;  %v2682_v47 = vmul.f32 %v5326_v9, %v5326_v9  ;;  %v2683_v0 = vmul.f32 %v5328_v11, %v5328_v11  ;;  %v2684_v42 = vmul.f32 %v5330_v3, %v5330_v3 }
 0x209   : > { %v2685_v21 = vmul.f32 %v5332_v4, %v5332_v4  ;;  %v2686_v17 = vadd.f32 %v2674_v32, %v2670_v12  ;;  %v2695_v18 = vadd.f32 %v2675_v33, %v2671_v13  ;;  %v2704_v24 = vadd.f32 %v2676_v10, %v2672_v34 }
 0x20a   : > { %v2713_v48 = vadd.f32 %v2677_v43, %v2673_v35 }
 0x20b   : > { %v2687_v22 = vadd.f32 %v2686_v17, %v2678_v58  ;;  %v2696_v52 = vadd.f32 %v2695_v18, %v2679_v16  ;;  %v2705_v23 = vadd.f32 %v2704_v24, %v2680_v19 }
 0x20c   : > { %v2714_v27 = vadd.f32 %v2713_v48, %v2681_v20 }
 0x20d   : > { %v2688_v28 = vadd.f32 %v2687_v22, %v2682_v47  ;;  %v2697_v36 = vadd.f32 %v2696_v52, %v2683_v0  ;;  %v2706_v37 = vadd.f32 %v2705_v23, %v2684_v42 }
 0x20e   : > { %v2715_v39 = vadd.f32 %v2714_v27, %v2685_v21  ;;  %v2786_v21 = vld [vmem:[%s5455_s2] sm:$0xf] }
 0x20f   : > { %v2689_v5 = vrot.slane %v2688_v28, 4  ;;  %v2698_v41 = vrot.slane %v2697_v36, 4  ;;  %v2707_v44 = vrot.slane %v2706_v37, 4  ;;  %v5369_v27 = vperm.slane %v2786_v21, 0 }
 0x210   : > { %v2716_v38 = vrot.slane %v2715_v39, 4 }
 0x211   : > { %v2690_v45 = vadd.f32 %v2689_v5, %v2688_v28  ;;  %v2699_v46 = vadd.f32 %v2698_v41, %v2697_v36  ;;  %v2708_v49 = vadd.f32 %v2707_v44, %v2706_v37  ;;  %v5371_v28 = vperm.slane %v2786_v21, 1 }
 0x212   : > { %v2717_v8 = vadd.f32 %v2716_v38, %v2715_v39  ;;  %v2812_v38 = vld [vmem:[%s5456_s3] sm:$0xf] }
 0x213   : > { %v2691_v14 = vrot.slane %v2690_v45, 2  ;;  %v2700_v50 = vrot.slane %v2699_v46, 2  ;;  %v2709_v29 = vrot.slane %v2708_v49, 2 }
 0x214   : > { %v2718_v51 = vrot.slane %v2717_v8, 2 }
 0x215   : > { %v2692_v25 = vadd.f32 %v2691_v14, %v2690_v45  ;;  %v2701_v26 = vadd.f32 %v2700_v50, %v2699_v46  ;;  %v2710_v53 = vadd.f32 %v2709_v29, %v2708_v49  ;;  %v2790_v14 = vperm.slane %v2786_v21, 2 }
 0x216   : > { %v2719_v54 = vadd.f32 %v2718_v51, %v2717_v8  ;;  %v2791_v50 = vperm.slane %v2786_v21, 3 }
 0x217   : > { %v2693_v1 = vrot.slane %v2692_v25, 1  ;;  %v2702_v30 = vrot.slane %v2701_v26, 1  ;;  %v2711_v55 = vrot.slane %v2710_v53, 1 }
 0x218   : > { %v2720_v31 = vrot.slane %v2719_v54, 1 }
 0x219   : > { %v2694_v12 = vadd.f32 %v2693_v1, %v2692_v25  ;;  %v2703_v13 = vadd.f32 %v2702_v30, %v2701_v26  ;;  %v2712_v34 = vadd.f32 %v2711_v55, %v2710_v53  ;;  %v2814_v25 = vperm.slane %v2812_v38, 0 }
 0x21a   : > { %v2721_v35 = vadd.f32 %v2720_v31, %v2719_v54  ;;  %v2815_v26 = vperm.slane %v2812_v38, 1  ;;  %v2816_v1 = vperm.slane %v2812_v38, 2  ;;  %v2817_v30 = vperm.slane %v2812_v38, 3 }
 0x21b   : > { %v2722_v32 = vmul.f32 0.03125, %v2694_v12  ;;  %v2723_v33 = vmul.f32 0.03125, %v2703_v13  ;;  %v2724_v10 = vmul.f32 0.03125, %v2712_v34 }
 0x21c   : > { %v2725_v43 = vmul.f32 0.03125, %v2721_v35 }
 0x21d   : > { %v2726_v58 = vadd.f32 1e-05, %v2722_v32  ;;  %v2727_v16 = vadd.f32 1e-05, %v2723_v33  ;;  %v2728_v19 = vadd.f32 1e-05, %v2724_v10 }
 0x21e   : > { %v2729_v20 = vadd.f32 1e-05, %v2725_v43 }
 0x21f   : > { %4462 = vrsqrt.f32 %v2726_v58  ;;  %vm2736_vm0 = vweird.f32 %v2726_v58  ;;  %vm2746_vm2 = vweird.f32 %v2727_v16  ;;  %vm2756_vm4 = vweird.f32 %v2728_v19 }
 0x220   : > { %4464 = vrsqrt.f32 %v2727_v16  ;;  %vm2766_vm7 = vweird.f32 %v2729_v20 }
 0x221   : > { %4466 = vrsqrt.f32 %v2728_v19 }
 0x222   : > { %4468 = vrsqrt.f32 %v2729_v20 }
 0x225   : > { %v4463_v47 = vpop.eup %4462 }
 0x226   : > { %v4465_v0 = vpop.eup %4464  ;;  %v2731_v42 = vmul.f32 %v4463_v47, %v2726_v58  ;;  %vm2737_vm1 = vweird.f32 %v4463_v47 }
 0x227   : > { %v4467_v17 = vpop.eup %4466  ;;  %v2741_v18 = vmul.f32 %v4465_v0, %v2727_v16  ;;  %vm2747_vm3 = vweird.f32 %v4465_v0  ;;  %vm2738_vm6 = vmor %vm2736_vm0, %vm2737_vm1 }
 0x228   : > { %v4469_v24 = vpop.eup %4468  ;;  %v2732_v48 = vmul.f32 %v4463_v47, %v2731_v42  ;;  %v2751_v22 = vmul.f32 %v4467_v17, %v2728_v19  ;;  %vm2757_vm5 = vweird.f32 %v4467_v17  ;;  %vm2748_vm9 = vmor %vm2746_vm2, %vm2747_vm3 }
 0x229   : > { %v2742_v52 = vmul.f32 %v4465_v0, %v2741_v18  ;;  %v2761_v23 = vmul.f32 %v4469_v24, %v2729_v20  ;;  %vm2767_vm8 = vweird.f32 %v4469_v24  ;;  %vm2758_vm10 = vmor %vm2756_vm4, %vm2757_vm5 }
 0x22a   : > { %v2733_v36 = vmul.f32 0.5, %v2732_v48  ;;  %v2752_v37 = vmul.f32 %v4467_v17, %v2751_v22  ;;  %vm2768_vm11 = vmor %vm2766_vm7, %vm2767_vm8 }
 0x22b   : > { %v2743_v39 = vmul.f32 0.5, %v2742_v52  ;;  %v2762_v5 = vmul.f32 %v4469_v24, %v2761_v23 }
 0x22c   : > { %v2734_v41 = vsub.f32 1.5, %v2733_v36  ;;  %v2753_v44 = vmul.f32 0.5, %v2752_v37 }
 0x22d   : > { %v2744_v45 = vsub.f32 1.5, %v2743_v39  ;;  %v2763_v46 = vmul.f32 0.5, %v2762_v5 }
 0x22e   : > { %v2735_v49 = vmul.f32 %v4463_v47, %v2734_v41  ;;  %v2754_v8 = vsub.f32 1.5, %v2753_v44 }
 0x22f   : > { %v2745_v29 = vmul.f32 %v4465_v0, %v2744_v45  ;;  %v2764_v51 = vsub.f32 1.5, %v2763_v46 }
 0x230   : > { %v2739_v53 = vsel %vm2738_vm6, %v4463_v47, %v2735_v49  ;;  %v2755_v54 = vmul.f32 %v4467_v17, %v2754_v8 }
 0x231   : > { %v2749_v55 = vsel %vm2748_vm9, %v4465_v0, %v2745_v29  ;;  %v2765_v31 = vmul.f32 %v4469_v24, %v2764_v51  ;;  %v2770_v12 = vmul.f32 %v2739_v53, %v5302_v6  ;;  %v2774_v13 = vmul.f32 %v2739_v53, %v5306_v56 }
 0x232   : > { %v2759_v34 = vsel %vm2758_vm10, %v4467_v17, %v2755_v54  ;;  %v2771_v35 = vmul.f32 %v2749_v55, %v5304_v40  ;;  %v2775_v32 = vmul.f32 %v2749_v55, %v5308_v7  ;;  %v2778_v33 = vmul.f32 %v2739_v53, %v5318_v59 }
 0x233   : > { %v2769_v10 = vsel %vm2768_vm11, %v4469_v24, %v2765_v31  ;;  %v2772_v43 = vmul.f32 %v2759_v34, %v5310_v57  ;;  %v2776_v58 = vmul.f32 %v2759_v34, %v5314_v62  ;;  %v2779_v16 = vmul.f32 %v2749_v55, %v5320_v15 }
 0x234   : > { %v2773_v19 = vmul.f32 %v2769_v10, %v5312_v60  ;;  %v2777_v6 = vmul.f32 %v2769_v10, %v5316_v63  ;;  %v2780_v56 = vmul.f32 %v2759_v34, %v5322_v61  ;;  %v2781_v20 = vmul.f32 %v2769_v10, %v5324_v2 }
 0x235   : > { %v2782_v40 = vmul.f32 %v2739_v53, %v5326_v9  ;;  %v2783_v7 = vmul.f32 %v2749_v55, %v5328_v11  ;;  %v2784_v59 = vmul.f32 %v2759_v34, %v5330_v3  ;;  %v2785_v57 = vmul.f32 %v2769_v10, %v5332_v4 }
 0x236   : > { %v2796_v62 = vmul.f32 %v5369_v27, %v2770_v12  ;;  %v2797_v15 = vmul.f32 %v5371_v28, %v2771_v35  ;;  %v2798_v47 = vmul.f32 %v2790_v14, %v2772_v43  ;;  %v2799_v60 = vmul.f32 %v2791_v50, %v2773_v19  ;;  %v2888_v19 = vld [vmem:[%s5457_s4 + $0x10] sm:$0xff] }
 0x237   : > { %v2800_v63 = vmul.f32 %v5369_v27, %v2774_v13  ;;  %v2801_v61 = vmul.f32 %v5371_v28, %v2775_v32  ;;  %v2802_v0 = vmul.f32 %v2790_v14, %v2776_v58  ;;  %v2803_v2 = vmul.f32 %v2791_v50, %v2777_v6  ;;  %v2886_v58 = vld [vmem:[%s5457_s4] sm:$0xff] }
 0x238   : > { %v2804_v9 = vmul.f32 %v5369_v27, %v2778_v33  ;;  %v2805_v11 = vmul.f32 %v5371_v28, %v2779_v16  ;;  %v2806_v42 = vmul.f32 %v2790_v14, %v2780_v56  ;;  %v2807_v3 = vmul.f32 %v2791_v50, %v2781_v20  ;;  %v2887_v16 = vld [vmem:[%s5457_s4 + $0x8] sm:$0xff] }
 0x239   : > { %v2808_v4 = vmul.f32 %v5369_v27, %v2782_v40  ;;  %v2809_v21 = vmul.f32 %v5371_v28, %v2783_v7  ;;  %v2810_v17 = vmul.f32 %v2790_v14, %v2784_v59  ;;  %v2811_v18 = vmul.f32 %v2791_v50, %v2785_v57  ;;  %v2889_v7 = vld [vmem:[%s5457_s4 + $0x18] sm:$0xff]  ;;  %v2890_v59 = vld [vmem:[%s5457_s4 + $0x20] sm:$0xff]  ;;  %v2891_v57 = vld [vmem:[%s5457_s4 + $0x28] sm:$0xff] }
 0x23a   : > { %v2822_v24 = vadd.f32 %v2814_v25, %v2796_v62  ;;  %v2823_v48 = vadd.f32 %v2815_v26, %v2797_v15  ;;  %v2824_v22 = vadd.f32 %v2816_v1, %v2798_v47  ;;  %v2825_v52 = vadd.f32 %v2817_v30, %v2799_v60 }
 0x23b   : > { %v2826_v23 = vadd.f32 %v2814_v25, %v2800_v63  ;;  %v2827_v36 = vadd.f32 %v2815_v26, %v2801_v61  ;;  %v2828_v37 = vadd.f32 %v2816_v1, %v2802_v0  ;;  %v2829_v39 = vadd.f32 %v2817_v30, %v2803_v2  ;;  %v2892_v63 = vld [vmem:[%s5457_s4 + $0x30] sm:$0xff]  ;;  %v2893_v61 = vld [vmem:[%s5457_s4 + $0x38] sm:$0xff] }
 0x23c   : > { %v2830_v5 = vadd.f32 %v2814_v25, %v2804_v9  ;;  %v2831_v41 = vadd.f32 %v2815_v26, %v2805_v11  ;;  %v2832_v44 = vadd.f32 %v2816_v1, %v2806_v42  ;;  %v2833_v38 = vadd.f32 %v2817_v30, %v2807_v3 }
 0x23d   : > { %v2834_v45 = vadd.f32 %v2814_v25, %v2808_v4  ;;  %v2835_v46 = vadd.f32 %v2815_v26, %v2809_v21  ;;  %v2836_v49 = vadd.f32 %v2816_v1, %v2810_v17  ;;  %v2837_v27 = vadd.f32 %v2817_v30, %v2811_v18 }
 0x23e   : > { %vm2838_vm12 = vcmp.ge.f32.partialorder %v2822_v24, 0.0  ;;  %vm2839_vm13 = vcmp.ge.f32.partialorder %v2823_v48, 0.0  ;;  %vm2840_vm14 = vcmp.ge.f32.partialorder %v2824_v22, 0.0  ;;  %vm2841_vm15 = vcmp.ge.f32.partialorder %v2825_v52, 0.0 }
 0x23f   : > { %vm2842_vm0 = vcmp.ge.f32.partialorder %v2826_v23, 0.0  ;;  %vm2843_vm1 = vcmp.ge.f32.partialorder %v2827_v36, 0.0  ;;  %vm2844_vm2 = vcmp.ge.f32.partialorder %v2828_v37, 0.0  ;;  %vm2845_vm3 = vcmp.ge.f32.partialorder %v2829_v39, 0.0 }
 0x240   : > { %vm2846_vm4 = vcmp.ge.f32.partialorder %v2830_v5, 0.0  ;;  %vm2847_vm5 = vcmp.ge.f32.partialorder %v2831_v41, 0.0  ;;  %vm2848_vm6 = vcmp.ge.f32.partialorder %v2832_v44, 0.0  ;;  %vm2849_vm7 = vcmp.ge.f32.partialorder %v2833_v38, 0.0 }
 0x241   : > { %vm2850_vm8 = vcmp.ge.f32.partialorder %v2834_v45, 0.0  ;;  %vm2851_vm9 = vcmp.ge.f32.partialorder %v2835_v46, 0.0  ;;  %vm2852_vm10 = vcmp.ge.f32.partialorder %v2836_v49, 0.0  ;;  %vm2853_vm11 = vcmp.ge.f32.partialorder %v2837_v27, 0.0 }
 0x242   : > { %v2854_v28 = vmul.f32 0.2, %v2822_v24  ;;  %v2855_v8 = vmul.f32 0.2, %v2823_v48  ;;  %v2856_v14 = vmul.f32 0.2, %v2824_v22 }
 0x243   : > { %v2857_v50 = vmul.f32 0.2, %v2825_v52  ;;  %v2858_v29 = vmul.f32 0.2, %v2826_v23  ;;  %v2859_v51 = vmul.f32 0.2, %v2827_v36 }
 0x244   : > { %v2860_v25 = vmul.f32 0.2, %v2828_v37  ;;  %v2861_v26 = vmul.f32 0.2, %v2829_v39  ;;  %v2862_v53 = vmul.f32 0.2, %v2830_v5  ;;  %v2870_v54 = vsel %vm2838_vm12, %v2822_v24, %v2854_v28 }
 0x245   : > { %v2863_v1 = vmul.f32 0.2, %v2831_v41  ;;  %v2864_v30 = vmul.f32 0.2, %v2832_v44  ;;  %v2865_v55 = vmul.f32 0.2, %v2833_v38  ;;  %v2871_v31 = vsel %vm2839_vm13, %v2823_v48, %v2855_v8 }
 0x246   : > { %v2866_v12 = vmul.f32 0.2, %v2834_v45  ;;  %v2867_v13 = vmul.f32 0.2, %v2835_v46  ;;  %v2868_v34 = vmul.f32 0.2, %v2836_v49  ;;  %v2872_v35 = vsel %vm2840_vm14, %v2824_v22, %v2856_v14 }
 0x247   : > { %v2869_v32 = vmul.f32 0.2, %v2837_v27  ;;  %v2873_v33 = vsel %vm2841_vm15, %v2825_v52, %v2857_v50  ;;  %v2874_v10 = vsel %vm2842_vm0, %v2826_v23, %v2858_v29  ;;  %v2875_v43 = vsel %vm2843_vm1, %v2827_v36, %v2859_v51 }
 0x248   : > { %v2876_v6 = vsel %vm2844_vm2, %v2828_v37, %v2860_v25  ;;  %v2877_v56 = vsel %vm2845_vm3, %v2829_v39, %v2861_v26  ;;  %v2878_v20 = vsel %vm2846_vm4, %v2830_v5, %v2862_v53  ;;  %v2879_v40 = vsel %vm2847_vm5, %v2831_v41, %v2863_v1 }
 0x249   : > { %v2880_v62 = vsel %vm2848_vm6, %v2832_v44, %v2864_v30  ;;  %v2881_v15 = vsel %vm2849_vm7, %v2833_v38, %v2865_v55  ;;  %v2882_v47 = vsel %vm2850_vm8, %v2834_v45, %v2866_v12  ;;  %v2883_v60 = vsel %vm2851_vm9, %v2835_v46, %v2867_v13 }
 0x24a   : > { %v2884_v0 = vsel %vm2852_vm10, %v2836_v49, %v2868_v34  ;;  %v2885_v2 = vsel %vm2853_vm11, %v2837_v27, %v2869_v32  ;;  %v2894_v9 = vmul.f32 %v2886_v58, %v2870_v54  ;;  %v2895_v11 = vmul.f32 %v2887_v16, %v2871_v31 }
 0x24b   : > { %v2896_v42 = vmul.f32 %v2888_v19, %v2872_v35  ;;  %v2897_v3 = vmul.f32 %v2889_v7, %v2873_v33  ;;  %v2898_v4 = vmul.f32 %v2890_v59, %v2874_v10  ;;  %v2899_v21 = vmul.f32 %v2891_v57, %v2875_v43 }
 0x24c   : > { %v2900_v17 = vmul.f32 %v2892_v63, %v2876_v6  ;;  %v2901_v18 = vmul.f32 %v2893_v61, %v2877_v56  ;;  %v2902_v24 = vmul.f32 %v2886_v58, %v2878_v20  ;;  %v2903_v48 = vmul.f32 %v2887_v16, %v2879_v40 }
 0x24d   : > { %v2904_v22 = vmul.f32 %v2888_v19, %v2880_v62  ;;  %v2905_v52 = vmul.f32 %v2889_v7, %v2881_v15  ;;  %v2906_v23 = vmul.f32 %v2890_v59, %v2882_v47  ;;  %v2907_v36 = vmul.f32 %v2891_v57, %v2883_v60 }
 0x24e   : > { %v2908_v37 = vmul.f32 %v2892_v63, %v2884_v0  ;;  %v2909_v39 = vmul.f32 %v2893_v61, %v2885_v2  ;;  %v2910_v5 = vadd.f32 %v2898_v4, %v2894_v9  ;;  %v2917_v41 = vadd.f32 %v2899_v21, %v2895_v11 }
 0x24f   : > { %v2924_v44 = vadd.f32 %v2900_v17, %v2896_v42  ;;  %v2931_v38 = vadd.f32 %v2901_v18, %v2897_v3  ;;  %v2938_v45 = vadd.f32 %v2906_v23, %v2902_v24  ;;  %v2945_v46 = vadd.f32 %v2907_v36, %v2903_v48 }
 0x250   : > { %v2911_v49 = vrot.slane %v2910_v5, 4  ;;  %v2918_v27 = vrot.slane %v2917_v41, 4  ;;  %v2952_v28 = vadd.f32 %v2908_v37, %v2904_v22  ;;  %v2959_v8 = vadd.f32 %v2909_v39, %v2905_v52 }
 0x251   : > { %v2925_v14 = vrot.slane %v2924_v44, 4  ;;  %v2932_v50 = vrot.slane %v2931_v38, 4  ;;  %v2939_v29 = vrot.slane %v2938_v45, 4  ;;  %v2946_v51 = vrot.slane %v2945_v46, 4 }
 0x252   : > { %v2912_v25 = vadd.f32 %v2911_v49, %v2910_v5  ;;  %v2919_v26 = vadd.f32 %v2918_v27, %v2917_v41  ;;  %v2953_v53 = vrot.slane %v2952_v28, 4  ;;  %v2960_v54 = vrot.slane %v2959_v8, 4 }
 0x253   : > { %v2926_v1 = vadd.f32 %v2925_v14, %v2924_v44  ;;  %v2933_v30 = vadd.f32 %v2932_v50, %v2931_v38  ;;  %v2940_v55 = vadd.f32 %v2939_v29, %v2938_v45  ;;  %v2947_v31 = vadd.f32 %v2946_v51, %v2945_v46 }
 0x254   : > { %v2913_v12 = vrot.slane %v2912_v25, 2  ;;  %v2920_v13 = vrot.slane %v2919_v26, 2  ;;  %v2954_v34 = vadd.f32 %v2953_v53, %v2952_v28  ;;  %v2961_v35 = vadd.f32 %v2960_v54, %v2959_v8 }
 0x255   : > { %v2927_v32 = vrot.slane %v2926_v1, 2  ;;  %v2934_v33 = vrot.slane %v2933_v30, 2  ;;  %v2941_v10 = vrot.slane %v2940_v55, 2  ;;  %v2948_v43 = vrot.slane %v2947_v31, 2 }
 0x256   : > { %v2914_v58 = vadd.f32 %v2913_v12, %v2912_v25  ;;  %v2921_v16 = vadd.f32 %v2920_v13, %v2919_v26  ;;  %v2955_v19 = vrot.slane %v2954_v34, 2  ;;  %v2962_v6 = vrot.slane %v2961_v35, 2 }
 0x257   : > { %v2928_v56 = vadd.f32 %v2927_v32, %v2926_v1  ;;  %v2935_v20 = vadd.f32 %v2934_v33, %v2933_v30  ;;  %v2942_v40 = vadd.f32 %v2941_v10, %v2940_v55  ;;  %v2949_v7 = vadd.f32 %v2948_v43, %v2947_v31 }
 0x258   : > { %v2915_v59 = vrot.slane %v2914_v58, 1  ;;  %v2922_v57 = vrot.slane %v2921_v16, 1  ;;  %v2956_v62 = vadd.f32 %v2955_v19, %v2954_v34  ;;  %v2963_v15 = vadd.f32 %v2962_v6, %v2961_v35 }
 0x259   : > { %v2929_v47 = vrot.slane %v2928_v56, 1  ;;  %v2936_v60 = vrot.slane %v2935_v20, 1  ;;  %v2943_v63 = vrot.slane %v2942_v40, 1  ;;  %v2950_v61 = vrot.slane %v2949_v7, 1 }
 0x25a   : > { %v2916_v0 = vadd.f32 %v2915_v59, %v2914_v58  ;;  %v2923_v2 = vadd.f32 %v2922_v57, %v2921_v16  ;;  %v2957_v9 = vrot.slane %v2956_v62, 1  ;;  %v2964_v11 = vrot.slane %v2963_v15, 1 }
 0x25b   : > { %v2930_v42 = vadd.f32 %v2929_v47, %v2928_v56  ;;  %v2937_v3 = vadd.f32 %v2936_v60, %v2935_v20  ;;  %v2944_v4 = vadd.f32 %v2943_v63, %v2942_v40  ;;  %v2951_v21 = vadd.f32 %v2950_v61, %v2949_v7 }
 0x25c   : > { %v2958_v17 = vadd.f32 %v2957_v9, %v2956_v62  ;;  %v2965_v18 = vadd.f32 %v2964_v11, %v2963_v15  ;;  %vm2974_vm12 = vcmask 1041409   ;;  %vm2983_vm13 = vcmask 1041408  }
 0x25d   : > { %v2975_v24 = vsel %vm2974_vm12, %v2944_v4, %v2916_v0  ;;  %v2976_v48 = vsel %vm2974_vm12, %v2951_v21, %v2923_v2  ;;  %vm3012_vm1 = vcmask 1024  }
 0x25e   : > { %v2977_v22 = vsel %vm2974_vm12, %v2958_v17, %v2930_v42  ;;  %v2978_v52 = vsel %vm2974_vm12, %v2965_v18, %v2937_v3  ;;  %v2984_v23 = vsel %vm2983_vm13, %v2975_v24, 0.0  ;;  %v2985_v36 = vsel %vm2983_vm13, %v2976_v48, 0.0 }
 0x25f   : > { %v2986_v37 = vadd.f32 %v2985_v36, %v2984_v23  ;;  %v2987_v39 = vsel %vm2983_vm13, %v2977_v22, 0.0  ;;  %v2989_v5 = vsel %vm2983_vm13, %v2978_v52, 0.0 }
 0x261   : > { %v2988_v41 = vadd.f32 %v2987_v39, %v2986_v37 }
 0x263   : > { %v2990_v44 = vadd.f32 %v2989_v5, %v2988_v41 }
 0x265   : > { %2991 = vadd.xlane.f32.xlu0 %v2990_v44 }
 0x2d8   : > { %v2992_v38 = vpop.xlane.xlu0 %2991 }
 0x2d9   : > { %v2993_v45 = vsub.f32 0.0, %v2992_v38 }
 0x2db   : > { %v2994_v46 = vmul.f32 1.442695, %v2993_v45 }
 0x2dd   : > { %4470 = vpow2.f32 %v2994_v46 }
 0x2e3   : > { %v4471_v49 = vpop.eup %4470 }
 0x2e4   : > { %v2996_v27 = vadd.f32 1.0, %v4471_v49 }
 0x2e6   : > { %4472 = vrcp.f32 %v2996_v27  ;;  %v3008_v50 = vand.u32 2147483648, %v2996_v27  ;;  %v3006_v51 = vand.u32 2147483647, %v2996_v27  ;;  %vm3002_vm15 = vweird.f32 %v2996_v27 }
 0x2e8   : > { %v3009_v26 = vor.u32 1.1754944e-38, %v3008_v50  ;;  %vm3007_vm2 = vcmp.eq.f32.partialorder %v3006_v51, 8.507059e+37 }
 0x2ec   : > { %v4473_v28 = vpop.eup %4472 }
 0x2ed   : > { %v2998_v8 = vmul.f32 %v4473_v28, %v2996_v27  ;;  %vm3003_vm14 = vweird.f32 %v4473_v28 }
 0x2ee   : > { %vm3004_vm0 = vmor %vm3002_vm15, %vm3003_vm14 }
 0x2ef   : > { %v2999_v14 = vsub.f32 1.0, %v2998_v8 }
 0x2f1   : > { %v3000_v29 = vmul.f32 %v4473_v28, %v2999_v14 }
 0x2f3   : > { %v3001_v25 = vadd.f32 %v4473_v28, %v3000_v29 }
 0x2f5   : > { %v3005_v53 = vsel %vm3004_vm0, %v4473_v28, %v3001_v25 }
 0x2f6   : > { %v3010_v54 = vsel %vm3007_vm2, %v3009_v26, %v3005_v53 }
 0x2f7   : > { %3013 = vst.msk [vmem:[%s5458_s5] sm:$0x3] %vm3012_vm1, %v3010_v54 }
 0x2f8 PF: > { %p12_p11 = scmp.ge.s32.totalorder %s4548_s22, 6   ;;  %s5459_s18 = smov %s4492_s19 }
 0x2f9   : > { %s5460_s19 = smov %s4557_s25  ;;  %s5461_s20 = smov %s4548_s22 }
 0x2fa   :  { %14 = sbr.rel (!%p12_p11) target bundleno = 2 (0x2), region = 105 }

</bundles_post_ra>
